<compile_context>
chip_gen: v7x
topology: tpu7x:2x2x1
jax: 0.10.0
libtpu: 0.0.40
codegen_flags: <defaults>
</compile_context>

<pallas_src>
import jax
import jax.numpy as jnp
from jax.experimental import pallas as pl
from jax.experimental.pallas import tpu as pltpu

INPUT_SIZE = 5
H1, H2, H3, H4, OUT = 1024, 128, 128, 128, 1
_LANE = 128


def _mlp_kernel(xT_ref,                    # (5, TB)      f32, batch on lanes
                w1_ref, b1_ref,            # (1024, 5)    bf16, (1024, 1) f32
                w2_ref, b2_ref,            # (128, 1024)  bf16, (128, 1)  f32
                w3_ref, b3_ref,            # (128, 128)   bf16, (128, 1)  f32
                w4_ref, b4_ref,            # (128, 128)   bf16, (128, 1)  f32
                w5_ref, b5_ref,            # (128, 1)     bf16, (1, 1)    f32
                o_ref):                    # (1, TB)      f32
    f32 = jnp.float32
    bf16 = jnp.bfloat16

    xT = xT_ref[...]                       # (5, TB) f32
    w1 = w1_ref[...].astype(f32)           # (1024, 5)

    # ---- fc1: (1024,5) @ (5,TB) as 5 unrolled VPU broadcast-FMAs ----------
    # (a K=5 MXU matmul would use ~4% of the systolic depth; VALU slots are
    # otherwise idle here)
    h = w1[:, 0:1] * xT[0:1, :]
    for k in range(1, INPUT_SIZE):
        h = h + w1[:, k:k + 1] * xT[k:k + 1, :]
    h = jnp.maximum(h + b1_ref[...], 0.0)                       # (1024, TB) f32

    # ---- fc2..fc4: bf16 MXU matmuls with f32 accumulation -----------------
    h = jnp.dot(w2_ref[...], h.astype(bf16),
                preferred_element_type=f32) + b2_ref[...]
    h = jnp.maximum(h, 0.0)                                     # (128, TB) f32
    h = jnp.dot(w3_ref[...], h.astype(bf16),
                preferred_element_type=f32) + b3_ref[...]
    h = jnp.maximum(h, 0.0)
    h = jnp.dot(w4_ref[...], h.astype(bf16),
                preferred_element_type=f32) + b4_ref[...]
    h = jnp.maximum(h, 0.0)                                     # (128, TB) f32

    # ---- fc5: N=1 output head as VPU multiply + sublane (XLU) reduction ---
    w5 = w5_ref[...].astype(f32)                                # (128, 1)
    y = jnp.sum(h * w5, axis=0, keepdims=True) + b5_ref[...]    # (1, TB) f32

    o_ref[...] = y.astype(o_ref.dtype)


def house_price_forward(x, params, *, tb=1024):
    """x: (B, INPUT_SIZE) f32.  params: (w1,b1,...,w5,b5) with weights in
    PyTorch (out, in) layout (bf16) except w5 stored as an (in, 1) column,
    and biases stored as (out, 1) f32 columns.  Returns (B, 1) f32."""
    B = x.shape[0]

    # Batch tile: multiple of 128 lanes; pad batch up to a multiple of the tile.
    tb = max(_LANE, (int(tb) // _LANE) * _LANE)
    b_pad = ((B + _LANE - 1) // _LANE) * _LANE
    tb = min(tb, b_pad)
    b_pad = ((b_pad + tb - 1) // tb) * tb
    n_tiles = b_pad // tb

    # Present the input lane-dense: (features, padded_batch).
    xT = jnp.zeros((INPUT_SIZE, b_pad), jnp.float32)
    xT = xT.at[:, :B].set(x.T.astype(jnp.float32))

    # Weights/biases: full-array blocks with constant index_maps -> DMA'd once,
    # resident in VMEM across all grid steps.
    resident = lambda p: pl.BlockSpec(p.shape, lambda i: (0, 0))
    in_specs = [pl.BlockSpec((INPUT_SIZE, tb), lambda i: (0, i))]
    in_specs += [resident(p) for p in params]

    flops = 2 * b_pad * (INPUT_SIZE * H1 + H1 * H2 + H2 * H3 + H3 * H4 + H4 * OUT)
    param_bytes = int(sum(int(p.size) * p.dtype.itemsize for p in params))
    cost = pl.CostEstimate(
        flops=flops,
        transcendentals=0,
        bytes_accessed=param_bytes + int(xT.size) * 4 + b_pad * OUT * 4,
    )

    out = pl.pallas_call(
        _mlp_kernel,
        out_shape=jax.ShapeDtypeStruct((1, b_pad), jnp.float32),
        grid=(n_tiles,),
        in_specs=in_specs,
        out_specs=pl.BlockSpec((1, tb), lambda i: (0, i)),
        compiler_params=pltpu.CompilerParams(
            dimension_semantics=("parallel",),
        ),
        cost_estimate=cost,
    )(xT, *params)

    return out[0, :B].reshape(B, OUT)


def init_params(key):
    """Deterministic init matching the PyTorch layer shapes.

    Weights are stored in PyTorch (out, in) layout, cast to bf16; the fc5
    weight is stored as an (in, 1) column so the kernel can do a VPU
    reduction instead of an N=1 matmul.  Biases are (out, 1) f32 columns.
    """
    dims = [(INPUT_SIZE, H1), (H1, H2), (H2, H3), (H3, H4), (H4, OUT)]
    params = []
    for li, (fan_in, fan_out) in enumerate(dims):
        kw, kb, key = jax.random.split(key, 3)
        bound = 1.0 / (fan_in ** 0.5)  # same scale as torch default uniform init
        w = jax.random.uniform(kw, (fan_out, fan_in), jnp.float32, -bound, bound)
        b = jax.random.uniform(kb, (fan_out, 1), jnp.float32, -bound, bound)
        if li == len(dims) - 1:
            w = w.T  # (H4, 1) column for the VPU output head
        params.extend([w.astype(jnp.bfloat16), b])
    return tuple(params)


def reference_forward(x, params):
    """Plain-JAX reference that matches the kernel's precision scheme
    (bf16 weights/activations into the MXU, f32 accumulation)."""
    w1, b1, w2, b2, w3, b3, w4, b4, w5, b5 = params
    f32, bf16 = jnp.float32, jnp.bfloat16
    hp = jax.lax.Precision.HIGHEST
    xT = x.T.astype(f32)
    h = jnp.maximum(jnp.dot(w1.astype(f32), xT, precision=hp) + b1, 0.0)
    h = jnp.maximum(jnp.dot(w2, h.astype(bf16), preferred_element_type=f32) + b2, 0.0)
    h = jnp.maximum(jnp.dot(w3, h.astype(bf16), preferred_element_type=f32) + b3, 0.0)
    h = jnp.maximum(jnp.dot(w4, h.astype(bf16), preferred_element_type=f32) + b4, 0.0)
    y = jnp.sum(h * w5.astype(f32), axis=0, keepdims=True) + b5
    return y.T


def reference_forward_f32(x, params):
    """Full-f32 reference (PyTorch semantics with f32-cast weights)."""
    w1, b1, w2, b2, w3, b3, w4, b4, w5, b5 = params
    f32 = jnp.float32
    hp = jax.lax.Precision.HIGHEST
    xT = x.T.astype(f32)
    h = jnp.maximum(jnp.dot(w1.astype(f32), xT, precision=hp) + b1, 0.0)
    h = jnp.maximum(jnp.dot(w2.astype(f32), h, precision=hp) + b2, 0.0)
    h = jnp.maximum(jnp.dot(w3.astype(f32), h, precision=hp) + b3, 0.0)
    h = jnp.maximum(jnp.dot(w4.astype(f32), h, precision=hp) + b4, 0.0)
    y = jnp.dot(w5.astype(f32).T, h, precision=hp) + b5
    return y.T


if __name__ == "__main__":
    key = jax.random.PRNGKey(0)
    kx, kp = jax.random.split(key)

    B = 8
    x = jax.random.normal(kx, (B, INPUT_SIZE), jnp.float32)
    params = init_params(kp)

    out = house_price_forward(x, params)
    out = jax.block_until_ready(out)

    ref = reference_forward(x, params)
    ref_f32 = reference_forward_f32(x, params)

    assert out.shape == (B, OUT), out.shape
    assert jnp.allclose(out, ref, atol=2e-3, rtol=2e-3), \
        "mismatch vs precision-matched reference"
    assert jnp.allclose(out, ref_f32, atol=1e-1, rtol=1e-1), \
        "mismatch vs f32 reference (bf16 weights drifted too far)"

    print("KERNEL_OK")
</pallas_src>

<mosaic_0001>
module attributes {stable_mosaic.version = 11 : i64} {
  func.func @_mlp_kernel(%arg0: i32, %arg1: memref<5x128xf32, #tpu.memory_space<vmem>>, %arg2: memref<1024x5xbf16, #tpu.memory_space<vmem>>, %arg3: memref<1024x1xf32, #tpu.memory_space<vmem>>, %arg4: memref<128x1024xbf16, #tpu.memory_space<vmem>>, %arg5: memref<128x1xf32, #tpu.memory_space<vmem>>, %arg6: memref<128x128xbf16, #tpu.memory_space<vmem>>, %arg7: memref<128x1xf32, #tpu.memory_space<vmem>>, %arg8: memref<128x128xbf16, #tpu.memory_space<vmem>>, %arg9: memref<128x1xf32, #tpu.memory_space<vmem>>, %arg10: memref<128x1xbf16, #tpu.memory_space<vmem>>, %arg11: memref<1x1xf32, #tpu.memory_space<vmem>>, %arg12: memref<1x128xf32, #tpu.memory_space<vmem>>) attributes {dimension_semantics = [#tpu.dimension_semantics<parallel>], iteration_bounds = array<i64: 1>, scalar_prefetch = 0 : i64, scratch_operands = 0 : i64, tpu.core_type = #tpu.core_type<tc>, window_params = [{transform_indices = @transform_0, window_bounds = array<i64: 5, 128>}, {pipeline_mode = #tpu.pipeline_mode<synchronous>, transform_indices = @transform_1, window_bounds = array<i64: 1024, 5>}, {pipeline_mode = #tpu.pipeline_mode<synchronous>, transform_indices = @transform_2, window_bounds = array<i64: 1024, 1>}, {pipeline_mode = #tpu.pipeline_mode<synchronous>, transform_indices = @transform_3, window_bounds = array<i64: 128, 1024>}, {pipeline_mode = #tpu.pipeline_mode<synchronous>, transform_indices = @transform_4, window_bounds = array<i64: 128, 1>}, {pipeline_mode = #tpu.pipeline_mode<synchronous>, transform_indices = @transform_5, window_bounds = array<i64: 128, 128>}, {pipeline_mode = #tpu.pipeline_mode<synchronous>, transform_indices = @transform_6, window_bounds = array<i64: 128, 1>}, {pipeline_mode = #tpu.pipeline_mode<synchronous>, transform_indices = @transform_7, window_bounds = array<i64: 128, 128>}, {pipeline_mode = #tpu.pipeline_mode<synchronous>, transform_indices = @transform_8, window_bounds = array<i64: 128, 1>}, {pipeline_mode = #tpu.pipeline_mode<synchronous>, transform_indices = @transform_9, window_bounds = array<i64: 128, 1>}, {pipeline_mode = #tpu.pipeline_mode<synchronous>, transform_indices = @transform_10, window_bounds = array<i64: 1, 1>}, {transform_indices = @transform_11, window_bounds = array<i64: 1, 128>}]} {
    %c0 = arith.constant 0 : index
    %c0_0 = arith.constant 0 : index
    %0 = vector.load %arg1[%c0, %c0_0] : memref<5x128xf32, #tpu.memory_space<vmem>>, vector<5x128xf32>
    %c0_1 = arith.constant 0 : index
    %c0_2 = arith.constant 0 : index
    %1 = vector.load %arg2[%c0_1, %c0_2] : memref<1024x5xbf16, #tpu.memory_space<vmem>>, vector<1024x5xbf16>
    %2 = arith.extf %1 : vector<1024x5xbf16> to vector<1024x5xf32>
    %3 = vector.extract_strided_slice %2 {offsets = [0, 0], sizes = [1024, 1], strides = [1, 1]} : vector<1024x5xf32> to vector<1024x1xf32>
    %4 = vector.extract_strided_slice %0 {offsets = [0, 0], sizes = [1, 128], strides = [1, 1]} : vector<5x128xf32> to vector<1x128xf32>
    %5 = vector.broadcast %3 : vector<1024x1xf32> to vector<1024x128xf32>
    %6 = vector.broadcast %4 : vector<1x128xf32> to vector<1024x128xf32>
    %7 = arith.mulf %5, %6 : vector<1024x128xf32>
    %8 = vector.extract_strided_slice %2 {offsets = [0, 1], sizes = [1024, 1], strides = [1, 1]} : vector<1024x5xf32> to vector<1024x1xf32>
    %9 = vector.extract_strided_slice %0 {offsets = [1, 0], sizes = [1, 128], strides = [1, 1]} : vector<5x128xf32> to vector<1x128xf32>
    %10 = vector.broadcast %8 : vector<1024x1xf32> to vector<1024x128xf32>
    %11 = vector.broadcast %9 : vector<1x128xf32> to vector<1024x128xf32>
    %12 = arith.mulf %10, %11 : vector<1024x128xf32>
    %13 = arith.addf %7, %12 : vector<1024x128xf32>
    %14 = vector.extract_strided_slice %2 {offsets = [0, 2], sizes = [1024, 1], strides = [1, 1]} : vector<1024x5xf32> to vector<1024x1xf32>
    %15 = vector.extract_strided_slice %0 {offsets = [2, 0], sizes = [1, 128], strides = [1, 1]} : vector<5x128xf32> to vector<1x128xf32>
    %16 = vector.broadcast %14 : vector<1024x1xf32> to vector<1024x128xf32>
    %17 = vector.broadcast %15 : vector<1x128xf32> to vector<1024x128xf32>
    %18 = arith.mulf %16, %17 : vector<1024x128xf32>
    %19 = arith.addf %13, %18 : vector<1024x128xf32>
    %20 = vector.extract_strided_slice %2 {offsets = [0, 3], sizes = [1024, 1], strides = [1, 1]} : vector<1024x5xf32> to vector<1024x1xf32>
    %21 = vector.extract_strided_slice %0 {offsets = [3, 0], sizes = [1, 128], strides = [1, 1]} : vector<5x128xf32> to vector<1x128xf32>
    %22 = vector.broadcast %20 : vector<1024x1xf32> to vector<1024x128xf32>
    %23 = vector.broadcast %21 : vector<1x128xf32> to vector<1024x128xf32>
    %24 = arith.mulf %22, %23 : vector<1024x128xf32>
    %25 = arith.addf %19, %24 : vector<1024x128xf32>
    %26 = vector.extract_strided_slice %2 {offsets = [0, 4], sizes = [1024, 1], strides = [1, 1]} : vector<1024x5xf32> to vector<1024x1xf32>
    %27 = vector.extract_strided_slice %0 {offsets = [4, 0], sizes = [1, 128], strides = [1, 1]} : vector<5x128xf32> to vector<1x128xf32>
    %28 = vector.broadcast %26 : vector<1024x1xf32> to vector<1024x128xf32>
    %29 = vector.broadcast %27 : vector<1x128xf32> to vector<1024x128xf32>
    %30 = arith.mulf %28, %29 : vector<1024x128xf32>
    %31 = arith.addf %25, %30 : vector<1024x128xf32>
    %c0_3 = arith.constant 0 : index
    %c0_4 = arith.constant 0 : index
    %32 = vector.load %arg3[%c0_3, %c0_4] : memref<1024x1xf32, #tpu.memory_space<vmem>>, vector<1024x1xf32>
    %33 = vector.broadcast %32 : vector<1024x1xf32> to vector<1024x128xf32>
    %34 = arith.addf %31, %33 : vector<1024x128xf32>
    %cst = arith.constant 0.000000e+00 : f32
    %35 = vector.broadcast %cst : f32 to vector<1024x128xf32>
    %36 = arith.maximumf %34, %35 : vector<1024x128xf32>
    %c0_5 = arith.constant 0 : index
    %c0_6 = arith.constant 0 : index
    %37 = vector.load %arg4[%c0_5, %c0_6] : memref<128x1024xbf16, #tpu.memory_space<vmem>>, vector<128x1024xbf16>
    %38 = arith.truncf %36 : vector<1024x128xf32> to vector<1024x128xbf16>
    %cst_7 = arith.constant dense<0.000000e+00> : vector<128x128xf32>
    %39 = tpu.matmul %37, %38, %cst_7 {dimension_numbers = #tpu.dot_dimension_numbers<[1], [0], [0], [1], [0, 0, 1, 1], [], []>} : vector<128x1024xbf16>, vector<1024x128xbf16>, vector<128x128xf32> -> vector<128x128xf32>
    %c0_8 = arith.constant 0 : index
    %c0_9 = arith.constant 0 : index
    %40 = vector.load %arg5[%c0_8, %c0_9] : memref<128x1xf32, #tpu.memory_space<vmem>>, vector<128x1xf32>
    %41 = vector.broadcast %40 : vector<128x1xf32> to vector<128x128xf32>
    %42 = arith.addf %39, %41 : vector<128x128xf32>
    %cst_10 = arith.constant 0.000000e+00 : f32
    %43 = vector.broadcast %cst_10 : f32 to vector<128x128xf32>
    %44 = arith.maximumf %42, %43 : vector<128x128xf32>
    %c0_11 = arith.constant 0 : index
    %c0_12 = arith.constant 0 : index
    %45 = vector.load %arg6[%c0_11, %c0_12] : memref<128x128xbf16, #tpu.memory_space<vmem>>, vector<128x128xbf16>
    %46 = arith.truncf %44 : vector<128x128xf32> to vector<128x128xbf16>
    %cst_13 = arith.constant dense<0.000000e+00> : vector<128x128xf32>
    %47 = tpu.matmul %45, %46, %cst_13 {dimension_numbers = #tpu.dot_dimension_numbers<[1], [0], [0], [1], [0, 0, 1, 1], [], []>} : vector<128x128xbf16>, vector<128x128xbf16>, vector<128x128xf32> -> vector<128x128xf32>
    %c0_14 = arith.constant 0 : index
    %c0_15 = arith.constant 0 : index
    %48 = vector.load %arg7[%c0_14, %c0_15] : memref<128x1xf32, #tpu.memory_space<vmem>>, vector<128x1xf32>
    %49 = vector.broadcast %48 : vector<128x1xf32> to vector<128x128xf32>
    %50 = arith.addf %47, %49 : vector<128x128xf32>
    %cst_16 = arith.constant 0.000000e+00 : f32
    %51 = vector.broadcast %cst_16 : f32 to vector<128x128xf32>
    %52 = arith.maximumf %50, %51 : vector<128x128xf32>
    %c0_17 = arith.constant 0 : index
    %c0_18 = arith.constant 0 : index
    %53 = vector.load %arg8[%c0_17, %c0_18] : memref<128x128xbf16, #tpu.memory_space<vmem>>, vector<128x128xbf16>
    %54 = arith.truncf %52 : vector<128x128xf32> to vector<128x128xbf16>
    %cst_19 = arith.constant dense<0.000000e+00> : vector<128x128xf32>
    %55 = tpu.matmul %53, %54, %cst_19 {dimension_numbers = #tpu.dot_dimension_numbers<[1], [0], [0], [1], [0, 0, 1, 1], [], []>} : vector<128x128xbf16>, vector<128x128xbf16>, vector<128x128xf32> -> vector<128x128xf32>
    %c0_20 = arith.constant 0 : index
    %c0_21 = arith.constant 0 : index
    %56 = vector.load %arg9[%c0_20, %c0_21] : memref<128x1xf32, #tpu.memory_space<vmem>>, vector<128x1xf32>
    %57 = vector.broadcast %56 : vector<128x1xf32> to vector<128x128xf32>
    %58 = arith.addf %55, %57 : vector<128x128xf32>
    %cst_22 = arith.constant 0.000000e+00 : f32
    %59 = vector.broadcast %cst_22 : f32 to vector<128x128xf32>
    %60 = arith.maximumf %58, %59 : vector<128x128xf32>
    %c0_23 = arith.constant 0 : index
    %c0_24 = arith.constant 0 : index
    %61 = vector.load %arg10[%c0_23, %c0_24] : memref<128x1xbf16, #tpu.memory_space<vmem>>, vector<128x1xbf16>
    %62 = arith.extf %61 : vector<128x1xbf16> to vector<128x1xf32>
    %63 = vector.broadcast %62 : vector<128x1xf32> to vector<128x128xf32>
    %64 = arith.mulf %60, %63 : vector<128x128xf32>
    %cst_25 = arith.constant dense<0.000000e+00> : vector<128xf32>
    %65 = vector.multi_reduction <add>, %64, %cst_25 [0] : vector<128x128xf32> to vector<128xf32>
    %66 = vector.shape_cast %65 : vector<128xf32> to vector<1x128xf32>
    %c0_26 = arith.constant 0 : index
    %c0_27 = arith.constant 0 : index
    %67 = vector.load %arg11[%c0_26, %c0_27] : memref<1x1xf32, #tpu.memory_space<vmem>>, vector<1x1xf32>
    %68 = vector.broadcast %67 : vector<1x1xf32> to vector<1x128xf32>
    %69 = arith.addf %66, %68 : vector<1x128xf32>
    %c0_28 = arith.constant 0 : index
    %c0_29 = arith.constant 0 : index
    %70 = vector.load %arg12[%c0_28, %c0_29] : memref<1x128xf32, #tpu.memory_space<vmem>>, vector<1x128xf32>
    tpu.vector_store %arg12[%c0_28, %c0_29], %69 {strides = array<i32>} : memref<1x128xf32, #tpu.memory_space<vmem>>, vector<1x128xf32>,
    return
  }
  func.func @transform_0(%arg0: i32) -> (i32, i32) {
    %c0_i32 = arith.constant 0 : i32
    %c0_i32_0 = arith.constant 0 : i32
    return %c0_i32, %arg0 : i32, i32
  }
  func.func @transform_1(%arg0: i32) -> (i32, i32) {
    %c0_i32 = arith.constant 0 : i32
    %c0_i32_0 = arith.constant 0 : i32
    %c0_i32_1 = arith.constant 0 : i32
    return %c0_i32, %c0_i32_0 : i32, i32
  }
  func.func @transform_2(%arg0: i32) -> (i32, i32) {
    %c0_i32 = arith.constant 0 : i32
    %c0_i32_0 = arith.constant 0 : i32
    %c0_i32_1 = arith.constant 0 : i32
    return %c0_i32, %c0_i32_0 : i32, i32
  }
  func.func @transform_3(%arg0: i32) -> (i32, i32) {
    %c0_i32 = arith.constant 0 : i32
    %c0_i32_0 = arith.constant 0 : i32
    %c0_i32_1 = arith.constant 0 : i32
    return %c0_i32, %c0_i32_0 : i32, i32
  }
  func.func @transform_4(%arg0: i32) -> (i32, i32) {
    %c0_i32 = arith.constant 0 : i32
    %c0_i32_0 = arith.constant 0 : i32
    %c0_i32_1 = arith.constant 0 : i32
    return %c0_i32, %c0_i32_0 : i32, i32
  }
  func.func @transform_5(%arg0: i32) -> (i32, i32) {
    %c0_i32 = arith.constant 0 : i32
    %c0_i32_0 = arith.constant 0 : i32
    %c0_i32_1 = arith.constant 0 : i32
    return %c0_i32, %c0_i32_0 : i32, i32
  }
  func.func @transform_6(%arg0: i32) -> (i32, i32) {
    %c0_i32 = arith.constant 0 : i32
    %c0_i32_0 = arith.constant 0 : i32
    %c0_i32_1 = arith.constant 0 : i32
    return %c0_i32, %c0_i32_0 : i32, i32
  }
  func.func @transform_7(%arg0: i32) -> (i32, i32) {
    %c0_i32 = arith.constant 0 : i32
    %c0_i32_0 = arith.constant 0 : i32
    %c0_i32_1 = arith.constant 0 : i32
    return %c0_i32, %c0_i32_0 : i32, i32
  }
  func.func @transform_8(%arg0: i32) -> (i32, i32) {
    %c0_i32 = arith.constant 0 : i32
    %c0_i32_0 = arith.constant 0 : i32
    %c0_i32_1 = arith.constant 0 : i32
    return %c0_i32, %c0_i32_0 : i32, i32
  }
  func.func @transform_9(%arg0: i32) -> (i32, i32) {
    %c0_i32 = arith.constant 0 : i32
    %c0_i32_0 = arith.constant 0 : i32
    %c0_i32_1 = arith.constant 0 : i32
    return %c0_i32, %c0_i32_0 : i32, i32
  }
  func.func @transform_10(%arg0: i32) -> (i32, i32) {
    %c0_i32 = arith.constant 0 : i32
    %c0_i32_0 = arith.constant 0 : i32
    %c0_i32_1 = arith.constant 0 : i32
    return %c0_i32, %c0_i32_0 : i32, i32
  }
  func.func @transform_11(%arg0: i32) -> (i32, i32) {
    %c0_i32 = arith.constant 0 : i32
    %c0_i32_0 = arith.constant 0 : i32
    return %c0_i32, %arg0 : i32, i32
  }
}

</mosaic_0001>

<bundles_post_ra>
// kernel: tpu_custom_call.1
= control target key start
LH: loop header
LB: loop body
LE: loop exit
PB: predicated region body
PF: predicated region fallthrough
CT: control target
= control target key end

     0   :  { %s14440_s0 = inlined_call_operand.vmem [shape: f32[5,128], index: 0, kind: input, shape index: {}]   ;;  %s14441_s1 = inlined_call_operand.vmem [shape: bf16[1024,5], index: 1, kind: input, shape index: {}]   ;;  %s14442_s2 = inlined_call_operand.vmem [shape: f32[1024,1], index: 2, kind: input, shape index: {}]   ;;  %s14443_s3 = inlined_call_operand.vmem [shape: bf16[128,1024], index: 3, kind: input, shape index: {}]   ;;  %s14444_s4 = inlined_call_operand.vmem [shape: f32[128,1], index: 4, kind: input, shape index: {}]   ;;  %s14445_s5 = inlined_call_operand.vmem [shape: bf16[128,128], index: 5, kind: input, shape index: {}]   ;;  %s14446_s6 = inlined_call_operand.vmem [shape: f32[128,1], index: 6, kind: input, shape index: {}]   ;;  %s14447_s7 = inlined_call_operand.vmem [shape: bf16[128,128], index: 7, kind: input, shape index: {}]   ;;  %s14448_s8 = inlined_call_operand.vmem [shape: f32[128,1], index: 8, kind: input, shape index: {}]   ;;  %s14449_s9 = inlined_call_operand.vmem [shape: bf16[128,1], index: 9, kind: input, shape index: {}]   ;;  %s14450_s10 = inlined_call_operand.<no memory space> [shape: f32[1,1], index: 10, kind: input, shape index: {}]   ;;  %s14451_s11 = inlined_call_operand.hbm [shape: f32[1,128], index: 11, kind: output, shape index: {}]  }
   0x1   :  { %v16_v0 = vstv %s14450_s10 }
   0x2   :  { %17 = vst [vmem:[#allocation2] sm:$0x1] %v16_v0 }
   0x3   :  { %v7237_v1 = vld [vmem:[%s14441_s1 + $0x10] sm:$0xff]   ;;  %v6949_v2 = vld [vmem:[%s14441_s1] sm:$0xff]   ;;  %v7238_v3 = vld [vmem:[%s14441_s1 + $0x18] sm:$0xff]   ;;  %v9362_v4 = vmov 1   ;;  %v14468_v5 = vmov 0  }
   0x4   :  { %7825 = vset.pattern.permute.xlu0 %v9362_v4  ;;  %7664 = vset.pattern.permute.xlu1 %v14468_v5  ;;  %v6958_v6 = vunpack.c.l.bf16 %v7237_v1  ;;  %v6959_v7 = vunpack.c.h.bf16 %v7237_v1  ;;  %v6950_v8 = vunpack.c.l.bf16 %v6949_v2  ;;  %v6951_v9 = vunpack.c.h.bf16 %v6949_v2  ;;  %v7240_v12 = vld [vmem:[%s14441_s1 + $0x28] sm:$0xff]   ;;  %v7242_v18 = vld [vmem:[%s14441_s1 + $0x38] sm:$0xff]  }
   0x5   :  { %v6962_v10 = vunpack.c.l.bf16 %v7238_v3  ;;  %v6963_v11 = vunpack.c.h.bf16 %v7238_v3  ;;  %v6970_v16 = vunpack.c.l.bf16 %v7240_v12  ;;  %v6971_v17 = vunpack.c.h.bf16 %v7240_v12  ;;  %v7244_v22 = vld [vmem:[%s14441_s1 + $0x48] sm:$0xff]   ;;  %v7246_v26 = vld [vmem:[%s14441_s1 + $0x58] sm:$0xff]  }
   0x6   :  { %v9445_v13 = vpack.i.bf16 %v6959_v7, %v6958_v6  ;;  %v9447_v14 = vpack.i.bf16 %v6951_v9, %v6950_v8  ;;  %v6978_v20 = vunpack.c.l.bf16 %v7242_v18  ;;  %v6979_v21 = vunpack.c.h.bf16 %v7242_v18  ;;  %v7248_v30 = vld [vmem:[%s14441_s1 + $0x68] sm:$0xff]   ;;  %v7250_v34 = vld [vmem:[%s14441_s1 + $0x78] sm:$0xff]  }
   0x7   :  { %v9451_v15 = vpack.i.bf16 %v6963_v11, %v6962_v10  ;;  %v9458_v19 = vpack.i.bf16 %v6971_v17, %v6970_v16  ;;  %v6986_v24 = vunpack.c.l.bf16 %v7244_v22  ;;  %v6987_v25 = vunpack.c.h.bf16 %v7244_v22 }
   0x8   :  { %7666 = vperm.xlu1 %7664, %v9445_v13   ;;  %7827 = vperm.xlu0 %7825, %v9447_v14   ;;  %v9465_v23 = vpack.i.bf16 %v6979_v21, %v6978_v20  ;;  %v6994_v28 = vunpack.c.l.bf16 %v7246_v26  ;;  %v6995_v29 = vunpack.c.h.bf16 %v7246_v26  ;;  %v7002_v32 = vunpack.c.l.bf16 %v7248_v30 }
   0x9   :  { %v9472_v27 = vpack.i.bf16 %v6987_v25, %v6986_v24  ;;  %v7003_v33 = vunpack.c.h.bf16 %v7248_v30 }
   0xa   :  { %v9479_v31 = vpack.i.bf16 %v6995_v29, %v6994_v28 }
   0xc   :  { %7671 = vperm.xlu1 %7664, %v9451_v15   ;;  %7843 = vperm.xlu0 %7825, %v9451_v15  }
  0x10   :  { %7676 = vperm.xlu1 %7664, %v9458_v19   ;;  %7853 = vperm.xlu0 %7825, %v9458_v19  }
  0x14   :  { %7681 = vperm.xlu1 %7664, %v9465_v23   ;;  %7863 = vperm.xlu0 %7825, %v9465_v23  }
  0x18   :  { %7686 = vperm.xlu1 %7664, %v9472_v27   ;;  %7873 = vperm.xlu0 %7825, %v9472_v27  }
  0x19   :  { %18 = vsyncpa [#allocation4], 0  ;;  %v9486_v35 = vpack.i.bf16 %v7003_v33, %v7002_v32  ;;  %v7010_v36 = vunpack.c.l.bf16 %v7250_v34  ;;  %v7011_v37 = vunpack.c.h.bf16 %v7250_v34  ;;  %v7252_v38 = vld [vmem:[%s14441_s1 + $0x88] sm:$0xff]   ;;  %v7254_v42 = vld [vmem:[%s14441_s1 + $0x98] sm:$0xff]  }
  0x1a   :  { %v7018_v40 = vunpack.c.l.bf16 %v7252_v38  ;;  %v7019_v41 = vunpack.c.h.bf16 %v7252_v38  ;;  %v7026_v44 = vunpack.c.l.bf16 %v7254_v42  ;;  %v7027_v45 = vunpack.c.h.bf16 %v7254_v42  ;;  %v7256_v46 = vld [vmem:[%s14441_s1 + $0xa8] sm:$0xff]   ;;  %v7258_v50 = vld [vmem:[%s14441_s1 + $0xb8] sm:$0xff]  }
  0x1b   :  { %v9493_v39 = vpack.i.bf16 %v7011_v37, %v7010_v36  ;;  %v7034_v48 = vunpack.c.l.bf16 %v7256_v46  ;;  %v7035_v49 = vunpack.c.h.bf16 %v7256_v46  ;;  %v7042_v52 = vunpack.c.l.bf16 %v7258_v50  ;;  %v7260_v54 = vld [vmem:[%s14441_s1 + $0xc8] sm:$0xff]   ;;  %v7262_v58 = vld [vmem:[%s14441_s1 + $0xd8] sm:$0xff]  }
  0x1c   :  { %7691 = vperm.xlu1 %7664, %v9479_v31   ;;  %7883 = vperm.xlu0 %7825, %v9479_v31   ;;  %v9500_v43 = vpack.i.bf16 %v7019_v41, %v7018_v40  ;;  %v9507_v47 = vpack.i.bf16 %v7027_v45, %v7026_v44  ;;  %v7043_v53 = vunpack.c.h.bf16 %v7258_v50  ;;  %v7050_v56 = vunpack.c.l.bf16 %v7260_v54  ;;  %v7264_v62 = vld [vmem:[%s14441_s1 + $0xe8] sm:$0xff]   ;;  %v7266_v2 = vld [vmem:[%s14441_s1 + $0xf8] sm:$0xff]  }
  0x1d   :  { %v9514_v51 = vpack.i.bf16 %v7035_v49, %v7034_v48  ;;  %v7051_v57 = vunpack.c.h.bf16 %v7260_v54  ;;  %v7058_v60 = vunpack.c.l.bf16 %v7262_v58  ;;  %v7059_v61 = vunpack.c.h.bf16 %v7262_v58  ;;  %v7268_v8 = vld [vmem:[%s14441_s1 + $0x108] sm:$0xff]   ;;  %v7270_v12 = vld [vmem:[%s14441_s1 + $0x118] sm:$0xff]  }
  0x1e   :  { %v9521_v55 = vpack.i.bf16 %v7043_v53, %v7042_v52  ;;  %v7066_v0 = vunpack.c.l.bf16 %v7264_v62  ;;  %v7067_v1 = vunpack.c.h.bf16 %v7264_v62  ;;  %v7074_v6 = vunpack.c.l.bf16 %v7266_v2  ;;  %v7272_v20 = vld [vmem:[%s14441_s1 + $0x128] sm:$0xff]   ;;  %v9568_v25 = vld [vmem:[%s14441_s1 + $0x138] sm:$0xff]  }
  0x1f   :  { %v9528_v59 = vpack.i.bf16 %v7051_v57, %v7050_v56  ;;  %v9535_v63 = vpack.i.bf16 %v7059_v61, %v7058_v60  ;;  %v7075_v7 = vunpack.c.h.bf16 %v7266_v2  ;;  %v7082_v10 = vunpack.c.l.bf16 %v7268_v8  ;;  %14896 = vst [vmem:[#allocation6_spill] sm:$0xff] %v9568_v25  ;;  %v9579_v30 = vld [vmem:[%s14441_s1 + $0x148] sm:$0xff]   ;;  %v9594_v36 = vld [vmem:[%s14441_s1 + $0x158] sm:$0xff]  }
  0x20   :  { %7696 = vperm.xlu1 %7664, %v9486_v35   ;;  %7893 = vperm.xlu0 %7825, %v9486_v35   ;;  %v9542_v3 = vpack.i.bf16 %v7067_v1, %v7066_v0  ;;  %v7083_v11 = vunpack.c.h.bf16 %v7268_v8  ;;  %v7090_v17 = vunpack.c.l.bf16 %v7270_v12  ;;  %v7091_v18 = vunpack.c.h.bf16 %v7270_v12  ;;  %14897 = vst [vmem:[#allocation7_spill] sm:$0xff] %v9579_v30  ;;  %14898 = vst [vmem:[#allocation8_spill] sm:$0xff] %v9594_v36  ;;  %v9609_v41 = vld [vmem:[%s14441_s1 + $0x168] sm:$0xff]   ;;  %v9624_v46 = vld [vmem:[%s14441_s1 + $0x178] sm:$0xff]  }
  0x21   :  { %v9549_v9 = vpack.i.bf16 %v7075_v7, %v7074_v6  ;;  %v7098_v22 = vunpack.c.l.bf16 %v7272_v20  ;;  %v7099_v24 = vunpack.c.h.bf16 %v7272_v20  ;;  %v14467_v28 = vunpack.c.l.bf16 %v9568_v25  ;;  %14899 = vst [vmem:[#allocation9_spill] sm:$0xff] %v9609_v41  ;;  %14900 = vst [vmem:[#allocation10_spill] sm:$0xff] %v9624_v46  ;;  %v9639_v52 = vld [vmem:[%s14441_s1 + $0x188] sm:$0xff]   ;;  %v9654_v57 = vld [vmem:[%s14441_s1 + $0x198] sm:$0xff]  }
  0x22   :  { %v9556_v16 = vpack.i.bf16 %v7083_v11, %v7082_v10  ;;  %v9563_v21 = vpack.i.bf16 %v7091_v18, %v7090_v17  ;;  %v14452_v29 = vunpack.c.h.bf16 %v9568_v25  ;;  %v14466_v33 = vunpack.c.l.bf16 %v9579_v30  ;;  %14901 = vst [vmem:[#allocation11_spill] sm:$0xff] %v9639_v52  ;;  %14902 = vst [vmem:[#allocation12_spill] sm:$0xff] %v9654_v57  ;;  %v9669_v62 = vld [vmem:[%s14441_s1 + $0x1a8] sm:$0xff]   ;;  %v7290_v6 = vld [vmem:[%s14441_s1 + $0x1b8] sm:$0xff]  }
  0x23   :  { %v9572_v26 = vpack.i.bf16 %v7099_v24, %v7098_v22  ;;  %v14465_v34 = vunpack.c.h.bf16 %v9579_v30  ;;  %v14474_v38 = vunpack.c.l.bf16 %v9594_v36  ;;  %v14459_v40 = vunpack.c.h.bf16 %v9594_v36  ;;  %14903 = vst [vmem:[#allocation13_spill] sm:$0xff] %v9669_v62  ;;  %v9695_v11 = vld [vmem:[%s14441_s1 + $0x1c8] sm:$0xff]   ;;  %v9706_v20 = vld [vmem:[%s14441_s1 + $0x1d8] sm:$0xff]  }
  0x24   :  { %7701 = vperm.xlu1 %7664, %v9493_v39   ;;  %7903 = vperm.xlu0 %7825, %v9493_v39   ;;  %v9587_v32 = vpack.i.bf16 %v14452_v29, %v14467_v28  ;;  %v14472_v44 = vunpack.c.l.bf16 %v9609_v41  ;;  %v14455_v45 = vunpack.c.h.bf16 %v9609_v41  ;;  %v14470_v49 = vunpack.c.l.bf16 %v9624_v46  ;;  %14904 = vst [vmem:[#allocation14_spill] sm:$0xff] %v9695_v11  ;;  %14905 = vst [vmem:[#allocation15_spill] sm:$0xff] %v9706_v20 }
  0x25   :  { %v9602_v37 = vpack.i.bf16 %v14465_v34, %v14466_v33  ;;  %v9617_v42 = vpack.i.bf16 %v14459_v40, %v14474_v38  ;;  %v14453_v50 = vunpack.c.h.bf16 %v9624_v46  ;;  %v14460_v54 = vunpack.c.l.bf16 %v9639_v52  ;;  %v7241_v34 = vld [vmem:[%s14441_s1 + $0x30] sm:$0xff]   ;;  %v7243_v33 = vld [vmem:[%s14441_s1 + $0x40] sm:$0xff]  }
  0x26   :  { %v9632_v48 = vpack.i.bf16 %v14455_v45, %v14472_v44  ;;  %v14475_v56 = vunpack.c.h.bf16 %v9639_v52  ;;  %v14456_v60 = vunpack.c.l.bf16 %v9654_v57  ;;  %v14473_v61 = vunpack.c.h.bf16 %v9654_v57 }
  0x27   :  { %v9647_v53 = vpack.i.bf16 %v14453_v50, %v14470_v49  ;;  %v14454_v1 = vunpack.c.l.bf16 %v9669_v62  ;;  %v14471_v2 = vunpack.c.h.bf16 %v9669_v62  ;;  %v7170_v8 = vunpack.c.l.bf16 %v7290_v6 }
  0x28   :  { %7706 = vperm.xlu1 %7664, %v9500_v43   ;;  %7913 = vperm.xlu0 %7825, %v9500_v43   ;;  %v9662_v58 = vpack.i.bf16 %v14475_v56, %v14460_v54  ;;  %v9677_v0 = vpack.i.bf16 %v14473_v61, %v14456_v60  ;;  %v7171_v10 = vunpack.c.h.bf16 %v7290_v6  ;;  %v14462_v17 = vunpack.c.l.bf16 %v9695_v11 }
  0x29   :  { %v9690_v7 = vpack.i.bf16 %v14471_v2, %v14454_v1  ;;  %v14461_v18 = vunpack.c.h.bf16 %v9695_v11  ;;  %v14458_v24 = vunpack.c.l.bf16 %v9706_v20  ;;  %v14457_v6 = vunpack.c.h.bf16 %v9706_v20  ;;  %v7298_v1 = vld [vmem:[%s14441_s1 + $0x1f8] sm:$0xff]  }
  0x2a   :  { %v9699_v12 = vpack.i.bf16 %v7171_v10, %v7170_v8  ;;  %v9721_v8 = vld [vmem:[%s14441_s1 + $0x1e8] sm:$0xff]   ;;  %v7202_v60 = vunpack.c.l.bf16 %v7298_v1  ;;  %v6982_v49 = vunpack.c.l.bf16 %v7243_v33  ;;  %v6983_v2 = vunpack.c.h.bf16 %v7243_v33  ;;  %v7247_v33 = vld [vmem:[%s14441_s1 + $0x60] sm:$0xff]  }
  0x2b   :  { %v9714_v22 = vpack.i.bf16 %v14461_v18, %v14462_v17  ;;  %14906 = vst [vmem:[#allocation16_spill] sm:$0xff] %v9721_v8  ;;  %v9729_v10 = vpack.i.bf16 %v14457_v6, %v14458_v24  ;;  %v14464_v29 = vunpack.c.l.bf16 %v9721_v8  ;;  %v14463_v50 = vunpack.c.h.bf16 %v9721_v8  ;;  %v7236_v24 = vld [vmem:[%s14441_s1 + $0x8] sm:$0xff]   ;;  %v7239_v17 = vld [vmem:[%s14441_s1 + $0x20] sm:$0xff]  }
  0x2c   :  { %7711 = vperm.xlu1 %7664, %v9507_v47   ;;  %7923 = vperm.xlu0 %7825, %v9507_v47   ;;  %v7203_v6 = vunpack.c.h.bf16 %v7298_v1  ;;  %v6954_v54 = vunpack.c.l.bf16 %v7236_v24  ;;  %v6955_v18 = vunpack.c.h.bf16 %v7236_v24  ;;  %v14476_v24 = vmov 2  }
  0x2d   :  { %v9742_v45 = vpack.i.bf16 %v14463_v50, %v14464_v29  ;;  %v6966_v50 = vunpack.c.l.bf16 %v7239_v17  ;;  %v6967_v29 = vunpack.c.h.bf16 %v7239_v17  ;;  %v6974_v17 = vunpack.c.l.bf16 %v7241_v34 }
  0x2e   :  { %v9749_v40 = vpack.i.bf16 %v7203_v6, %v7202_v60  ;;  %v9756_v1 = vpack.i.bf16 %v6955_v18, %v6954_v54  ;;  %v6975_v18 = vunpack.c.h.bf16 %v7241_v34  ;;  %v9791_v44 = vpack.i.bf16 %v6983_v2, %v6982_v49  ;;  %v7249_v49 = vld [vmem:[%s14441_s1 + $0x70] sm:$0xff]  }
  0x2f   :  { %v9769_v54 = vpack.i.bf16 %v6967_v29, %v6966_v50  ;;  %v7245_v29 = vld [vmem:[%s14441_s1 + $0x50] sm:$0xff]   ;;  %v6999_v8 = vunpack.c.h.bf16 %v7247_v33  ;;  %v7006_v11 = vunpack.c.l.bf16 %v7249_v49  ;;  %v7007_v30 = vunpack.c.h.bf16 %v7249_v49 }
  0x30   :  { %7716 = vperm.xlu1 %7664, %v9514_v51   ;;  %7933 = vperm.xlu0 %7825, %v9514_v51   ;;  %14907 = vst [vmem:[#allocation17_spill] sm:$0xff] %v9749_v40  ;;  %v6990_v61 = vunpack.c.l.bf16 %v7245_v29  ;;  %v6991_v38 = vunpack.c.h.bf16 %v7245_v29 }
  0x31   :  { %v9824_v25 = vpack.i.bf16 %v7007_v30, %v7006_v11  ;;  %v7255_v30 = vld [vmem:[%s14441_s1 + $0xa0] sm:$0xff]  }
  0x32   :  { %v9802_v56 = vpack.i.bf16 %v6991_v38, %v6990_v61  ;;  %v7251_v38 = vld [vmem:[%s14441_s1 + $0x80] sm:$0xff]  }
  0x34   :  { %7721 = vperm.xlu1 %7664, %v9521_v55   ;;  %7943 = vperm.xlu0 %7825, %v9521_v55  }
  0x38   :  { %7726 = vperm.xlu1 %7664, %v9528_v59   ;;  %7953 = vperm.xlu0 %7825, %v9528_v59  }
  0x3c   :  { %7731 = vperm.xlu1 %7664, %v9535_v63   ;;  %7963 = vperm.xlu0 %7825, %v9535_v63  }
  0x40   :  { %7736 = vperm.xlu1 %7664, %v9542_v3   ;;  %7973 = vperm.xlu0 %7825, %v9542_v3  }
  0x44   :  { %7741 = vperm.xlu1 %7664, %v9549_v9   ;;  %7983 = vperm.xlu0 %7825, %v9549_v9  }
  0x48   :  { %7746 = vperm.xlu1 %7664, %v9556_v16   ;;  %7993 = vperm.xlu0 %7825, %v9556_v16  }
  0x4c   :  { %7751 = vperm.xlu1 %7664, %v9563_v21   ;;  %8003 = vperm.xlu0 %7825, %v9563_v21  }
  0x50   :  { %7756 = vperm.xlu1 %7664, %v9572_v26   ;;  %8013 = vperm.xlu0 %7825, %v9572_v26  }
  0x54   :  { %7761 = vperm.xlu1 %7664, %v9587_v32   ;;  %8023 = vperm.xlu0 %7825, %v9587_v32  }
  0x58   :  { %7766 = vperm.xlu1 %7664, %v9602_v37   ;;  %8033 = vperm.xlu0 %7825, %v9602_v37  }
  0x5c   :  { %7771 = vperm.xlu1 %7664, %v9617_v42   ;;  %8043 = vperm.xlu0 %7825, %v9617_v42  }
  0x60   :  { %7776 = vperm.xlu1 %7664, %v9632_v48   ;;  %8053 = vperm.xlu0 %7825, %v9632_v48  }
  0x64   :  { %7781 = vperm.xlu1 %7664, %v9647_v53   ;;  %8063 = vperm.xlu0 %7825, %v9647_v53  }
  0x68   :  { %7786 = vperm.xlu1 %7664, %v9662_v58   ;;  %8073 = vperm.xlu0 %7825, %v9662_v58  }
  0x6c   :  { %7791 = vperm.xlu1 %7664, %v9677_v0   ;;  %8083 = vperm.xlu0 %7825, %v9677_v0  }
  0x70   :  { %7796 = vperm.xlu1 %7664, %v9690_v7   ;;  %8093 = vperm.xlu0 %7825, %v9690_v7  }
  0x74   :  { %7801 = vperm.xlu1 %7664, %v9699_v12   ;;  %8103 = vperm.xlu0 %7825, %v9699_v12  }
  0x78   :  { %7806 = vperm.xlu1 %7664, %v9714_v22   ;;  %8113 = vperm.xlu0 %7825, %v9714_v22  }
  0x7c   :  { %7811 = vperm.xlu1 %7664, %v9729_v10   ;;  %8123 = vperm.xlu0 %7825, %v9729_v10  }
  0x80   :  { %7816 = vperm.xlu1 %7664, %v9742_v45   ;;  %8133 = vperm.xlu0 %7825, %v9742_v45  }
  0x84   :  { %7821 = vperm.xlu1 %7664, %v9749_v40   ;;  %8143 = vperm.xlu0 %7825, %v9749_v40  }
  0x87   :  { %v9761_v60 = vpop.permute.xlu1 %7666  ;;  %v9763_v6 = vpop.permute.xlu0 %7827 }
  0x88   :  { %14908 = vst [vmem:[#allocation18_spill] sm:$0xff] %v9761_v60  ;;  %14909 = vst [vmem:[#allocation19_spill] sm:$0xff] %v9763_v6  ;;  %7831 = vset.pattern.permute.xlu1 %v9362_v4  ;;  %8153 = vset.pattern.permute.xlu0 %v14476_v24  ;;  %v9780_v4 = vpack.i.bf16 %v6975_v18, %v6974_v17  ;;  %v6998_v24 = vunpack.c.l.bf16 %v7247_v33 }
  0x89   :  { %7833 = vperm.xlu1 %7831, %v9756_v1   ;;  %8155 = vperm.xlu0 %8153, %v9756_v1  }
  0x8a   :  { %v9813_v20 = vpack.i.bf16 %v6999_v8, %v6998_v24  ;;  %v7253_v8 = vld [vmem:[%s14441_s1 + $0x90] sm:$0xff]  }
  0x8b   :  { %v9774_v28 = vpop.permute.xlu1 %7671  ;;  %v9776_v5 = vpop.permute.xlu0 %7843 }
  0x8c   :  { %14910 = vst [vmem:[#allocation20_spill] sm:$0xff] %v9774_v28  ;;  %14911 = vst [vmem:[#allocation21_spill] sm:$0xff] %v9776_v5 }
  0x8d   :  { %7838 = vperm.xlu1 %7831, %v9445_v13   ;;  %8170 = vperm.xlu0 %8153, %v9769_v54  }
  0x8f   :  { %v9785_v34 = vpop.permute.xlu1 %7676  ;;  %v9787_v50 = vpop.permute.xlu0 %7853 }
  0x90   :  { %14912 = vst [vmem:[#allocation22_spill] sm:$0xff] %v9785_v34  ;;  %14913 = vst [vmem:[#allocation23_spill] sm:$0xff] %v9787_v50 }
  0x91   :  { %7848 = vperm.xlu1 %7831, %v9769_v54   ;;  %8180 = vperm.xlu0 %8153, %v9780_v4  }
  0x93   :  { %v9796_v17 = vpop.permute.xlu1 %7681  ;;  %v9798_v18 = vpop.permute.xlu0 %7863 }
  0x94   :  { %14914 = vst [vmem:[#allocation24_spill] sm:$0xff] %v9796_v17  ;;  %14915 = vst [vmem:[#allocation25_spill] sm:$0xff] %v9798_v18  ;;  %v7023_v18 = vunpack.c.h.bf16 %v7253_v8  ;;  %v7031_v17 = vunpack.c.h.bf16 %v7255_v30 }
  0x95   :  { %7858 = vperm.xlu1 %7831, %v9780_v4   ;;  %8190 = vperm.xlu0 %8153, %v9791_v44  }
  0x97   :  { %v9807_v2 = vpop.permute.xlu1 %7686  ;;  %v9809_v29 = vpop.permute.xlu0 %7873 }
  0x98   :  { %14916 = vst [vmem:[#allocation26_spill] sm:$0xff] %v9807_v2  ;;  %14917 = vst [vmem:[#allocation27_spill] sm:$0xff] %v9809_v29  ;;  %v7014_v29 = vunpack.c.l.bf16 %v7251_v38  ;;  %v7015_v2 = vunpack.c.h.bf16 %v7251_v38 }
  0x99   :  { %7868 = vperm.xlu1 %7831, %v9791_v44   ;;  %8200 = vperm.xlu0 %8153, %v9802_v56  }
  0x9b   :  { %v9818_v61 = vpop.permute.xlu1 %7691  ;;  %v9820_v33 = vpop.permute.xlu0 %7883 }
  0x9c   :  { %14918 = vst [vmem:[#allocation28_spill] sm:$0xff] %v9818_v61  ;;  %14919 = vst [vmem:[#allocation29_spill] sm:$0xff] %v9820_v33  ;;  %v9835_v33 = vpack.i.bf16 %v7015_v2, %v7014_v29  ;;  %v7022_v61 = vunpack.c.l.bf16 %v7253_v8  ;;  %v7257_v2 = vld [vmem:[%s14441_s1 + $0xb0] sm:$0xff]  }
  0x9d   :  { %7878 = vperm.xlu1 %7831, %v9802_v56   ;;  %8210 = vperm.xlu0 %8153, %v9813_v20   ;;  %v7039_v6 = vunpack.c.h.bf16 %v7257_v2 }
  0x9f   :  { %v9829_v24 = vpop.permute.xlu1 %7696  ;;  %v9831_v49 = vpop.permute.xlu0 %7893 }
  0xa0   :  { %14920 = vst [vmem:[#allocation30_spill] sm:$0xff] %v9829_v24  ;;  %14921 = vst [vmem:[#allocation31_spill] sm:$0xff] %v9831_v49  ;;  %v9846_v49 = vpack.i.bf16 %v7023_v18, %v7022_v61  ;;  %v7030_v24 = vunpack.c.l.bf16 %v7255_v30  ;;  %v7259_v18 = vld [vmem:[%s14441_s1 + $0xc0] sm:$0xff]  }
  0xa1   :  { %7888 = vperm.xlu1 %7831, %v9813_v20   ;;  %8220 = vperm.xlu0 %8153, %v9824_v25   ;;  %v7047_v50 = vunpack.c.h.bf16 %v7259_v18 }
  0xa3   :  { %v9840_v11 = vpop.permute.xlu1 %7701  ;;  %v9842_v38 = vpop.permute.xlu0 %7903 }
  0xa4   :  { %14922 = vst [vmem:[#allocation32_spill] sm:$0xff] %v9840_v11  ;;  %14923 = vst [vmem:[#allocation33_spill] sm:$0xff] %v9842_v38  ;;  %v9857_v38 = vpack.i.bf16 %v7031_v17, %v7030_v24  ;;  %v7038_v11 = vunpack.c.l.bf16 %v7257_v2  ;;  %v7261_v17 = vld [vmem:[%s14441_s1 + $0xd0] sm:$0xff]  }
  0xa5   :  { %7898 = vperm.xlu1 %7831, %v9824_v25   ;;  %8230 = vperm.xlu0 %8153, %v9835_v33   ;;  %v7055_v34 = vunpack.c.h.bf16 %v7261_v17 }
  0xa7   :  { %v9851_v29 = vpop.permute.xlu1 %7706  ;;  %v9853_v8 = vpop.permute.xlu0 %7913 }
  0xa8   :  { %14924 = vst [vmem:[#allocation34_spill] sm:$0xff] %v9851_v29  ;;  %14925 = vst [vmem:[#allocation35_spill] sm:$0xff] %v9853_v8  ;;  %v9868_v8 = vpack.i.bf16 %v7039_v6, %v7038_v11  ;;  %v7046_v29 = vunpack.c.l.bf16 %v7259_v18  ;;  %v7263_v6 = vld [vmem:[%s14441_s1 + $0xe0] sm:$0xff]  }
  0xa9   :  { %7908 = vperm.xlu1 %7831, %v9835_v33   ;;  %8240 = vperm.xlu0 %8153, %v9846_v49   ;;  %v7063_v5 = vunpack.c.h.bf16 %v7263_v6 }
  0xab   :  { %v9862_v61 = vpop.permute.xlu1 %7711  ;;  %v9864_v30 = vpop.permute.xlu0 %7923 }
  0xac   :  { %14926 = vst [vmem:[#allocation36_spill] sm:$0xff] %v9862_v61  ;;  %14927 = vst [vmem:[#allocation37_spill] sm:$0xff] %v9864_v30  ;;  %v9879_v30 = vpack.i.bf16 %v7047_v50, %v7046_v29  ;;  %v7054_v61 = vunpack.c.l.bf16 %v7261_v17  ;;  %v7265_v50 = vld [vmem:[%s14441_s1 + $0xf0] sm:$0xff]  }
  0xad   :  { %7918 = vperm.xlu1 %7831, %v9846_v49   ;;  %8250 = vperm.xlu0 %8153, %v9857_v38   ;;  %v7071_v28 = vunpack.c.h.bf16 %v7265_v50 }
  0xaf   :  { %v9873_v24 = vpop.permute.xlu1 %7716  ;;  %v9875_v2 = vpop.permute.xlu0 %7933 }
  0xb0   :  { %14928 = vst [vmem:[#allocation38_spill] sm:$0xff] %v9873_v24  ;;  %14929 = vst [vmem:[#allocation39_spill] sm:$0xff] %v9875_v2  ;;  %v9890_v2 = vpack.i.bf16 %v7055_v34, %v7054_v61  ;;  %v7062_v24 = vunpack.c.l.bf16 %v7263_v6  ;;  %v7267_v34 = vld [vmem:[%s14441_s1 + $0x100] sm:$0xff]  }
  0xb1   :  { %7928 = vperm.xlu1 %7831, %v9857_v38   ;;  %8260 = vperm.xlu0 %8153, %v9868_v8   ;;  %v7079_v60 = vunpack.c.h.bf16 %v7267_v34 }
  0xb3   :  { %v9884_v11 = vpop.permute.xlu1 %7721  ;;  %v9886_v18 = vpop.permute.xlu0 %7943 }
  0xb4   :  { %14930 = vst [vmem:[#allocation40_spill] sm:$0xff] %v9884_v11  ;;  %14931 = vst [vmem:[#allocation41_spill] sm:$0xff] %v9886_v18  ;;  %v9901_v18 = vpack.i.bf16 %v7063_v5, %v7062_v24  ;;  %v7070_v11 = vunpack.c.l.bf16 %v7265_v50  ;;  %v7269_v5 = vld [vmem:[%s14441_s1 + $0x110] sm:$0xff]  }
  0xb5   :  { %7938 = vperm.xlu1 %7831, %v9868_v8   ;;  %8270 = vperm.xlu0 %8153, %v9879_v30   ;;  %v7087_v46 = vunpack.c.h.bf16 %v7269_v5 }
  0xb7   :  { %v9895_v29 = vpop.permute.xlu1 %7726  ;;  %v9897_v17 = vpop.permute.xlu0 %7953 }
  0xb8   :  { %14932 = vst [vmem:[#allocation42_spill] sm:$0xff] %v9895_v29  ;;  %14933 = vst [vmem:[#allocation43_spill] sm:$0xff] %v9897_v17  ;;  %v9912_v17 = vpack.i.bf16 %v7071_v28, %v7070_v11  ;;  %v7078_v29 = vunpack.c.l.bf16 %v7267_v34  ;;  %v7271_v28 = vld [vmem:[%s14441_s1 + $0x120] sm:$0xff]  }
  0xb9   :  { %7948 = vperm.xlu1 %7831, %v9879_v30   ;;  %8280 = vperm.xlu0 %8153, %v9890_v2   ;;  %v7095_v62 = vunpack.c.h.bf16 %v7271_v28 }
  0xbb   :  { %v9906_v61 = vpop.permute.xlu1 %7731  ;;  %v9908_v6 = vpop.permute.xlu0 %7963 }
  0xbc   :  { %14934 = vst [vmem:[#allocation44_spill] sm:$0xff] %v9906_v61  ;;  %14935 = vst [vmem:[#allocation45_spill] sm:$0xff] %v9908_v6  ;;  %v9923_v6 = vpack.i.bf16 %v7079_v60, %v7078_v29  ;;  %v7086_v61 = vunpack.c.l.bf16 %v7269_v5  ;;  %v7273_v60 = vld [vmem:[%s14441_s1 + $0x130] sm:$0xff]  }
  0xbd   :  { %7958 = vperm.xlu1 %7831, %v9890_v2   ;;  %8290 = vperm.xlu0 %8153, %v9901_v18   ;;  %v7103_v41 = vunpack.c.h.bf16 %v7273_v60 }
  0xbf   :  { %v9917_v24 = vpop.permute.xlu1 %7736  ;;  %v9919_v50 = vpop.permute.xlu0 %7973 }
  0xc0   :  { %14936 = vst [vmem:[#allocation46_spill] sm:$0xff] %v9917_v24  ;;  %14937 = vst [vmem:[#allocation47_spill] sm:$0xff] %v9919_v50  ;;  %v9934_v50 = vpack.i.bf16 %v7087_v46, %v7086_v61  ;;  %v7094_v24 = vunpack.c.l.bf16 %v7271_v28  ;;  %v9950_v46 = vld [vmem:[%s14441_s1 + $0x140] sm:$0xff]  }
  0xc1   :  { %7968 = vperm.xlu1 %7831, %v9901_v18   ;;  %8300 = vperm.xlu0 %8153, %v9912_v17   ;;  %14942 = vst [vmem:[#allocation52_spill] sm:$0xff] %v9950_v46 }
  0xc3   :  { %v9928_v11 = vpop.permute.xlu1 %7741  ;;  %v9930_v34 = vpop.permute.xlu0 %7983 }
  0xc4   :  { %14938 = vst [vmem:[#allocation48_spill] sm:$0xff] %v9928_v11  ;;  %14939 = vst [vmem:[#allocation49_spill] sm:$0xff] %v9930_v34  ;;  %v9945_v34 = vpack.i.bf16 %v7095_v62, %v7094_v24  ;;  %v7102_v11 = vunpack.c.l.bf16 %v7273_v60  ;;  %v14534_v62 = vunpack.c.l.bf16 %v9950_v46  ;;  %v14533_v24 = vunpack.c.h.bf16 %v9950_v46  ;;  %v9965_v60 = vld [vmem:[%s14441_s1 + $0x150] sm:$0xff]  }
  0xc5   :  { %7978 = vperm.xlu1 %7831, %v9912_v17   ;;  %8310 = vperm.xlu0 %8153, %v9923_v6   ;;  %14946 = vst [vmem:[#allocation56_spill] sm:$0xff] %v9965_v60 }
  0xc7   :  { %v9939_v29 = vpop.permute.xlu1 %7746  ;;  %v9941_v5 = vpop.permute.xlu0 %7993 }
  0xc8   :  { %14940 = vst [vmem:[#allocation50_spill] sm:$0xff] %v9939_v29  ;;  %14941 = vst [vmem:[#allocation51_spill] sm:$0xff] %v9941_v5  ;;  %v9958_v5 = vpack.i.bf16 %v7103_v41, %v7102_v11  ;;  %v9977_v41 = vpack.i.bf16 %v14533_v24, %v14534_v62  ;;  %v14542_v11 = vunpack.c.l.bf16 %v9965_v60 }
  0xc9   :  { %7988 = vperm.xlu1 %7831, %v9923_v6   ;;  %8320 = vperm.xlu0 %8153, %v9934_v50  }
  0xca   :  { %14945 = vst [vmem:[#allocation55_spill] sm:$0xff] %v9958_v5  ;;  %14949 = vst [vmem:[#allocation59_spill] sm:$0xff] %v9977_v41 }
  0xcb   :  { %v9952_v61 = vpop.permute.xlu1 %7751  ;;  %v9954_v28 = vpop.permute.xlu0 %8003 }
  0xcc   :  { %14943 = vst [vmem:[#allocation53_spill] sm:$0xff] %v9952_v61  ;;  %14944 = vst [vmem:[#allocation54_spill] sm:$0xff] %v9954_v28  ;;  %v14541_v28 = vunpack.c.h.bf16 %v9965_v60 }
  0xcd   :  { %7998 = vperm.xlu1 %7831, %v9934_v50   ;;  %8330 = vperm.xlu0 %8153, %v9945_v34  }
  0xce   :  { %v9996_v24 = vpack.i.bf16 %v14541_v28, %v14542_v11 }
  0xcf   :  { %v9967_v29 = vpop.permute.xlu1 %7756  ;;  %v9969_v61 = vpop.permute.xlu0 %8013 }
  0xd0   :  { %14947 = vst [vmem:[#allocation57_spill] sm:$0xff] %v9967_v29  ;;  %14948 = vst [vmem:[#allocation58_spill] sm:$0xff] %v9969_v61  ;;  %v9984_v29 = vld [vmem:[%s14441_s1 + $0x160] sm:$0xff]  }
  0xd1   :  { %8008 = vperm.xlu1 %7831, %v9945_v34   ;;  %8340 = vperm.xlu0 %8153, %v9958_v5   ;;  %14950 = vst [vmem:[#allocation60_spill] sm:$0xff] %v9984_v29  ;;  %14953 = vst [vmem:[#allocation63_spill] sm:$0xff] %v9996_v24  ;;  %v14550_v62 = vunpack.c.l.bf16 %v9984_v29  ;;  %v14549_v46 = vunpack.c.h.bf16 %v9984_v29 }
  0xd3   :  { %v9986_v61 = vpop.permute.xlu1 %7761  ;;  %v9988_v57 = vpop.permute.xlu0 %8023  ;;  %v10015_v28 = vpack.i.bf16 %v14549_v46, %v14550_v62 }
  0xd4   :  { %14951 = vst [vmem:[#allocation61_spill] sm:$0xff] %v9986_v61  ;;  %14952 = vst [vmem:[#allocation62_spill] sm:$0xff] %v9988_v57  ;;  %v10003_v61 = vld [vmem:[%s14441_s1 + $0x170] sm:$0xff]  }
  0xd5   :  { %8018 = vperm.xlu1 %7831, %v9958_v5   ;;  %8350 = vperm.xlu0 %8153, %v9977_v41   ;;  %14954 = vst [vmem:[#allocation64_spill] sm:$0xff] %v10003_v61  ;;  %14957 = vst [vmem:[#allocation67_spill] sm:$0xff] %v10015_v28  ;;  %v14558_v11 = vunpack.c.l.bf16 %v10003_v61  ;;  %v14557_v60 = vunpack.c.h.bf16 %v10003_v61 }
  0xd7   :  { %v10005_v57 = vpop.permute.xlu1 %7766  ;;  %v10007_v36 = vpop.permute.xlu0 %8033  ;;  %v10034_v46 = vpack.i.bf16 %v14557_v60, %v14558_v11 }
  0xd8   :  { %14955 = vst [vmem:[#allocation65_spill] sm:$0xff] %v10005_v57  ;;  %14956 = vst [vmem:[#allocation66_spill] sm:$0xff] %v10007_v36  ;;  %v10022_v57 = vld [vmem:[%s14441_s1 + $0x180] sm:$0xff]  }
  0xd9   :  { %8028 = vperm.xlu1 %7831, %v9977_v41   ;;  %8360 = vperm.xlu0 %8153, %v9996_v24   ;;  %14958 = vst [vmem:[#allocation68_spill] sm:$0xff] %v10022_v57  ;;  %14961 = vst [vmem:[#allocation71_spill] sm:$0xff] %v10034_v46  ;;  %v14566_v62 = vunpack.c.l.bf16 %v10022_v57  ;;  %v14565_v29 = vunpack.c.h.bf16 %v10022_v57 }
  0xdb   :  { %v10024_v36 = vpop.permute.xlu1 %7771  ;;  %v10026_v41 = vpop.permute.xlu0 %8043  ;;  %v10053_v60 = vpack.i.bf16 %v14565_v29, %v14566_v62 }
  0xdc   :  { %14959 = vst [vmem:[#allocation69_spill] sm:$0xff] %v10024_v36  ;;  %14960 = vst [vmem:[#allocation70_spill] sm:$0xff] %v10026_v41  ;;  %v10041_v36 = vld [vmem:[%s14441_s1 + $0x190] sm:$0xff]  }
  0xdd   :  { %8038 = vperm.xlu1 %7831, %v9996_v24   ;;  %8370 = vperm.xlu0 %8153, %v10015_v28   ;;  %14962 = vst [vmem:[#allocation72_spill] sm:$0xff] %v10041_v36  ;;  %14965 = vst [vmem:[#allocation75_spill] sm:$0xff] %v10053_v60  ;;  %v14574_v11 = vunpack.c.l.bf16 %v10041_v36  ;;  %v14573_v61 = vunpack.c.h.bf16 %v10041_v36 }
  0xdf   :  { %v10043_v41 = vpop.permute.xlu1 %7776  ;;  %v10045_v24 = vpop.permute.xlu0 %8053  ;;  %v10072_v29 = vpack.i.bf16 %v14573_v61, %v14574_v11 }
  0xe0   :  { %14963 = vst [vmem:[#allocation73_spill] sm:$0xff] %v10043_v41  ;;  %14964 = vst [vmem:[#allocation74_spill] sm:$0xff] %v10045_v24  ;;  %v10060_v41 = vld [vmem:[%s14441_s1 + $0x1a0] sm:$0xff]  }
  0xe1   :  { %8048 = vperm.xlu1 %7831, %v10015_v28   ;;  %8380 = vperm.xlu0 %8153, %v10034_v46   ;;  %14966 = vst [vmem:[#allocation76_spill] sm:$0xff] %v10060_v41  ;;  %14969 = vst [vmem:[#allocation79_spill] sm:$0xff] %v10072_v29  ;;  %v14582_v62 = vunpack.c.l.bf16 %v10060_v41  ;;  %v14581_v52 = vunpack.c.h.bf16 %v10060_v41 }
  0xe3   :  { %v10062_v24 = vpop.permute.xlu1 %7781  ;;  %v10064_v28 = vpop.permute.xlu0 %8063  ;;  %v10091_v61 = vpack.i.bf16 %v14581_v52, %v14582_v62 }
  0xe4   :  { %14967 = vst [vmem:[#allocation77_spill] sm:$0xff] %v10062_v24  ;;  %14968 = vst [vmem:[#allocation78_spill] sm:$0xff] %v10064_v28  ;;  %v10079_v24 = vld [vmem:[%s14441_s1 + $0x1b0] sm:$0xff]  }
  0xe5   :  { %8058 = vperm.xlu1 %7831, %v10034_v46   ;;  %8390 = vperm.xlu0 %8153, %v10053_v60   ;;  %14970 = vst [vmem:[#allocation80_spill] sm:$0xff] %v10079_v24  ;;  %14973 = vst [vmem:[#allocation83_spill] sm:$0xff] %v10091_v61  ;;  %v14590_v11 = vunpack.c.l.bf16 %v10079_v24  ;;  %v14589_v36 = vunpack.c.h.bf16 %v10079_v24 }
  0xe7   :  { %v10081_v28 = vpop.permute.xlu1 %7786  ;;  %v10083_v46 = vpop.permute.xlu0 %8073  ;;  %v10110_v52 = vpack.i.bf16 %v14589_v36, %v14590_v11 }
  0xe8   :  { %14971 = vst [vmem:[#allocation81_spill] sm:$0xff] %v10081_v28  ;;  %14972 = vst [vmem:[#allocation82_spill] sm:$0xff] %v10083_v46  ;;  %v10098_v28 = vld [vmem:[%s14441_s1 + $0x1c0] sm:$0xff]  }
  0xe9   :  { %8068 = vperm.xlu1 %7831, %v10053_v60   ;;  %8400 = vperm.xlu0 %8153, %v10072_v29   ;;  %14974 = vst [vmem:[#allocation84_spill] sm:$0xff] %v10098_v28  ;;  %14977 = vst [vmem:[#allocation87_spill] sm:$0xff] %v10110_v52  ;;  %v14597_v62 = vunpack.c.l.bf16 %v10098_v28  ;;  %v14598_v41 = vunpack.c.h.bf16 %v10098_v28 }
  0xeb   :  { %v10100_v46 = vpop.permute.xlu1 %7791  ;;  %v10102_v60 = vpop.permute.xlu0 %8083  ;;  %v10129_v36 = vpack.i.bf16 %v14598_v41, %v14597_v62 }
  0xec   :  { %14975 = vst [vmem:[#allocation85_spill] sm:$0xff] %v10100_v46  ;;  %14976 = vst [vmem:[#allocation86_spill] sm:$0xff] %v10102_v60  ;;  %v10117_v46 = vld [vmem:[%s14441_s1 + $0x1d0] sm:$0xff]  }
  0xed   :  { %8078 = vperm.xlu1 %7831, %v10072_v29   ;;  %8410 = vperm.xlu0 %8153, %v10091_v61   ;;  %14978 = vst [vmem:[#allocation88_spill] sm:$0xff] %v10117_v46  ;;  %14981 = vst [vmem:[#allocation91_spill] sm:$0xff] %v10129_v36  ;;  %v14606_v11 = vunpack.c.l.bf16 %v10117_v46  ;;  %v14605_v24 = vunpack.c.h.bf16 %v10117_v46 }
  0xef   :  { %v10119_v60 = vpop.permute.xlu1 %7796  ;;  %v10121_v29 = vpop.permute.xlu0 %8093  ;;  %v10148_v62 = vpack.i.bf16 %v14605_v24, %v14606_v11 }
  0xf0   :  { %14979 = vst [vmem:[#allocation89_spill] sm:$0xff] %v10119_v60  ;;  %14980 = vst [vmem:[#allocation90_spill] sm:$0xff] %v10121_v29  ;;  %v10136_v60 = vld [vmem:[%s14441_s1 + $0x1e0] sm:$0xff]  }
  0xf1   :  { %8088 = vperm.xlu1 %7831, %v10091_v61   ;;  %8420 = vperm.xlu0 %8153, %v10110_v52   ;;  %14984 = vst [vmem:[#allocation94_spill] sm:$0xff] %v10148_v62  ;;  %v14615_v41 = vunpack.c.l.bf16 %v10136_v60  ;;  %v14614_v57 = vunpack.c.h.bf16 %v10136_v60 }
  0xf3   :  { %v10138_v29 = vpop.permute.xlu1 %7801  ;;  %v10140_v61 = vpop.permute.xlu0 %8103  ;;  %v10167_v24 = vpack.i.bf16 %v14614_v57, %v14615_v41 }
  0xf4   :  { %14982 = vst [vmem:[#allocation92_spill] sm:$0xff] %v10138_v29  ;;  %14983 = vst [vmem:[#allocation93_spill] sm:$0xff] %v10140_v61  ;;  %v10155_v29 = vld [vmem:[%s14441_s1 + $0x1f0] sm:$0xff]  }
  0xf5   :  { %8098 = vperm.xlu1 %7831, %v10110_v52   ;;  %8430 = vperm.xlu0 %8153, %v10129_v36   ;;  %14987 = vst [vmem:[#allocation97_spill] sm:$0xff] %v10167_v24  ;;  %v14620_v11 = vunpack.c.l.bf16 %v10155_v29  ;;  %v14619_v46 = vunpack.c.h.bf16 %v10155_v29 }
  0xf7   :  { %v10157_v61 = vpop.permute.xlu1 %7806  ;;  %v10159_v52 = vpop.permute.xlu0 %8113 }
  0xf8   :  { %14985 = vst [vmem:[#allocation95_spill] sm:$0xff] %v10157_v61  ;;  %14986 = vst [vmem:[#allocation96_spill] sm:$0xff] %v10159_v52  ;;  %v10181_v52 = vpack.i.bf16 %v14619_v46, %v14620_v11  ;;  %v14624_v61 = vmov 3  }
  0xf9   :  { %8108 = vperm.xlu1 %7831, %v10129_v36   ;;  %8440 = vperm.xlu0 %8153, %v10148_v62  }
  0xfa   :  { %14990 = vst [vmem:[#allocation100_spill] sm:$0xff] %v10181_v52 }
  0xfb   :  { %v10171_v28 = vpop.permute.xlu1 %7811  ;;  %v10173_v5 = vpop.permute.xlu0 %8123 }
  0xfc   :  { %14988 = vst [vmem:[#allocation98_spill] sm:$0xff] %v10171_v28  ;;  %14989 = vst [vmem:[#allocation99_spill] sm:$0xff] %v10173_v5 }
  0xfd   :  { %8118 = vperm.xlu1 %7831, %v10148_v62   ;;  %8450 = vperm.xlu0 %8153, %v10167_v24  }
  0xff   :  { %v10183_v57 = vpop.permute.xlu1 %7816  ;;  %v10185_v41 = vpop.permute.xlu0 %8133 }
 0x100   :  { %14991 = vst [vmem:[#allocation101_spill] sm:$0xff] %v10183_v57  ;;  %14992 = vst [vmem:[#allocation102_spill] sm:$0xff] %v10185_v41  ;;  %v14997_v41 = vmov 2  }
 0x101   :  { %8128 = vperm.xlu1 %7831, %v10167_v24   ;;  %8460 = vperm.xlu0 %8153, %v10181_v52  }
 0x103   :  { %v10189_v28 = vpop.permute.xlu1 %7821  ;;  %v10191_v5 = vpop.permute.xlu0 %8143 }
 0x104   :  { %14993 = vst [vmem:[#allocation103_spill] sm:$0xff] %v10189_v28  ;;  %14994 = vst [vmem:[#allocation104_spill] sm:$0xff] %v10191_v5 }
 0x105   :  { %8138 = vperm.xlu1 %7831, %v10181_v52   ;;  %8469 = vset.pattern.permute.xlu0 %v14624_v61 }
 0x106   :  { %8471 = vperm.xlu0 %8469, %v9447_v14  }
 0x108   :  { %v10196_v46 = vpop.permute.xlu1 %7833  ;;  %v10198_v11 = vpop.permute.xlu0 %8155 }
 0x109   :  { %14995 = vst [vmem:[#allocation105_spill] sm:$0xff] %v10196_v46  ;;  %14996 = vst [vmem:[#allocation106_spill] sm:$0xff] %v10198_v11  ;;  %8147 = vset.pattern.permute.xlu1 %v14997_v41 }
 0x10a   :  { %8149 = vperm.xlu1 %8147, %v9447_v14   ;;  %8487 = vperm.xlu0 %8469, %v9451_v15  }
 0x10c   :  { %v10203_v28 = vpop.permute.xlu1 %7838  ;;  %v10205_v5 = vpop.permute.xlu0 %8170 }
 0x10d   :  { %14998 = vst [vmem:[#allocation107_spill] sm:$0xff] %v10203_v28  ;;  %14999 = vst [vmem:[#allocation108_spill] sm:$0xff] %v10205_v5 }
 0x10e   :  { %8160 = vperm.xlu1 %8147, %v9445_v13   ;;  %8497 = vperm.xlu0 %8469, %v9458_v19  }
 0x110   :  { %v10209_v61 = vpop.permute.xlu1 %7848  ;;  %v10211_v57 = vpop.permute.xlu0 %8180 }
 0x111   :  { %15000 = vst [vmem:[#allocation109_spill] sm:$0xff] %v10209_v61  ;;  %15001 = vst [vmem:[#allocation110_spill] sm:$0xff] %v10211_v57 }
 0x112   :  { %8165 = vperm.xlu1 %8147, %v9451_v15   ;;  %8507 = vperm.xlu0 %8469, %v9465_v23  }
 0x114   :  { %v10215_v41 = vpop.permute.xlu1 %7858  ;;  %v10217_v11 = vpop.permute.xlu0 %8190 }
 0x115   :  { %15002 = vst [vmem:[#allocation111_spill] sm:$0xff] %v10215_v41  ;;  %15003 = vst [vmem:[#allocation112_spill] sm:$0xff] %v10217_v11 }
 0x116   :  { %8175 = vperm.xlu1 %8147, %v9458_v19   ;;  %8517 = vperm.xlu0 %8469, %v9472_v27  }
 0x118   :  { %v10221_v5 = vpop.permute.xlu1 %7868  ;;  %v10223_v46 = vpop.permute.xlu0 %8200 }
 0x119   :  { %15004 = vst [vmem:[#allocation113_spill] sm:$0xff] %v10221_v5  ;;  %15005 = vst [vmem:[#allocation114_spill] sm:$0xff] %v10223_v46 }
 0x11a   :  { %8185 = vperm.xlu1 %8147, %v9465_v23   ;;  %8527 = vperm.xlu0 %8469, %v9479_v31  }
 0x11c   :  { %v10227_v57 = vpop.permute.xlu1 %7878  ;;  %v10229_v61 = vpop.permute.xlu0 %8210 }
 0x11d   :  { %15006 = vst [vmem:[#allocation115_spill] sm:$0xff] %v10227_v57  ;;  %15007 = vst [vmem:[#allocation116_spill] sm:$0xff] %v10229_v61 }
 0x11e   :  { %8195 = vperm.xlu1 %8147, %v9472_v27   ;;  %8537 = vperm.xlu0 %8469, %v9486_v35  }
 0x120   :  { %v10233_v11 = vpop.permute.xlu1 %7888  ;;  %v10235_v41 = vpop.permute.xlu0 %8220 }
 0x121   :  { %15008 = vst [vmem:[#allocation117_spill] sm:$0xff] %v10233_v11  ;;  %15009 = vst [vmem:[#allocation118_spill] sm:$0xff] %v10235_v41 }
 0x122   :  { %8205 = vperm.xlu1 %8147, %v9479_v31   ;;  %8547 = vperm.xlu0 %8469, %v9493_v39  }
 0x124   :  { %v10239_v46 = vpop.permute.xlu1 %7898  ;;  %v10241_v5 = vpop.permute.xlu0 %8230 }
 0x125   :  { %15010 = vst [vmem:[#allocation119_spill] sm:$0xff] %v10239_v46  ;;  %15011 = vst [vmem:[#allocation120_spill] sm:$0xff] %v10241_v5 }
 0x126   :  { %8215 = vperm.xlu1 %8147, %v9486_v35   ;;  %8557 = vperm.xlu0 %8469, %v9500_v43  }
 0x128   :  { %v10245_v61 = vpop.permute.xlu1 %7908  ;;  %v10247_v57 = vpop.permute.xlu0 %8240 }
 0x129   :  { %15012 = vst [vmem:[#allocation121_spill] sm:$0xff] %v10245_v61  ;;  %15013 = vst [vmem:[#allocation122_spill] sm:$0xff] %v10247_v57 }
 0x12a   :  { %8225 = vperm.xlu1 %8147, %v9493_v39   ;;  %8567 = vperm.xlu0 %8469, %v9507_v47  }
 0x12c   :  { %v10251_v41 = vpop.permute.xlu1 %7918  ;;  %v10253_v11 = vpop.permute.xlu0 %8250 }
 0x12d   :  { %15014 = vst [vmem:[#allocation123_spill] sm:$0xff] %v10251_v41  ;;  %15015 = vst [vmem:[#allocation124_spill] sm:$0xff] %v10253_v11 }
 0x12e   :  { %8235 = vperm.xlu1 %8147, %v9500_v43   ;;  %8577 = vperm.xlu0 %8469, %v9514_v51  }
 0x130   :  { %v10257_v5 = vpop.permute.xlu1 %7928  ;;  %v10259_v46 = vpop.permute.xlu0 %8260 }
 0x131   :  { %15016 = vst [vmem:[#allocation125_spill] sm:$0xff] %v10257_v5  ;;  %15017 = vst [vmem:[#allocation126_spill] sm:$0xff] %v10259_v46 }
 0x132   :  { %8245 = vperm.xlu1 %8147, %v9507_v47   ;;  %8587 = vperm.xlu0 %8469, %v9521_v55  }
 0x134   :  { %v10263_v57 = vpop.permute.xlu1 %7938  ;;  %v10265_v61 = vpop.permute.xlu0 %8270 }
 0x135   :  { %15018 = vst [vmem:[#allocation127_spill] sm:$0xff] %v10263_v57  ;;  %15019 = vst [vmem:[#allocation128_spill] sm:$0xff] %v10265_v61 }
 0x136   :  { %8255 = vperm.xlu1 %8147, %v9514_v51   ;;  %8597 = vperm.xlu0 %8469, %v9528_v59  }
 0x138   :  { %v10269_v11 = vpop.permute.xlu1 %7948  ;;  %v10271_v41 = vpop.permute.xlu0 %8280 }
 0x139   :  { %15020 = vst [vmem:[#allocation129_spill] sm:$0xff] %v10269_v11  ;;  %15021 = vst [vmem:[#allocation130_spill] sm:$0xff] %v10271_v41 }
 0x13a   :  { %8265 = vperm.xlu1 %8147, %v9521_v55   ;;  %8607 = vperm.xlu0 %8469, %v9535_v63  }
 0x13c   :  { %v10275_v46 = vpop.permute.xlu1 %7958  ;;  %v10277_v5 = vpop.permute.xlu0 %8290 }
 0x13d   :  { %15022 = vst [vmem:[#allocation131_spill] sm:$0xff] %v10275_v46  ;;  %15023 = vst [vmem:[#allocation132_spill] sm:$0xff] %v10277_v5 }
 0x13e   :  { %8275 = vperm.xlu1 %8147, %v9528_v59   ;;  %8617 = vperm.xlu0 %8469, %v9542_v3  }
 0x140   :  { %v10281_v61 = vpop.permute.xlu1 %7968  ;;  %v10283_v57 = vpop.permute.xlu0 %8300 }
 0x141   :  { %15024 = vst [vmem:[#allocation133_spill] sm:$0xff] %v10281_v61  ;;  %15025 = vst [vmem:[#allocation134_spill] sm:$0xff] %v10283_v57 }
 0x142   :  { %8285 = vperm.xlu1 %8147, %v9535_v63   ;;  %8627 = vperm.xlu0 %8469, %v9549_v9  }
 0x144   :  { %v10287_v41 = vpop.permute.xlu1 %7978  ;;  %v10289_v11 = vpop.permute.xlu0 %8310 }
 0x145   :  { %15026 = vst [vmem:[#allocation135_spill] sm:$0xff] %v10287_v41  ;;  %15027 = vst [vmem:[#allocation136_spill] sm:$0xff] %v10289_v11 }
 0x146   :  { %8295 = vperm.xlu1 %8147, %v9542_v3   ;;  %8637 = vperm.xlu0 %8469, %v9556_v16  }
 0x148   :  { %v10293_v5 = vpop.permute.xlu1 %7988  ;;  %v10295_v46 = vpop.permute.xlu0 %8320 }
 0x149   :  { %15028 = vst [vmem:[#allocation137_spill] sm:$0xff] %v10293_v5  ;;  %15029 = vst [vmem:[#allocation138_spill] sm:$0xff] %v10295_v46 }
 0x14a   :  { %8305 = vperm.xlu1 %8147, %v9549_v9   ;;  %8647 = vperm.xlu0 %8469, %v9563_v21  }
 0x14c   :  { %v10299_v57 = vpop.permute.xlu1 %7998  ;;  %v10301_v61 = vpop.permute.xlu0 %8330 }
 0x14d   :  { %15030 = vst [vmem:[#allocation139_spill] sm:$0xff] %v10299_v57  ;;  %15031 = vst [vmem:[#allocation140_spill] sm:$0xff] %v10301_v61 }
 0x14e   :  { %8315 = vperm.xlu1 %8147, %v9556_v16   ;;  %8657 = vperm.xlu0 %8469, %v9572_v26  }
 0x150   :  { %v10305_v11 = vpop.permute.xlu1 %8008  ;;  %v10307_v41 = vpop.permute.xlu0 %8340 }
 0x151   :  { %15032 = vst [vmem:[#allocation141_spill] sm:$0xff] %v10305_v11  ;;  %15033 = vst [vmem:[#allocation142_spill] sm:$0xff] %v10307_v41 }
 0x152   :  { %8325 = vperm.xlu1 %8147, %v9563_v21   ;;  %8667 = vperm.xlu0 %8469, %v9587_v32  }
 0x154   :  { %v10311_v46 = vpop.permute.xlu1 %8018  ;;  %v10313_v5 = vpop.permute.xlu0 %8350 }
 0x155   :  { %15034 = vst [vmem:[#allocation143_spill] sm:$0xff] %v10311_v46  ;;  %15035 = vst [vmem:[#allocation144_spill] sm:$0xff] %v10313_v5 }
 0x156   :  { %8335 = vperm.xlu1 %8147, %v9572_v26   ;;  %8677 = vperm.xlu0 %8469, %v9602_v37  }
 0x158   :  { %v10317_v61 = vpop.permute.xlu1 %8028  ;;  %v10319_v57 = vpop.permute.xlu0 %8360 }
 0x159   :  { %15036 = vst [vmem:[#allocation145_spill] sm:$0xff] %v10317_v61  ;;  %15037 = vst [vmem:[#allocation146_spill] sm:$0xff] %v10319_v57 }
 0x15a   :  { %8345 = vperm.xlu1 %8147, %v9587_v32   ;;  %8687 = vperm.xlu0 %8469, %v9617_v42  }
 0x15c   :  { %v10323_v41 = vpop.permute.xlu1 %8038  ;;  %v10325_v11 = vpop.permute.xlu0 %8370 }
 0x15d   :  { %15038 = vst [vmem:[#allocation147_spill] sm:$0xff] %v10323_v41  ;;  %15039 = vst [vmem:[#allocation148_spill] sm:$0xff] %v10325_v11 }
 0x15e   :  { %8355 = vperm.xlu1 %8147, %v9602_v37   ;;  %8697 = vperm.xlu0 %8469, %v9632_v48  }
 0x160   :  { %v10329_v5 = vpop.permute.xlu1 %8048  ;;  %v10331_v46 = vpop.permute.xlu0 %8380 }
 0x161   :  { %15040 = vst [vmem:[#allocation149_spill] sm:$0xff] %v10329_v5  ;;  %15041 = vst [vmem:[#allocation150_spill] sm:$0xff] %v10331_v46 }
 0x162   :  { %8365 = vperm.xlu1 %8147, %v9617_v42   ;;  %8707 = vperm.xlu0 %8469, %v9647_v53  }
 0x164   :  { %v10335_v57 = vpop.permute.xlu1 %8058  ;;  %v10337_v32 = vpop.permute.xlu0 %8390 }
 0x165   :  { %15042 = vst [vmem:[#allocation151_spill] sm:$0xff] %v10335_v57  ;;  %15043 = vst [vmem:[#allocation152_spill] sm:$0xff] %v10337_v32 }
 0x166   :  { %8375 = vperm.xlu1 %8147, %v9632_v48   ;;  %8717 = vperm.xlu0 %8469, %v9662_v58  }
 0x168   :  { %v10341_v11 = vpop.permute.xlu1 %8068  ;;  %v10343_v37 = vpop.permute.xlu0 %8400 }
 0x169   :  { %15044 = vst [vmem:[#allocation153_spill] sm:$0xff] %v10341_v11  ;;  %15045 = vst [vmem:[#allocation154_spill] sm:$0xff] %v10343_v37 }
 0x16a   :  { %8385 = vperm.xlu1 %8147, %v9647_v53   ;;  %8727 = vperm.xlu0 %8469, %v9677_v0  }
 0x16c   :  { %v10347_v46 = vpop.permute.xlu1 %8078  ;;  %v10349_v42 = vpop.permute.xlu0 %8410 }
 0x16d   :  { %15046 = vst [vmem:[#allocation155_spill] sm:$0xff] %v10347_v46  ;;  %15047 = vst [vmem:[#allocation156_spill] sm:$0xff] %v10349_v42 }
 0x16e   :  { %8395 = vperm.xlu1 %8147, %v9662_v58   ;;  %8737 = vperm.xlu0 %8469, %v9690_v7  }
 0x170   :  { %v10353_v32 = vpop.permute.xlu1 %8088  ;;  %v10355_v48 = vpop.permute.xlu0 %8420 }
 0x171   :  { %15048 = vst [vmem:[#allocation157_spill] sm:$0xff] %v10353_v32  ;;  %15049 = vst [vmem:[#allocation158_spill] sm:$0xff] %v10355_v48 }
 0x172   :  { %8405 = vperm.xlu1 %8147, %v9677_v0   ;;  %8747 = vperm.xlu0 %8469, %v9699_v12  }
 0x174   :  { %v10359_v37 = vpop.permute.xlu1 %8098  ;;  %v10361_v53 = vpop.permute.xlu0 %8430 }
 0x175   :  { %15050 = vst [vmem:[#allocation159_spill] sm:$0xff] %v10359_v37  ;;  %15051 = vst [vmem:[#allocation160_spill] sm:$0xff] %v10361_v53  ;;  %v15106_v53 = vld [vmem:[#allocation56_spill] sm:$0xff] }
 0x176   :  { %8415 = vperm.xlu1 %8147, %v9690_v7   ;;  %8757 = vperm.xlu0 %8469, %v9714_v22  }
 0x178   :  { %v10365_v42 = vpop.permute.xlu1 %8108  ;;  %v10367_v58 = vpop.permute.xlu0 %8440 }
 0x179   :  { %15052 = vst [vmem:[#allocation161_spill] sm:$0xff] %v10365_v42  ;;  %15053 = vst [vmem:[#allocation162_spill] sm:$0xff] %v10367_v58  ;;  %v15104_v42 = vld [vmem:[#allocation11_spill] sm:$0xff] }
 0x17a   :  { %8425 = vperm.xlu1 %8147, %v9699_v12   ;;  %8767 = vperm.xlu0 %8469, %v9729_v10  }
 0x17c   :  { %v10371_v48 = vpop.permute.xlu1 %8118  ;;  %v10373_v0 = vpop.permute.xlu0 %8450 }
 0x17d   :  { %15054 = vst [vmem:[#allocation163_spill] sm:$0xff] %v10371_v48  ;;  %15055 = vst [vmem:[#allocation164_spill] sm:$0xff] %v10373_v0  ;;  %v14679_v48 = vmov 4  }
 0x17e   :  { %8435 = vperm.xlu1 %8147, %v9714_v22   ;;  %8777 = vperm.xlu0 %8469, %v9742_v45  }
 0x180   :  { %v10377_v37 = vpop.permute.xlu1 %8128  ;;  %v10379_v7 = vpop.permute.xlu0 %8460 }
 0x181   :  { %15056 = vst [vmem:[#allocation165_spill] sm:$0xff] %v10377_v37  ;;  %15057 = vst [vmem:[#allocation166_spill] sm:$0xff] %v10379_v7  ;;  %v15064_v7 = vmov 3  }
 0x182   :  { %8445 = vperm.xlu1 %8147, %v9729_v10   ;;  %8787 = vperm.xlu0 %8469, %v9749_v40  }
 0x184   :  { %v10383_v32 = vpop.permute.xlu1 %8138 }
 0x185   :  { %15058 = vst [vmem:[#allocation167_spill] sm:$0xff] %v10383_v32  ;;  %v10385_v58 = vpop.permute.xlu0 %8471 }
 0x186   :  { %15059 = vst [vmem:[#allocation168_spill] sm:$0xff] %v10385_v58  ;;  %8455 = vperm.xlu1 %8147, %v9742_v45   ;;  %8797 = vset.pattern.permute.xlu0 %v14679_v48 }
 0x187   :  { %8799 = vperm.xlu0 %8797, %v9756_v1  }
 0x189   :  { %v10390_v22 = vpop.permute.xlu1 %8149  ;;  %v10392_v0 = vpop.permute.xlu0 %8487 }
 0x18a   :  { %15060 = vst [vmem:[#allocation169_spill] sm:$0xff] %v10390_v22  ;;  %15061 = vst [vmem:[#allocation170_spill] sm:$0xff] %v10392_v0  ;;  %8465 = vperm.xlu1 %8147, %v9749_v40  }
 0x18b   :  { %8814 = vperm.xlu0 %8797, %v9769_v54  }
 0x18d   :  { %v10396_v10 = vpop.permute.xlu1 %8160  ;;  %v10398_v32 = vpop.permute.xlu0 %8497 }
 0x18e   :  { %15062 = vst [vmem:[#allocation171_spill] sm:$0xff] %v10396_v10  ;;  %15063 = vst [vmem:[#allocation172_spill] sm:$0xff] %v10398_v32  ;;  %8475 = vset.pattern.permute.xlu1 %v15064_v7 }
 0x18f   :  { %8477 = vperm.xlu1 %8475, %v9756_v1   ;;  %8824 = vperm.xlu0 %8797, %v9780_v4  }
 0x191   :  { %v10403_v45 = vpop.permute.xlu1 %8165  ;;  %v10405_v48 = vpop.permute.xlu0 %8507 }
 0x192   :  { %15065 = vst [vmem:[#allocation173_spill] sm:$0xff] %v10403_v45  ;;  %15066 = vst [vmem:[#allocation174_spill] sm:$0xff] %v10405_v48  ;;  %v15100_v45 = vld [vmem:[#allocation68_spill] sm:$0xff] }
 0x193   :  { %8482 = vperm.xlu1 %8475, %v9445_v13   ;;  %8834 = vperm.xlu0 %8797, %v9791_v44   ;;  %v15101_v10 = vunpack.c.l.bf16 %v15100_v45 }
 0x195   :  { %v10409_v37 = vpop.permute.xlu1 %8175  ;;  %v10411_v40 = vpop.permute.xlu0 %8517 }
 0x196   :  { %15067 = vst [vmem:[#allocation175_spill] sm:$0xff] %v10409_v37  ;;  %15068 = vst [vmem:[#allocation176_spill] sm:$0xff] %v10411_v40 }
 0x197   :  { %8492 = vperm.xlu1 %8475, %v9769_v54   ;;  %8844 = vperm.xlu0 %8797, %v9802_v56  }
 0x199   :  { %v10415_v7 = vpop.permute.xlu1 %8185  ;;  %v10417_v32 = vpop.permute.xlu0 %8527 }
 0x19a   :  { %15069 = vst [vmem:[#allocation177_spill] sm:$0xff] %v10415_v7  ;;  %15070 = vst [vmem:[#allocation178_spill] sm:$0xff] %v10417_v32 }
 0x19b   :  { %8502 = vperm.xlu1 %8475, %v9780_v4   ;;  %8854 = vperm.xlu0 %8797, %v9813_v20  }
 0x19d   :  { %v10421_v48 = vpop.permute.xlu1 %8195  ;;  %v10423_v0 = vpop.permute.xlu0 %8537 }
 0x19e   :  { %15071 = vst [vmem:[#allocation179_spill] sm:$0xff] %v10421_v48  ;;  %15072 = vst [vmem:[#allocation180_spill] sm:$0xff] %v10423_v0 }
 0x19f   :  { %8512 = vperm.xlu1 %8475, %v9791_v44   ;;  %8864 = vperm.xlu0 %8797, %v9824_v25  }
 0x1a1   :  { %v10427_v40 = vpop.permute.xlu1 %8205  ;;  %v10429_v37 = vpop.permute.xlu0 %8547 }
 0x1a2   :  { %15073 = vst [vmem:[#allocation181_spill] sm:$0xff] %v10427_v40  ;;  %15074 = vst [vmem:[#allocation182_spill] sm:$0xff] %v10429_v37 }
 0x1a3   :  { %8522 = vperm.xlu1 %8475, %v9802_v56   ;;  %8874 = vperm.xlu0 %8797, %v9835_v33  }
 0x1a5   :  { %v10433_v32 = vpop.permute.xlu1 %8215  ;;  %v10435_v7 = vpop.permute.xlu0 %8557 }
 0x1a6   :  { %15075 = vst [vmem:[#allocation183_spill] sm:$0xff] %v10433_v32  ;;  %15076 = vst [vmem:[#allocation184_spill] sm:$0xff] %v10435_v7 }
 0x1a7   :  { %8532 = vperm.xlu1 %8475, %v9813_v20   ;;  %8884 = vperm.xlu0 %8797, %v9846_v49  }
 0x1a9   :  { %v10439_v0 = vpop.permute.xlu1 %8225  ;;  %v10441_v48 = vpop.permute.xlu0 %8567 }
 0x1aa   :  { %15077 = vst [vmem:[#allocation185_spill] sm:$0xff] %v10439_v0  ;;  %15078 = vst [vmem:[#allocation186_spill] sm:$0xff] %v10441_v48 }
 0x1ab   :  { %8542 = vperm.xlu1 %8475, %v9824_v25   ;;  %8894 = vperm.xlu0 %8797, %v9857_v38  }
 0x1ad   :  { %v10445_v37 = vpop.permute.xlu1 %8235  ;;  %v10447_v40 = vpop.permute.xlu0 %8577 }
 0x1ae   :  { %15079 = vst [vmem:[#allocation187_spill] sm:$0xff] %v10445_v37  ;;  %15080 = vst [vmem:[#allocation188_spill] sm:$0xff] %v10447_v40 }
 0x1af   :  { %8552 = vperm.xlu1 %8475, %v9835_v33   ;;  %8904 = vperm.xlu0 %8797, %v9868_v8  }
 0x1b1   :  { %v10451_v7 = vpop.permute.xlu1 %8245  ;;  %v10453_v32 = vpop.permute.xlu0 %8587 }
 0x1b2   :  { %15081 = vst [vmem:[#allocation189_spill] sm:$0xff] %v10451_v7  ;;  %15082 = vst [vmem:[#allocation190_spill] sm:$0xff] %v10453_v32 }
 0x1b3   :  { %8562 = vperm.xlu1 %8475, %v9846_v49   ;;  %8914 = vperm.xlu0 %8797, %v9879_v30  }
 0x1b5   :  { %v10457_v48 = vpop.permute.xlu1 %8255  ;;  %v10459_v0 = vpop.permute.xlu0 %8597 }
 0x1b6   :  { %15083 = vst [vmem:[#allocation191_spill] sm:$0xff] %v10457_v48  ;;  %15084 = vst [vmem:[#allocation192_spill] sm:$0xff] %v10459_v0 }
 0x1b7   :  { %8572 = vperm.xlu1 %8475, %v9857_v38   ;;  %8924 = vperm.xlu0 %8797, %v9890_v2  }
 0x1b9   :  { %v10463_v40 = vpop.permute.xlu1 %8265  ;;  %v10465_v37 = vpop.permute.xlu0 %8607 }
 0x1ba   :  { %15085 = vst [vmem:[#allocation193_spill] sm:$0xff] %v10463_v40  ;;  %15086 = vst [vmem:[#allocation194_spill] sm:$0xff] %v10465_v37 }
 0x1bb   :  { %8582 = vperm.xlu1 %8475, %v9868_v8   ;;  %8934 = vperm.xlu0 %8797, %v9901_v18  }
 0x1bd   :  { %v10469_v32 = vpop.permute.xlu1 %8275  ;;  %v10471_v7 = vpop.permute.xlu0 %8617 }
 0x1be   :  { %15087 = vst [vmem:[#allocation195_spill] sm:$0xff] %v10469_v32  ;;  %15088 = vst [vmem:[#allocation196_spill] sm:$0xff] %v10471_v7 }
 0x1bf   :  { %8592 = vperm.xlu1 %8475, %v9879_v30   ;;  %8944 = vperm.xlu0 %8797, %v9912_v17  }
 0x1c1   :  { %v10475_v0 = vpop.permute.xlu1 %8285  ;;  %v10477_v48 = vpop.permute.xlu0 %8627 }
 0x1c2   :  { %15089 = vst [vmem:[#allocation197_spill] sm:$0xff] %v10475_v0  ;;  %15090 = vst [vmem:[#allocation198_spill] sm:$0xff] %v10477_v48 }
 0x1c3   :  { %8602 = vperm.xlu1 %8475, %v9890_v2   ;;  %8954 = vperm.xlu0 %8797, %v9923_v6  }
 0x1c5   :  { %v10481_v37 = vpop.permute.xlu1 %8295  ;;  %v10483_v40 = vpop.permute.xlu0 %8637 }
 0x1c6   :  { %15091 = vst [vmem:[#allocation199_spill] sm:$0xff] %v10481_v37  ;;  %15092 = vst [vmem:[#allocation200_spill] sm:$0xff] %v10483_v40  ;;  %v15097_v37 = vld [vmem:[#allocation55_spill] sm:$0xff]  ;;  %v15098_v40 = vld [vmem:[#allocation84_spill] sm:$0xff] }
 0x1c7   :  { %8612 = vperm.xlu1 %8475, %v9901_v18   ;;  %8964 = vperm.xlu0 %8797, %v9934_v50   ;;  %v15099_v22 = vunpack.c.h.bf16 %v15098_v40 }
 0x1c9   :  { %v10487_v7 = vpop.permute.xlu1 %8305  ;;  %v10489_v32 = vpop.permute.xlu0 %8647  ;;  %v9000_v58 = vpack.i.bf16 %v15101_v10, %v15099_v22  ;;  %v15110_v22 = vunpack.c.h.bf16 %v15106_v53  ;;  %v15111_v10 = vld [vmem:[#allocation88_spill] sm:$0xff] }
 0x1ca   :  { %15093 = vst [vmem:[#allocation201_spill] sm:$0xff] %v10487_v7  ;;  %15094 = vst [vmem:[#allocation202_spill] sm:$0xff] %v10489_v32 }
 0x1cb   :  { %8622 = vperm.xlu1 %8475, %v9912_v17   ;;  %8974 = vperm.xlu0 %8797, %v9945_v34  }
 0x1cd   :  { %v10493_v48 = vpop.permute.xlu1 %8315  ;;  %v10495_v0 = vpop.permute.xlu0 %8657 }
 0x1ce   :  { %15095 = vst [vmem:[#allocation203_spill] sm:$0xff] %v10493_v48  ;;  %15096 = vst [vmem:[#allocation204_spill] sm:$0xff] %v10495_v0  ;;  %v15105_v48 = vunpack.c.h.bf16 %v15104_v42  ;;  %v15107_v0 = vunpack.c.l.bf16 %v15106_v53  ;;  %v15120_v53 = vld [vmem:[#allocation59_spill] sm:$0xff] }
 0x1cf   :  { %8632 = vperm.xlu1 %8475, %v9923_v6   ;;  %8984 = vperm.xlu0 %8797, %v15097_v37  }
 0x1d0   :  { %v9023_v46 = vpack.i.bf16 %v15107_v0, %v15105_v48  ;;  %v15115_v48 = vunpack.c.h.bf16 %v15111_v10  ;;  %v15116_v0 = vld [vmem:[#allocation72_spill] sm:$0xff] }
 0x1d1   :  { %v10503_v7 = vpop.permute.xlu1 %8325  ;;  %v10505_v32 = vpop.permute.xlu0 %8667 }
 0x1d2   :  { %15102 = vst [vmem:[#allocation55_spill] sm:$0xff] %v10503_v7  ;;  %15103 = vst [vmem:[#allocation205_spill] sm:$0xff] %v10505_v32  ;;  %v15112_v7 = vunpack.c.l.bf16 %v15111_v10  ;;  %v15126_v10 = vld [vmem:[#allocation63_spill] sm:$0xff] }
 0x1d3   :  { %8642 = vperm.xlu1 %8475, %v9934_v50   ;;  %9001 = vperm.xlu0 %8797, %v9000_v58  }
 0x1d4   :  { %v9028_v32 = vpack.i.bf16 %v15112_v7, %v15110_v22  ;;  %v15121_v7 = vunpack.c.h.bf16 %v15116_v0  ;;  %v15122_v22 = vld [vmem:[#allocation8_spill] sm:$0xff] }
 0x1d5   :  { %v10512_v11 = vpop.permute.xlu1 %8335  ;;  %v10514_v57 = vpop.permute.xlu0 %8677 }
 0x1d6   :  { %15108 = vst [vmem:[#allocation56_spill] sm:$0xff] %v10512_v11  ;;  %15109 = vst [vmem:[#allocation206_spill] sm:$0xff] %v10514_v57  ;;  %v15117_v11 = vunpack.c.l.bf16 %v15116_v0  ;;  %v15133_v0 = vld [vmem:[#allocation67_spill] sm:$0xff] }
 0x1d7   :  { %8652 = vperm.xlu1 %8475, %v9945_v34   ;;  %9024 = vperm.xlu0 %8797, %v9023_v46  }
 0x1d8   :  { %v9033_v42 = vpack.i.bf16 %v15117_v11, %v15115_v48  ;;  %v15127_v11 = vld [vmem:[#allocation12_spill] sm:$0xff] }
 0x1d9   :  { %v10521_v45 = vpop.permute.xlu1 %8345  ;;  %v10523_v58 = vpop.permute.xlu0 %8687  ;;  %v15128_v48 = vunpack.c.h.bf16 %v15127_v11  ;;  %v15138_v11 = vld [vmem:[#allocation71_spill] sm:$0xff] }
 0x1da   :  { %15113 = vst [vmem:[#allocation88_spill] sm:$0xff] %v10521_v45  ;;  %15114 = vst [vmem:[#allocation207_spill] sm:$0xff] %v10523_v58  ;;  %v15123_v45 = vunpack.c.l.bf16 %v15122_v22 }
 0x1db   :  { %8662 = vperm.xlu1 %8475, %v15097_v37   ;;  %9029 = vperm.xlu0 %8797, %v9028_v32  }
 0x1dc   :  { %v9038_v58 = vpack.i.bf16 %v15123_v45, %v15121_v7  ;;  %v15135_v7 = vunpack.c.l.bf16 %v10136_v60 }
 0x1dd   :  { %v10530_v40 = vpop.permute.xlu1 %8355  ;;  %v10532_v46 = vpop.permute.xlu0 %8697 }
 0x1de   :  { %15118 = vst [vmem:[#allocation72_spill] sm:$0xff] %v10530_v40  ;;  %15119 = vst [vmem:[#allocation208_spill] sm:$0xff] %v10532_v46  ;;  %v15129_v40 = vld [vmem:[#allocation60_spill] sm:$0xff] }
 0x1df   :  { %8672 = vperm.xlu1 %8475, %v15120_v53   ;;  %9034 = vperm.xlu0 %8797, %v9033_v42   ;;  %v15130_v5 = vunpack.c.l.bf16 %v15129_v40  ;;  %v15134_v45 = vunpack.c.h.bf16 %v15129_v40  ;;  %v15144_v40 = vld [vmem:[#allocation75_spill] sm:$0xff] }
 0x1e1   :  { %v10539_v57 = vpop.permute.xlu1 %8365  ;;  %v10541_v32 = vpop.permute.xlu0 %8707  ;;  %v9057_v46 = vpack.i.bf16 %v15130_v5, %v15128_v48  ;;  %v15139_v5 = vunpack.c.h.bf16 %v10136_v60  ;;  %v15140_v48 = vld [vmem:[#allocation76_spill] sm:$0xff]  ;;  %v15150_v60 = vld [vmem:[#allocation79_spill] sm:$0xff] }
 0x1e2   :  { %15124 = vst [vmem:[#allocation59_spill] sm:$0xff] %v10539_v57  ;;  %15125 = vst [vmem:[#allocation209_spill] sm:$0xff] %v10541_v32  ;;  %v9062_v32 = vpack.i.bf16 %v15135_v7, %v15134_v45  ;;  %v15145_v45 = vunpack.c.h.bf16 %v15140_v48  ;;  %v15146_v7 = vld [vmem:[#allocation9_spill] sm:$0xff] }
 0x1e3   :  { %8682 = vperm.xlu1 %8475, %v15126_v10   ;;  %9039 = vperm.xlu0 %8797, %v9038_v58  }
 0x1e5   :  { %v10548_v41 = vpop.permute.xlu1 %8375  ;;  %v10550_v42 = vpop.permute.xlu0 %8717 }
 0x1e6   :  { %15131 = vst [vmem:[#allocation60_spill] sm:$0xff] %v10548_v41  ;;  %15132 = vst [vmem:[#allocation210_spill] sm:$0xff] %v10550_v42  ;;  %v15141_v41 = vunpack.c.l.bf16 %v15140_v48  ;;  %v15157_v48 = vld [vmem:[#allocation83_spill] sm:$0xff] }
 0x1e7   :  { %8692 = vperm.xlu1 %8475, %v15133_v0   ;;  %9058 = vperm.xlu0 %8797, %v9057_v46   ;;  %v15190_v0 = vld [vmem:[#allocation19_spill] sm:$0xff] }
 0x1e8   :  { %v9067_v22 = vpack.i.bf16 %v15141_v41, %v15139_v5  ;;  %v15151_v41 = vld [vmem:[#allocation13_spill] sm:$0xff] }
 0x1e9   :  { %v10557_v57 = vpop.permute.xlu1 %8385  ;;  %v10559_v58 = vpop.permute.xlu0 %8727  ;;  %v15152_v5 = vunpack.c.h.bf16 %v15151_v41  ;;  %v15162_v41 = vld [vmem:[#allocation87_spill] sm:$0xff] }
 0x1ea   :  { %15136 = vst [vmem:[#allocation211_spill] sm:$0xff] %v10557_v57  ;;  %15137 = vst [vmem:[#allocation212_spill] sm:$0xff] %v10559_v58  ;;  %v15147_v57 = vunpack.c.l.bf16 %v15146_v7 }
 0x1eb   :  { %8702 = vperm.xlu1 %8475, %v15138_v11   ;;  %9063 = vperm.xlu0 %8797, %v9062_v32  }
 0x1ec   :  { %v9072_v58 = vpack.i.bf16 %v15147_v57, %v15145_v45  ;;  %v15159_v45 = vunpack.c.l.bf16 %v10155_v29 }
 0x1ed   :  { %v10566_v42 = vpop.permute.xlu1 %8395  ;;  %v10568_v46 = vpop.permute.xlu0 %8737 }
 0x1ee   :  { %15142 = vst [vmem:[#allocation76_spill] sm:$0xff] %v10566_v42  ;;  %15143 = vst [vmem:[#allocation213_spill] sm:$0xff] %v10568_v46  ;;  %v15153_v42 = vld [vmem:[#allocation64_spill] sm:$0xff] }
 0x1ef   :  { %8712 = vperm.xlu1 %8475, %v15144_v40   ;;  %9068 = vperm.xlu0 %8797, %v9067_v22   ;;  %v15154_v11 = vunpack.c.l.bf16 %v15153_v42  ;;  %v15158_v57 = vunpack.c.h.bf16 %v15153_v42  ;;  %v15189_v40 = vmov 4  }
 0x1f1   :  { %v10575_v61 = vpop.permute.xlu1 %8405  ;;  %v10577_v32 = vpop.permute.xlu0 %8747  ;;  %v9091_v46 = vpack.i.bf16 %v15154_v11, %v15152_v5  ;;  %v15163_v11 = vunpack.c.h.bf16 %v10155_v29  ;;  %v15164_v5 = vld [vmem:[#allocation80_spill] sm:$0xff] }
 0x1f2   :  { %15148 = vst [vmem:[#allocation214_spill] sm:$0xff] %v10575_v61  ;;  %15149 = vst [vmem:[#allocation215_spill] sm:$0xff] %v10577_v32  ;;  %v9096_v32 = vpack.i.bf16 %v15159_v45, %v15158_v57  ;;  %v15168_v42 = vunpack.c.h.bf16 %v15164_v5  ;;  %v15169_v57 = vld [vmem:[#allocation10_spill] sm:$0xff] }
 0x1f3   :  { %8722 = vperm.xlu1 %8475, %v15150_v60   ;;  %9073 = vperm.xlu0 %8797, %v9072_v58   ;;  %v15170_v45 = vunpack.c.l.bf16 %v15169_v57 }
 0x1f5   :  { %v10584_v28 = vpop.permute.xlu1 %8415  ;;  %v10586_v22 = vpop.permute.xlu0 %8757 }
 0x1f6   :  { %15155 = vst [vmem:[#allocation64_spill] sm:$0xff] %v10584_v28  ;;  %15156 = vst [vmem:[#allocation216_spill] sm:$0xff] %v10586_v22  ;;  %v15165_v28 = vunpack.c.l.bf16 %v15164_v5 }
 0x1f7   :  { %8732 = vperm.xlu1 %8475, %v15157_v48   ;;  %9092 = vperm.xlu0 %8797, %v9091_v46   ;;  %v15188_v48 = vld [vmem:[#allocation23_spill] sm:$0xff] }
 0x1f8   :  { %v9101_v7 = vpack.i.bf16 %v15165_v28, %v15163_v11  ;;  %v7856_v60 = vunpack.i.h.bf16 %v15188_v48 }
 0x1f9   :  { %v10593_v61 = vpop.permute.xlu1 %8425  ;;  %v10595_v58 = vpop.permute.xlu0 %8767 }
 0x1fa   :  { %15160 = vst [vmem:[#allocation217_spill] sm:$0xff] %v10593_v61  ;;  %15161 = vst [vmem:[#allocation218_spill] sm:$0xff] %v10595_v58  ;;  %v9106_v61 = vpack.i.bf16 %v15170_v45, %v15168_v42  ;;  %v939_v58 = vlaneseq  ;;  %v15179_v45 = vmov 0  }
 0x1fb   :  { %8742 = vperm.xlu1 %8475, %v15162_v41   ;;  %9097 = vperm.xlu0 %8797, %v9096_v32  }
 0x1fc   :  { %v10616_v29 = vshrl.u32 %v939_v58, 7 }
 0x1fd   :  { %v10602_v22 = vpop.permute.xlu1 %8435  ;;  %v10604_v46 = vpop.permute.xlu0 %8777 }
 0x1fe   :  { %15166 = vst [vmem:[#allocation80_spill] sm:$0xff] %v10602_v22  ;;  %15167 = vst [vmem:[#allocation219_spill] sm:$0xff] %v10604_v46  ;;  %v1585_v5 = vsub.s32 1, %v10616_v29 }
 0x1ff   :  { %8752 = vperm.xlu1 %8475, %v10129_v36   ;;  %9102 = vperm.xlu0 %8797, %v9101_v7   ;;  %15173 = vst [vmem:[#allocation222_spill] sm:$0xff] %v10616_v29  ;;  %v14763_v7 = vsub.s32 0, %v10616_v29 }
 0x201   :  { %v10611_v41 = vpop.permute.xlu1 %8445  ;;  %v10613_v32 = vpop.permute.xlu0 %8787 }
 0x202   :  { %15171 = vst [vmem:[#allocation220_spill] sm:$0xff] %v10611_v41  ;;  %15172 = vst [vmem:[#allocation221_spill] sm:$0xff] %v10613_v32 }
 0x203   :  { %8762 = vperm.xlu1 %8475, %v10148_v62   ;;  %9107 = vperm.xlu0 %8797, %v9106_v61   ;;  %v10631_v61 = vld [vmem:[%s14440_s0] sm:$0x1f] }
 0x204   :  { %15177 = vst [vmem:[#allocation226_spill] sm:$0xff] %v10631_v61  ;;  %v10642_v46 = vrot.slane %v10631_v61, %v14763_v7 }
 0x205   :  { %v10618_v28 = vpop.permute.xlu1 %8455 }
 0x206   :  { %15174 = vst [vmem:[#allocation223_spill] sm:$0xff] %v10618_v28  ;;  %v10620_v11 = vpop.permute.xlu0 %8799  ;;  %v15183_v28 = vld [vmem:[#allocation20_spill] sm:$0xff] }
 0x207   :  { %15175 = vst [vmem:[#allocation224_spill] sm:$0xff] %v10620_v11  ;;  %8772 = vperm.xlu1 %8475, %v10167_v24   ;;  %9126 = vperm.xlu0 %8797, %v9699_v12   ;;  %v15180_v12 = vld [vmem:[#allocation18_spill] sm:$0xff]  ;;  %v7673_v41 = vunpack.i.l.bf16 %v15183_v28  ;;  %v7674_v57 = vunpack.i.h.bf16 %v15183_v28 }
 0x208   :  { %v7668_v32 = vunpack.i.l.bf16 %v15180_v12  ;;  %15181 = vst [vmem:[#allocation18_spill] sm:$0xff] %v10642_v46  ;;  %v7669_v28 = vunpack.i.h.bf16 %v15180_v12 }
 0x209   :  { %v10626_v42 = vpop.permute.xlu1 %8465 }
 0x20a   :  { %15176 = vst [vmem:[#allocation225_spill] sm:$0xff] %v10626_v42  ;;  %v10633_v58 = vpop.permute.xlu0 %8814  ;;  %v10645_v42 = vrot.slane %v10631_v61, %v1585_v5  ;;  %v7855_v5 = vunpack.i.l.bf16 %v15188_v48  ;;  %v950_v48 = vmul.f32 %v7674_v57, %v10642_v46  ;;  %v10683_v57 = vmul.f32 %v7669_v28, %v10642_v46 }
 0x20b   :  { %15178 = vst [vmem:[#allocation227_spill] sm:$0xff] %v10633_v58  ;;  %8782 = vperm.xlu1 %8475, %v10181_v52   ;;  %9130 = vset.pattern.permute.xlu0 %v15179_v45  ;;  %v15184_v58 = vld [vmem:[#allocation21_spill] sm:$0xff]  ;;  %v15185_v52 = vld [vmem:[#allocation22_spill] sm:$0xff]  ;;  %v7830_v45 = vunpack.i.h.bf16 %v15190_v0 }
 0x20c   :  { %9132 = vperm.xlu0 %9130, %v9447_v14   ;;  %15182 = vst [vmem:[#allocation228_spill] sm:$0xff] %v10645_v42  ;;  %v7846_v11 = vunpack.i.h.bf16 %v15184_v58  ;;  %v7845_v22 = vunpack.i.l.bf16 %v15184_v58  ;;  %v7678_v24 = vunpack.i.l.bf16 %v15185_v52  ;;  %v7679_v7 = vunpack.i.h.bf16 %v15185_v52 }
 0x20d   :  { %v10665_v58 = vmul.f32 %v7668_v32, %v10642_v46  ;;  %v949_v52 = vmul.f32 %v7673_v41, %v10642_v46  ;;  %v1598_v41 = vmul.f32 %v7856_v60, %v10645_v42 }
 0x20e   :  { %v10652_v62 = vpop.permute.xlu1 %8477  ;;  %v10654_v36 = vpop.permute.xlu0 %8824  ;;  %v1594_v12 = vmul.f32 %v7846_v11, %v10645_v42  ;;  %v953_v10 = vmul.f32 %v7678_v24, %v10642_v46  ;;  %v954_v32 = vmul.f32 %v7679_v7, %v10642_v46  ;;  %v15197_v11 = vld [vmem:[#allocation25_spill] sm:$0xff] }
 0x20f   :  { %15186 = vst [vmem:[#allocation20_spill] sm:$0xff] %v10652_v62  ;;  %15187 = vst [vmem:[#allocation21_spill] sm:$0xff] %v10654_v36  ;;  %8791 = vset.pattern.permute.xlu1 %v15189_v40  ;;  %v7829_v36 = vunpack.i.l.bf16 %v15190_v0  ;;  %v2357_v62 = vsub.s32 2, %v10616_v29  ;;  %v1593_v40 = vmul.f32 %v7845_v22, %v10645_v42  ;;  %v1597_v0 = vmul.f32 %v7855_v5, %v10645_v42 }
 0x210   :  { %8793 = vperm.xlu1 %8791, %v9447_v14   ;;  %9137 = vperm.xlu0 %9130, %v9756_v1   ;;  %15191 = vst [vmem:[#allocation22_spill] sm:$0xff] %v10665_v58  ;;  %v15194_v58 = vld [vmem:[#allocation24_spill] sm:$0xff]  ;;  %v7866_v7 = vunpack.i.h.bf16 %v15197_v11  ;;  %v7865_v5 = vunpack.i.l.bf16 %v15197_v11  ;;  %v10711_v11 = vadd.f32 %v1598_v41, %v954_v32  ;;  %v15209_v41 = vld [vmem:[#allocation29_spill] sm:$0xff] }
 0x211   :  { %v7683_v29 = vunpack.i.l.bf16 %v15194_v58  ;;  %15195 = vst [vmem:[#allocation24_spill] sm:$0xff] %v10683_v57  ;;  %v7684_v22 = vunpack.i.h.bf16 %v15194_v58  ;;  %v10689_v24 = vmul.f32 %v7829_v36, %v10645_v42  ;;  %v10697_v28 = vadd.f32 %v1593_v40, %v949_v52  ;;  %v15207_v52 = vld [vmem:[#allocation27_spill] sm:$0xff]  ;;  %v15208_v32 = vld [vmem:[#allocation28_spill] sm:$0xff] }
 0x212   :  { %v10674_v14 = vpop.permute.xlu1 %8482  ;;  %v10676_v1 = vpop.permute.xlu0 %8834  ;;  %v10709_v57 = vadd.f32 %v1597_v0, %v953_v10  ;;  %15206 = vst [vmem:[#allocation235_spill] sm:$0xff] %v10711_v11  ;;  %v7876_v10 = vunpack.i.h.bf16 %v15207_v52  ;;  %v7693_v0 = vunpack.i.l.bf16 %v15208_v32 }
 0x213   :  { %15192 = vst [vmem:[#allocation23_spill] sm:$0xff] %v10674_v14  ;;  %15193 = vst [vmem:[#allocation19_spill] sm:$0xff] %v10676_v1  ;;  %v15198_v1 = vld [vmem:[#allocation26_spill] sm:$0xff]  ;;  %v10695_v14 = vmul.f32 %v7830_v45, %v10645_v42  ;;  %v957_v45 = vmul.f32 %v7683_v29, %v10642_v46  ;;  %v958_v40 = vmul.f32 %v7684_v22, %v10642_v46  ;;  %v7694_v29 = vunpack.i.h.bf16 %v15208_v32  ;;  %v15214_v32 = vld [vmem:[#allocation32_spill] sm:$0xff] }
 0x214   :  { %8804 = vperm.xlu1 %8791, %v9445_v13   ;;  %9142 = vperm.xlu0 %9130, %v9769_v54   ;;  %15196 = vst [vmem:[#allocation229_spill] sm:$0xff] %v10689_v24  ;;  %v7688_v60 = vunpack.i.l.bf16 %v15198_v1  ;;  %15200 = vst [vmem:[#allocation26_spill] sm:$0xff] %v10697_v28  ;;  %v7689_v58 = vunpack.i.h.bf16 %v15198_v1  ;;  %v10701_v13 = vrot.slane %v10631_v61, %v2357_v62  ;;  %v7885_v22 = vunpack.i.l.bf16 %v15209_v41 }
 0x215   :  { %15199 = vst [vmem:[#allocation25_spill] sm:$0xff] %v10695_v14  ;;  %v10707_v24 = vadd.f32 %v1594_v12, %v950_v48  ;;  %15205 = vst [vmem:[#allocation234_spill] sm:$0xff] %v10709_v57  ;;  %v7875_v14 = vunpack.i.l.bf16 %v15207_v52  ;;  %v1601_v62 = vmul.f32 %v7865_v5, %v10645_v42  ;;  %v1602_v1 = vmul.f32 %v7866_v7, %v10645_v42  ;;  %v15212_v5 = vld [vmem:[#allocation30_spill] sm:$0xff]  ;;  %v15215_v57 = vld [vmem:[#allocation33_spill] sm:$0xff] }
 0x216   :  { %15201 = vst [vmem:[#allocation230_spill] sm:$0xff] %v10701_v13  ;;  %v10703_v54 = vpop.permute.xlu1 %8492  ;;  %v10705_v36 = vpop.permute.xlu0 %8844  ;;  %v961_v48 = vmul.f32 %v7688_v60, %v10642_v46  ;;  %v962_v12 = vmul.f32 %v7689_v58, %v10642_v46  ;;  %v7699_v7 = vunpack.i.h.bf16 %v15212_v5  ;;  %v7698_v60 = vunpack.i.l.bf16 %v15212_v5 }
 0x217   :  { %15202 = vst [vmem:[#allocation231_spill] sm:$0xff] %v10703_v54  ;;  %15203 = vst [vmem:[#allocation232_spill] sm:$0xff] %v10705_v36  ;;  %v15213_v54 = vld [vmem:[#allocation31_spill] sm:$0xff]  ;;  %v1605_v58 = vmul.f32 %v7875_v14, %v10645_v42  ;;  %v1606_v5 = vmul.f32 %v7876_v10, %v10645_v42  ;;  %v965_v28 = vmul.f32 %v7693_v0, %v10642_v46 }
 0x218   :  { %15204 = vst [vmem:[#allocation233_spill] sm:$0xff] %v10707_v24  ;;  %8809 = vperm.xlu1 %8791, %v9451_v15   ;;  %9147 = vperm.xlu0 %9130, %v9780_v4   ;;  %v7886_v4 = vunpack.i.h.bf16 %v15209_v41  ;;  %v7895_v52 = vunpack.i.l.bf16 %v15213_v54  ;;  %v7896_v11 = vunpack.i.h.bf16 %v15213_v54  ;;  %v7906_v41 = vunpack.i.h.bf16 %v15215_v57 }
 0x219   :  { %v7905_v24 = vunpack.i.l.bf16 %v15215_v57  ;;  %v966_v14 = vmul.f32 %v7694_v29, %v10642_v46  ;;  %v1609_v54 = vmul.f32 %v7885_v22, %v10645_v42  ;;  %v970_v61 = vmul.f32 %v7699_v7, %v10642_v46 }
 0x21a   :  { %v10726_v36 = vpop.permute.xlu1 %8502  ;;  %v10728_v15 = vpop.permute.xlu0 %8854  ;;  %v1613_v57 = vmul.f32 %v7895_v52, %v10645_v42  ;;  %v1614_v10 = vmul.f32 %v7896_v11, %v10645_v42  ;;  %v10765_v7 = vadd.f32 %v1605_v58, %v961_v48  ;;  %v10767_v52 = vadd.f32 %v1606_v5, %v962_v12  ;;  %v15224_v58 = vld [vmem:[#allocation36_spill] sm:$0xff] }
 0x21b   :  { %15210 = vst [vmem:[#allocation27_spill] sm:$0xff] %v10726_v36  ;;  %15211 = vst [vmem:[#allocation28_spill] sm:$0xff] %v10728_v15  ;;  %v7704_v36 = vunpack.i.h.bf16 %v15214_v32  ;;  %v7703_v15 = vunpack.i.l.bf16 %v15214_v32  ;;  %v969_v32 = vmul.f32 %v7698_v60, %v10642_v46  ;;  %v1617_v22 = vmul.f32 %v7905_v24, %v10645_v42  ;;  %v15220_v24 = vld [vmem:[#allocation34_spill] sm:$0xff] }
 0x21c   :  { %8819 = vperm.xlu1 %8791, %v9458_v19   ;;  %9152 = vperm.xlu0 %9130, %v9791_v44   ;;  %v1610_v44 = vmul.f32 %v7886_v4, %v10645_v42  ;;  %v1618_v4 = vmul.f32 %v7906_v41, %v10645_v42  ;;  %v10763_v60 = vadd.f32 %v1602_v1, %v958_v40  ;;  %v7708_v41 = vunpack.i.l.bf16 %v15220_v24 }
 0x21d   :  { %v973_v29 = vmul.f32 %v7703_v15, %v10642_v46  ;;  %v974_v0 = vmul.f32 %v7704_v36, %v10642_v46  ;;  %v10777_v36 = vadd.f32 %v1613_v57, %v969_v32  ;;  %v7709_v40 = vunpack.i.h.bf16 %v15220_v24  ;;  %v15228_v57 = vld [vmem:[#allocation38_spill] sm:$0xff] }
 0x21e   :  { %v10746_v13 = vpop.permute.xlu1 %8512  ;;  %v10748_v19 = vpop.permute.xlu0 %8864  ;;  %v10775_v15 = vadd.f32 %v1610_v44, %v966_v14  ;;  %v7714_v5 = vunpack.i.h.bf16 %v15224_v58  ;;  %v7713_v14 = vunpack.i.l.bf16 %v15224_v58 }
 0x21f   :  { %15216 = vst [vmem:[#allocation29_spill] sm:$0xff] %v10746_v13  ;;  %15217 = vst [vmem:[#allocation30_spill] sm:$0xff] %v10748_v19  ;;  %v10761_v19 = vadd.f32 %v1601_v62, %v957_v45  ;;  %v10780_v45 = vadd.f32 %v1614_v10, %v970_v61  ;;  %v10785_v62 = vadd.f32 %v1617_v22, %v973_v29  ;;  %v15225_v61 = vld [vmem:[#allocation37_spill] sm:$0xff]  ;;  %v7719_v10 = vunpack.i.h.bf16 %v15228_v57 }
 0x220   :  { %8829 = vperm.xlu1 %8791, %v9465_v23   ;;  %9157 = vperm.xlu0 %9130, %v9802_v56   ;;  %v10773_v56 = vadd.f32 %v1609_v54, %v965_v28  ;;  %v10787_v1 = vadd.f32 %v1618_v4, %v974_v0  ;;  %v15223_v28 = vld [vmem:[#allocation35_spill] sm:$0xff]  ;;  %v7926_v54 = vunpack.i.h.bf16 %v15225_v61  ;;  %v7925_v44 = vunpack.i.l.bf16 %v15225_v61  ;;  %v15230_v61 = vld [vmem:[#allocation40_spill] sm:$0xff] }
 0x221   :  { %15221 = vst [vmem:[#allocation33_spill] sm:$0xff] %v10785_v62  ;;  %v7916_v48 = vunpack.i.h.bf16 %v15223_v28  ;;  %v7915_v12 = vunpack.i.l.bf16 %v15223_v28  ;;  %v7718_v29 = vunpack.i.l.bf16 %v15228_v57  ;;  %v15229_v0 = vld [vmem:[#allocation39_spill] sm:$0xff]  ;;  %v978_v4 = vmul.f32 %v7709_v40, %v10642_v46 }
 0x222   :  { %v10769_v11 = vpop.permute.xlu1 %8522  ;;  %v10771_v23 = vpop.permute.xlu0 %8874  ;;  %15222 = vst [vmem:[#allocation34_spill] sm:$0xff] %v10787_v1  ;;  %v7935_v22 = vunpack.i.l.bf16 %v15229_v0  ;;  %v7936_v24 = vunpack.i.h.bf16 %v15229_v0  ;;  %v981_v57 = vmul.f32 %v7713_v14, %v10642_v46  ;;  %v1625_v40 = vmul.f32 %v7925_v44, %v10645_v42 }
 0x223   :  { %15218 = vst [vmem:[#allocation31_spill] sm:$0xff] %v10769_v11  ;;  %15219 = vst [vmem:[#allocation32_spill] sm:$0xff] %v10771_v23  ;;  %v1621_v28 = vmul.f32 %v7915_v12, %v10645_v42  ;;  %v1622_v58 = vmul.f32 %v7916_v48, %v10645_v42  ;;  %v982_v23 = vmul.f32 %v7714_v5, %v10642_v46  ;;  %v7724_v13 = vunpack.i.h.bf16 %v15230_v61 }
 0x224   :  { %8839 = vperm.xlu1 %8791, %v9472_v27   ;;  %9162 = vperm.xlu0 %9130, %v9813_v20   ;;  %v977_v20 = vmul.f32 %v7708_v41, %v10642_v46  ;;  %v7723_v41 = vunpack.i.l.bf16 %v15230_v61  ;;  %v1626_v0 = vmul.f32 %v7926_v54, %v10645_v42  ;;  %v986_v48 = vmul.f32 %v7719_v10, %v10642_v46 }
 0x225   :  { %v1629_v12 = vmul.f32 %v7935_v22, %v10645_v42  ;;  %v1630_v14 = vmul.f32 %v7936_v24, %v10645_v42  ;;  %v10833_v22 = vadd.f32 %v1622_v58, %v978_v4  ;;  %v10835_v61 = vadd.f32 %v1625_v40, %v981_v57  ;;  %v15238_v57 = vld [vmem:[#allocation44_spill] sm:$0xff] }
 0x226   :  { %v10795_v32 = vpop.permute.xlu1 %8532  ;;  %v10797_v27 = vpop.permute.xlu0 %8884  ;;  %v989_v54 = vmul.f32 %v7723_v41, %v10642_v46  ;;  %v10831_v1 = vadd.f32 %v1621_v28, %v977_v20  ;;  %v10837_v24 = vadd.f32 %v1626_v0, %v982_v23  ;;  %v7733_v40 = vunpack.i.l.bf16 %v15238_v57  ;;  %v15239_v0 = vld [vmem:[#allocation45_spill] sm:$0xff] }
 0x227   :  { %15226 = vst [vmem:[#allocation35_spill] sm:$0xff] %v10795_v32  ;;  %15227 = vst [vmem:[#allocation36_spill] sm:$0xff] %v10797_v27  ;;  %v15231_v27 = vld [vmem:[#allocation41_spill] sm:$0xff]  ;;  %v10851_v23 = vadd.f32 %v1630_v14, %v986_v48 }
 0x228   :  { %8849 = vperm.xlu1 %8791, %v9479_v31   ;;  %9167 = vperm.xlu0 %9130, %v9824_v25   ;;  %v7945_v32 = vunpack.i.l.bf16 %v15231_v27  ;;  %v985_v25 = vmul.f32 %v7718_v29, %v10642_v46  ;;  %v7946_v5 = vunpack.i.h.bf16 %v15231_v27 }
 0x22a   :  { %v10815_v11 = vpop.permute.xlu1 %8542  ;;  %v10817_v31 = vpop.permute.xlu0 %8894  ;;  %v1633_v44 = vmul.f32 %v7945_v32, %v10645_v42  ;;  %v990_v32 = vmul.f32 %v7724_v13, %v10642_v46  ;;  %v1634_v20 = vmul.f32 %v7946_v5, %v10645_v42  ;;  %v7734_v13 = vunpack.i.h.bf16 %v15238_v57 }
 0x22b   :  { %15232 = vst [vmem:[#allocation37_spill] sm:$0xff] %v10815_v11  ;;  %15233 = vst [vmem:[#allocation38_spill] sm:$0xff] %v10817_v31  ;;  %v15234_v31 = vld [vmem:[#allocation42_spill] sm:$0xff]  ;;  %v15235_v11 = vld [vmem:[#allocation43_spill] sm:$0xff] }
 0x22c   :  { %8859 = vperm.xlu1 %8791, %v9486_v35   ;;  %9172 = vperm.xlu0 %9130, %v9835_v33   ;;  %v7728_v29 = vunpack.i.l.bf16 %v15234_v31  ;;  %v7955_v10 = vunpack.i.l.bf16 %v15235_v11  ;;  %v10843_v33 = vadd.f32 %v1629_v12, %v985_v25  ;;  %v7729_v41 = vunpack.i.h.bf16 %v15234_v31  ;;  %v15242_v12 = vld [vmem:[#allocation46_spill] sm:$0xff] }
 0x22d   :  { %v7956_v62 = vunpack.i.h.bf16 %v15235_v11  ;;  %v10853_v4 = vadd.f32 %v1633_v44, %v989_v54  ;;  %v7966_v11 = vunpack.i.h.bf16 %v15239_v0  ;;  %v7965_v31 = vunpack.i.l.bf16 %v15239_v0  ;;  %v15243_v44 = vld [vmem:[#allocation47_spill] sm:$0xff]  ;;  %v15244_v0 = vld [vmem:[#allocation48_spill] sm:$0xff] }
 0x22e   :  { %v10839_v27 = vpop.permute.xlu1 %8552  ;;  %v10841_v35 = vpop.permute.xlu0 %8904  ;;  %v993_v28 = vmul.f32 %v7728_v29, %v10642_v46  ;;  %v1637_v58 = vmul.f32 %v7955_v10, %v10645_v42  ;;  %v7739_v14 = vunpack.i.h.bf16 %v15242_v12  ;;  %v7738_v5 = vunpack.i.l.bf16 %v15242_v12 }
 0x22f   :  { %15236 = vst [vmem:[#allocation39_spill] sm:$0xff] %v10839_v27  ;;  %15237 = vst [vmem:[#allocation40_spill] sm:$0xff] %v10841_v35  ;;  %v1638_v48 = vmul.f32 %v7956_v62, %v10645_v42  ;;  %v10869_v54 = vadd.f32 %v1634_v20, %v990_v32  ;;  %v7975_v29 = vunpack.i.l.bf16 %v15243_v44  ;;  %v7976_v57 = vunpack.i.h.bf16 %v15243_v44  ;;  %v15254_v27 = vld [vmem:[#allocation54_spill] sm:$0xff] }
 0x230   :  { %8869 = vperm.xlu1 %8791, %v9493_v39   ;;  %9177 = vperm.xlu0 %9130, %v9846_v49   ;;  %v994_v49 = vmul.f32 %v7729_v41, %v10642_v46  ;;  %v10874_v10 = vadd.f32 %v1637_v58, %v993_v28  ;;  %v7743_v41 = vunpack.i.l.bf16 %v15244_v0  ;;  %v998_v12 = vmul.f32 %v7734_v13, %v10642_v46 }
 0x231   :  { %v1641_v32 = vmul.f32 %v7965_v31, %v10645_v42  ;;  %v1642_v20 = vmul.f32 %v7966_v11, %v10645_v42  ;;  %v1001_v28 = vmul.f32 %v7738_v5, %v10642_v46  ;;  %v1002_v58 = vmul.f32 %v7739_v14, %v10642_v46 }
 0x232   :  { %v10861_v25 = vpop.permute.xlu1 %8562  ;;  %v10863_v39 = vpop.permute.xlu0 %8914  ;;  %v7744_v44 = vunpack.i.h.bf16 %v15244_v0  ;;  %v1646_v11 = vmul.f32 %v7976_v57, %v10645_v42  ;;  %v1005_v31 = vmul.f32 %v7743_v41, %v10642_v46  ;;  %v15250_v0 = vld [vmem:[#allocation51_spill] sm:$0xff]  ;;  %v15253_v41 = vld [vmem:[#allocation53_spill] sm:$0xff] }
 0x233   :  { %15240 = vst [vmem:[#allocation41_spill] sm:$0xff] %v10861_v25  ;;  %15241 = vst [vmem:[#allocation42_spill] sm:$0xff] %v10863_v39  ;;  %v15245_v39 = vld [vmem:[#allocation49_spill] sm:$0xff]  ;;  %v997_v25 = vmul.f32 %v7733_v40, %v10642_v46  ;;  %v1645_v40 = vmul.f32 %v7975_v29, %v10645_v42  ;;  %v10902_v14 = vadd.f32 %v1642_v20, %v998_v12  ;;  %v7996_v57 = vunpack.i.h.bf16 %v15250_v0 }
 0x234   :  { %8879 = vperm.xlu1 %8791, %v9500_v43   ;;  %9182 = vperm.xlu0 %9130, %v9857_v38   ;;  %v7985_v62 = vunpack.i.l.bf16 %v15245_v39  ;;  %v10887_v38 = vadd.f32 %v1638_v48, %v994_v49  ;;  %v7986_v13 = vunpack.i.h.bf16 %v15245_v39  ;;  %v15249_v48 = vld [vmem:[#allocation50_spill] sm:$0xff]  ;;  %v7995_v39 = vunpack.i.l.bf16 %v15250_v0 }
 0x235   :  { %v7748_v5 = vunpack.i.l.bf16 %v15249_v48  ;;  %v7749_v29 = vunpack.i.h.bf16 %v15249_v48  ;;  %v10917_v12 = vadd.f32 %v1645_v40, %v1001_v28  ;;  %v15257_v40 = vld [vmem:[#allocation57_spill] sm:$0xff] }
 0x236   :  { %v10883_v35 = vpop.permute.xlu1 %8572  ;;  %v10885_v43 = vpop.permute.xlu0 %8924  ;;  %15248 = vst [vmem:[#allocation45_spill] sm:$0xff] %v10887_v38  ;;  %v1649_v49 = vmul.f32 %v7985_v62, %v10645_v42  ;;  %v7753_v62 = vunpack.i.l.bf16 %v15253_v41  ;;  %v8005_v38 = vunpack.i.l.bf16 %v15254_v27  ;;  %v1653_v0 = vmul.f32 %v7995_v39, %v10645_v42  ;;  %v15260_v39 = vld [vmem:[#allocation61_spill] sm:$0xff] }
 0x237   :  { %15246 = vst [vmem:[#allocation43_spill] sm:$0xff] %v10883_v35  ;;  %15247 = vst [vmem:[#allocation44_spill] sm:$0xff] %v10885_v43  ;;  %v10900_v43 = vadd.f32 %v1641_v32, %v997_v25  ;;  %v1650_v25 = vmul.f32 %v7986_v13, %v10645_v42  ;;  %v10919_v32 = vadd.f32 %v1646_v11, %v1002_v58  ;;  %v8006_v13 = vunpack.i.h.bf16 %v15254_v27 }
 0x238   :  { %8889 = vperm.xlu1 %8791, %v9507_v47   ;;  %9187 = vperm.xlu0 %9130, %v9868_v8   ;;  %v1006_v8 = vmul.f32 %v7744_v44, %v10642_v46  ;;  %v10921_v20 = vadd.f32 %v1649_v49, %v1005_v31  ;;  %v1009_v44 = vmul.f32 %v7748_v5, %v10642_v46  ;;  %v7758_v11 = vunpack.i.l.bf16 %v15257_v40  ;;  %v15259_v49 = vld [vmem:[#allocation58_spill] sm:$0xff] }
 0x239   :  { %v1010_v48 = vmul.f32 %v7749_v29, %v10642_v46  ;;  %v1013_v28 = vmul.f32 %v7753_v62, %v10642_v46  ;;  %v1657_v58 = vmul.f32 %v8005_v38, %v10645_v42  ;;  %v8015_v5 = vunpack.i.l.bf16 %v15259_v49 }
 0x23a   :  { %v10906_v35 = vpop.permute.xlu1 %8582  ;;  %v10908_v47 = vpop.permute.xlu0 %8934  ;;  %v10936_v31 = vadd.f32 %v1650_v25, %v1006_v8  ;;  %v7759_v27 = vunpack.i.h.bf16 %v15257_v40  ;;  %v8016_v29 = vunpack.i.h.bf16 %v15259_v49  ;;  %v7764_v8 = vunpack.i.h.bf16 %v15260_v39 }
 0x23b   :  { %15251 = vst [vmem:[#allocation46_spill] sm:$0xff] %v10906_v35  ;;  %15252 = vst [vmem:[#allocation47_spill] sm:$0xff] %v10908_v47  ;;  %v7754_v47 = vunpack.i.h.bf16 %v15253_v41  ;;  %v15261_v41 = vld [vmem:[#allocation62_spill] sm:$0xff]  ;;  %v10957_v49 = vadd.f32 %v1657_v58, %v1013_v28  ;;  %v15266_v28 = vld [vmem:[#allocation65_spill] sm:$0xff] }
 0x23c   :  { %8899 = vperm.xlu1 %8791, %v9514_v51   ;;  %9192 = vperm.xlu0 %9130, %v9879_v30   ;;  %v1654_v30 = vmul.f32 %v7996_v57, %v10645_v42  ;;  %15258 = vst [vmem:[#allocation50_spill] sm:$0xff] %v10936_v31  ;;  %v7763_v57 = vunpack.i.l.bf16 %v15260_v39  ;;  %v8025_v62 = vunpack.i.l.bf16 %v15261_v41  ;;  %v8026_v25 = vunpack.i.h.bf16 %v15261_v41 }
 0x23d   :  { %v1014_v38 = vmul.f32 %v7754_v47, %v10642_v46  ;;  %15264 = vst [vmem:[#allocation54_spill] sm:$0xff] %v10957_v49  ;;  %v1017_v31 = vmul.f32 %v7758_v11, %v10642_v46  ;;  %v1661_v47 = vmul.f32 %v8015_v5, %v10645_v42  ;;  %v1662_v39 = vmul.f32 %v8016_v29, %v10645_v42  ;;  %v15269_v5 = vld [vmem:[#allocation66_spill] sm:$0xff] }
 0x23e   :  { %v10928_v35 = vpop.permute.xlu1 %8592  ;;  %v10930_v51 = vpop.permute.xlu0 %8944  ;;  %v10955_v40 = vadd.f32 %v1654_v30, %v1010_v48  ;;  %v1021_v41 = vmul.f32 %v7763_v57, %v10642_v46  ;;  %v1666_v30 = vmul.f32 %v8026_v25, %v10645_v42  ;;  %v7768_v58 = vunpack.i.l.bf16 %v15266_v28  ;;  %v15270_v57 = vld [vmem:[#allocation69_spill] sm:$0xff] }
 0x23f   :  { %15255 = vst [vmem:[#allocation48_spill] sm:$0xff] %v10928_v35  ;;  %15256 = vst [vmem:[#allocation49_spill] sm:$0xff] %v10930_v51  ;;  %v1658_v51 = vmul.f32 %v8006_v13, %v10645_v42  ;;  %v1018_v13 = vmul.f32 %v7759_v27, %v10642_v46  ;;  %v8036_v27 = vunpack.i.h.bf16 %v15269_v5  ;;  %v8035_v29 = vunpack.i.l.bf16 %v15269_v5 }
 0x240   :  { %8909 = vperm.xlu1 %8791, %v9521_v55   ;;  %9197 = vperm.xlu0 %9130, %v9890_v2   ;;  %v10953_v2 = vadd.f32 %v1653_v0, %v1009_v44  ;;  %v1665_v44 = vmul.f32 %v8025_v62, %v10645_v42  ;;  %v1022_v0 = vmul.f32 %v7764_v8, %v10642_v46  ;;  %v7773_v62 = vunpack.i.l.bf16 %v15270_v57 }
 0x241   :  { %v10967_v48 = vadd.f32 %v1658_v51, %v1014_v38  ;;  %v10980_v51 = vadd.f32 %v1661_v47, %v1017_v31  ;;  %v7774_v38 = vunpack.i.h.bf16 %v15270_v57  ;;  %v10985_v8 = vadd.f32 %v1662_v39, %v1018_v13  ;;  %v15276_v31 = vld [vmem:[#allocation73_spill] sm:$0xff] }
 0x242   :  { %v10949_v35 = vpop.permute.xlu1 %8602  ;;  %v10951_v55 = vpop.permute.xlu0 %8954  ;;  %v10987_v25 = vadd.f32 %v1665_v44, %v1021_v41  ;;  %v1025_v5 = vmul.f32 %v7768_v58, %v10642_v46  ;;  %v7778_v47 = vunpack.i.l.bf16 %v15276_v31  ;;  %v1669_v13 = vmul.f32 %v8035_v29, %v10645_v42  ;;  %v15280_v29 = vld [vmem:[#allocation77_spill] sm:$0xff] }
 0x243   :  { %15262 = vst [vmem:[#allocation51_spill] sm:$0xff] %v10949_v35  ;;  %15263 = vst [vmem:[#allocation53_spill] sm:$0xff] %v10951_v55  ;;  %v1670_v39 = vmul.f32 %v8036_v27, %v10645_v42  ;;  %v1029_v41 = vmul.f32 %v7773_v62, %v10642_v46  ;;  %v1030_v44 = vmul.f32 %v7774_v38, %v10642_v46  ;;  %v7784_v62 = vunpack.i.h.bf16 %v15280_v29 }
 0x244   :  { %8919 = vperm.xlu1 %8791, %v9528_v59   ;;  %9202 = vperm.xlu0 %9130, %v9901_v18   ;;  %15265 = vst [vmem:[#allocation57_spill] sm:$0xff] %v10967_v48  ;;  %v7769_v18 = vunpack.i.h.bf16 %v15266_v28  ;;  %15271 = vst [vmem:[#allocation62_spill] sm:$0xff] %v10980_v51  ;;  %v15274_v48 = vld [vmem:[#allocation70_spill] sm:$0xff]  ;;  %v7783_v38 = vunpack.i.l.bf16 %v15280_v29 }
 0x245   :  { %15272 = vst [vmem:[#allocation65_spill] sm:$0xff] %v10985_v8  ;;  %15273 = vst [vmem:[#allocation66_spill] sm:$0xff] %v10987_v25  ;;  %v8046_v28 = vunpack.i.h.bf16 %v15274_v48  ;;  %v8045_v49 = vunpack.i.l.bf16 %v15274_v48  ;;  %v15277_v51 = vld [vmem:[#allocation74_spill] sm:$0xff]  ;;  %v11023_v8 = vadd.f32 %v1669_v13, %v1025_v5  ;;  %v1038_v5 = vmul.f32 %v7784_v62, %v10642_v46 }
 0x246   :  { %v10972_v11 = vpop.permute.xlu1 %8612  ;;  %v10974_v59 = vpop.permute.xlu0 %8964  ;;  %v8055_v57 = vunpack.i.l.bf16 %v15277_v51  ;;  %v8056_v58 = vunpack.i.h.bf16 %v15277_v51 }
 0x247   :  { %15267 = vst [vmem:[#allocation58_spill] sm:$0xff] %v10972_v11  ;;  %15268 = vst [vmem:[#allocation61_spill] sm:$0xff] %v10974_v59  ;;  %v10991_v59 = vadd.f32 %v1666_v30, %v1022_v0  ;;  %v1673_v48 = vmul.f32 %v8045_v49, %v10645_v42  ;;  %v1674_v0 = vmul.f32 %v8046_v28, %v10645_v42  ;;  %v7779_v30 = vunpack.i.h.bf16 %v15276_v31 }
 0x248   :  { %8929 = vperm.xlu1 %8791, %v9535_v63   ;;  %9207 = vperm.xlu0 %9130, %v9912_v17   ;;  %v1026_v17 = vmul.f32 %v7769_v18, %v10642_v46  ;;  %v1033_v18 = vmul.f32 %v7778_v47, %v10642_v46  ;;  %v1677_v27 = vmul.f32 %v8055_v57, %v10645_v42  ;;  %v15285_v47 = vld [vmem:[#allocation82_spill] sm:$0xff] }
 0x249   :  { %15275 = vst [vmem:[#allocation69_spill] sm:$0xff] %v10991_v59  ;;  %v15284_v59 = vld [vmem:[#allocation81_spill] sm:$0xff]  ;;  %v8075_v57 = vunpack.i.l.bf16 %v15285_v47 }
 0x24a   :  { %v10996_v11 = vpop.permute.xlu1 %8622  ;;  %v10998_v63 = vpop.permute.xlu0 %8974  ;;  %v7789_v31 = vunpack.i.h.bf16 %v15284_v59  ;;  %v7788_v51 = vunpack.i.l.bf16 %v15284_v59  ;;  %v11028_v29 = vadd.f32 %v1670_v39, %v1026_v17  ;;  %v1037_v59 = vmul.f32 %v7783_v38, %v10642_v46  ;;  %v15294_v38 = vld [vmem:[#allocation89_spill] sm:$0xff] }
 0x24b   :  { %15278 = vst [vmem:[#allocation70_spill] sm:$0xff] %v10996_v11  ;;  %15279 = vst [vmem:[#allocation73_spill] sm:$0xff] %v10998_v63  ;;  %v11030_v63 = vadd.f32 %v1673_v48, %v1029_v41  ;;  %v11036_v11 = vadd.f32 %v1677_v27, %v1033_v18  ;;  %v1685_v48 = vmul.f32 %v8075_v57, %v10645_v42  ;;  %v15293_v18 = vld [vmem:[#allocation86_spill] sm:$0xff] }
 0x24c   :  { %8939 = vperm.xlu1 %8791, %v9542_v3   ;;  %9212 = vperm.xlu0 %9130, %v9923_v6   ;;  %v15283_v6 = vld [vmem:[#allocation78_spill] sm:$0xff]  ;;  %v1041_v39 = vmul.f32 %v7788_v51, %v10642_v46  ;;  %v1042_v41 = vmul.f32 %v7789_v31, %v10642_v46  ;;  %v8086_v27 = vunpack.i.h.bf16 %v15293_v18  ;;  %v8085_v62 = vunpack.i.l.bf16 %v15293_v18 }
 0x24d   :  { %v8066_v49 = vunpack.i.h.bf16 %v15283_v6  ;;  %v8065_v28 = vunpack.i.l.bf16 %v15283_v6  ;;  %15286 = vst [vmem:[#allocation78_spill] sm:$0xff] %v11028_v29  ;;  %15287 = vst [vmem:[#allocation81_spill] sm:$0xff] %v11030_v63  ;;  %v1034_v6 = vmul.f32 %v7779_v30, %v10642_v46  ;;  %v15295_v31 = vld [vmem:[#allocation90_spill] sm:$0xff]  ;;  %v15299_v63 = vld [vmem:[#allocation93_spill] sm:$0xff] }
 0x24e   :  { %v11015_v25 = vpop.permute.xlu1 %8632  ;;  %v11017_v3 = vpop.permute.xlu0 %8984  ;;  %15289 = vst [vmem:[#allocation236_spill] sm:$0xff] %v11036_v11  ;;  %v8096_v51 = vunpack.i.h.bf16 %v15295_v31  ;;  %v8105_v18 = vunpack.i.l.bf16 %v15299_v63 }
 0x24f   :  { %15281 = vst [vmem:[#allocation74_spill] sm:$0xff] %v11015_v25  ;;  %15282 = vst [vmem:[#allocation77_spill] sm:$0xff] %v11017_v3  ;;  %v11032_v3 = vadd.f32 %v1674_v0, %v1030_v44  ;;  %v1678_v25 = vmul.f32 %v8056_v58, %v10645_v42  ;;  %v1682_v17 = vmul.f32 %v8066_v49, %v10645_v42  ;;  %v8076_v44 = vunpack.i.h.bf16 %v15285_v47  ;;  %v15292_v0 = vld [vmem:[#allocation85_spill] sm:$0xff] }
 0x250   :  { %8949 = vperm.xlu1 %8791, %v9549_v9   ;;  %9217 = vperm.xlu0 %9130, %v9934_v50   ;;  %v1681_v50 = vmul.f32 %v8065_v28, %v10645_v42  ;;  %v7794_v30 = vunpack.i.h.bf16 %v15292_v0  ;;  %v7793_v58 = vunpack.i.l.bf16 %v15292_v0  ;;  %v7799_v49 = vunpack.i.h.bf16 %v15294_v38 }
 0x251   :  { %15288 = vst [vmem:[#allocation82_spill] sm:$0xff] %v11032_v3  ;;  %v7798_v28 = vunpack.i.l.bf16 %v15294_v38  ;;  %v8095_v47 = vunpack.i.l.bf16 %v15295_v31  ;;  %v8106_v3 = vunpack.i.h.bf16 %v15299_v63 }
 0x252   :  { %v11040_v13 = vpop.permute.xlu1 %8642  ;;  %v11042_v9 = vpop.permute.xlu0 %9001  ;;  %v1045_v38 = vmul.f32 %v7793_v58, %v10642_v46  ;;  %v1046_v31 = vmul.f32 %v7794_v30, %v10642_v46  ;;  %v1697_v58 = vmul.f32 %v8105_v18, %v10645_v42  ;;  %v11099_v18 = vadd.f32 %v1682_v17, %v1038_v5  ;;  %v15318_v5 = vld [vmem:[#allocation96_spill] sm:$0xff] }
 0x253   :  { %15290 = vst [vmem:[#allocation237_spill] sm:$0xff] %v11040_v13  ;;  %15291 = vst [vmem:[#allocation238_spill] sm:$0xff] %v11042_v9  ;;  %v1686_v9 = vmul.f32 %v8076_v44, %v10645_v42  ;;  %v1050_v13 = vmul.f32 %v7799_v49, %v10642_v46  ;;  %v1693_v63 = vmul.f32 %v8095_v47, %v10645_v42 }
 0x254   :  { %8959 = vperm.xlu1 %8791, %v9556_v16   ;;  %9222 = vperm.xlu0 %9130, %v9945_v34   ;;  %v15298_v34 = vld [vmem:[#allocation92_spill] sm:$0xff]  ;;  %v1694_v44 = vmul.f32 %v8096_v51, %v10645_v42  ;;  %v15303_v51 = vld [vmem:[#allocation6_spill] sm:$0xff] }
 0x255   :  { %v7804_v11 = vunpack.i.h.bf16 %v15298_v34  ;;  %v7803_v0 = vunpack.i.l.bf16 %v15298_v34  ;;  %v1049_v34 = vmul.f32 %v7798_v28, %v10642_v46  ;;  %v15304_v47 = vunpack.c.l.bf16 %v15303_v51 }
 0x256   :  { %v11060_v57 = vpop.permute.xlu1 %8652  ;;  %v11062_v16 = vpop.permute.xlu0 %9024  ;;  %v11103_v29 = vadd.f32 %v1686_v9, %v1042_v41  ;;  %v15319_v41 = vld [vmem:[#allocation63_spill] sm:$0xff] }
 0x257   :  { %15296 = vst [vmem:[#allocation85_spill] sm:$0xff] %v11060_v57  ;;  %15297 = vst [vmem:[#allocation86_spill] sm:$0xff] %v11062_v16  ;;  %v1689_v57 = vmul.f32 %v8085_v62, %v10645_v42  ;;  %v1690_v16 = vmul.f32 %v8086_v27, %v10645_v42  ;;  %v1054_v30 = vmul.f32 %v7804_v11, %v10642_v46  ;;  %v15302_v62 = vld [vmem:[#allocation95_spill] sm:$0xff] }
 0x258   :  { %8969 = vperm.xlu1 %8791, %v9563_v21   ;;  %9227 = vperm.xlu0 %9130, %v15097_v37   ;;  %v1053_v37 = vmul.f32 %v7803_v0, %v10642_v46  ;;  %v1698_v27 = vmul.f32 %v8106_v3, %v10645_v42  ;;  %v7809_v28 = vunpack.i.h.bf16 %v15302_v62  ;;  %v7808_v49 = vunpack.i.l.bf16 %v15302_v62  ;;  %15309 = vst [vmem:[#allocation95_spill] sm:$0xff] %v11099_v18 }
 0x259   :  { %v11095_v0 = vadd.f32 %v1678_v25, %v1034_v6  ;;  %v11097_v11 = vadd.f32 %v1681_v50, %v1037_v59  ;;  %v11101_v3 = vadd.f32 %v1685_v48, %v1041_v39  ;;  %v11105_v62 = vadd.f32 %v1689_v57, %v1045_v38  ;;  %v15320_v48 = vld [vmem:[#allocation98_spill] sm:$0xff] }
 0x25a   :  { %v11079_v55 = vpop.permute.xlu1 %8662  ;;  %v11081_v21 = vpop.permute.xlu0 %9029  ;;  %v11115_v25 = vadd.f32 %v1694_v44, %v1050_v13  ;;  %v11117_v6 = vadd.f32 %v1697_v58, %v1053_v37  ;;  %v11119_v59 = vadd.f32 %v1698_v27, %v1054_v30  ;;  %v8116_v50 = vunpack.i.h.bf16 %v15318_v5  ;;  %v4176_v27 = vld [vmem:[%s14442_s2 + $0x88] sm:$0xff] }
 0x25b   :  { %15300 = vst [vmem:[#allocation89_spill] sm:$0xff] %v11079_v55  ;;  %15301 = vst [vmem:[#allocation90_spill] sm:$0xff] %v11081_v21  ;;  %v15305_v55 = vld [vmem:[#allocation52_spill] sm:$0xff]  ;;  %v1057_v9 = vmul.f32 %v7808_v49, %v10642_v46  ;;  %v1058_v17 = vmul.f32 %v7809_v28, %v10642_v46  ;;  %v8115_v39 = vunpack.i.l.bf16 %v15318_v5  ;;  %v7814_v57 = vunpack.i.h.bf16 %v15320_v48  ;;  %v15326_v28 = vld [vmem:[#allocation103_spill] sm:$0xff] }
 0x25c   :  { %8979 = vperm.xlu1 %8791, %v9572_v26   ;;  %9232 = vperm.xlu0 %9130, %v15120_v53   ;;  %v15306_v21 = vunpack.c.l.bf16 %v15305_v55  ;;  %15307 = vst [vmem:[#allocation92_spill] sm:$0xff] %v11095_v0  ;;  %15308 = vst [vmem:[#allocation93_spill] sm:$0xff] %v11097_v11  ;;  %v11107_v26 = vadd.f32 %v1690_v16, %v1046_v31  ;;  %v11109_v53 = vadd.f32 %v1693_v63, %v1049_v34  ;;  %v15321_v16 = vld [vmem:[#allocation99_spill] sm:$0xff]  ;;  %v15322_v34 = vld [vmem:[#allocation101_spill] sm:$0xff] }
 0x25d   :  { %15310 = vst [vmem:[#allocation239_spill] sm:$0xff] %v11105_v62  ;;  %15315 = vst [vmem:[#allocation244_spill] sm:$0xff] %v11115_v25  ;;  %v7813_v13 = vunpack.i.l.bf16 %v15320_v48  ;;  %v8126_v38 = vunpack.i.h.bf16 %v15321_v16  ;;  %v8125_v31 = vunpack.i.l.bf16 %v15321_v16  ;;  %v7819_v63 = vunpack.i.h.bf16 %v15322_v34  ;;  %v15327_v5 = vld [vmem:[#allocation104_spill] sm:$0xff]  ;;  %v15333_v0 = vld [vmem:[#allocation71_spill] sm:$0xff] }
 0x25e   :  { %v8988_v35 = vpack.i.bf16 %v15306_v21, %v15304_v47  ;;  %15311 = vst [vmem:[#allocation240_spill] sm:$0xff] %v11107_v26  ;;  %15312 = vst [vmem:[#allocation241_spill] sm:$0xff] %v11109_v53  ;;  %v11111_v51 = vpop.permute.xlu1 %8672  ;;  %v11113_v55 = vpop.permute.xlu0 %9034  ;;  %v7818_v44 = vunpack.i.l.bf16 %v15322_v34  ;;  %v15323_v21 = vld [vmem:[#allocation102_spill] sm:$0xff]  ;;  %v7824_v49 = vunpack.i.h.bf16 %v15326_v28  ;;  %v7823_v47 = vunpack.i.l.bf16 %v15326_v28  ;;  %v15335_v62 = vld [vmem:[#allocation105_spill] sm:$0xff] }
 0x25f   :  { %15313 = vst [vmem:[#allocation242_spill] sm:$0xff] %v11111_v51  ;;  %15314 = vst [vmem:[#allocation243_spill] sm:$0xff] %v11113_v55  ;;  %v8136_v37 = vunpack.i.h.bf16 %v15323_v21  ;;  %v8135_v30 = vunpack.i.l.bf16 %v15323_v21  ;;  %v8145_v48 = vunpack.i.l.bf16 %v15327_v5  ;;  %v1701_v16 = vmul.f32 %v8115_v39, %v10645_v42  ;;  %v15336_v26 = vld [vmem:[#allocation222_spill] sm:$0xff] }
 0x260   :  { %15316 = vst [vmem:[#allocation245_spill] sm:$0xff] %v11117_v6  ;;  %15317 = vst [vmem:[#allocation246_spill] sm:$0xff] %v11119_v59  ;;  %8989 = vperm.xlu1 %8791, %v8988_v35   ;;  %9237 = vperm.xlu0 %9130, %v15319_v41   ;;  %v8146_v41 = vunpack.i.h.bf16 %v15327_v5  ;;  %v1702_v34 = vmul.f32 %v8116_v50, %v10645_v42  ;;  %v15328_v21 = vmov 0   ;;  %v15329_v6 = vld [vmem:[#allocation67_spill] sm:$0xff]  ;;  %v1061_v59 = vmul.f32 %v7813_v13, %v10642_v46 }
 0x261   :  { %v1062_v18 = vmul.f32 %v7814_v57, %v10642_v46  ;;  %v1705_v11 = vmul.f32 %v8125_v31, %v10645_v42  ;;  %v1706_v28 = vmul.f32 %v8126_v38, %v10645_v42  ;;  %v1065_v53 = vmul.f32 %v7818_v44, %v10642_v46  ;;  %v4159_v57 = vld [vmem:[%s14442_s2] sm:$0xff] }
 0x262   :  { %v11134_v58 = vpop.permute.xlu1 %8682  ;;  %v11136_v35 = vpop.permute.xlu0 %9039  ;;  %v1066_v5 = vmul.f32 %v7819_v63, %v10642_v46  ;;  %v1709_v39 = vmul.f32 %v8135_v30, %v10645_v42  ;;  %v1710_v50 = vmul.f32 %v8136_v37, %v10645_v42  ;;  %v1069_v13 = vmul.f32 %v7823_v47, %v10642_v46  ;;  %v15332_v37 = vld [vmem:[#allocation107_spill] sm:$0xff] }
 0x263   :  { %15324 = vst [vmem:[#allocation96_spill] sm:$0xff] %v11134_v58  ;;  %15325 = vst [vmem:[#allocation63_spill] sm:$0xff] %v11136_v35  ;;  %v1070_v38 = vmul.f32 %v7824_v49, %v10642_v46  ;;  %v1713_v31 = vmul.f32 %v8145_v48, %v10645_v42  ;;  %v1714_v63 = vmul.f32 %v8146_v41, %v10645_v42  ;;  %v7841_v47 = vunpack.i.h.bf16 %v15332_v37  ;;  %v15365_v35 = vld [vmem:[#allocation112_spill] sm:$0xff] }
 0x264   :  { %8993 = vset.pattern.permute.xlu1 %v15328_v21  ;;  %9242 = vperm.xlu0 %9130, %v15329_v6   ;;  %v11168_v44 = vadd.f32 %v1701_v16, %v1057_v9  ;;  %v11170_v30 = vadd.f32 %v1702_v34, %v1058_v17  ;;  %v3129_v49 = vsub.s32 3, %v15336_v26  ;;  %v11179_v48 = vadd.f32 %v1706_v28, %v1062_v18  ;;  %v15339_v17 = vld [vmem:[#allocation106_spill] sm:$0xff]  ;;  %v15345_v28 = vld [vmem:[#allocation108_spill] sm:$0xff] }
 0x265   :  { %4374 = vperm.xlu1 %8993, %v4176_v27   ;;  %v7840_v27 = vunpack.i.l.bf16 %v15332_v37  ;;  %v11181_v41 = vadd.f32 %v1709_v39, %v1065_v53  ;;  %v7836_v9 = vunpack.i.h.bf16 %v15335_v62  ;;  %v8157_v16 = vunpack.i.l.bf16 %v15339_v17 }
 0x266   :  { %v11157_v25 = vpop.permute.xlu1 %8692  ;;  %v11159_v6 = vpop.permute.xlu0 %9058  ;;  %15337 = vst [vmem:[#allocation102_spill] sm:$0xff] %v11179_v48  ;;  %v11194_v37 = vadd.f32 %v1713_v31, %v1069_v13  ;;  %v11196_v18 = vadd.f32 %v1714_v63, %v1070_v38  ;;  %v8158_v53 = vunpack.i.h.bf16 %v15339_v17  ;;  %v8173_v39 = vunpack.i.h.bf16 %v15345_v28  ;;  %v15349_v31 = vld [vmem:[#allocation226_spill] sm:$0xff]  ;;  %v15362_v48 = vld [vmem:[#allocation79_spill] sm:$0xff] }
 0x267   :  { %15330 = vst [vmem:[#allocation98_spill] sm:$0xff] %v11157_v25  ;;  %15331 = vst [vmem:[#allocation99_spill] sm:$0xff] %v11159_v6  ;;  %v11174_v25 = vadd.f32 %v1705_v11, %v1061_v59  ;;  %v7835_v6 = vunpack.i.l.bf16 %v15335_v62  ;;  %v4207_v11 = vld [vmem:[%s14442_s2 + $0x180] sm:$0xff]  ;;  %v11192_v59 = vadd.f32 %v1710_v50, %v1066_v5  ;;  %v1591_v62 = vmul.f32 %v7840_v27, %v10645_v42 }
 0x268   :  { %9247 = vperm.xlu0 %9130, %v15333_v0   ;;  %15338 = vst [vmem:[#allocation103_spill] sm:$0xff] %v11181_v41  ;;  %15343 = vst [vmem:[#allocation71_spill] sm:$0xff] %v11194_v37  ;;  %v1592_v5 = vmul.f32 %v7841_v47, %v10645_v42  ;;  %v15348_v50 = vld [vmem:[#allocation109_spill] sm:$0xff]  ;;  %v11209_v38 = vrot.slane %v15349_v31, %v3129_v49  ;;  %v11212_v63 = vmul.f32 %v7836_v9, %v10645_v42  ;;  %v15352_v27 = vld [vmem:[#allocation230_spill] sm:$0xff] }
 0x269   :  { %15334 = vst [vmem:[#allocation101_spill] sm:$0xff] %v11174_v25  ;;  %4289 = vperm.xlu1 %8993, %v4159_v57   ;;  %15342 = vst [vmem:[#allocation107_spill] sm:$0xff] %v11192_v59  ;;  %v8172_v57 = vunpack.i.l.bf16 %v15345_v28  ;;  %v11204_v41 = vmul.f32 %v7835_v6, %v10645_v42  ;;  %v7850_v13 = vunpack.i.l.bf16 %v15348_v50  ;;  %v11215_v17 = vmul.f32 %v8157_v16, %v15352_v27  ;;  %v4191_v47 = vld [vmem:[%s14442_s2 + $0x100] sm:$0xff]  ;;  %v15363_v25 = vld [vmem:[#allocation24_spill] sm:$0xff] }
 0x26a   :  { %v11185_v34 = vpop.permute.xlu1 %8702  ;;  %v11187_v0 = vpop.permute.xlu0 %9063  ;;  %15344 = vst [vmem:[#allocation105_spill] sm:$0xff] %v11196_v18  ;;  %15350 = vst [vmem:[#allocation108_spill] sm:$0xff] %v11209_v38  ;;  %v7851_v28 = vunpack.i.h.bf16 %v15348_v50  ;;  %v11227_v49 = vmul.f32 %v8158_v53, %v15352_v27  ;;  %v15359_v50 = vld [vmem:[#allocation22_spill] sm:$0xff]  ;;  %v11243_v53 = vadd.f32 %v1592_v5, %v15363_v25  ;;  %v8193_v55 = vunpack.i.h.bf16 %v15365_v35 }
 0x26b   :  { %15340 = vst [vmem:[#allocation104_spill] sm:$0xff] %v11185_v34  ;;  %15341 = vst [vmem:[#allocation67_spill] sm:$0xff] %v11187_v0  ;;  %v15346_v34 = vld [vmem:[#allocation75_spill] sm:$0xff]  ;;  %v11233_v59 = vadd.f32 %v1591_v62, %v15359_v50  ;;  %v11236_v0 = vmul.f32 %v8172_v57, %v15352_v27 }
 0x26c   :  { %9252 = vperm.xlu0 %9130, %v15346_v34   ;;  %15347 = vst [vmem:[#allocation106_spill] sm:$0xff] %v11204_v41  ;;  %15351 = vst [vmem:[#allocation75_spill] sm:$0xff] %v11212_v63  ;;  %v15354_v34 = vld [vmem:[#allocation110_spill] sm:$0xff]  ;;  %v11251_v62 = vmul.f32 %v7851_v28, %v10645_v42  ;;  %v15422_v41 = vld [vmem:[#allocation127_spill] sm:$0xff] }
 0x26d   :  { %4529 = vperm.xlu1 %8993, %v4207_v11   ;;  %15353 = vst [vmem:[#allocation109_spill] sm:$0xff] %v11215_v17  ;;  %v8182_v37 = vunpack.i.l.bf16 %v15354_v34  ;;  %15357 = vst [vmem:[#allocation247_spill] sm:$0xff] %v11227_v49  ;;  %v8183_v9 = vunpack.i.h.bf16 %v15354_v34  ;;  %v15358_v11 = vld [vmem:[#allocation111_spill] sm:$0xff]  ;;  %v11246_v34 = vmul.f32 %v7850_v13, %v10645_v42  ;;  %v15394_v49 = vld [vmem:[#allocation120_spill] sm:$0xff] }
 0x26e   :  { %v11219_v6 = vpop.permute.xlu1 %8712  ;;  %v11221_v18 = vpop.permute.xlu0 %9068  ;;  %v7861_v16 = vunpack.i.h.bf16 %v15358_v11  ;;  %v7860_v31 = vunpack.i.l.bf16 %v15358_v11  ;;  %15360 = vst [vmem:[#allocation111_spill] sm:$0xff] %v11236_v0  ;;  %v8192_v11 = vunpack.i.l.bf16 %v15365_v35  ;;  %15366 = vst [vmem:[#allocation24_spill] sm:$0xff] %v11251_v62  ;;  %v4177_v13 = vld [vmem:[%s14442_s2 + $0x90] sm:$0xff]  ;;  %v8232_v17 = vunpack.i.l.bf16 %v15394_v49  ;;  %v15419_v63 = vld [vmem:[#allocation94_spill] sm:$0xff] }
 0x26f   :  { %15355 = vst [vmem:[#allocation226_spill] sm:$0xff] %v11219_v6  ;;  %15356 = vst [vmem:[#allocation110_spill] sm:$0xff] %v11221_v18  ;;  %v11239_v18 = vmul.f32 %v8173_v39, %v15352_v27  ;;  %v11254_v57 = vmul.f32 %v8182_v37, %v15352_v27  ;;  %v15368_v39 = vld [vmem:[#allocation113_spill] sm:$0xff]  ;;  %v11266_v35 = vmul.f32 %v8183_v9, %v15352_v27  ;;  %v15376_v6 = vld [vmem:[#allocation83_spill] sm:$0xff] }
 0x270   :  { %9257 = vperm.xlu0 %9130, %v15362_v48   ;;  %15364 = vst [vmem:[#allocation79_spill] sm:$0xff] %v11246_v34  ;;  %v7871_v50 = vunpack.i.h.bf16 %v15368_v39  ;;  %v7870_v48 = vunpack.i.l.bf16 %v15368_v39  ;;  %v11269_v28 = vmul.f32 %v7860_v31, %v10645_v42  ;;  %v11272_v37 = vmul.f32 %v7861_v16, %v10645_v42  ;;  %v15379_v31 = vld [vmem:[#allocation116_spill] sm:$0xff]  ;;  %v15387_v0 = vld [vmem:[#allocation119_spill] sm:$0xff] }
 0x271   :  { %15361 = vst [vmem:[#allocation22_spill] sm:$0xff] %v11239_v18  ;;  %4449 = vperm.xlu1 %8993, %v4191_v47   ;;  %15367 = vst [vmem:[#allocation112_spill] sm:$0xff] %v11254_v57  ;;  %v15374_v47 = vld [vmem:[#allocation114_spill] sm:$0xff]  ;;  %v11280_v51 = vmul.f32 %v8192_v11, %v15352_v27  ;;  %v11283_v9 = vmul.f32 %v8193_v55, %v15352_v27  ;;  %v8212_v16 = vunpack.i.l.bf16 %v15379_v31  ;;  %v4161_v55 = vld [vmem:[%s14442_s2 + $0x10] sm:$0xff]  ;;  %v7900_v62 = vunpack.i.l.bf16 %v15387_v0 }
 0x272   :  { %v11258_v25 = vpop.permute.xlu1 %8722  ;;  %v11260_v5 = vpop.permute.xlu0 %9073  ;;  %15371 = vst [vmem:[#allocation249_spill] sm:$0xff] %v11266_v35  ;;  %15372 = vst [vmem:[#allocation250_spill] sm:$0xff] %v11269_v28  ;;  %v8202_v58 = vunpack.i.l.bf16 %v15374_v47  ;;  %v8203_v39 = vunpack.i.h.bf16 %v15374_v47  ;;  %v8213_v35 = vunpack.i.h.bf16 %v15379_v31  ;;  %v11291_v47 = vmul.f32 %v7871_v50, %v10645_v42 }
 0x273   :  { %15369 = vst [vmem:[#allocation113_spill] sm:$0xff] %v11258_v25  ;;  %15370 = vst [vmem:[#allocation248_spill] sm:$0xff] %v11260_v5  ;;  %v15375_v25 = vld [vmem:[#allocation115_spill] sm:$0xff] }
 0x274   :  { %15373 = vst [vmem:[#allocation251_spill] sm:$0xff] %v11272_v37  ;;  %v7881_v57 = vunpack.i.h.bf16 %v15375_v25  ;;  %v7880_v5 = vunpack.i.l.bf16 %v15375_v25  ;;  %9262 = vperm.xlu0 %9130, %v15376_v6   ;;  %15377 = vst [vmem:[#allocation114_spill] sm:$0xff] %v11280_v51  ;;  %v11288_v37 = vmul.f32 %v7870_v48, %v10645_v42  ;;  %v15382_v25 = vld [vmem:[#allocation117_spill] sm:$0xff]  ;;  %v15386_v48 = vld [vmem:[#allocation118_spill] sm:$0xff]  ;;  %v11309_v34 = vmul.f32 %v8203_v39, %v15352_v27 }
 0x275   :  { %15378 = vst [vmem:[#allocation115_spill] sm:$0xff] %v11283_v9  ;;  %4379 = vperm.xlu1 %8993, %v4177_v13   ;;  %15381 = vst [vmem:[#allocation116_spill] sm:$0xff] %v11291_v47  ;;  %v7891_v28 = vunpack.i.h.bf16 %v15382_v25  ;;  %v7890_v6 = vunpack.i.l.bf16 %v15382_v25  ;;  %v11303_v13 = vmul.f32 %v8202_v58, %v15352_v27  ;;  %v8223_v31 = vunpack.i.h.bf16 %v15386_v48  ;;  %v4183_v51 = vld [vmem:[%s14442_s2 + $0xc0] sm:$0xff] }
 0x276   :  { %15380 = vst [vmem:[#allocation83_spill] sm:$0xff] %v11288_v37  ;;  %v11295_v11 = vpop.permute.xlu1 %8732  ;;  %v11297_v18 = vpop.permute.xlu0 %9092  ;;  %v8222_v50 = vunpack.i.l.bf16 %v15386_v48  ;;  %15388 = vst [vmem:[#allocation118_spill] sm:$0xff] %v11309_v34  ;;  %v11312_v25 = vmul.f32 %v7880_v5, %v10645_v42  ;;  %v11319_v58 = vmul.f32 %v8212_v16, %v15352_v27  ;;  %v7901_v48 = vunpack.i.h.bf16 %v15387_v0  ;;  %v4209_v0 = vld [vmem:[%s14442_s2 + $0x190] sm:$0xff]  ;;  %v15563_v47 = vld [vmem:[#allocation26_spill] sm:$0xff] }
 0x277   :  { %15383 = vst [vmem:[#allocation117_spill] sm:$0xff] %v11295_v11  ;;  %15384 = vst [vmem:[#allocation252_spill] sm:$0xff] %v11297_v18  ;;  %v11315_v18 = vmul.f32 %v7881_v57, %v10645_v42  ;;  %v15391_v11 = vld [vmem:[#allocation87_spill] sm:$0xff]  ;;  %v11327_v39 = vmul.f32 %v7890_v6, %v10645_v42  ;;  %v11330_v5 = vmul.f32 %v7891_v28, %v10645_v42  ;;  %v8233_v57 = vunpack.i.h.bf16 %v15394_v49 }
 0x278   :  { %15385 = vst [vmem:[#allocation253_spill] sm:$0xff] %v11303_v13  ;;  %15389 = vst [vmem:[#allocation119_spill] sm:$0xff] %v11312_v25  ;;  %9267 = vperm.xlu0 %9130, %v15391_v11   ;;  %v11322_v13 = vmul.f32 %v8213_v35, %v15352_v27  ;;  %v15397_v11 = vld [vmem:[#allocation121_spill] sm:$0xff]  ;;  %v11342_v35 = vmul.f32 %v8222_v50, %v15352_v27  ;;  %v11345_v6 = vmul.f32 %v8223_v31, %v15352_v27 }
 0x279   :  { %15390 = vst [vmem:[#allocation254_spill] sm:$0xff] %v11315_v18  ;;  %15392 = vst [vmem:[#allocation87_spill] sm:$0xff] %v11319_v58  ;;  %4299 = vperm.xlu1 %8993, %v4161_v55   ;;  %v7910_v34 = vunpack.i.l.bf16 %v15397_v11  ;;  %v11348_v28 = vmul.f32 %v7900_v62, %v10645_v42  ;;  %v7911_v49 = vunpack.i.h.bf16 %v15397_v11  ;;  %v15403_v55 = vld [vmem:[#allocation122_spill] sm:$0xff]  ;;  %v11356_v18 = vmul.f32 %v7901_v48, %v10645_v42  ;;  %v15408_v62 = vld [vmem:[#allocation124_spill] sm:$0xff] }
 0x27a   :  { %15393 = vst [vmem:[#allocation255_spill] sm:$0xff] %v11322_v13  ;;  %15395 = vst [vmem:[#allocation120_spill] sm:$0xff] %v11327_v39  ;;  %v11334_v16 = vpop.permute.xlu1 %8742  ;;  %v11336_v58 = vpop.permute.xlu0 %9097  ;;  %v8243_v13 = vunpack.i.h.bf16 %v15403_v55  ;;  %v15405_v39 = vld [vmem:[#allocation91_spill] sm:$0xff]  ;;  %v11359_v50 = vmul.f32 %v8232_v17, %v15352_v27  ;;  %v11364_v11 = vmul.f32 %v8233_v57, %v15352_v27 }
 0x27b   :  { %15396 = vst [vmem:[#allocation256_spill] sm:$0xff] %v11330_v5  ;;  %15398 = vst [vmem:[#allocation121_spill] sm:$0xff] %v11334_v16  ;;  %v8242_v16 = vunpack.i.l.bf16 %v15403_v55  ;;  %v11367_v55 = vmul.f32 %v7910_v34, %v10645_v42  ;;  %v4193_v17 = vld [vmem:[%s14442_s2 + $0x110] sm:$0xff] }
 0x27c   :  { %15399 = vst [vmem:[#allocation257_spill] sm:$0xff] %v11336_v58  ;;  %15400 = vst [vmem:[#allocation258_spill] sm:$0xff] %v11342_v35  ;;  %v15404_v58 = vld [vmem:[#allocation123_spill] sm:$0xff]  ;;  %9272 = vperm.xlu0 %9130, %v15405_v39   ;;  %v8253_v35 = vunpack.i.h.bf16 %v15408_v62  ;;  %v15411_v39 = vld [vmem:[#allocation125_spill] sm:$0xff] }
 0x27d   :  { %15401 = vst [vmem:[#allocation259_spill] sm:$0xff] %v11345_v6  ;;  %15402 = vst [vmem:[#allocation260_spill] sm:$0xff] %v11348_v28  ;;  %v7920_v5 = vunpack.i.l.bf16 %v15404_v58  ;;  %v7921_v31 = vunpack.i.h.bf16 %v15404_v58  ;;  %v8252_v6 = vunpack.i.l.bf16 %v15408_v62  ;;  %4539 = vperm.xlu1 %8993, %v4209_v0   ;;  %v7930_v28 = vunpack.i.l.bf16 %v15411_v39  ;;  %v15415_v0 = vld [vmem:[#allocation126_spill] sm:$0xff] }
 0x27e   :  { %15406 = vst [vmem:[#allocation122_spill] sm:$0xff] %v11356_v18  ;;  %15407 = vst [vmem:[#allocation123_spill] sm:$0xff] %v11359_v50  ;;  %v11371_v48 = vpop.permute.xlu1 %8752  ;;  %v11373_v18 = vpop.permute.xlu0 %9102  ;;  %v11379_v58 = vmul.f32 %v7911_v49, %v10645_v42  ;;  %v7931_v57 = vunpack.i.h.bf16 %v15411_v39  ;;  %v8263_v34 = vunpack.i.h.bf16 %v15415_v0  ;;  %v8262_v25 = vunpack.i.l.bf16 %v15415_v0 }
 0x27f   :  { %15409 = vst [vmem:[#allocation91_spill] sm:$0xff] %v11364_v11  ;;  %15410 = vst [vmem:[#allocation124_spill] sm:$0xff] %v11367_v55  ;;  %v11385_v62 = vmul.f32 %v8242_v16, %v15352_v27  ;;  %v11395_v49 = vmul.f32 %v7921_v31, %v10645_v42  ;;  %v11398_v39 = vmul.f32 %v8252_v6, %v15352_v27  ;;  %v7941_v11 = vunpack.i.h.bf16 %v15422_v41  ;;  %v4179_v6 = vld [vmem:[%s14442_s2 + $0xa0] sm:$0xff] }
 0x280   :  { %15412 = vst [vmem:[#allocation125_spill] sm:$0xff] %v11371_v48  ;;  %15413 = vst [vmem:[#allocation261_spill] sm:$0xff] %v11373_v18  ;;  %v11388_v48 = vmul.f32 %v8243_v13, %v15352_v27  ;;  %v11391_v18 = vmul.f32 %v7920_v5, %v10645_v42  ;;  %9277 = vperm.xlu0 %9130, %v15419_v63   ;;  %v7940_v0 = vunpack.i.l.bf16 %v15422_v41  ;;  %v15425_v5 = vld [vmem:[#allocation128_spill] sm:$0xff] }
 0x281   :  { %15414 = vst [vmem:[#allocation262_spill] sm:$0xff] %v11379_v58  ;;  %15416 = vst [vmem:[#allocation126_spill] sm:$0xff] %v11385_v62  ;;  %4459 = vperm.xlu1 %8993, %v4193_v17   ;;  %v11403_v16 = vmul.f32 %v8253_v35, %v15352_v27  ;;  %v11406_v13 = vmul.f32 %v7930_v28, %v10645_v42  ;;  %v8272_v63 = vunpack.i.l.bf16 %v15425_v5  ;;  %v15431_v17 = vld [vmem:[#allocation129_spill] sm:$0xff]  ;;  %v15451_v58 = vld [vmem:[#allocation135_spill] sm:$0xff] }
 0x282   :  { %15417 = vst [vmem:[#allocation263_spill] sm:$0xff] %v11388_v48  ;;  %15418 = vst [vmem:[#allocation264_spill] sm:$0xff] %v11391_v18  ;;  %v8273_v48 = vunpack.i.h.bf16 %v15425_v5  ;;  %v11410_v31 = vpop.permute.xlu1 %8762  ;;  %v11412_v62 = vpop.permute.xlu0 %9107  ;;  %v11418_v41 = vmul.f32 %v7931_v57, %v10645_v42  ;;  %v11421_v35 = vmul.f32 %v8262_v25, %v15352_v27  ;;  %v11424_v28 = vmul.f32 %v8263_v34, %v15352_v27  ;;  %v15436_v25 = vld [vmem:[#allocation131_spill] sm:$0xff] }
 0x283   :  { %15420 = vst [vmem:[#allocation94_spill] sm:$0xff] %v11395_v49  ;;  %15421 = vst [vmem:[#allocation265_spill] sm:$0xff] %v11398_v39  ;;  %v7951_v5 = vunpack.i.h.bf16 %v15431_v17  ;;  %v11432_v49 = vmul.f32 %v7940_v0, %v10645_v42  ;;  %v11435_v57 = vmul.f32 %v7941_v11, %v10645_v42  ;;  %v7960_v34 = vunpack.i.l.bf16 %v15436_v25  ;;  %v4163_v11 = vld [vmem:[%s14442_s2 + $0x20] sm:$0xff] }
 0x284   :  { %15423 = vst [vmem:[#allocation127_spill] sm:$0xff] %v11403_v16  ;;  %15424 = vst [vmem:[#allocation266_spill] sm:$0xff] %v11406_v13  ;;  %v7950_v16 = vunpack.i.l.bf16 %v15431_v17  ;;  %v15433_v13 = vld [vmem:[#allocation97_spill] sm:$0xff]  ;;  %v11443_v17 = vmul.f32 %v8273_v48, %v15352_v27 }
 0x285   :  { %15426 = vst [vmem:[#allocation128_spill] sm:$0xff] %v11410_v31  ;;  %15427 = vst [vmem:[#allocation267_spill] sm:$0xff] %v11412_v62  ;;  %v15432_v31 = vld [vmem:[#allocation130_spill] sm:$0xff]  ;;  %9282 = vperm.xlu0 %9130, %v15433_v13   ;;  %4389 = vperm.xlu1 %8993, %v4179_v6   ;;  %v11461_v50 = vmul.f32 %v7951_v5, %v10645_v42  ;;  %v7980_v5 = vunpack.i.l.bf16 %v15451_v58 }
 0x286   :  { %15428 = vst [vmem:[#allocation268_spill] sm:$0xff] %v11418_v41  ;;  %15429 = vst [vmem:[#allocation269_spill] sm:$0xff] %v11421_v35  ;;  %v8283_v39 = vunpack.i.h.bf16 %v15432_v31  ;;  %v8282_v62 = vunpack.i.l.bf16 %v15432_v31  ;;  %v7961_v35 = vunpack.i.h.bf16 %v15436_v25  ;;  %v15439_v31 = vld [vmem:[#allocation132_spill] sm:$0xff]  ;;  %v11447_v0 = vpop.permute.xlu1 %8772  ;;  %v11455_v6 = vmul.f32 %v7950_v16, %v10645_v42 }
 0x287   :  { %15430 = vst [vmem:[#allocation270_spill] sm:$0xff] %v11424_v28  ;;  %15434 = vst [vmem:[#allocation129_spill] sm:$0xff] %v11432_v49  ;;  %v11440_v28 = vmul.f32 %v8272_v63, %v15352_v27  ;;  %v8293_v41 = vunpack.i.h.bf16 %v15439_v31  ;;  %v8292_v13 = vunpack.i.l.bf16 %v15439_v31  ;;  %v11449_v49 = vpop.permute.xlu0 %9126  ;;  %v15443_v63 = vld [vmem:[#allocation133_spill] sm:$0xff]  ;;  %v11472_v16 = vmul.f32 %v7960_v34, %v10645_v42  ;;  %v15454_v34 = vld [vmem:[#allocation136_spill] sm:$0xff] }
 0x288   :  { %15435 = vst [vmem:[#allocation130_spill] sm:$0xff] %v11435_v57  ;;  %15438 = vst [vmem:[#allocation131_spill] sm:$0xff] %v11443_v17  ;;  %v7971_v25 = vunpack.i.h.bf16 %v15443_v63  ;;  %v7970_v48 = vunpack.i.l.bf16 %v15443_v63  ;;  %v15444_v57 = vld [vmem:[#allocation134_spill] sm:$0xff]  ;;  %v11464_v31 = vmul.f32 %v8282_v62, %v15352_v27  ;;  %v15448_v17 = vld [vmem:[#allocation100_spill] sm:$0xff]  ;;  %v11475_v63 = vmul.f32 %v7961_v35, %v10645_v42 }
 0x289   :  { %15437 = vst [vmem:[#allocation97_spill] sm:$0xff] %v11440_v28  ;;  %15440 = vst [vmem:[#allocation132_spill] sm:$0xff] %v11447_v0  ;;  %v8302_v18 = vunpack.i.l.bf16 %v15444_v57  ;;  %v8303_v0 = vunpack.i.h.bf16 %v15444_v57  ;;  %9287 = vperm.xlu0 %9130, %v15448_v17   ;;  %v7981_v28 = vunpack.i.h.bf16 %v15451_v58  ;;  %4309 = vperm.xlu1 %8993, %v4163_v11   ;;  %v4175_v62 = vld [vmem:[%s14442_s2 + $0x80] sm:$0xff]  ;;  %v11486_v57 = vmul.f32 %v8293_v41, %v15352_v27 }
 0x28a   :  { %15441 = vst [vmem:[#allocation271_spill] sm:$0xff] %v11449_v49  ;;  %15442 = vst [vmem:[#allocation272_spill] sm:$0xff] %v11455_v6  ;;  %v11467_v49 = vmul.f32 %v8283_v39, %v15352_v27  ;;  %v11483_v39 = vmul.f32 %v8292_v13, %v15352_v27  ;;  %v8313_v17 = vunpack.i.h.bf16 %v15454_v34  ;;  %v8312_v35 = vunpack.i.l.bf16 %v15454_v34  ;;  %v4211_v58 = vld [vmem:[%s14442_s2 + $0x1a0] sm:$0xff]  ;;  %v15508_v6 = vld [vmem:[#allocation152_spill] sm:$0xff] }
 0x28b   :  { %15445 = vst [vmem:[#allocation133_spill] sm:$0xff] %v11461_v50  ;;  %15446 = vst [vmem:[#allocation134_spill] sm:$0xff] %v11464_v31  ;;  %v11496_v11 = vmul.f32 %v7970_v48, %v10645_v42  ;;  %v11499_v31 = vmul.f32 %v7971_v25, %v10645_v42  ;;  %v11502_v13 = vmul.f32 %v8302_v18, %v15352_v27  ;;  %v15459_v41 = vld [vmem:[#allocation137_spill] sm:$0xff] }
 0x28c   :  { %15447 = vst [vmem:[#allocation273_spill] sm:$0xff] %v11467_v49  ;;  %15449 = vst [vmem:[#allocation100_spill] sm:$0xff] %v11472_v16  ;;  %v11490_v49 = vpop.permute.xlu1 %8782  ;;  %v11508_v34 = vmul.f32 %v8303_v0, %v15352_v27  ;;  %v11514_v25 = vmul.f32 %v7980_v5, %v10645_v42  ;;  %v11517_v18 = vmul.f32 %v7981_v28, %v10645_v42  ;;  %v4160_v0 = vld [vmem:[%s14442_s2 + $0x8] sm:$0xff]  ;;  %v15468_v5 = vld [vmem:[#allocation140_spill] sm:$0xff] }
 0x28d   :  { %15450 = vst [vmem:[#allocation274_spill] sm:$0xff] %v11475_v63  ;;  %15452 = vst [vmem:[#allocation135_spill] sm:$0xff] %v11483_v39  ;;  %v11505_v39 = vpop.permute.xlu0 %9132  ;;  %v15462_v63 = vld [vmem:[#allocation138_spill] sm:$0xff]  ;;  %4369 = vperm.xlu0 %9130, %v4175_v62   ;;  %4549 = vperm.xlu1 %8993, %v4211_v58   ;;  %v8333_v62 = vunpack.i.h.bf16 %v15468_v5  ;;  %v8332_v28 = vunpack.i.l.bf16 %v15468_v5 }
 0x28e   :  { %15453 = vst [vmem:[#allocation275_spill] sm:$0xff] %v11486_v57  ;;  %15455 = vst [vmem:[#allocation136_spill] sm:$0xff] %v11490_v49  ;;  %v7990_v57 = vunpack.i.l.bf16 %v15459_v41  ;;  %v7991_v49 = vunpack.i.h.bf16 %v15459_v41  ;;  %v8323_v16 = vunpack.i.h.bf16 %v15462_v63  ;;  %v8322_v48 = vunpack.i.l.bf16 %v15462_v63 }
 0x28f   :  { %15456 = vst [vmem:[#allocation276_spill] sm:$0xff] %v11496_v11  ;;  %15457 = vst [vmem:[#allocation277_spill] sm:$0xff] %v11499_v31  ;;  %v11525_v41 = vmul.f32 %v8312_v35, %v15352_v27  ;;  %v11528_v63 = vmul.f32 %v8313_v17, %v15352_v27  ;;  %v15471_v35 = vld [vmem:[#allocation142_spill] sm:$0xff] }
 0x290   :  { %15458 = vst [vmem:[#allocation278_spill] sm:$0xff] %v11502_v13  ;;  %15460 = vst [vmem:[#allocation137_spill] sm:$0xff] %v11505_v39  ;;  %v15465_v13 = vld [vmem:[#allocation139_spill] sm:$0xff]  ;;  %v11536_v58 = vmul.f32 %v7990_v57, %v10645_v42  ;;  %v11541_v55 = vpop.permute.xlu1 %8793  ;;  %v11549_v5 = vmul.f32 %v8322_v48, %v15352_v27  ;;  %v11552_v50 = vmul.f32 %v8323_v16, %v15352_v27  ;;  %v8343_v57 = vunpack.i.h.bf16 %v15471_v35 }
 0x291   :  { %15461 = vst [vmem:[#allocation279_spill] sm:$0xff] %v11508_v34  ;;  %15463 = vst [vmem:[#allocation138_spill] sm:$0xff] %v11514_v25  ;;  %v8001_v31 = vunpack.i.h.bf16 %v15465_v13  ;;  %v8000_v11 = vunpack.i.l.bf16 %v15465_v13  ;;  %v4195_v34 = vld [vmem:[%s14442_s2 + $0x120] sm:$0xff]  ;;  %v11543_v17 = vpop.permute.xlu0 %9137  ;;  %4294 = vperm.xlu0 %9130, %v4160_v0   ;;  %v4208_v48 = vld [vmem:[%s14442_s2 + $0x188] sm:$0xff]  ;;  %v11567_v16 = vmul.f32 %v8332_v28, %v15352_v27  ;;  %v11570_v0 = vmul.f32 %v8333_v62, %v15352_v27 }
 0x292   :  { %15464 = vst [vmem:[#allocation280_spill] sm:$0xff] %v11517_v18  ;;  %15466 = vst [vmem:[#allocation139_spill] sm:$0xff] %v11525_v41  ;;  %v15470_v13 = vld [vmem:[#allocation141_spill] sm:$0xff]  ;;  %v8342_v41 = vunpack.i.l.bf16 %v15471_v35  ;;  %4469 = vperm.xlu1 %8993, %v4195_v34  }
 0x293   :  { %15467 = vst [vmem:[#allocation281_spill] sm:$0xff] %v11528_v63  ;;  %15469 = vst [vmem:[#allocation140_spill] sm:$0xff] %v11536_v58  ;;  %v8011_v18 = vunpack.i.h.bf16 %v15470_v13  ;;  %v8010_v25 = vunpack.i.l.bf16 %v15470_v13  ;;  %v11546_v63 = vmul.f32 %v7991_v49, %v10645_v42  ;;  %v11556_v13 = vmul.f32 %v8000_v11, %v10645_v42  ;;  %v15482_v11 = vld [vmem:[#allocation144_spill] sm:$0xff] }
 0x294   :  { %15472 = vst [vmem:[#allocation141_spill] sm:$0xff] %v11541_v55  ;;  %15473 = vst [vmem:[#allocation142_spill] sm:$0xff] %v11543_v17  ;;  %v11559_v58 = vmul.f32 %v8001_v31, %v10645_v42  ;;  %v15479_v55 = vld [vmem:[#allocation143_spill] sm:$0xff]  ;;  %v8353_v35 = vunpack.i.h.bf16 %v15482_v11  ;;  %v8352_v31 = vunpack.i.l.bf16 %v15482_v11  ;;  %v11584_v28 = vmul.f32 %v8342_v41, %v15352_v27 }
 0x295   :  { %15474 = vst [vmem:[#allocation282_spill] sm:$0xff] %v11546_v63  ;;  %15475 = vst [vmem:[#allocation283_spill] sm:$0xff] %v11549_v5  ;;  %v8021_v17 = vunpack.i.h.bf16 %v15479_v55  ;;  %v8020_v49 = vunpack.i.l.bf16 %v15479_v55  ;;  %v4181_v5 = vld [vmem:[%s14442_s2 + $0xb0] sm:$0xff]  ;;  %v11578_v55 = vmul.f32 %v8010_v25, %v10645_v42  ;;  %v11581_v34 = vmul.f32 %v8011_v18, %v10645_v42  ;;  %4534 = vperm.xlu0 %9130, %v4208_v48  }
 0x296   :  { %15476 = vst [vmem:[#allocation284_spill] sm:$0xff] %v11552_v50  ;;  %15477 = vst [vmem:[#allocation285_spill] sm:$0xff] %v11556_v13  ;;  %v11589_v50 = vpop.permute.xlu0 %9142  ;;  %v11592_v11 = vmul.f32 %v8343_v57, %v15352_v27  ;;  %4399 = vperm.xlu1 %8993, %v4181_v5   ;;  %v4192_v57 = vld [vmem:[%s14442_s2 + $0x108] sm:$0xff] }
 0x297   :  { %15478 = vst [vmem:[#allocation286_spill] sm:$0xff] %v11559_v58  ;;  %15480 = vst [vmem:[#allocation143_spill] sm:$0xff] %v11567_v16  ;;  %v15486_v16 = vld [vmem:[#allocation145_spill] sm:$0xff]  ;;  %v15490_v58 = vld [vmem:[#allocation146_spill] sm:$0xff]  ;;  %v11598_v18 = vmul.f32 %v8020_v49, %v10645_v42  ;;  %v11601_v41 = vmul.f32 %v8021_v17, %v10645_v42 }
 0x298   :  { %15481 = vst [vmem:[#allocation287_spill] sm:$0xff] %v11570_v0  ;;  %15483 = vst [vmem:[#allocation144_spill] sm:$0xff] %v11578_v55  ;;  %v8030_v62 = vunpack.i.l.bf16 %v15486_v16  ;;  %v11587_v0 = vpop.permute.xlu1 %8804  ;;  %v8031_v13 = vunpack.i.h.bf16 %v15486_v16  ;;  %v8363_v25 = vunpack.i.h.bf16 %v15490_v58  ;;  %v8362_v55 = vunpack.i.l.bf16 %v15490_v58  ;;  %v15496_v49 = vld [vmem:[#allocation148_spill] sm:$0xff] }
 0x299   :  { %15484 = vst [vmem:[#allocation288_spill] sm:$0xff] %v11581_v34  ;;  %15485 = vst [vmem:[#allocation289_spill] sm:$0xff] %v11584_v28  ;;  %v15493_v28 = vld [vmem:[#allocation147_spill] sm:$0xff]  ;;  %v11609_v16 = vmul.f32 %v8352_v31, %v15352_v27  ;;  %v11612_v58 = vmul.f32 %v8353_v35, %v15352_v27  ;;  %v8373_v48 = vunpack.i.h.bf16 %v15496_v49  ;;  %v8372_v17 = vunpack.i.l.bf16 %v15496_v49  ;;  %v15499_v31 = vld [vmem:[#allocation150_spill] sm:$0xff]  ;;  %4454 = vperm.xlu0 %9130, %v4192_v57  }
 0x29a   :  { %15487 = vst [vmem:[#allocation145_spill] sm:$0xff] %v11587_v0  ;;  %15488 = vst [vmem:[#allocation290_spill] sm:$0xff] %v11589_v50  ;;  %v8041_v34 = vunpack.i.h.bf16 %v15493_v28  ;;  %v8040_v63 = vunpack.i.l.bf16 %v15493_v28  ;;  %v11620_v5 = vmul.f32 %v8030_v62, %v10645_v42  ;;  %v15498_v28 = vld [vmem:[#allocation149_spill] sm:$0xff]  ;;  %v11627_v35 = vpop.permute.xlu0 %9147  ;;  %v11633_v49 = vmul.f32 %v8362_v55, %v15352_v27 }
 0x29b   :  { %15489 = vst [vmem:[#allocation291_spill] sm:$0xff] %v11592_v11  ;;  %15491 = vst [vmem:[#allocation146_spill] sm:$0xff] %v11598_v18  ;;  %v4165_v11 = vld [vmem:[%s14442_s2 + $0x30] sm:$0xff]  ;;  %v8051_v18 = vunpack.i.h.bf16 %v15498_v28  ;;  %v11636_v0 = vmul.f32 %v8363_v25, %v15352_v27  ;;  %v8383_v62 = vunpack.i.h.bf16 %v15499_v31  ;;  %v4178_v55 = vld [vmem:[%s14442_s2 + $0x98] sm:$0xff]  ;;  %v11651_v25 = vmul.f32 %v8372_v17, %v15352_v27 }
 0x29c   :  { %15492 = vst [vmem:[#allocation292_spill] sm:$0xff] %v11601_v41  ;;  %15494 = vst [vmem:[#allocation147_spill] sm:$0xff] %v11609_v16  ;;  %v8050_v41 = vunpack.i.l.bf16 %v15498_v28  ;;  %v8382_v16 = vunpack.i.l.bf16 %v15499_v31  ;;  %v11625_v50 = vpop.permute.xlu1 %8809  ;;  %v11640_v28 = vmul.f32 %v8040_v63, %v10645_v42  ;;  %4319 = vperm.xlu1 %8993, %v4165_v11   ;;  %v11654_v57 = vmul.f32 %v8373_v48, %v15352_v27  ;;  %v15511_v31 = vld [vmem:[#allocation153_spill] sm:$0xff] }
 0x29d   :  { %15495 = vst [vmem:[#allocation293_spill] sm:$0xff] %v11612_v58  ;;  %15497 = vst [vmem:[#allocation148_spill] sm:$0xff] %v11620_v5  ;;  %v11630_v58 = vmul.f32 %v8031_v13, %v10645_v42  ;;  %v11643_v5 = vmul.f32 %v8041_v34, %v10645_v42  ;;  %v8392_v13 = vunpack.i.l.bf16 %v15508_v6  ;;  %v8393_v63 = vunpack.i.h.bf16 %v15508_v6  ;;  %4384 = vperm.xlu0 %9130, %v4178_v55  }
 0x29e   :  { %15500 = vst [vmem:[#allocation149_spill] sm:$0xff] %v11625_v50  ;;  %15501 = vst [vmem:[#allocation150_spill] sm:$0xff] %v11627_v35  ;;  %v15507_v50 = vld [vmem:[#allocation151_spill] sm:$0xff]  ;;  %v8070_v34 = vunpack.i.l.bf16 %v15511_v31  ;;  %v11662_v11 = vmul.f32 %v8050_v41, %v10645_v42  ;;  %v11668_v17 = vmul.f32 %v8382_v16, %v15352_v27  ;;  %v8071_v48 = vunpack.i.h.bf16 %v15511_v31  ;;  %v11673_v6 = vpop.permute.xlu0 %9152 }
 0x29f   :  { %15502 = vst [vmem:[#allocation294_spill] sm:$0xff] %v11630_v58  ;;  %15503 = vst [vmem:[#allocation295_spill] sm:$0xff] %v11633_v49  ;;  %v8060_v35 = vunpack.i.l.bf16 %v15507_v50  ;;  %v4213_v49 = vld [vmem:[%s14442_s2 + $0x1b0] sm:$0xff]  ;;  %v11685_v16 = vmul.f32 %v8392_v13, %v15352_v27 }
 0x2a0   :  { %15504 = vst [vmem:[#allocation296_spill] sm:$0xff] %v11636_v0  ;;  %15505 = vst [vmem:[#allocation297_spill] sm:$0xff] %v11640_v28  ;;  %v11665_v0 = vmul.f32 %v8051_v18, %v10645_v42  ;;  %v15521_v31 = vld [vmem:[#allocation155_spill] sm:$0xff]  ;;  %4559 = vperm.xlu1 %8993, %v4213_v49   ;;  %v11693_v28 = vmul.f32 %v8393_v63, %v15352_v27  ;;  %v11704_v49 = vmul.f32 %v8071_v48, %v10645_v42  ;;  %v15527_v63 = vld [vmem:[#allocation162_spill] sm:$0xff] }
 0x2a1   :  { %15506 = vst [vmem:[#allocation298_spill] sm:$0xff] %v11643_v5  ;;  %15509 = vst [vmem:[#allocation152_spill] sm:$0xff] %v11651_v25  ;;  %v11671_v25 = vpop.permute.xlu1 %8819  ;;  %v15518_v5 = vld [vmem:[#allocation154_spill] sm:$0xff]  ;;  %v11682_v18 = vmul.f32 %v8060_v35, %v10645_v42  ;;  %v15524_v35 = vld [vmem:[#allocation160_spill] sm:$0xff]  ;;  %v8443_v58 = vunpack.i.h.bf16 %v15527_v63 }
 0x2a2   :  { %15510 = vst [vmem:[#allocation299_spill] sm:$0xff] %v11654_v57  ;;  %15512 = vst [vmem:[#allocation153_spill] sm:$0xff] %v11662_v11  ;;  %v11676_v57 = vmul.f32 %v8383_v62, %v15352_v27  ;;  %v8403_v41 = vunpack.i.h.bf16 %v15518_v5  ;;  %v8402_v11 = vunpack.i.l.bf16 %v15518_v5  ;;  %v4162_v62 = vld [vmem:[%s14442_s2 + $0x18] sm:$0xff]  ;;  %v11696_v5 = vmul.f32 %v8070_v34, %v10645_v42  ;;  %v11711_v34 = vpop.permute.xlu0 %9157  ;;  %v15532_v48 = vld [vmem:[#allocation163_spill] sm:$0xff] }
 0x2a3   :  { %15513 = vst [vmem:[#allocation300_spill] sm:$0xff] %v11665_v0  ;;  %15514 = vst [vmem:[#allocation301_spill] sm:$0xff] %v11668_v17  ;;  %v8081_v17 = vunpack.i.h.bf16 %v15521_v31  ;;  %v8080_v0 = vunpack.i.l.bf16 %v15521_v31  ;;  %v8433_v55 = vunpack.i.h.bf16 %v15524_v35  ;;  %v8432_v13 = vunpack.i.l.bf16 %v15524_v35  ;;  %v15526_v31 = vld [vmem:[#allocation161_spill] sm:$0xff]  ;;  %4304 = vperm.xlu0 %9130, %v4162_v62  }
 0x2a4   :  { %15515 = vst [vmem:[#allocation302_spill] sm:$0xff] %v11671_v25  ;;  %15516 = vst [vmem:[#allocation303_spill] sm:$0xff] %v11673_v6  ;;  %v8110_v50 = vunpack.i.l.bf16 %v15526_v31  ;;  %v11717_v35 = vmul.f32 %v8403_v41, %v15352_v27  ;;  %v15572_v6 = vld [vmem:[#allocation181_spill] sm:$0xff] }
 0x2a5   :  { %15517 = vst [vmem:[#allocation304_spill] sm:$0xff] %v11676_v57  ;;  %15519 = vst [vmem:[#allocation154_spill] sm:$0xff] %v11682_v18  ;;  %v4197_v57 = vld [vmem:[%s14442_s2 + $0x130] sm:$0xff]  ;;  %v8111_v18 = vunpack.i.h.bf16 %v15526_v31  ;;  %v11722_v25 = vmul.f32 %v8080_v0, %v10645_v42  ;;  %v11725_v31 = vmul.f32 %v8081_v17, %v10645_v42  ;;  %v11733_v41 = vmul.f32 %v8432_v13, %v15352_v27 }
 0x2a6   :  { %15520 = vst [vmem:[#allocation305_spill] sm:$0xff] %v11685_v16  ;;  %15522 = vst [vmem:[#allocation155_spill] sm:$0xff] %v11693_v28  ;;  %v8442_v28 = vunpack.i.l.bf16 %v15527_v63  ;;  %v11709_v16 = vpop.permute.xlu1 %8829  ;;  %4479 = vperm.xlu1 %8993, %v4197_v57   ;;  %v11736_v62 = vmul.f32 %v8433_v55, %v15352_v27  ;;  %v15538_v0 = vld [vmem:[#allocation168_spill] sm:$0xff]  ;;  %v11744_v57 = vmul.f32 %v8110_v50, %v10645_v42  ;;  %v3901_v55 = vsub.s32 4, %v15336_v26  ;;  %v15546_v50 = vld [vmem:[#allocation171_spill] sm:$0xff] }
 0x2a7   :  { %15523 = vst [vmem:[#allocation306_spill] sm:$0xff] %v11696_v5  ;;  %15525 = vst [vmem:[#allocation160_spill] sm:$0xff] %v11704_v49  ;;  %v11714_v5 = vmul.f32 %v8402_v11, %v15352_v27  ;;  %v8120_v49 = vunpack.i.l.bf16 %v15532_v48  ;;  %v4210_v11 = vld [vmem:[%s14442_s2 + $0x198] sm:$0xff]  ;;  %v8474_v63 = vunpack.i.h.bf16 %v15538_v0  ;;  %v8473_v17 = vunpack.i.l.bf16 %v15538_v0 }
 0x2a8   :  { %15528 = vst [vmem:[#allocation161_spill] sm:$0xff] %v11709_v16  ;;  %15529 = vst [vmem:[#allocation162_spill] sm:$0xff] %v11711_v34  ;;  %v8121_v34 = vunpack.i.h.bf16 %v15532_v48  ;;  %v11747_v48 = vmul.f32 %v8111_v18, %v10645_v42  ;;  %v11750_v13 = vmul.f32 %v8442_v28, %v15352_v27  ;;  %v11758_v0 = vmul.f32 %v8443_v58, %v15352_v27  ;;  %v4194_v58 = vld [vmem:[%s14442_s2 + $0x118] sm:$0xff] }
 0x2a9   :  { %15530 = vst [vmem:[#allocation307_spill] sm:$0xff] %v11714_v5  ;;  %15531 = vst [vmem:[#allocation308_spill] sm:$0xff] %v11717_v35  ;;  %v11755_v35 = vpop.permute.xlu0 %9162  ;;  %v11761_v5 = vmul.f32 %v8120_v49, %v10645_v42  ;;  %4544 = vperm.xlu0 %9130, %v4210_v11   ;;  %v11775_v49 = vmul.f32 %v8473_v17, %v11209_v38  ;;  %v15552_v11 = vld [vmem:[#allocation170_spill] sm:$0xff]  ;;  %v8207_v21 = vunpack.i.l.bf16 %v15572_v6 }
 0x2aa   :  { %15533 = vst [vmem:[#allocation163_spill] sm:$0xff] %v11722_v25  ;;  %15534 = vst [vmem:[#allocation309_spill] sm:$0xff] %v11725_v31  ;;  %v11753_v16 = vpop.permute.xlu1 %8839  ;;  %v8162_v31 = vunpack.i.l.bf16 %v15546_v50  ;;  %v15547_v25 = vld [vmem:[#allocation173_spill] sm:$0xff]  ;;  %v11766_v28 = vmul.f32 %v8121_v34, %v10645_v42  ;;  %4409 = vperm.xlu1 %8993, %v4183_v51   ;;  %v8490_v42 = vunpack.i.h.bf16 %v15552_v11  ;;  %v8489_v51 = vunpack.i.l.bf16 %v15552_v11 }
 0x2ab   :  { %15536 = vst [vmem:[#allocation310_spill] sm:$0xff] %v11733_v41  ;;  %15537 = vst [vmem:[#allocation311_spill] sm:$0xff] %v11736_v62  ;;  %v8167_v18 = vunpack.i.l.bf16 %v15547_v25  ;;  %v8163_v41 = vunpack.i.h.bf16 %v15546_v50  ;;  %v8168_v62 = vunpack.i.h.bf16 %v15547_v25  ;;  %v4167_v50 = vld [vmem:[%s14442_s2 + $0x40] sm:$0xff]  ;;  %v15553_v25 = vld [vmem:[#allocation175_spill] sm:$0xff] }
 0x2ac   :  { %15539 = vst [vmem:[#allocation168_spill] sm:$0xff] %v11744_v57  ;;  %15540 = vst [vmem:[#allocation312_spill] sm:$0xff] %v11747_v48  ;;  %v9337_v17 = vld [vmem:[%s14440_s0] sm:$0x1f]  ;;  %v2363_v48 = vmul.f32 %v8162_v31, %v15352_v27  ;;  %v4180_v31 = vld [vmem:[%s14442_s2 + $0xa8] sm:$0xff] }
 0x2ad   :  { %15541 = vst [vmem:[#allocation313_spill] sm:$0xff] %v11750_v13  ;;  %15542 = vst [vmem:[#allocation314_spill] sm:$0xff] %v11753_v16  ;;  %v15549_v13 = vld [vmem:[#allocation169_spill] sm:$0xff]  ;;  %4464 = vperm.xlu0 %9130, %v4194_v58  }
 0x2ae   :  { %15543 = vst [vmem:[#allocation315_spill] sm:$0xff] %v11755_v35  ;;  %15544 = vst [vmem:[#allocation316_spill] sm:$0xff] %v11758_v0  ;;  %v8151_v26 = vunpack.i.l.bf16 %v15549_v13  ;;  %v11778_v0 = vmul.f32 %v8474_v63, %v11209_v38  ;;  %v8152_v34 = vunpack.i.h.bf16 %v15549_v13  ;;  %v11791_v63 = vrot.slane %v9337_v17, %v3901_v55  ;;  %v11793_v57 = vpop.permute.xlu1 %8849  ;;  %v11795_v13 = vpop.permute.xlu0 %9167  ;;  %v15556_v35 = vld [vmem:[#allocation172_spill] sm:$0xff]  ;;  %v15558_v17 = vld [vmem:[#allocation177_spill] sm:$0xff]  ;;  %4329 = vperm.xlu1 %8993, %v4167_v50  }
 0x2af   :  { %15545 = vst [vmem:[#allocation317_spill] sm:$0xff] %v11761_v5  ;;  %15548 = vst [vmem:[#allocation171_spill] sm:$0xff] %v11766_v28  ;;  %v8178_v28 = vunpack.i.h.bf16 %v15553_v25  ;;  %v8177_v5 = vunpack.i.l.bf16 %v15553_v25  ;;  %v8500_v16 = vunpack.i.h.bf16 %v15556_v35  ;;  %v8499_v11 = vunpack.i.l.bf16 %v15556_v35  ;;  %v15560_v35 = vld [vmem:[#allocation174_spill] sm:$0xff] }
 0x2b0   :  { %15550 = vst [vmem:[#allocation173_spill] sm:$0xff] %v11775_v49  ;;  %15551 = vst [vmem:[#allocation169_spill] sm:$0xff] %v11778_v0  ;;  %v2365_v0 = vmul.f32 %v8167_v18, %v15352_v27  ;;  %v11802_v25 = vmul.f32 %v8151_v26, %v15352_v27  ;;  %v2364_v49 = vmul.f32 %v8163_v41, %v15352_v27  ;;  %v8510_v18 = vunpack.i.h.bf16 %v15560_v35  ;;  %v4215_v41 = vld [vmem:[%s14442_s2 + $0x1c0] sm:$0xff] }
 0x2b1   :  { %15554 = vst [vmem:[#allocation170_spill] sm:$0xff] %v11793_v57  ;;  %15555 = vst [vmem:[#allocation175_spill] sm:$0xff] %v11795_v13  ;;  %v2366_v55 = vmul.f32 %v8168_v62, %v15352_v27  ;;  %v8187_v57 = vunpack.i.l.bf16 %v15558_v17  ;;  %v11811_v13 = vmul.f32 %v8152_v34, %v15352_v27  ;;  %v8509_v58 = vunpack.i.l.bf16 %v15560_v35  ;;  %4394 = vperm.xlu0 %9130, %v4180_v31   ;;  %v15569_v31 = vld [vmem:[#allocation176_spill] sm:$0xff] }
 0x2b2   :  { %15557 = vst [vmem:[#allocation172_spill] sm:$0xff] %v11802_v25  ;;  %v8188_v26 = vunpack.i.h.bf16 %v15558_v17  ;;  %v3137_v62 = vmul.f32 %v8489_v51, %v11209_v38  ;;  %v3138_v50 = vmul.f32 %v8490_v42, %v11209_v38  ;;  %v2369_v25 = vmul.f32 %v8177_v5, %v15352_v27  ;;  %v11823_v34 = vpop.permute.xlu1 %8859  ;;  %v15565_v5 = vld [vmem:[#allocation233_spill] sm:$0xff]  ;;  %4569 = vperm.xlu1 %8993, %v4215_v41  }
 0x2b3   :  { %15559 = vst [vmem:[#allocation177_spill] sm:$0xff] %v11811_v13  ;;  %v2370_v9 = vmul.f32 %v8178_v28, %v15352_v27  ;;  %15561 = vst [vmem:[#allocation174_spill] sm:$0xff] %v11823_v34  ;;  %v11825_v13 = vpop.permute.xlu0 %9172  ;;  %v11828_v35 = vadd.f32 %v2363_v48, %v11233_v59  ;;  %v3141_v17 = vmul.f32 %v8499_v11, %v11209_v38  ;;  %v15566_v34 = vld [vmem:[#allocation179_spill] sm:$0xff]  ;;  %v8520_v41 = vunpack.i.h.bf16 %v15569_v31 }
 0x2b4   :  { %15562 = vst [vmem:[#allocation318_spill] sm:$0xff] %v11825_v13  ;;  %v3142_v37 = vmul.f32 %v8500_v16, %v11209_v38  ;;  %v2493_v46 = vadd.f32 %v2365_v0, %v15563_v47  ;;  %v11834_v42 = vadd.f32 %v2364_v49, %v11243_v53  ;;  %v2494_v51 = vadd.f32 %v2366_v55, %v15565_v5  ;;  %v4164_v59 = vld [vmem:[%s14442_s2 + $0x28] sm:$0xff]  ;;  %v4199_v0 = vld [vmem:[%s14442_s2 + $0x140] sm:$0xff] }
 0x2b5   :  { %v2373_v28 = vmul.f32 %v8187_v57, %v15352_v27  ;;  %v8197_v39 = vunpack.i.l.bf16 %v15566_v34  ;;  %v3145_v48 = vmul.f32 %v8509_v58, %v11209_v38  ;;  %v3146_v16 = vmul.f32 %v8510_v18, %v11209_v38  ;;  %v15567_v57 = vld [vmem:[#allocation234_spill] sm:$0xff]  ;;  %v15568_v11 = vld [vmem:[#allocation235_spill] sm:$0xff]  ;;  %4314 = vperm.xlu0 %9130, %v4164_v59  }
 0x2b6   :  { %15564 = vst [vmem:[#allocation26_spill] sm:$0xff] %v11834_v42  ;;  %v2374_v47 = vmul.f32 %v8188_v26, %v15352_v27  ;;  %v8198_v53 = vunpack.i.h.bf16 %v15566_v34  ;;  %v2497_v49 = vadd.f32 %v2369_v25, %v15567_v57  ;;  %v2498_v55 = vadd.f32 %v2370_v9, %v15568_v11  ;;  %v11853_v13 = vpop.permute.xlu1 %8869  ;;  %v15571_v18 = vld [vmem:[#allocation178_spill] sm:$0xff]  ;;  %4489 = vperm.xlu1 %8993, %v4199_v0   ;;  %v15575_v59 = vld [vmem:[#allocation183_spill] sm:$0xff] }
 0x2b7   :  { %v8519_v5 = vunpack.i.l.bf16 %v15569_v31  ;;  %15570 = vst [vmem:[#allocation233_spill] sm:$0xff] %v11853_v13  ;;  %v11855_v58 = vpop.permute.xlu0 %9177  ;;  %v8529_v26 = vunpack.i.l.bf16 %v15571_v18  ;;  %v8208_v34 = vunpack.i.h.bf16 %v15572_v6  ;;  %v11860_v42 = vadd.f32 %v3137_v62, %v2493_v46  ;;  %v4212_v11 = vld [vmem:[%s14442_s2 + $0x1a8] sm:$0xff] }
 0x2b8   :  { %v2501_v25 = vadd.f32 %v2373_v28, %v10761_v19  ;;  %v8530_v9 = vunpack.i.h.bf16 %v15571_v18  ;;  %v2377_v57 = vmul.f32 %v8197_v39, %v15352_v27  ;;  %v11868_v31 = vadd.f32 %v3138_v50, %v2494_v51  ;;  %v4185_v19 = vld [vmem:[%s14442_s2 + $0xd0] sm:$0xff] }
 0x2b9   :  { %15573 = vst [vmem:[#allocation179_spill] sm:$0xff] %v11860_v42  ;;  %v2502_v13 = vadd.f32 %v2374_v47, %v10763_v60  ;;  %v2378_v6 = vmul.f32 %v8198_v53, %v15352_v27  ;;  %v8218_v46 = vunpack.i.h.bf16 %v15575_v59  ;;  %v8217_v62 = vunpack.i.l.bf16 %v15575_v59  ;;  %v15579_v53 = vld [vmem:[#allocation180_spill] sm:$0xff]  ;;  %4554 = vperm.xlu0 %9130, %v4212_v11   ;;  %v15583_v11 = vld [vmem:[#allocation185_spill] sm:$0xff] }
 0x2ba   :  { %15574 = vst [vmem:[#allocation234_spill] sm:$0xff] %v11868_v31  ;;  %v3149_v39 = vmul.f32 %v8519_v5, %v11209_v38  ;;  %v3150_v28 = vmul.f32 %v8520_v41, %v11209_v38  ;;  %v11879_v0 = vpop.permute.xlu1 %8879  ;;  %v11883_v51 = vadd.f32 %v3141_v17, %v2497_v49  ;;  %v11885_v60 = vadd.f32 %v3142_v37, %v2498_v55  ;;  %v4196_v37 = vld [vmem:[%s14442_s2 + $0x128] sm:$0xff] }
 0x2bb   :  { %v11881_v50 = vpop.permute.xlu0 %9182  ;;  %v3153_v47 = vmul.f32 %v8529_v26, %v11209_v38  ;;  %v8539_v18 = vunpack.i.l.bf16 %v15579_v53  ;;  %v2381_v59 = vmul.f32 %v8207_v21, %v15352_v27  ;;  %v2382_v31 = vmul.f32 %v8208_v34, %v15352_v27  ;;  %4419 = vperm.xlu1 %8993, %v4185_v19   ;;  %v4169_v26 = vld [vmem:[%s14442_s2 + $0x50] sm:$0xff]  ;;  %v15582_v34 = vld [vmem:[#allocation182_spill] sm:$0xff] }
 0x2bc   :  { %15576 = vst [vmem:[#allocation235_spill] sm:$0xff] %v11881_v50  ;;  %15577 = vst [vmem:[#allocation176_spill] sm:$0xff] %v11883_v51  ;;  %v3154_v5 = vmul.f32 %v8530_v9, %v11209_v38  ;;  %v2505_v41 = vadd.f32 %v2377_v57, %v10765_v7  ;;  %v8540_v42 = vunpack.i.h.bf16 %v15579_v53  ;;  %v11897_v17 = vadd.f32 %v3145_v48, %v2501_v25 }
 0x2bd   :  { %15578 = vst [vmem:[#allocation178_spill] sm:$0xff] %v11885_v60  ;;  %v2506_v49 = vadd.f32 %v2378_v6, %v10767_v52  ;;  %v2385_v21 = vmul.f32 %v8217_v62, %v15352_v27  ;;  %v2386_v55 = vmul.f32 %v8218_v46, %v15352_v27  ;;  %v11905_v7 = vadd.f32 %v3146_v16, %v2502_v13  ;;  %v15586_v13 = vld [vmem:[#allocation187_spill] sm:$0xff] }
 0x2be   :  { %15580 = vst [vmem:[#allocation181_spill] sm:$0xff] %v11897_v17  ;;  %v8550_v9 = vunpack.i.h.bf16 %v15582_v34  ;;  %v8549_v57 = vunpack.i.l.bf16 %v15582_v34  ;;  %v8228_v19 = vunpack.i.h.bf16 %v15583_v11  ;;  %v8227_v48 = vunpack.i.l.bf16 %v15583_v11  ;;  %v11911_v25 = vpop.permute.xlu1 %8889  ;;  %4474 = vperm.xlu0 %9130, %v4196_v37   ;;  %v15587_v34 = vld [vmem:[#allocation184_spill] sm:$0xff] }
 0x2bf   :  { %15581 = vst [vmem:[#allocation183_spill] sm:$0xff] %v11905_v7  ;;  %15584 = vst [vmem:[#allocation180_spill] sm:$0xff] %v11911_v25  ;;  %v11913_v52 = vpop.permute.xlu0 %9187  ;;  %v3157_v6 = vmul.f32 %v8539_v18, %v11209_v38  ;;  %v2509_v46 = vadd.f32 %v2381_v59, %v10773_v56  ;;  %v2510_v62 = vadd.f32 %v2382_v31, %v10775_v15  ;;  %v8237_v16 = vunpack.i.l.bf16 %v15586_v13  ;;  %v4182_v11 = vld [vmem:[%s14442_s2 + $0xb8] sm:$0xff] }
 0x2c0   :  { %15585 = vst [vmem:[#allocation182_spill] sm:$0xff] %v11913_v52  ;;  %v3158_v53 = vmul.f32 %v8540_v42, %v11209_v38  ;;  %v8559_v7 = vunpack.i.l.bf16 %v15587_v34  ;;  %v8238_v17 = vunpack.i.h.bf16 %v15586_v13  ;;  %4339 = vperm.xlu1 %8993, %v4169_v26   ;;  %v11925_v52 = vadd.f32 %v3149_v39, %v2505_v41  ;;  %v4217_v42 = vld [vmem:[%s14442_s2 + $0x1d0] sm:$0xff] }
 0x2c1   :  { %v2513_v56 = vadd.f32 %v2385_v21, %v10777_v36  ;;  %v2514_v15 = vadd.f32 %v2386_v55, %v10780_v45  ;;  %v8560_v31 = vunpack.i.h.bf16 %v15587_v34  ;;  %v11933_v18 = vadd.f32 %v3150_v28, %v2506_v49  ;;  %v15589_v45 = vld [vmem:[#allocation186_spill] sm:$0xff]  ;;  %v4166_v34 = vld [vmem:[%s14442_s2 + $0x38] sm:$0xff] }
 0x2c2   :  { %v3161_v59 = vmul.f32 %v8549_v57, %v11209_v38  ;;  %v3162_v37 = vmul.f32 %v8550_v9, %v11209_v38  ;;  %v2389_v26 = vmul.f32 %v8227_v48, %v15352_v27  ;;  %v2390_v39 = vmul.f32 %v8228_v19, %v15352_v27  ;;  %v11939_v41 = vpop.permute.xlu1 %8899  ;;  %4404 = vperm.xlu0 %9130, %v4182_v11   ;;  %v15592_v19 = vld [vmem:[#allocation189_spill] sm:$0xff]  ;;  %v15596_v11 = vld [vmem:[#allocation34_spill] sm:$0xff] }
 0x2c3   :  { %15588 = vst [vmem:[#allocation185_spill] sm:$0xff] %v11939_v41  ;;  %v11941_v36 = vpop.permute.xlu0 %9192  ;;  %v8569_v21 = vunpack.i.l.bf16 %v15589_v45  ;;  %v2393_v55 = vmul.f32 %v8237_v16, %v15352_v27  ;;  %v11945_v13 = vadd.f32 %v3153_v47, %v2509_v46  ;;  %v11947_v28 = vadd.f32 %v3154_v5, %v2510_v62  ;;  %v4201_v5 = vld [vmem:[%s14442_s2 + $0x150] sm:$0xff] }
 0x2c4   :  { %v3165_v49 = vmul.f32 %v8559_v7, %v11209_v38  ;;  %v8570_v9 = vunpack.i.h.bf16 %v15589_v45  ;;  %v2394_v57 = vmul.f32 %v8238_v17, %v15352_v27  ;;  %v8247_v48 = vunpack.i.l.bf16 %v15592_v19  ;;  %4579 = vperm.xlu1 %8993, %v4217_v42   ;;  %v15595_v17 = vld [vmem:[#allocation33_spill] sm:$0xff]  ;;  %v15597_v45 = vld [vmem:[#allocation188_spill] sm:$0xff] }
 0x2c5   :  { %15590 = vst [vmem:[#allocation187_spill] sm:$0xff] %v11945_v13  ;;  %15591 = vst [vmem:[#allocation184_spill] sm:$0xff] %v11947_v28  ;;  %v3166_v16 = vmul.f32 %v8560_v31, %v11209_v38  ;;  %v8248_v47 = vunpack.i.h.bf16 %v15592_v19  ;;  %v11961_v7 = vadd.f32 %v3157_v6, %v2513_v56  ;;  %v11963_v46 = vadd.f32 %v3158_v53, %v2514_v15  ;;  %v15599_v6 = vld [vmem:[#allocation191_spill] sm:$0xff]  ;;  %v15732_v13 = vld [vmem:[#allocation137_spill] sm:$0xff] }
 0x2c6   :  { %v2517_v62 = vadd.f32 %v2389_v26, %v15595_v17  ;;  %v2518_v42 = vadd.f32 %v2390_v39, %v15596_v11  ;;  %v8580_v60 = vunpack.i.h.bf16 %v15597_v45  ;;  %v8579_v41 = vunpack.i.l.bf16 %v15597_v45  ;;  %v11969_v51 = vpop.permute.xlu1 %8909  ;;  %4324 = vperm.xlu0 %9130, %v4166_v34   ;;  %v15600_v17 = vld [vmem:[#allocation193_spill] sm:$0xff] }
 0x2c7   :  { %15593 = vst [vmem:[#allocation186_spill] sm:$0xff] %v11961_v7  ;;  %15594 = vst [vmem:[#allocation189_spill] sm:$0xff] %v11963_v46  ;;  %v11971_v31 = vpop.permute.xlu0 %9197  ;;  %v3169_v19 = vmul.f32 %v8569_v21, %v11209_v38  ;;  %v2521_v50 = vadd.f32 %v2393_v55, %v10831_v1  ;;  %v8258_v56 = vunpack.i.h.bf16 %v15599_v6  ;;  %v8257_v53 = vunpack.i.l.bf16 %v15599_v6  ;;  %v4214_v21 = vld [vmem:[%s14442_s2 + $0x1b8] sm:$0xff]  ;;  %v15601_v55 = vld [vmem:[#allocation190_spill] sm:$0xff] }
 0x2c8   :  { %15598 = vst [vmem:[#allocation33_spill] sm:$0xff] %v11969_v51  ;;  %v3170_v15 = vmul.f32 %v8570_v9, %v11209_v38  ;;  %v2522_v26 = vadd.f32 %v2394_v57, %v10833_v22  ;;  %v2397_v39 = vmul.f32 %v8247_v48, %v15352_v27  ;;  %v8267_v11 = vunpack.i.l.bf16 %v15600_v17  ;;  %4499 = vperm.xlu1 %8993, %v4201_v5   ;;  %v4187_v22 = vld [vmem:[%s14442_s2 + $0xe0] sm:$0xff]  ;;  %v15605_v46 = vld [vmem:[#allocation195_spill] sm:$0xff] }
 0x2c9   :  { %v2398_v1 = vmul.f32 %v8248_v47, %v15352_v27  ;;  %v8590_v45 = vunpack.i.h.bf16 %v15601_v55  ;;  %v8589_v6 = vunpack.i.l.bf16 %v15601_v55  ;;  %v8268_v34 = vunpack.i.h.bf16 %v15600_v17 }
 0x2ca   :  { %v3173_v9 = vmul.f32 %v8579_v41, %v11209_v38  ;;  %v3174_v57 = vmul.f32 %v8580_v60, %v11209_v38  ;;  %v11993_v48 = vpop.permute.xlu1 %8919  ;;  %v11997_v51 = vadd.f32 %v3161_v59, %v2517_v62  ;;  %v11999_v47 = vadd.f32 %v3162_v37, %v2518_v42  ;;  %4564 = vperm.xlu0 %9130, %v4214_v21   ;;  %v4198_v59 = vld [vmem:[%s14442_s2 + $0x138] sm:$0xff] }
 0x2cb   :  { %v11995_v5 = vpop.permute.xlu0 %9202  ;;  %v2401_v55 = vmul.f32 %v8257_v53, %v15352_v27  ;;  %v2402_v17 = vmul.f32 %v8258_v56, %v15352_v27  ;;  %v8277_v7 = vunpack.i.l.bf16 %v15605_v46  ;;  %v12004_v25 = vadd.f32 %v3165_v49, %v2521_v50 }
 0x2cc   :  { %15602 = vst [vmem:[#allocation34_spill] sm:$0xff] %v11995_v5  ;;  %15603 = vst [vmem:[#allocation188_spill] sm:$0xff] %v11997_v51  ;;  %v2525_v41 = vadd.f32 %v2397_v39, %v10835_v61  ;;  %v2405_v60 = vmul.f32 %v8267_v11, %v15352_v27  ;;  %v8278_v28 = vunpack.i.h.bf16 %v15605_v46  ;;  %4429 = vperm.xlu1 %8993, %v4187_v22   ;;  %v4171_v61 = vld [vmem:[%s14442_s2 + $0x60] sm:$0xff]  ;;  %v15608_v46 = vld [vmem:[#allocation192_spill] sm:$0xff] }
 0x2cd   :  { %15604 = vst [vmem:[#allocation191_spill] sm:$0xff] %v11999_v47  ;;  %15606 = vst [vmem:[#allocation193_spill] sm:$0xff] %v12004_v25  ;;  %v12012_v37 = vadd.f32 %v3166_v16, %v2522_v26  ;;  %v2526_v62 = vadd.f32 %v2398_v1, %v10837_v24  ;;  %v3177_v42 = vmul.f32 %v8589_v6, %v11209_v38  ;;  %v8600_v56 = vunpack.i.h.bf16 %v15608_v46  ;;  %v15609_v39 = vld [vmem:[#allocation197_spill] sm:$0xff] }
 0x2ce   :  { %v3178_v50 = vmul.f32 %v8590_v45, %v11209_v38  ;;  %v2406_v49 = vmul.f32 %v8268_v34, %v15352_v27  ;;  %v8599_v53 = vunpack.i.l.bf16 %v15608_v46  ;;  %v8288_v11 = vunpack.i.h.bf16 %v15609_v39  ;;  %v12025_v26 = vpop.permute.xlu1 %8929  ;;  %v15612_v45 = vld [vmem:[#allocation194_spill] sm:$0xff]  ;;  %4484 = vperm.xlu0 %9130, %v4198_v59   ;;  %v15778_v25 = vld [vmem:[#allocation97_spill] sm:$0xff] }
 0x2cf   :  { %15607 = vst [vmem:[#allocation190_spill] sm:$0xff] %v12012_v37  ;;  %v8287_v16 = vunpack.i.l.bf16 %v15609_v39  ;;  %15610 = vst [vmem:[#allocation195_spill] sm:$0xff] %v12025_v26  ;;  %v12027_v24 = vpop.permute.xlu0 %9207  ;;  %v2529_v21 = vadd.f32 %v2401_v55, %v10843_v33  ;;  %v2530_v1 = vadd.f32 %v2402_v17, %v10851_v23  ;;  %v8609_v6 = vunpack.i.l.bf16 %v15612_v45  ;;  %v4184_v39 = vld [vmem:[%s14442_s2 + $0xc8] sm:$0xff]  ;;  %v15614_v23 = vld [vmem:[#allocation196_spill] sm:$0xff] }
 0x2d0   :  { %15611 = vst [vmem:[#allocation192_spill] sm:$0xff] %v12027_v24  ;;  %v2409_v34 = vmul.f32 %v8277_v7, %v15352_v27  ;;  %v2533_v22 = vadd.f32 %v2405_v60, %v10853_v4  ;;  %v8610_v46 = vunpack.i.h.bf16 %v15612_v45  ;;  %v2410_v47 = vmul.f32 %v8278_v28, %v15352_v27  ;;  %4349 = vperm.xlu1 %8993, %v4171_v61   ;;  %v4219_v4 = vld [vmem:[%s14442_s2 + $0x1e0] sm:$0xff] }
 0x2d1   :  { %v12039_v51 = vadd.f32 %v3169_v19, %v2525_v41  ;;  %v2534_v33 = vadd.f32 %v2406_v49, %v10869_v54  ;;  %v8620_v55 = vunpack.i.h.bf16 %v15614_v23  ;;  %v8619_v7 = vunpack.i.l.bf16 %v15614_v23  ;;  %v15733_v26 = vld [vmem:[#allocation18_spill] sm:$0xff] }
 0x2d2   :  { %v12047_v17 = vadd.f32 %v3170_v15, %v2526_v62  ;;  %v3181_v28 = vmul.f32 %v8599_v53, %v11209_v38  ;;  %v3182_v60 = vmul.f32 %v8600_v56, %v11209_v38  ;;  %v2413_v59 = vmul.f32 %v8287_v16, %v15352_v27  ;;  %v12053_v41 = vpop.permute.xlu1 %8939  ;;  %4414 = vperm.xlu0 %9130, %v4184_v39   ;;  %v15620_v56 = vld [vmem:[#allocation45_spill] sm:$0xff]  ;;  %v15621_v16 = vld [vmem:[#allocation198_spill] sm:$0xff] }
 0x2d3   :  { %15613 = vst [vmem:[#allocation197_spill] sm:$0xff] %v12039_v51  ;;  %v2414_v19 = vmul.f32 %v8288_v11, %v15352_v27  ;;  %15616 = vst [vmem:[#allocation196_spill] sm:$0xff] %v12053_v41  ;;  %v12055_v54 = vpop.permute.xlu0 %9212  ;;  %v3185_v49 = vmul.f32 %v8609_v6, %v11209_v38  ;;  %v2537_v61 = vadd.f32 %v2409_v34, %v10874_v10  ;;  %v8629_v23 = vunpack.i.l.bf16 %v15621_v16  ;;  %v4168_v11 = vld [vmem:[%s14442_s2 + $0x48] sm:$0xff] }
 0x2d4   :  { %15615 = vst [vmem:[#allocation194_spill] sm:$0xff] %v12047_v17  ;;  %15617 = vst [vmem:[#allocation319_spill] sm:$0xff] %v12055_v54  ;;  %v12059_v45 = vadd.f32 %v3173_v9, %v2529_v21  ;;  %v12061_v15 = vadd.f32 %v3174_v57, %v2530_v1  ;;  %v3186_v62 = vmul.f32 %v8610_v46, %v11209_v38  ;;  %4589 = vperm.xlu1 %8993, %v4219_v4   ;;  %v15628_v4 = vld [vmem:[#allocation201_spill] sm:$0xff]  ;;  %v15729_v51 = vld [vmem:[#allocation43_spill] sm:$0xff] }
 0x2d5   :  { %v2538_v53 = vadd.f32 %v2410_v47, %v15620_v56  ;;  %v12069_v54 = vadd.f32 %v3177_v42, %v2533_v22  ;;  %v12072_v10 = vmul.f32 %v8619_v7, %v11209_v38  ;;  %v12075_v9 = vmul.f32 %v8620_v55, %v11209_v38  ;;  %v4203_v47 = vld [vmem:[%s14442_s2 + $0x160] sm:$0xff]  ;;  %v15624_v42 = vld [vmem:[#allocation199_spill] sm:$0xff]  ;;  %v15627_v55 = vld [vmem:[#allocation200_spill] sm:$0xff] }
 0x2d6   :  { %15618 = vst [vmem:[#allocation320_spill] sm:$0xff] %v12059_v45  ;;  %15619 = vst [vmem:[#allocation321_spill] sm:$0xff] %v12061_v15  ;;  %v8630_v57 = vunpack.i.h.bf16 %v15621_v16  ;;  %v12081_v21 = vadd.f32 %v3178_v50, %v2534_v33  ;;  %v2541_v1 = vadd.f32 %v2413_v59, %v10900_v43  ;;  %v2542_v6 = vadd.f32 %v2414_v19, %v10902_v14  ;;  %v12087_v46 = vpop.permute.xlu1 %8949  ;;  %v15629_v14 = vld [vmem:[#allocation203_spill] sm:$0xff] }
 0x2d7   :  { %15622 = vst [vmem:[#allocation45_spill] sm:$0xff] %v12069_v54  ;;  %v8298_v34 = vunpack.i.h.bf16 %v15624_v42  ;;  %v8297_v22 = vunpack.i.l.bf16 %v15624_v42  ;;  %15625 = vst [vmem:[#allocation199_spill] sm:$0xff] %v12087_v46  ;;  %v12089_v39 = vpop.permute.xlu0 %9217  ;;  %v8639_v7 = vunpack.i.l.bf16 %v15627_v55  ;;  %v8308_v56 = vunpack.i.h.bf16 %v15628_v4  ;;  %4334 = vperm.xlu0 %9130, %v4168_v11   ;;  %v4216_v19 = vld [vmem:[%s14442_s2 + $0x1c8] sm:$0xff]  ;;  %v15635_v46 = vld [vmem:[#allocation76_spill] sm:$0xff] }
 0x2d8   :  { %15623 = vst [vmem:[#allocation198_spill] sm:$0xff] %v12081_v21  ;;  %15626 = vst [vmem:[#allocation322_spill] sm:$0xff] %v12089_v39  ;;  %v8307_v16 = vunpack.i.l.bf16 %v15628_v4  ;;  %v12094_v50 = vadd.f32 %v3181_v28, %v2537_v61  ;;  %v12097_v43 = vmul.f32 %v8629_v23, %v11209_v38  ;;  %v8318_v33 = vunpack.i.h.bf16 %v15629_v14  ;;  %4509 = vperm.xlu1 %8993, %v4203_v47   ;;  %v15630_v28 = vld [vmem:[#allocation72_spill] sm:$0xff] }
 0x2d9   :  { %v8317_v59 = vunpack.i.l.bf16 %v15629_v14  ;;  %v12104_v42 = vadd.f32 %v3182_v60, %v2538_v53  ;;  %v3194_v21 = vmul.f32 %v8630_v57, %v11209_v38  ;;  %v8640_v11 = vunpack.i.h.bf16 %v15627_v55  ;;  %v4189_v4 = vld [vmem:[%s14442_s2 + $0xf0] sm:$0xff] }
 0x2da   :  { %v8358_v61 = vunpack.i.h.bf16 %v15630_v28  ;;  %v8357_v23 = vunpack.i.l.bf16 %v15630_v28  ;;  %v2417_v47 = vmul.f32 %v8297_v22, %v15352_v27  ;;  %v2418_v14 = vmul.f32 %v8298_v34, %v15352_v27  ;;  %v12115_v54 = vpop.permute.xlu1 %8959 }
 0x2db   :  { %15631 = vst [vmem:[#allocation200_spill] sm:$0xff] %v12115_v54  ;;  %v12117_v60 = vpop.permute.xlu0 %9222  ;;  %v12119_v53 = vadd.f32 %v3185_v49, %v2541_v1  ;;  %v12121_v57 = vadd.f32 %v3186_v62, %v2542_v6  ;;  %v3197_v55 = vmul.f32 %v8639_v7, %v11209_v38  ;;  %v2421_v28 = vmul.f32 %v8307_v16, %v15352_v27  ;;  %v15636_v54 = vld [vmem:[#allocation206_spill] sm:$0xff]  ;;  %v4173_v16 = vld [vmem:[%s14442_s2 + $0x70] sm:$0xff] }
 0x2dc   :  { %15632 = vst [vmem:[#allocation201_spill] sm:$0xff] %v12117_v60  ;;  %v2422_v39 = vmul.f32 %v8308_v56, %v15352_v27  ;;  %v8397_v15 = vunpack.i.l.bf16 %v15635_v46  ;;  %4574 = vperm.xlu0 %9130, %v4216_v19   ;;  %v2425_v22 = vmul.f32 %v8317_v59, %v15352_v27  ;;  %v2426_v34 = vmul.f32 %v8318_v33, %v15352_v27  ;;  %v4200_v62 = vld [vmem:[%s14442_s2 + $0x148] sm:$0xff]  ;;  %v15637_v59 = vld [vmem:[#allocation80_spill] sm:$0xff] }
 0x2dd   :  { %15633 = vst [vmem:[#allocation203_spill] sm:$0xff] %v12119_v53  ;;  %15634 = vst [vmem:[#allocation72_spill] sm:$0xff] %v12121_v57  ;;  %v8680_v45 = vunpack.i.h.bf16 %v15636_v54  ;;  %v8679_v49 = vunpack.i.l.bf16 %v15636_v54  ;;  %4439 = vperm.xlu1 %8993, %v4189_v4   ;;  %v3198_v1 = vmul.f32 %v8640_v11, %v11209_v38  ;;  %v2441_v6 = vmul.f32 %v8357_v23, %v15352_v27  ;;  %v15640_v23 = vld [vmem:[#allocation50_spill] sm:$0xff]  ;;  %v15731_v53 = vld [vmem:[#allocation44_spill] sm:$0xff] }
 0x2de   :  { %v2442_v7 = vmul.f32 %v8358_v61, %v15352_v27  ;;  %v8398_v56 = vunpack.i.h.bf16 %v15635_v46  ;;  %v2545_v33 = vadd.f32 %v2417_v47, %v10917_v12  ;;  %v2546_v54 = vadd.f32 %v2418_v14, %v10919_v32  ;;  %v12145_v60 = vpop.permute.xlu1 %8969 }
 0x2df   :  { %v8438_v19 = vunpack.i.h.bf16 %v15637_v59  ;;  %v8437_v4 = vunpack.i.l.bf16 %v15637_v59  ;;  %15638 = vst [vmem:[#allocation76_spill] sm:$0xff] %v12145_v60  ;;  %v12147_v11 = vpop.permute.xlu0 %9227  ;;  %v2549_v61 = vadd.f32 %v2421_v28, %v10921_v20  ;;  %v2550_v46 = vadd.f32 %v2422_v39, %v15640_v23  ;;  %v4186_v20 = vld [vmem:[%s14442_s2 + $0xd8] sm:$0xff]  ;;  %v15642_v28 = vld [vmem:[#allocation210_spill] sm:$0xff] }
 0x2e0   :  { %15639 = vst [vmem:[#allocation206_spill] sm:$0xff] %v12147_v11  ;;  %v2457_v17 = vmul.f32 %v8397_v15, %v15352_v27  ;;  %4494 = vperm.xlu0 %9130, %v4200_v62   ;;  %v2553_v12 = vadd.f32 %v2425_v22, %v10953_v2  ;;  %v2554_v32 = vadd.f32 %v2426_v34, %v10955_v40  ;;  %v8719_v59 = vunpack.i.l.bf16 %v15642_v28  ;;  %v4221_v2 = vld [vmem:[%s14442_s2 + $0x1f0] sm:$0xff]  ;;  %v15643_v40 = vld [vmem:[#allocation78_spill] sm:$0xff] }
 0x2e1   :  { %v3213_v47 = vmul.f32 %v8679_v49, %v11209_v38  ;;  %v3214_v14 = vmul.f32 %v8680_v45, %v11209_v38  ;;  %4359 = vperm.xlu1 %8993, %v4173_v16   ;;  %v2569_v39 = vadd.f32 %v2441_v6, %v11023_v8  ;;  %v2458_v15 = vmul.f32 %v8398_v56, %v15352_v27 }
 0x2e2   :  { %v2570_v22 = vadd.f32 %v2442_v7, %v15643_v40  ;;  %v8720_v34 = vunpack.i.h.bf16 %v15642_v28  ;;  %v2473_v45 = vmul.f32 %v8437_v4, %v15352_v27  ;;  %v2474_v49 = vmul.f32 %v8438_v19, %v15352_v27  ;;  %v12170_v62 = vpop.permute.xlu1 %8979  ;;  %v15650_v4 = vld [vmem:[#allocation216_spill] sm:$0xff] }
 0x2e3   :  { %15644 = vst [vmem:[#allocation80_spill] sm:$0xff] %v12170_v62  ;;  %v12172_v16 = vpop.permute.xlu0 %9232  ;;  %v12175_v8 = vadd.f32 %v12072_v10, %v2545_v33  ;;  %v2585_v6 = vadd.f32 %v2457_v17, %v11101_v3  ;;  %v12179_v56 = vadd.f32 %v12097_v43, %v2549_v61  ;;  %v12182_v7 = vadd.f32 %v12075_v9, %v2546_v54  ;;  %v4170_v10 = vld [vmem:[%s14442_s2 + $0x58] sm:$0xff]  ;;  %v4205_v9 = vld [vmem:[%s14442_s2 + $0x170] sm:$0xff] }
 0x2e4   :  { %15645 = vst [vmem:[#allocation50_spill] sm:$0xff] %v12172_v16  ;;  %4424 = vperm.xlu0 %9130, %v4186_v20   ;;  %v12184_v23 = vadd.f32 %v3194_v21, %v2550_v46  ;;  %v8760_v19 = vunpack.i.h.bf16 %v15650_v4  ;;  %v8759_v28 = vunpack.i.l.bf16 %v15650_v4  ;;  %v12191_v33 = vadd.f32 %v3197_v55, %v2553_v12  ;;  %v15662_v4 = vld [vmem:[#allocation52_spill] sm:$0xff]  ;;  %v15705_v16 = vld [vmem:[#allocation35_spill] sm:$0xff] }
 0x2e5   :  { %15646 = vst [vmem:[#allocation210_spill] sm:$0xff] %v12175_v8  ;;  %15647 = vst [vmem:[#allocation78_spill] sm:$0xff] %v12179_v56  ;;  %4599 = vperm.xlu1 %8993, %v4221_v2   ;;  %v12193_v3 = vadd.f32 %v3198_v1, %v2554_v32  ;;  %v3229_v17 = vmul.f32 %v8719_v59, %v11209_v38  ;;  %v12199_v21 = vadd.f32 %v3213_v47, %v2569_v39  ;;  %v15655_v1 = vld [vmem:[#allocation224_spill] sm:$0xff]  ;;  %v15658_v47 = vld [vmem:[#allocation227_spill] sm:$0xff] }
 0x2e6   :  { %15648 = vst [vmem:[#allocation323_spill] sm:$0xff] %v12182_v7  ;;  %15649 = vst [vmem:[#allocation324_spill] sm:$0xff] %v12184_v23  ;;  %v12201_v43 = vadd.f32 %v3214_v14, %v2570_v22  ;;  %v2586_v54 = vadd.f32 %v2458_v15, %v11103_v29  ;;  %v3230_v61 = vmul.f32 %v8720_v34, %v11209_v38  ;;  %v8801_v12 = vunpack.i.l.bf16 %v15655_v1  ;;  %v12208_v32 = vpop.permute.xlu1 %8989  ;;  %v4218_v22 = vld [vmem:[%s14442_s2 + $0x1d8] sm:$0xff]  ;;  %v15661_v34 = vld [vmem:[#allocation23_spill] sm:$0xff] }
 0x2e7   :  { %15651 = vst [vmem:[#allocation216_spill] sm:$0xff] %v12191_v33  ;;  %15652 = vst [vmem:[#allocation325_spill] sm:$0xff] %v12193_v3  ;;  %v2601_v46 = vadd.f32 %v2473_v45, %v11168_v44  ;;  %v2602_v55 = vadd.f32 %v2474_v49, %v11170_v30  ;;  %v12210_v20 = vpop.permute.xlu0 %9237  ;;  %v8802_v59 = vunpack.i.h.bf16 %v15655_v1  ;;  %v8817_v39 = vunpack.i.h.bf16 %v15658_v47  ;;  %v15660_v30 = vld [vmem:[#allocation20_spill] sm:$0xff]  ;;  %v15689_v3 = vld [vmem:[#allocation14_spill] sm:$0xff] }
 0x2e8   :  { %15653 = vst [vmem:[#allocation326_spill] sm:$0xff] %v12199_v21  ;;  %15654 = vst [vmem:[#allocation327_spill] sm:$0xff] %v12201_v43  ;;  %v8816_v14 = vunpack.i.l.bf16 %v15658_v47  ;;  %4344 = vperm.xlu0 %9130, %v4170_v10   ;;  %v12215_v29 = vadd.f32 %v3229_v17, %v2585_v6  ;;  %v3245_v15 = vmul.f32 %v8759_v28, %v11209_v38  ;;  %v8480_v2 = vunpack.i.h.bf16 %v15660_v30  ;;  %v15664_v10 = vld [vmem:[#allocation84_spill] sm:$0xff]  ;;  %v15667_v47 = vld [vmem:[#allocation21_spill] sm:$0xff] }
 0x2e9   :  { %15656 = vst [vmem:[#allocation224_spill] sm:$0xff] %v12208_v32  ;;  %15657 = vst [vmem:[#allocation328_spill] sm:$0xff] %v12210_v20  ;;  %v3246_v44 = vmul.f32 %v8760_v19, %v11209_v38  ;;  %v8479_v40 = vunpack.i.l.bf16 %v15660_v30  ;;  %4519 = vperm.xlu1 %8993, %v4205_v9   ;;  %v8485_v45 = vunpack.i.h.bf16 %v15661_v34  ;;  %v8484_v49 = vunpack.i.l.bf16 %v15661_v34  ;;  %v15681_v27 = vld [vmem:[#allocation232_spill] sm:$0xff]  ;;  %v4188_v21 = vld [vmem:[%s14442_s2 + $0xe8] sm:$0xff] }
 0x2ea   :  { %15659 = vst [vmem:[#allocation227_spill] sm:$0xff] %v12215_v29  ;;  %v15663_v6 = vunpack.c.h.bf16 %v15662_v4  ;;  %v15665_v17 = vunpack.c.l.bf16 %v15664_v10  ;;  %v12230_v1 = vadd.f32 %v3230_v61, %v2586_v54  ;;  %v12233_v19 = vmul.f32 %v8801_v12, %v11791_v63  ;;  %v12252_v12 = vpop.permute.xlu1 %4374  ;;  %v15675_v10 = vld [vmem:[#allocation231_spill] sm:$0xff]  ;;  %v15685_v43 = vld [vmem:[#allocation28_spill] sm:$0xff]  ;;  %v15692_v23 = vld [vmem:[#allocation26_spill] sm:$0xff] }
 0x2eb   :  { %v8826_v9 = vunpack.i.l.bf16 %v15667_v47  ;;  %v12236_v30 = vpop.permute.xlu0 %9242  ;;  %v12238_v41 = vadd.f32 %v3245_v15, %v2601_v46  ;;  %v12240_v11 = vadd.f32 %v3246_v44, %v2602_v55  ;;  %v12243_v34 = vmul.f32 %v8802_v59, %v11791_v63  ;;  %v15673_v55 = vld [vmem:[#allocation19_spill] sm:$0xff]  ;;  %v15704_v56 = vld [vmem:[#allocation32_spill] sm:$0xff]  ;;  %v15709_v7 = vld [vmem:[#allocation37_spill] sm:$0xff] }
 0x2ec   :  { %v8995_v28 = vpack.i.bf16 %v15665_v17, %v15663_v6  ;;  %15666 = vst [vmem:[#allocation20_spill] sm:$0xff] %v12230_v1  ;;  %15668 = vst [vmem:[#allocation23_spill] sm:$0xff] %v12236_v30  ;;  %v12246_v4 = vmul.f32 %v8816_v14, %v11791_v63  ;;  %v12249_v54 = vmul.f32 %v8817_v39, %v11791_v63  ;;  %v8827_v61 = vunpack.i.h.bf16 %v15667_v47  ;;  %v4202_v39 = vld [vmem:[%s14442_s2 + $0x158] sm:$0xff]  ;;  %v15678_v47 = vld [vmem:[#allocation7_spill] sm:$0xff] }
 0x2ed   :  { %15669 = vst [vmem:[#allocation52_spill] sm:$0xff] %v12238_v41  ;;  %15670 = vst [vmem:[#allocation84_spill] sm:$0xff] %v12240_v11  ;;  %4584 = vperm.xlu0 %9130, %v4218_v22   ;;  %v12255_v6 = vmul.f32 %v8479_v40, %v11209_v38  ;;  %v12258_v46 = vmul.f32 %v8480_v2, %v11209_v38  ;;  %v8837_v59 = vunpack.i.h.bf16 %v15673_v55  ;;  %v8836_v15 = vunpack.i.l.bf16 %v15673_v55  ;;  %v15676_v17 = vld [vmem:[#allocation68_spill] sm:$0xff] }
 0x2ee   :  { %15671 = vst [vmem:[#allocation21_spill] sm:$0xff] %v12246_v4  ;;  %15672 = vst [vmem:[#allocation329_spill] sm:$0xff] %v12249_v54  ;;  %v15674_v14 = vmov 4   ;;  %v3135_v44 = vmul.f32 %v8484_v49, %v11209_v38  ;;  %v3136_v22 = vmul.f32 %v8485_v45, %v11209_v38  ;;  %v8494_v40 = vunpack.i.l.bf16 %v15675_v10  ;;  %v15710_v54 = vld [vmem:[#allocation38_spill] sm:$0xff] }
 0x2ef   :  { %8994 = vset.pattern.permute.xlu1 %v15674_v14  ;;  %v15677_v2 = vunpack.c.h.bf16 %v15676_v17  ;;  %v15679_v62 = vunpack.c.l.bf16 %v15678_v47  ;;  %v12274_v55 = vmul.f32 %v8826_v9, %v11791_v63  ;;  %v8495_v60 = vunpack.i.h.bf16 %v15675_v10  ;;  %v12279_v49 = vpop.permute.xlu0 %9247 }
 0x2f0   :  { %8996 = vperm.xlu1 %8994, %v8995_v28   ;;  %v8847_v29 = vunpack.i.h.bf16 %v15681_v27  ;;  %v8846_v11 = vunpack.i.l.bf16 %v15681_v27  ;;  %15682 = vst [vmem:[#allocation231_spill] sm:$0xff] %v12279_v49  ;;  %v12282_v45 = vmul.f32 %v8827_v61, %v11791_v63  ;;  %v15684_v28 = vld [vmem:[#allocation27_spill] sm:$0xff]  ;;  %v12290_v9 = vmul.f32 %v8836_v15, %v11791_v63  ;;  %v15686_v49 = vld [vmem:[#allocation29_spill] sm:$0xff] }
 0x2f1   :  { %v9005_v30 = vpack.i.bf16 %v15679_v62, %v15677_v2  ;;  %15680 = vst [vmem:[#allocation19_spill] sm:$0xff] %v12274_v55  ;;  %v8505_v41 = vunpack.i.h.bf16 %v15684_v28  ;;  %v8504_v17 = vunpack.i.l.bf16 %v15684_v28  ;;  %v8856_v62 = vunpack.i.l.bf16 %v15685_v43  ;;  %v12287_v2 = vpop.permute.xlu1 %4289  ;;  %4504 = vperm.xlu0 %9130, %v4202_v39  }
 0x2f2   :  { %15683 = vst [vmem:[#allocation68_spill] sm:$0xff] %v12282_v45  ;;  %v12293_v10 = vmul.f32 %v8837_v59, %v11791_v63  ;;  %v8857_v27 = vunpack.i.h.bf16 %v15685_v43  ;;  %v8514_v61 = vunpack.i.l.bf16 %v15686_v49  ;;  %v12301_v28 = vmul.f32 %v8494_v40, %v11209_v38  ;;  %v15706_v45 = vld [vmem:[#allocation36_spill] sm:$0xff] }
 0x2f3   :  { %v15688_v39 = vunpack.c.h.bf16 %v15678_v47  ;;  %v15690_v15 = vunpack.c.l.bf16 %v15689_v3  ;;  %v12308_v59 = vadd.f32 %v3135_v44, %v11828_v35  ;;  %v12311_v43 = vadd.f32 %v3136_v22, %v15692_v23  ;;  %v12323_v47 = vpop.permute.xlu0 %9252 }
 0x2f4   :  { %15687 = vst [vmem:[#allocation7_spill] sm:$0xff] %v12301_v28  ;;  %9006 = vperm.xlu1 %8994, %v9005_v30   ;;  %v12314_v20 = vmul.f32 %v8495_v60, %v11209_v38  ;;  %v12317_v32 = vmul.f32 %v8846_v11, %v11791_v63  ;;  %v12320_v40 = vmul.f32 %v8847_v29, %v11791_v63  ;;  %v8515_v30 = vunpack.i.h.bf16 %v15686_v49  ;;  %v15701_v60 = vld [vmem:[#allocation30_spill] sm:$0xff]  ;;  %v15724_v28 = vld [vmem:[#allocation303_spill] sm:$0xff] }
 0x2f5   :  { %v9010_v33 = vpack.i.bf16 %v15690_v15, %v15688_v39  ;;  %15691 = vst [vmem:[#allocation232_spill] sm:$0xff] %v12308_v59  ;;  %15693 = vst [vmem:[#allocation27_spill] sm:$0xff] %v12311_v43  ;;  %v12326_v39 = vmul.f32 %v8504_v17, %v11209_v38  ;;  %v12329_v35 = vmul.f32 %v8505_v41, %v11209_v38  ;;  %v8866_v44 = vunpack.i.l.bf16 %v15701_v60  ;;  %v12335_v11 = vpop.permute.xlu1 %4529  ;;  %v15703_v17 = vld [vmem:[#allocation31_spill] sm:$0xff] }
 0x2f6   :  { %15694 = vst [vmem:[#allocation28_spill] sm:$0xff] %v12314_v20  ;;  %15695 = vst [vmem:[#allocation29_spill] sm:$0xff] %v12317_v32  ;;  %v12332_v23 = vmul.f32 %v8856_v62, %v11791_v63  ;;  %4434 = vperm.xlu0 %9130, %v4188_v21   ;;  %v12338_v29 = vmul.f32 %v8857_v27, %v11791_v63  ;;  %v12341_v22 = vmul.f32 %v8514_v61, %v11209_v38  ;;  %v4172_v41 = vld [vmem:[%s14442_s2 + $0x68] sm:$0xff] }
 0x2f7   :  { %15696 = vst [vmem:[#allocation14_spill] sm:$0xff] %v12320_v40  ;;  %15697 = vst [vmem:[#allocation26_spill] sm:$0xff] %v12323_v47  ;;  %v8867_v49 = vunpack.i.h.bf16 %v15701_v60  ;;  %v8524_v15 = vunpack.i.l.bf16 %v15703_v17  ;;  %v8525_v62 = vunpack.i.h.bf16 %v15703_v17  ;;  %v8877_v47 = vunpack.i.h.bf16 %v15704_v56  ;;  %v15754_v40 = vld [vmem:[#allocation229_spill] sm:$0xff] }
 0x2f8   :  { %15698 = vst [vmem:[#allocation330_spill] sm:$0xff] %v12326_v39  ;;  %15699 = vst [vmem:[#allocation331_spill] sm:$0xff] %v12329_v35  ;;  %v8876_v21 = vunpack.i.l.bf16 %v15704_v56  ;;  %v8534_v27 = vunpack.i.l.bf16 %v15705_v16  ;;  %9011 = vperm.xlu1 %8994, %v9010_v33   ;;  %v12353_v61 = vmul.f32 %v8515_v30, %v11209_v38  ;;  %v8535_v60 = vunpack.i.h.bf16 %v15705_v16  ;;  %v12358_v39 = vpop.permute.xlu0 %9257  ;;  %v4240_v16 = vld [vmem:[%s14442_s2 + $0x288] sm:$0xff] }
 0x2f9   :  { %15700 = vst [vmem:[#allocation332_spill] sm:$0xff] %v12332_v23  ;;  %15702 = vst [vmem:[#allocation30_spill] sm:$0xff] %v12338_v29  ;;  %v8887_v55 = vunpack.i.h.bf16 %v15706_v45  ;;  %v8886_v35 = vunpack.i.l.bf16 %v15706_v45  ;;  %v12361_v17 = vmul.f32 %v8866_v44, %v11791_v63  ;;  %v8545_v8 = vunpack.i.h.bf16 %v15709_v7  ;;  %v12366_v4 = vpop.permute.xlu1 %4449 }
 0x2fa   :  { %15707 = vst [vmem:[#allocation31_spill] sm:$0xff] %v12358_v39  ;;  %v8544_v56 = vunpack.i.l.bf16 %v15709_v7  ;;  %v8896_v33 = vunpack.i.l.bf16 %v15710_v54  ;;  %4354 = vperm.xlu0 %9130, %v4172_v41   ;;  %v12372_v45 = vmul.f32 %v8867_v49, %v11791_v63  ;;  %v12375_v30 = vmul.f32 %v8524_v15, %v11209_v38  ;;  %v15713_v39 = vld [vmem:[#allocation39_spill] sm:$0xff] }
 0x2fb   :  { %15708 = vst [vmem:[#allocation32_spill] sm:$0xff] %v12361_v17  ;;  %v8897_v44 = vunpack.i.h.bf16 %v15710_v54  ;;  %v8554_v17 = vunpack.i.l.bf16 %v15713_v39  ;;  %v4220_v7 = vld [vmem:[%s14442_s2 + $0x1e8] sm:$0xff]  ;;  %v12383_v41 = vmul.f32 %v8525_v62, %v11209_v38  ;;  %v12386_v29 = vmul.f32 %v8876_v21, %v11791_v63 }
 0x2fc   :  { %15711 = vst [vmem:[#allocation35_spill] sm:$0xff] %v12372_v45  ;;  %15712 = vst [vmem:[#allocation36_spill] sm:$0xff] %v12375_v30  ;;  %v12389_v49 = vmul.f32 %v8877_v47, %v11791_v63  ;;  %v12392_v15 = vmul.f32 %v8534_v27, %v11209_v38  ;;  %v15716_v45 = vmov 0   ;;  %v12396_v54 = vmul.f32 %v8535_v60, %v11209_v38  ;;  %v12405_v1 = vpop.permute.xlu0 %9262 }
 0x2fd   :  { %15714 = vst [vmem:[#allocation37_spill] sm:$0xff] %v12383_v41  ;;  %9015 = vset.pattern.permute.xlu1 %v15716_v45  ;;  %v12399_v20 = vmul.f32 %v8886_v35, %v11791_v63  ;;  %v12402_v62 = vmul.f32 %v8887_v55, %v11791_v63  ;;  %v8555_v21 = vunpack.i.h.bf16 %v15713_v39  ;;  %15720 = vst [vmem:[#allocation335_spill] sm:$0xff] %v12405_v1  ;;  %v9155_v35 = vunpack.i.h.bf16 %v15724_v28  ;;  %v12417_v23 = vpop.permute.xlu1 %4379  ;;  %v4223_v55 = vld [vmem:[%s14442_s2 + $0x200] sm:$0xff]  ;;  %v4204_v1 = vld [vmem:[%s14442_s2 + $0x168] sm:$0xff] }
 0x2fe   :  { %15715 = vst [vmem:[#allocation38_spill] sm:$0xff] %v12392_v15  ;;  %15717 = vst [vmem:[#allocation39_spill] sm:$0xff] %v12396_v54  ;;  %4694 = vperm.xlu1 %9015, %v4240_v16   ;;  %v12408_v47 = vmul.f32 %v8544_v56, %v11209_v38  ;;  %v12411_v27 = vmul.f32 %v8545_v8, %v11209_v38  ;;  %v12414_v60 = vmul.f32 %v8896_v33, %v11791_v63  ;;  %v15726_v8 = vld [vmem:[#allocation40_spill] sm:$0xff]  ;;  %v15756_v41 = vld [vmem:[#allocation115_spill] sm:$0xff] }
 0x2ff   :  { %15718 = vst [vmem:[#allocation333_spill] sm:$0xff] %v12399_v20  ;;  %15719 = vst [vmem:[#allocation334_spill] sm:$0xff] %v12402_v62  ;;  %4594 = vperm.xlu0 %9130, %v4220_v7   ;;  %v12423_v39 = vmul.f32 %v8897_v44, %v11791_v63  ;;  %v12426_v56 = vmul.f32 %v8554_v17, %v11209_v38  ;;  %v8907_v16 = vunpack.i.h.bf16 %v15726_v8  ;;  %v8906_v33 = vunpack.i.l.bf16 %v15726_v8 }
 0x300   :  { %15721 = vst [vmem:[#allocation336_spill] sm:$0xff] %v12408_v47  ;;  %15722 = vst [vmem:[#allocation337_spill] sm:$0xff] %v12411_v27  ;;  %v15727_v27 = vld [vmem:[#allocation41_spill] sm:$0xff]  ;;  %v9154_v44 = vunpack.i.l.bf16 %v15724_v28  ;;  %v8575_v15 = vunpack.i.h.bf16 %v15729_v51  ;;  %v8574_v8 = vunpack.i.l.bf16 %v15729_v51  ;;  %v12443_v57 = vpop.permute.xlu0 %9267  ;;  %v8926_v5 = vunpack.i.l.bf16 %v15731_v53 }
 0x301   :  { %15723 = vst [vmem:[#allocation338_spill] sm:$0xff] %v12414_v60  ;;  %15725 = vst [vmem:[#allocation303_spill] sm:$0xff] %v12423_v39  ;;  %v8565_v7 = vunpack.i.h.bf16 %v15727_v27  ;;  %v8564_v47 = vunpack.i.l.bf16 %v15727_v27  ;;  %v15728_v60 = vld [vmem:[#allocation42_spill] sm:$0xff]  ;;  %v12438_v39 = vmul.f32 %v8555_v21, %v11209_v38  ;;  %v9134_v27 = vunpack.i.l.bf16 %v15732_v13  ;;  %v12448_v20 = vpop.permute.xlu1 %4299  ;;  %v15735_v21 = vld [vmem:[#allocation11_spill] sm:$0xff] }
 0x302   :  { %v8916_v54 = vunpack.i.l.bf16 %v15728_v60  ;;  %v8917_v17 = vunpack.i.h.bf16 %v15728_v60  ;;  %4609 = vperm.xlu1 %9015, %v4223_v55   ;;  %15730 = vst [vmem:[#allocation40_spill] sm:$0xff] %v12443_v57  ;;  %v960_v62 = vmul.f32 %v9155_v35, %v15733_v26  ;;  %v15734_v28 = vunpack.c.h.bf16 %v15689_v3  ;;  %v4190_v35 = vld [vmem:[%s14442_s2 + $0xf8] sm:$0xff] }
 0x303   :  { %4514 = vperm.xlu0 %9130, %v4204_v1   ;;  %v15736_v60 = vunpack.c.l.bf16 %v15735_v21  ;;  %v12455_v59 = vmul.f32 %v8906_v33, %v11791_v63  ;;  %v12458_v51 = vmul.f32 %v8907_v16, %v11791_v63  ;;  %v8927_v55 = vunpack.i.h.bf16 %v15731_v53  ;;  %v15743_v21 = vld [vmem:[#allocation46_spill] sm:$0xff] }
 0x304   :  { %v9135_v57 = vunpack.i.h.bf16 %v15732_v13  ;;  %v12466_v1 = vmul.f32 %v8564_v47, %v11209_v38  ;;  %v12469_v3 = vmul.f32 %v8565_v7, %v11209_v38  ;;  %v12472_v33 = vmul.f32 %v8916_v54, %v11791_v63  ;;  %v12486_v7 = vpop.permute.xlu0 %9272 }
 0x305   :  { %v9017_v43 = vpack.i.bf16 %v15736_v60, %v15734_v28  ;;  %15737 = vst [vmem:[#allocation41_spill] sm:$0xff] %v12455_v59  ;;  %15738 = vst [vmem:[#allocation42_spill] sm:$0xff] %v12458_v51  ;;  %v959_v16 = vmul.f32 %v9154_v44, %v15733_v26  ;;  %v12476_v28 = vmul.f32 %v8917_v17, %v11791_v63  ;;  %v8584_v47 = vunpack.i.l.bf16 %v15743_v21  ;;  %v15746_v60 = vld [vmem:[#allocation116_spill] sm:$0xff] }
 0x306   :  { %15739 = vst [vmem:[#allocation43_spill] sm:$0xff] %v12466_v1  ;;  %15740 = vst [vmem:[#allocation44_spill] sm:$0xff] %v12469_v3  ;;  %v12479_v13 = vmul.f32 %v8574_v8, %v11209_v38  ;;  %v12482_v53 = vmul.f32 %v8575_v15, %v11209_v38  ;;  %9016 = vset.pattern.permute.xlu1 %v15674_v14  ;;  %v12489_v54 = vmul.f32 %v8926_v5, %v11791_v63  ;;  %v12494_v8 = vpop.permute.xlu1 %4539 }
 0x307   :  { %15744 = vst [vmem:[#allocation11_spill] sm:$0xff] %v12486_v7  ;;  %v943_v44 = vmul.f32 %v9134_v27, %v15733_v26  ;;  %v1732_v17 = vadd.f32 %v15746_v60, %v960_v62  ;;  %v9194_v51 = vunpack.i.l.bf16 %v11941_v36  ;;  %9018 = vperm.xlu1 %9016, %v9017_v43   ;;  %4444 = vperm.xlu0 %9130, %v4190_v35   ;;  %v8585_v59 = vunpack.i.h.bf16 %v15743_v21  ;;  %v4174_v27 = vld [vmem:[%s14442_s2 + $0x78] sm:$0xff] }
 0x308   :  { %15741 = vst [vmem:[#allocation137_spill] sm:$0xff] %v12479_v13  ;;  %15742 = vst [vmem:[#allocation18_spill] sm:$0xff] %v12482_v53  ;;  %v12497_v15 = vmul.f32 %v8927_v55, %v11791_v63  ;;  %v15748_v53 = vld [vmem:[#allocation47_spill] sm:$0xff]  ;;  %v944_v5 = vmul.f32 %v9135_v57, %v15733_v26  ;;  %v15749_v60 = vld [vmem:[#allocation48_spill] sm:$0xff]  ;;  %v9195_v35 = vunpack.i.h.bf16 %v11941_v36  ;;  %v12513_v21 = vmul.f32 %v8584_v47, %v11209_v38 }
 0x309   :  { %15745 = vst [vmem:[#allocation46_spill] sm:$0xff] %v12489_v54  ;;  %v8936_v7 = vunpack.i.l.bf16 %v15748_v53  ;;  %v8937_v62 = vunpack.i.h.bf16 %v15748_v53  ;;  %v8594_v43 = vunpack.i.l.bf16 %v15749_v60  ;;  %v15750_v13 = vld [vmem:[#allocation83_spill] sm:$0xff]  ;;  %v8595_v57 = vunpack.i.h.bf16 %v15749_v60  ;;  %v12518_v53 = vpop.permute.xlu0 %9277 }
 0x30a   :  { %15747 = vst [vmem:[#allocation116_spill] sm:$0xff] %v12497_v15  ;;  %v1731_v3 = vadd.f32 %v15750_v13, %v959_v16  ;;  %v4272_v55 = vld [vmem:[%s14442_s2 + $0x388] sm:$0xff]  ;;  %15751 = vst [vmem:[#allocation47_spill] sm:$0xff] %v12513_v21  ;;  %v15752_v15 = vld [vmem:[#allocation49_spill] sm:$0xff]  ;;  %v1715_v32 = vadd.f32 %v15754_v40, %v943_v44  ;;  %v991_v36 = vmul.f32 %v9194_v51, %v15733_v26  ;;  %v12525_v47 = vpop.permute.xlu1 %4459 }
 0x30b   :  { %v8947_v1 = vunpack.i.h.bf16 %v15752_v15  ;;  %v8946_v54 = vunpack.i.l.bf16 %v15752_v15  ;;  %15753 = vst [vmem:[#allocation48_spill] sm:$0xff] %v12518_v53  ;;  %v15755_v16 = vld [vmem:[#allocation318_spill] sm:$0xff]  ;;  %v2504_v37 = vadd.f32 %v15756_v41, %v1732_v17  ;;  %9022 = vset.pattern.permute.xlu1 %v15716_v45  ;;  %15757 = vst [vmem:[#allocation83_spill] sm:$0xff] %v12525_v47  ;;  %4364 = vperm.xlu0 %9130, %v4174_v27   ;;  %v15760_v53 = vld [vmem:[#allocation25_spill] sm:$0xff] }
 0x30c   :  { %v9174_v13 = vunpack.i.l.bf16 %v15755_v16  ;;  %v12528_v60 = vmul.f32 %v8585_v59, %v11209_v38  ;;  %v12531_v15 = vmul.f32 %v8936_v7, %v11791_v63  ;;  %v1716_v21 = vadd.f32 %v15760_v53, %v944_v5  ;;  %4854 = vperm.xlu1 %9022, %v4272_v55   ;;  %v4222_v41 = vld [vmem:[%s14442_s2 + $0x1f8] sm:$0xff]  ;;  %v4255_v7 = vld [vmem:[%s14442_s2 + $0x300] sm:$0xff] }
 0x30d   :  { %v9175_v40 = vunpack.i.h.bf16 %v15755_v16  ;;  %v12539_v51 = vmul.f32 %v8937_v62, %v11791_v63  ;;  %v3179_v44 = vmul.f32 %v8594_v43, %v11209_v38  ;;  %v992_v59 = vmul.f32 %v9195_v35, %v15733_v26  ;;  %v15762_v17 = vld [vmem:[#allocation114_spill] sm:$0xff]  ;;  %v15765_v62 = vld [vmem:[#allocation51_spill] sm:$0xff]  ;;  %v12557_v43 = vpop.permute.xlu0 %9282 }
 0x30e   :  { %15758 = vst [vmem:[#allocation49_spill] sm:$0xff] %v12528_v60  ;;  %15759 = vst [vmem:[#allocation229_spill] sm:$0xff] %v12531_v15  ;;  %v2503_v5 = vadd.f32 %v15762_v17, %v1731_v3  ;;  %v12548_v27 = vmul.f32 %v8595_v57, %v11209_v38  ;;  %v12551_v55 = vmul.f32 %v8946_v54, %v11791_v63  ;;  %v8604_v16 = vunpack.i.l.bf16 %v15765_v62  ;;  %v15767_v60 = vld [vmem:[#allocation272_spill] sm:$0xff]  ;;  %v12563_v57 = vpop.permute.xlu1 %4389  ;;  %v15774_v45 = vld [vmem:[#allocation142_spill] sm:$0xff] }
 0x30f   :  { %15761 = vst [vmem:[#allocation318_spill] sm:$0xff] %v12539_v51  ;;  %v12554_v53 = vmul.f32 %v8947_v1, %v11791_v63  ;;  %15766 = vst [vmem:[#allocation114_spill] sm:$0xff] %v12557_v43  ;;  %v975_v35 = vmul.f32 %v9174_v13, %v15733_v26  ;;  %v1763_v51 = vadd.f32 %v15767_v60, %v991_v36  ;;  %v15768_v3 = vld [vmem:[#allocation172_spill] sm:$0xff]  ;;  %4604 = vperm.xlu0 %9130, %v4222_v41   ;;  %v15771_v43 = vld [vmem:[#allocation177_spill] sm:$0xff] }
 0x310   :  { %15763 = vst [vmem:[#allocation115_spill] sm:$0xff] %v12551_v55  ;;  %v3276_v15 = vadd.f32 %v12353_v61, %v2504_v37  ;;  %v2487_v17 = vadd.f32 %v15768_v3, %v1715_v32  ;;  %15769 = vst [vmem:[#allocation51_spill] sm:$0xff] %v12563_v57  ;;  %v8605_v54 = vunpack.i.h.bf16 %v15765_v62  ;;  %v15770_v55 = vld [vmem:[#allocation141_spill] sm:$0xff]  ;;  %4769 = vperm.xlu1 %9022, %v4255_v7   ;;  %v4256_v41 = vld [vmem:[%s14442_s2 + $0x308] sm:$0xff]  ;;  %v9140_v57 = vunpack.i.h.bf16 %v15774_v45 }
 0x311   :  { %15764 = vst [vmem:[#allocation25_spill] sm:$0xff] %v12554_v53  ;;  %v8795_v1 = vunpack.i.l.bf16 %v15770_v55  ;;  %v976_v53 = vmul.f32 %v9175_v40, %v15733_v26  ;;  %v4206_v13 = vld [vmem:[%s14442_s2 + $0x178] sm:$0xff]  ;;  %v2488_v36 = vadd.f32 %v15771_v43, %v1716_v21  ;;  %v8796_v32 = vunpack.i.h.bf16 %v15770_v55  ;;  %v12585_v43 = vpop.permute.xlu0 %9287 }
 0x312   :  { %v15772_v60 = vld [vmem:[#allocation53_spill] sm:$0xff]  ;;  %v3275_v62 = vadd.f32 %v12341_v22, %v2503_v5  ;;  %v12580_v40 = vmul.f32 %v8604_v16, %v11209_v38  ;;  %v9139_v21 = vunpack.i.l.bf16 %v15774_v45  ;;  %15775 = vst [vmem:[#allocation272_spill] sm:$0xff] %v12585_v43  ;;  %v15776_v55 = vld [vmem:[#allocation124_spill] sm:$0xff]  ;;  %v2535_v30 = vadd.f32 %v15778_v25, %v1763_v51  ;;  %v12591_v22 = vpop.permute.xlu1 %4309  ;;  %v15783_v43 = vld [vmem:[#allocation91_spill] sm:$0xff] }
 0x313   :  { %v8957_v37 = vunpack.i.h.bf16 %v15772_v60  ;;  %v15773_v61 = vld [vmem:[#allocation133_spill] sm:$0xff]  ;;  %v8956_v7 = vunpack.i.l.bf16 %v15772_v60  ;;  %v1747_v47 = vadd.f32 %v15776_v55, %v975_v35  ;;  %4524 = vperm.xlu0 %9130, %v4206_v13   ;;  %v12594_v5 = vmul.f32 %v8605_v54, %v11209_v38  ;;  %v15779_v60 = vld [vmem:[#allocation262_spill] sm:$0xff]  ;;  %v4241_v54 = vld [vmem:[%s14442_s2 + $0x290] sm:$0xff] }
 0x314   :  { %v1764_v3 = vadd.f32 %v15773_v61, %v992_v59  ;;  %v4048_v59 = vadd.f32 %v12293_v10, %v3276_v15  ;;  %v15777_v61 = vld [vmem:[#allocation173_spill] sm:$0xff]  ;;  %v3903_v16 = vmul.f32 %v8795_v1, %v11791_v63  ;;  %v1748_v45 = vadd.f32 %v15779_v60, %v976_v53  ;;  %4774 = vperm.xlu1 %9022, %v4256_v41   ;;  %v15781_v1 = vld [vmem:[#allocation131_spill] sm:$0xff] }
 0x315   :  { %v3259_v14 = vadd.f32 %v15777_v61, %v2487_v17  ;;  %v4239_v35 = vld [vmem:[%s14442_s2 + $0x280] sm:$0xff]  ;;  %v3904_v17 = vmul.f32 %v8796_v32, %v11791_v63  ;;  %v4047_v51 = vadd.f32 %v12290_v9, %v3275_v62  ;;  %v946_v9 = vmul.f32 %v9140_v57, %v15733_v26  ;;  %v4370_v32 = vpop.permute.xlu0 %4369  ;;  %v4224_v41 = vld [vmem:[%s14442_s2 + $0x208] sm:$0xff] }
 0x316   :  { %v15780_v10 = vld [vmem:[#allocation169_spill] sm:$0xff]  ;;  %v4944_v25 = vadd.f32 %v12252_v12, %v4048_v59  ;;  %v2536_v13 = vadd.f32 %v15781_v1, %v1764_v3  ;;  %v945_v12 = vmul.f32 %v9139_v21, %v15733_v26  ;;  %v3307_v55 = vadd.f32 %v3179_v44, %v2535_v30  ;;  %v15782_v59 = vld [vmem:[#allocation123_spill] sm:$0xff] }
 0x317   :  { %v3260_v15 = vadd.f32 %v15780_v10, %v2488_v36  ;;  %v12612_v53 = vld [vmem:[%s14443_s3] sm:$0xff]  ;;  %v4031_v62 = vadd.f32 %v3903_v16, %v3259_v14  ;;  %v2519_v61 = vadd.f32 %v15782_v59, %v1747_v47  ;;  %v4943_v60 = vadd.f32 %v4370_v32, %v4047_v51  ;;  %v12626_v10 = vpop.permute.xlu1 %4549  ;;  %4689 = vperm.xlu0 %9130, %v4239_v35   ;;  %v4225_v47 = vld [vmem:[%s14442_s2 + $0x210] sm:$0xff]  ;;  %v4232_v1 = vld [vmem:[%s14442_s2 + $0x248] sm:$0xff] }
 0x318   :  { %v12617_v36 = vld [vmem:[%s14443_s3 + $0x20] sm:$0xff]  ;;  %v12630_v21 = vmul.f32 %v8956_v7, %v11791_v63  ;;  %4699 = vperm.xlu1 %9022, %v4241_v54   ;;  %v2520_v14 = vadd.f32 %v15783_v43, %v1748_v45  ;;  %v5072_v16 = vmax.f32 %v4944_v25, 0.0  ;;  %v3308_v7 = vadd.f32 %v12548_v27, %v2536_v13  ;;  %v15785_v51 = vld [vmem:[#allocation75_spill] sm:$0xff] }
 0x319   :  { %v6869_v3 = vcombine.high %v12612_v53, %v12617_v36  ;;  %v4032_v57 = vadd.f32 %v3904_v17, %v3260_v15  ;;  %v4927_v30 = vadd.f32 %v12287_v2, %v4031_v62  ;;  %v5071_v44 = vmax.f32 %v4943_v60, 0.0  ;;  %v15784_v15 = vld [vmem:[#allocation106_spill] sm:$0xff]  ;;  %v4295_v45 = vpop.permute.xlu0 %4294  ;;  %v4226_v60 = vld [vmem:[%s14442_s2 + $0x218] sm:$0xff] }
 0x31a   :  { %v12642_v35 = vmul.f32 %v8957_v37, %v11791_v63  ;;  %v1717_v17 = vadd.f32 %v15784_v15, %v945_v12  ;;  %v1718_v54 = vadd.f32 %v15785_v51, %v946_v9  ;;  %v15786_v32 = vld [vmem:[#allocation314_spill] sm:$0xff]  ;;  %v4079_v2 = vadd.f32 %v12472_v33, %v3307_v55  ;;  %v15790_v15 = vld [vmem:[#allocation109_spill] sm:$0xff] }
 0x31b   :  { %5759 = vmatprep.mubr.bf16.mxu0 %v6869_v3  ;;  %v8841_v43 = vunpack.i.l.bf16 %v15786_v32  ;;  %v3291_v3 = vadd.f32 %v12426_v56, %v2519_v61  ;;  %v4928_v62 = vadd.f32 %v4295_v45, %v4032_v57  ;;  %v12649_v59 = vpop.permute.xlu1 %4469  ;;  %4614 = vperm.xlu0 %9130, %v4224_v41   ;;  %v5255_v25 = vpack.c.bf16 %v5072_v16, %v5071_v44  ;;  %v15787_v27 = vld [vmem:[#allocation58_spill] sm:$0xff]  ;;  %v15788_v57 = vld [vmem:[#allocation61_spill] sm:$0xff]  ;;  %v15791_v45 = vld [vmem:[#allocation247_spill] sm:$0xff] }
 0x31c   :  { %v8615_v13 = vunpack.i.h.bf16 %v15787_v27  ;;  %v8614_v37 = vunpack.i.l.bf16 %v15787_v27  ;;  %v8842_v12 = vunpack.i.h.bf16 %v15786_v32  ;;  %4619 = vperm.xlu1 %9022, %v4225_v47   ;;  %v4271_v9 = vld [vmem:[%s14442_s2 + $0x380] sm:$0xff]  ;;  %v3292_v33 = vadd.f32 %v12438_v39, %v2520_v14 }
 0x31d   :  { %v5055_v55 = vmax.f32 %v4927_v30, 0.0  ;;  %v4975_v56 = vadd.f32 %v12335_v11, %v4079_v2  ;;  %v5056_v61 = vmax.f32 %v4928_v62, 0.0  ;;  %7306 = vmatprep.subr.bf16.mxu0 %v5255_v25  ;;  %v4080_v41 = vadd.f32 %v12476_v28, %v3308_v7  ;;  %v15789_v47 = vld [vmem:[#allocation162_spill] sm:$0xff]  ;;  %v4535_v32 = vpop.permute.xlu0 %4534 }
 0x31e   :  { %v9159_v16 = vunpack.i.l.bf16 %v15789_v47  ;;  %v2489_v51 = vadd.f32 %v15790_v15, %v1717_v17  ;;  %v2490_v39 = vadd.f32 %v15791_v45, %v1718_v54  ;;  %v3921_v14 = vmul.f32 %v8841_v43, %v11791_v63  ;;  %v12674_v7 = vld [vmem:[%s14443_s3 + $0x8] sm:$0xff] }
 0x31f   :  { %v4063_v11 = vadd.f32 %v12386_v29, %v3291_v3  ;;  %v4976_v30 = vadd.f32 %v4535_v32, %v4080_v41  ;;  %v12669_v2 = vpop.permute.xlu1 %4399  ;;  %4849 = vperm.xlu0 %9130, %v4271_v9   ;;  %v5247_v28 = vpack.c.bf16 %v5056_v61, %v5055_v55  ;;  %15792 = vst [vmem:[#allocation172_spill] sm:$0xff] %v12674_v7  ;;  %v12679_v17 = vld [vmem:[%s14443_s3 + $0x28] sm:$0xff]  ;;  %v9160_v54 = vunpack.i.h.bf16 %v15789_v47  ;;  %v4242_v29 = vld [vmem:[%s14442_s2 + $0x298] sm:$0xff] }
 0x320   :  { %15793 = vst [vmem:[#allocation141_spill] sm:$0xff] %v12679_v17  ;;  %v3922_v43 = vmul.f32 %v8842_v12, %v11791_v63  ;;  %4624 = vperm.xlu1 %9022, %v4226_v60   ;;  %v6871_v62 = vcombine.high %v12674_v7, %v12679_v17  ;;  %v4064_v27 = vadd.f32 %v12389_v49, %v3292_v33  ;;  %v4273_v12 = vld [vmem:[%s14442_s2 + $0x390] sm:$0xff]  ;;  %v5103_v9 = vmax.f32 %v4975_v56, 0.0  ;;  %v15915_v17 = vld [vmem:[#allocation210_spill] sm:$0xff] }
 0x321   :  { %v4959_v25 = vadd.f32 %v12366_v4, %v4063_v11  ;;  %7307 = vmatpush3.bf16.msra.mxu0 %v5247_v28  ;;  %v5104_v55 = vmax.f32 %v4976_v30, 0.0  ;;  %v12696_v61 = vmul.f32 %v8614_v37, %v11209_v38  ;;  %v8966_v41 = vunpack.i.l.bf16 %v15788_v57  ;;  %v4455_v15 = vpop.permute.xlu0 %4454 }
 0x322   :  { %v963_v60 = vmul.f32 %v9159_v16, %v15733_v26  ;;  %v3261_v47 = vadd.f32 %v12255_v6, %v2489_v51  ;;  %5856 = vmatprep.mubr.bf16.mxu1 %v6871_v62  ;;  %v8921_v4 = vunpack.i.l.bf16 %v11993_v48  ;;  %v4049_v49 = vadd.f32 %v3921_v14, %v11925_v52  ;;  %v4258_v6 = vld [vmem:[%s14442_s2 + $0x318] sm:$0xff] }
 0x323   :  { %v4960_v33 = vadd.f32 %v4455_v15, %v4064_v27  ;;  %v12703_v32 = vpop.permute.xlu1 %4319  ;;  %4704 = vperm.xlu0 %9130, %v4242_v29   ;;  %v5271_v56 = vpack.c.bf16 %v5104_v55, %v5103_v9  ;;  %v12706_v37 = vmul.f32 %v8615_v13, %v11209_v38  ;;  %v964_v45 = vmul.f32 %v9160_v54, %v15733_v26  ;;  %v4274_v13 = vld [vmem:[%s14442_s2 + $0x398] sm:$0xff]  ;;  %v15796_v27 = vld [vmem:[#allocation254_spill] sm:$0xff] }
 0x324   :  { %4859 = vperm.xlu1 %9022, %v4273_v12   ;;  %v4050_v16 = vadd.f32 %v3922_v43, %v11933_v18  ;;  %v3262_v51 = vadd.f32 %v12258_v46, %v2490_v39  ;;  %v8922_v52 = vunpack.i.h.bf16 %v11993_v48  ;;  %v5087_v14 = vmax.f32 %v4959_v25, 0.0  ;;  %v15795_v18 = vld [vmem:[#allocation119_spill] sm:$0xff] }
 0x325   :  { %v4945_v11 = vadd.f32 %v12417_v23, %v4049_v49  ;;  %v5088_v30 = vmax.f32 %v4960_v33, 0.0  ;;  %7370 = vmatprep.subr.bf16.mxu1 %v5271_v56  ;;  %v12720_v28 = vmul.f32 %v8966_v41, %v11791_v63  ;;  %v1735_v54 = vadd.f32 %v15795_v18, %v963_v60  ;;  %v4385_v39 = vpop.permute.xlu0 %4384 }
 0x326   :  { %v8881_v43 = vunpack.i.l.bf16 %v11879_v0  ;;  %v4033_v46 = vadd.f32 %v12233_v19, %v3261_v47  ;;  %v9199_v48 = vunpack.i.l.bf16 %v11971_v31  ;;  %v3953_v23 = vmul.f32 %v8921_v4, %v11791_v63  ;;  %v4244_v19 = vld [vmem:[%s14442_s2 + $0x2a8] sm:$0xff] }
 0x327   :  { %15794 = vst [vmem:[#allocation177_spill] sm:$0xff] %v12720_v28  ;;  %v4946_v29 = vadd.f32 %v4385_v39, %v4050_v16  ;;  %v12727_v62 = vpop.permute.xlu1 %4559  ;;  %4784 = vperm.xlu0 %9130, %v4258_v6   ;;  %v5263_v25 = vpack.c.bf16 %v5088_v30, %v5087_v14  ;;  %v1736_v12 = vadd.f32 %v15796_v27, %v964_v45  ;;  %v8882_v9 = vunpack.i.h.bf16 %v11879_v0  ;;  %v4257_v0 = vld [vmem:[%s14442_s2 + $0x310] sm:$0xff]  ;;  %v15802_v39 = vld [vmem:[#allocation118_spill] sm:$0xff]  ;;  %v15864_v28 = vld [vmem:[#allocation277_spill] sm:$0xff] }
 0x328   :  { %v9200_v55 = vunpack.i.h.bf16 %v11971_v31  ;;  %4864 = vperm.xlu1 %9022, %v4274_v13   ;;  %v4034_v41 = vadd.f32 %v12243_v34, %v3262_v51  ;;  %v3954_v60 = vmul.f32 %v8922_v52, %v11791_v63  ;;  %v5073_v47 = vmax.f32 %v4945_v11, 0.0  ;;  %v15797_v34 = vld [vmem:[#allocation253_spill] sm:$0xff]  ;;  %v15798_v45 = vld [vmem:[#allocation8_spill] sm:$0xff]  ;;  %v15800_v6 = vld [vmem:[#allocation15_spill] sm:$0xff] }
 0x329   :  { %v4929_v15 = vadd.f32 %v12448_v20, %v4033_v46  ;;  %v5074_v4 = vmax.f32 %v4946_v29, 0.0  ;;  %7371 = vmatpush3.bf16.msra.mxu1 %v5263_v25  ;;  %v9179_v31 = vunpack.i.l.bf16 %v11855_v58  ;;  %v3937_v49 = vmul.f32 %v8881_v43, %v11791_v63  ;;  %v4305_v56 = vpop.permute.xlu0 %4304  ;;  %v4228_v46 = vld [vmem:[%s14442_s2 + $0x228] sm:$0xff] }
 0x32a   :  { %v2507_v33 = vadd.f32 %v15797_v34, %v1735_v54  ;;  %v15799_v16 = vunpack.c.h.bf16 %v15798_v45  ;;  %v15801_v51 = vunpack.c.l.bf16 %v15800_v6  ;;  %v995_v20 = vmul.f32 %v9199_v48, %v15733_v26  ;;  %v15803_v27 = vld [vmem:[#allocation70_spill] sm:$0xff] }
 0x32b   :  { %v4081_v14 = vadd.f32 %v3953_v23, %v12094_v50  ;;  %v4930_v11 = vadd.f32 %v4305_v56, %v4034_v41  ;;  %v12750_v30 = vpop.permute.xlu1 %4479  ;;  %4714 = vperm.xlu0 %9130, %v4244_v19   ;;  %v5256_v13 = vpack.c.bf16 %v5074_v4, %v5073_v47  ;;  %v9180_v18 = vunpack.i.h.bf16 %v11855_v58  ;;  %v15804_v41 = vld [vmem:[#allocation145_spill] sm:$0xff]  ;;  %v15805_v19 = vld [vmem:[#allocation36_spill] sm:$0xff] }
 0x32c   :  { %v9044_v52 = vpack.i.bf16 %v15801_v51, %v15799_v16  ;;  %v3938_v43 = vmul.f32 %v8882_v9, %v11791_v63  ;;  %v996_v54 = vmul.f32 %v9200_v55, %v15733_v26  ;;  %4779 = vperm.xlu1 %9022, %v4257_v0   ;;  %v2508_v48 = vadd.f32 %v15802_v39, %v1736_v12  ;;  %v15806_v0 = vld [vmem:[#allocation100_spill] sm:$0xff]  ;;  %v15807_v56 = vld [vmem:[#allocation193_spill] sm:$0xff]  ;;  %v15809_v51 = vld [vmem:[#allocation190_spill] sm:$0xff] }
 0x32d   :  { %v5057_v29 = vmax.f32 %v4929_v15, 0.0  ;;  %v4977_v50 = vadd.f32 %v12494_v8, %v4081_v14  ;;  %v5058_v23 = vmax.f32 %v4930_v11, 0.0  ;;  %7308 = vmatprep.subr.bf16.mxu0 %v5256_v13  ;;  %v4082_v25 = vadd.f32 %v3954_v60, %v12104_v42  ;;  %v4545_v4 = vpop.permute.xlu0 %4544  ;;  %v15812_v39 = vld [vmem:[#allocation83_spill] sm:$0xff] }
 0x32e   :  { %v8624_v58 = vunpack.i.l.bf16 %v15803_v27  ;;  %v8806_v9 = vunpack.i.l.bf16 %v15804_v41  ;;  %v979_v55 = vmul.f32 %v9179_v31, %v15733_v26  ;;  %v3279_v47 = vadd.f32 %v15805_v19, %v2507_v33  ;;  %v4275_v33 = vld [vmem:[%s14442_s2 + $0x3a0] sm:$0xff] }
 0x32f   :  { %v1767_v34 = vadd.f32 %v15806_v0, %v995_v20  ;;  %v4065_v12 = vadd.f32 %v3937_v49, %v15807_v56  ;;  %v4978_v15 = vadd.f32 %v4545_v4, %v4082_v25  ;;  %v12767_v45 = vpop.permute.xlu1 %4409  ;;  %4634 = vperm.xlu0 %9130, %v4228_v46   ;;  %v5248_v8 = vpack.c.bf16 %v5058_v23, %v5057_v29  ;;  %v15810_v20 = vld [vmem:[#allocation37_spill] sm:$0xff]  ;;  %v15811_v49 = vld [vmem:[#allocation274_spill] sm:$0xff]  ;;  %v15815_v0 = vld [vmem:[#allocation264_spill] sm:$0xff] }
 0x330   :  { %v8807_v42 = vunpack.i.h.bf16 %v15804_v41  ;;  %v980_v60 = vmul.f32 %v9180_v18, %v15733_v26  ;;  %v15808_v16 = vmov 4   ;;  %v4066_v31 = vadd.f32 %v3938_v43, %v15809_v51  ;;  %v15813_v23 = vld [vmem:[#allocation74_spill] sm:$0xff]  ;;  %v15814_v41 = vld [vmem:[#allocation29_spill] sm:$0xff] }
 0x331   :  { %9043 = vset.pattern.permute.xlu1 %v15808_v16  ;;  %v3280_v14 = vadd.f32 %v15810_v20, %v2508_v48  ;;  %v1768_v11 = vadd.f32 %v15811_v49, %v996_v54  ;;  %v5105_v13 = vmax.f32 %v4977_v50, 0.0  ;;  %v4961_v46 = vadd.f32 %v15812_v39, %v4065_v12  ;;  %7309 = vmatpush3.bf16.msra.mxu0 %v5248_v8  ;;  %v4465_v4 = vpop.permute.xlu0 %4464  ;;  %v15816_v48 = vld [vmem:[#allocation134_spill] sm:$0xff]  ;;  %v15821_v39 = vld [vmem:[#allocation273_spill] sm:$0xff] }
 0x332   :  { %v5106_v29 = vmax.f32 %v4978_v15, 0.0  ;;  %9045 = vperm.xlu1 %9043, %v9044_v52   ;;  %v8625_v18 = vunpack.i.h.bf16 %v15803_v27  ;;  %v8634_v25 = vunpack.i.l.bf16 %v15813_v23  ;;  %v3907_v43 = vmul.f32 %v8806_v9, %v11791_v63  ;;  %v4243_v52 = vld [vmem:[%s14442_s2 + $0x2a0] sm:$0xff] }
 0x333   :  { %v4051_v19 = vadd.f32 %v15814_v41, %v3279_v47  ;;  %v1751_v56 = vadd.f32 %v15815_v0, %v979_v55  ;;  %v2539_v51 = vadd.f32 %v15816_v48, %v1767_v34  ;;  %v4962_v54 = vadd.f32 %v4465_v4, %v4066_v31  ;;  %v12785_v50 = vpop.permute.xlu1 %4329  ;;  %4869 = vperm.xlu0 %9130, %v4275_v33   ;;  %v15817_v47 = vld [vmem:[#allocation94_spill] sm:$0xff]  ;;  %v4246_v34 = vld [vmem:[%s14442_s2 + $0x2b8] sm:$0xff]  ;;  %v15819_v33 = vld [vmem:[#allocation51_spill] sm:$0xff] }
 0x334   :  { %v5272_v12 = vpack.c.bf16 %v5106_v29, %v5105_v13  ;;  %v12791_v27 = vmul.f32 %v8624_v58, %v11209_v38  ;;  %v3908_v9 = vmul.f32 %v8807_v42, %v11791_v63  ;;  %v1752_v15 = vadd.f32 %v15817_v47, %v980_v60  ;;  %v15818_v8 = vld [vmem:[#allocation14_spill] sm:$0xff] }
 0x335   :  { %v4052_v55 = vadd.f32 %v15818_v8, %v3280_v14  ;;  %v5089_v31 = vmax.f32 %v4961_v46, 0.0  ;;  %v4947_v20 = vadd.f32 %v15819_v33, %v4051_v19  ;;  %v5090_v49 = vmax.f32 %v4962_v54, 0.0  ;;  %v15822_v14 = vld [vmem:[#allocation232_spill] sm:$0xff]  ;;  %v4395_v46 = vpop.permute.xlu0 %4394  ;;  %v15823_v4 = vld [vmem:[#allocation126_spill] sm:$0xff] }
 0x336   :  { %v15820_v13 = vmov 0   ;;  %7372 = vmatprep.subr.bf16.mxu1 %v5272_v12  ;;  %v2540_v58 = vadd.f32 %v15821_v39, %v1768_v11  ;;  %v12803_v29 = vmul.f32 %v8625_v18, %v11209_v38  ;;  %v8635_v42 = vunpack.i.h.bf16 %v15813_v23  ;;  %v4227_v18 = vld [vmem:[%s14442_s2 + $0x220] sm:$0xff] }
 0x337   :  { %9049 = vset.pattern.permute.xlu1 %v15820_v13  ;;  %v12807_v60 = vmul.f32 %v8634_v25, %v11209_v38  ;;  %v4035_v41 = vadd.f32 %v3907_v43, %v15822_v14  ;;  %v3311_v19 = vadd.f32 %v12580_v40, %v2539_v51  ;;  %v2523_v0 = vadd.f32 %v15823_v4, %v1751_v56  ;;  %v12812_v54 = vpop.permute.xlu1 %4569  ;;  %v15824_v23 = vld [vmem:[#allocation237_spill] sm:$0xff]  ;;  %v15825_v12 = vld [vmem:[#allocation238_spill] sm:$0xff]  ;;  %v15826_v43 = vld [vmem:[#allocation27_spill] sm:$0xff] }
 0x338   :  { %4709 = vperm.xlu1 %9049, %v4243_v52   ;;  %v4948_v48 = vadd.f32 %v4395_v46, %v4052_v55  ;;  %4724 = vperm.xlu0 %9130, %v4246_v34   ;;  %v5264_v11 = vpack.c.bf16 %v5090_v49, %v5089_v31  ;;  %v8644_v25 = vunpack.i.l.bf16 %v15824_v23  ;;  %v9004_v47 = vunpack.i.h.bf16 %v15825_v12  ;;  %v4262_v40 = vld [vmem:[%s14442_s2 + $0x338] sm:$0xff]  ;;  %v15827_v56 = vld [vmem:[#allocation263_spill] sm:$0xff]  ;;  %v15828_v39 = vld [vmem:[#allocation170_spill] sm:$0xff] }
 0x339   :  { %v4036_v52 = vadd.f32 %v3908_v9, %v15826_v43  ;;  %v2524_v51 = vadd.f32 %v15827_v56, %v1752_v15  ;;  %v5075_v8 = vmax.f32 %v4947_v20, 0.0  ;;  %v4931_v55 = vadd.f32 %v12591_v22, %v4035_v41  ;;  %v4315_v14 = vpop.permute.xlu0 %4314  ;;  %v15830_v4 = vld [vmem:[#allocation12_spill] sm:$0xff]  ;;  %v15832_v43 = vld [vmem:[#allocation46_spill] sm:$0xff]  ;;  %v15833_v41 = vld [vmem:[#allocation43_spill] sm:$0xff] }
 0x33a   :  { %v5076_v34 = vmax.f32 %v4948_v48, 0.0  ;;  %7373 = vmatpush3.bf16.msra.mxu1 %v5264_v11  ;;  %v3312_v31 = vadd.f32 %v12594_v5, %v2540_v58  ;;  %v12827_v33 = vmul.f32 %v8635_v42, %v11209_v38  ;;  %v8851_v9 = vunpack.i.l.bf16 %v15828_v39  ;;  %v4248_v56 = vld [vmem:[%s14442_s2 + $0x2c8] sm:$0xff] }
 0x33b   :  { %v15829_v46 = vunpack.c.h.bf16 %v15800_v6  ;;  %v15831_v15 = vunpack.c.l.bf16 %v15830_v4  ;;  %v4083_v22 = vadd.f32 %v15832_v43, %v3311_v19  ;;  %v3295_v48 = vadd.f32 %v15833_v41, %v2523_v0  ;;  %v12837_v5 = vpop.permute.xlu1 %4489  ;;  %v15835_v19 = vld [vmem:[#allocation44_spill] sm:$0xff]  ;;  %v15838_v4 = vld [vmem:[#allocation149_spill] sm:$0xff] }
 0x33c   :  { %4629 = vperm.xlu1 %9049, %v4227_v18   ;;  %v4932_v11 = vadd.f32 %v4315_v14, %v4036_v52  ;;  %4804 = vperm.xlu0 %9130, %v4262_v40   ;;  %v5257_v58 = vpack.c.bf16 %v5076_v34, %v5075_v8  ;;  %v12840_v42 = vmul.f32 %v8644_v25, %v11209_v38  ;;  %v8852_v6 = vunpack.i.h.bf16 %v15828_v39  ;;  %v15836_v40 = vld [vmem:[#allocation116_spill] sm:$0xff]  ;;  %v15837_v25 = vld [vmem:[#allocation290_spill] sm:$0xff] }
 0x33d   :  { %v9051_v20 = vpack.i.bf16 %v15831_v15, %v15829_v46  ;;  %v12843_v18 = vmul.f32 %v9004_v47, %v11791_v63  ;;  %v3296_v46 = vadd.f32 %v15835_v19, %v2524_v51  ;;  %v5059_v0 = vmax.f32 %v4931_v55, 0.0  ;;  %v15839_v15 = vld [vmem:[#allocation315_spill] sm:$0xff]  ;;  %v4555_v41 = vpop.permute.xlu0 %4554  ;;  %v15840_v55 = vld [vmem:[#allocation333_spill] sm:$0xff] }
 0x33e   :  { %15834 = vst [vmem:[#allocation53_spill] sm:$0xff] %v12840_v42  ;;  %v4979_v52 = vadd.f32 %v12626_v10, %v4083_v22  ;;  %v5060_v14 = vmax.f32 %v4932_v11, 0.0  ;;  %7310 = vmatprep.subr.bf16.mxu0 %v5257_v58  ;;  %v4084_v8 = vadd.f32 %v15836_v40, %v3312_v31  ;;  %v9144_v34 = vunpack.i.l.bf16 %v15837_v25 }
 0x33f   :  { %v8811_v47 = vunpack.i.l.bf16 %v15838_v4  ;;  %v9164_v43 = vunpack.i.l.bf16 %v15839_v15  ;;  %v3925_v39 = vmul.f32 %v8851_v9, %v11791_v63  ;;  %v4067_v19 = vadd.f32 %v15840_v55, %v3295_v48  ;;  %v12859_v22 = vpop.permute.xlu1 %4419 }
 0x340   :  { %9050 = vset.pattern.permute.xlu1 %v15808_v16  ;;  %v4980_v10 = vadd.f32 %v4555_v41, %v4084_v8  ;;  %4734 = vperm.xlu0 %9130, %v4248_v56   ;;  %v5249_v31 = vpack.c.bf16 %v5060_v14, %v5059_v0  ;;  %v9145_v11 = vunpack.i.h.bf16 %v15837_v25  ;;  %v8812_v58 = vunpack.i.h.bf16 %v15838_v4  ;;  %v15841_v8 = vld [vmem:[#allocation334_spill] sm:$0xff] }
 0x341   :  { %9052 = vperm.xlu1 %9050, %v9051_v20   ;;  %v9165_v40 = vunpack.i.h.bf16 %v15839_v15  ;;  %v3926_v9 = vmul.f32 %v8852_v6, %v11791_v63  ;;  %v5107_v44 = vmax.f32 %v4979_v52, 0.0  ;;  %v4963_v48 = vadd.f32 %v12649_v59, %v4067_v19  ;;  %v4276_v0 = vld [vmem:[%s14442_s2 + $0x3a8] sm:$0xff]  ;;  %v4475_v41 = vpop.permute.xlu0 %4474 }
 0x342   :  { %v5108_v20 = vmax.f32 %v4980_v10, 0.0  ;;  %7311 = vmatpush3.bf16.msra.mxu0 %v5249_v31  ;;  %v4068_v56 = vadd.f32 %v15841_v8, %v3296_v46  ;;  %v15842_v14 = vld [vmem:[#allocation86_spill] sm:$0xff]  ;;  %v951_v4 = vmul.f32 %v9144_v34, %v15733_v26  ;;  %v3909_v6 = vmul.f32 %v8811_v47, %v11791_v63  ;;  %v15843_v52 = vld [vmem:[#allocation195_spill] sm:$0xff] }
 0x343   :  { %v967_v15 = vmul.f32 %v9164_v43, %v15733_v26  ;;  %v8931_v55 = vunpack.i.l.bf16 %v15843_v52  ;;  %v15844_v59 = vld [vmem:[#allocation187_spill] sm:$0xff]  ;;  %v12880_v46 = vpop.permute.xlu1 %4339  ;;  %v952_v8 = vmul.f32 %v9145_v11, %v15733_v26  ;;  %v3910_v34 = vmul.f32 %v8812_v58, %v11791_v63  ;;  %v15845_v43 = vld [vmem:[#allocation184_spill] sm:$0xff]  ;;  %v15850_v25 = vld [vmem:[#allocation34_spill] sm:$0xff] }
 0x344   :  { %v4053_v19 = vadd.f32 %v3925_v39, %v15844_v59  ;;  %v4964_v10 = vadd.f32 %v4475_v41, %v4068_v56  ;;  %4654 = vperm.xlu0 %9130, %v4232_v1   ;;  %v5273_v31 = vpack.c.bf16 %v5108_v20, %v5107_v44  ;;  %v968_v47 = vmul.f32 %v9165_v40, %v15733_v26  ;;  %v4279_v39 = vld [vmem:[%s14442_s2 + $0x3c0] sm:$0xff]  ;;  %v15846_v11 = vld [vmem:[#allocation79_spill] sm:$0xff]  ;;  %v15847_v40 = vld [vmem:[#allocation120_spill] sm:$0xff] }
 0x345   :  { %9056 = vset.pattern.permute.xlu1 %v15820_v13  ;;  %v4054_v49 = vadd.f32 %v3926_v9, %v15845_v43  ;;  %v8932_v56 = vunpack.i.h.bf16 %v15843_v52  ;;  %v5091_v41 = vmax.f32 %v4963_v48, 0.0  ;;  %v4259_v44 = vld [vmem:[%s14442_s2 + $0x320] sm:$0xff]  ;;  %v1723_v58 = vadd.f32 %v15846_v11, %v951_v4  ;;  %v15848_v9 = vld [vmem:[#allocation180_spill] sm:$0xff]  ;;  %v15849_v43 = vld [vmem:[#allocation179_spill] sm:$0xff]  ;;  %v4405_v51 = vpop.permute.xlu0 %4404 }
 0x346   :  { %4874 = vperm.xlu1 %9056, %v4276_v0   ;;  %v4949_v59 = vadd.f32 %v12669_v2, %v4053_v19  ;;  %v5092_v1 = vmax.f32 %v4964_v10, 0.0  ;;  %7374 = vmatprep.subr.bf16.mxu1 %v5273_v31  ;;  %v1739_v20 = vadd.f32 %v15847_v40, %v967_v15  ;;  %v8891_v0 = vunpack.i.l.bf16 %v15848_v9  ;;  %v15851_v31 = vld [vmem:[#allocation256_spill] sm:$0xff]  ;;  %v15852_v11 = vld [vmem:[#allocation234_spill] sm:$0xff] }
 0x347   :  { %v4037_v3 = vadd.f32 %v3909_v6, %v15849_v43  ;;  %v9204_v52 = vunpack.i.l.bf16 %v15850_v25  ;;  %v3957_v48 = vmul.f32 %v8931_v55, %v11791_v63  ;;  %v4950_v2 = vadd.f32 %v4405_v51, %v4054_v49  ;;  %v12900_v19 = vpop.permute.xlu1 %4579  ;;  %v4250_v6 = vld [vmem:[%s14442_s2 + $0x2d8] sm:$0xff] }
 0x348   :  { %4889 = vperm.xlu0 %9130, %v4279_v39   ;;  %v5265_v10 = vpack.c.bf16 %v5092_v1, %v5091_v41  ;;  %v1740_v24 = vadd.f32 %v15851_v31, %v968_v47  ;;  %v8892_v4 = vunpack.i.h.bf16 %v15848_v9  ;;  %v9205_v15 = vunpack.i.h.bf16 %v15850_v25  ;;  %v4260_v47 = vld [vmem:[%s14442_s2 + $0x328] sm:$0xff]  ;;  %v15853_v41 = vld [vmem:[#allocation24_spill] sm:$0xff] }
 0x349   :  { %v4038_v40 = vadd.f32 %v3910_v34, %v15852_v11  ;;  %v3958_v55 = vmul.f32 %v8932_v56, %v11791_v63  ;;  %v5077_v49 = vmax.f32 %v4949_v59, 0.0  ;;  %v4933_v51 = vadd.f32 %v12703_v32, %v4037_v3  ;;  %v15854_v1 = vld [vmem:[#allocation235_spill] sm:$0xff]  ;;  %v4325_v31 = vpop.permute.xlu0 %4324 }
 0x34a   :  { %4789 = vperm.xlu1 %9056, %v4259_v44   ;;  %v5078_v39 = vmax.f32 %v4950_v2, 0.0  ;;  %7375 = vmatpush3.bf16.msra.mxu1 %v5265_v10  ;;  %v1724_v25 = vadd.f32 %v15853_v41, %v952_v8  ;;  %v9184_v44 = vunpack.i.l.bf16 %v15854_v1  ;;  %v3941_v34 = vmul.f32 %v8891_v0, %v11791_v63  ;;  %v15855_v9 = vld [vmem:[#allocation87_spill] sm:$0xff] }
 0x34b   :  { %v2511_v43 = vadd.f32 %v15855_v9, %v1739_v20  ;;  %v999_v56 = vmul.f32 %v9204_v52, %v15733_v26  ;;  %v15856_v59 = vld [vmem:[#allocation203_spill] sm:$0xff]  ;;  %v4934_v3 = vadd.f32 %v4325_v31, %v4038_v40  ;;  %v12920_v32 = vpop.permute.xlu1 %4499  ;;  %v9185_v10 = vunpack.i.h.bf16 %v15854_v1  ;;  %v4266_v20 = vld [vmem:[%s14442_s2 + $0x358] sm:$0xff] }
 0x34c   :  { %v4085_v11 = vadd.f32 %v3957_v48, %v15856_v59  ;;  %4744 = vperm.xlu0 %9130, %v4250_v6   ;;  %v5258_v2 = vpack.c.bf16 %v5078_v39, %v5077_v49  ;;  %v3942_v8 = vmul.f32 %v8892_v4, %v11791_v63  ;;  %v1000_v41 = vmul.f32 %v9205_v15, %v15733_v26  ;;  %v15857_v0 = vld [vmem:[#allocation255_spill] sm:$0xff]  ;;  %v15858_v6 = vld [vmem:[#allocation72_spill] sm:$0xff]  ;;  %v15859_v39 = vld [vmem:[#allocation38_spill] sm:$0xff] }
 0x34d   :  { %v2512_v52 = vadd.f32 %v15857_v0, %v1740_v24  ;;  %v5061_v9 = vmax.f32 %v4933_v51, 0.0  ;;  %v5062_v40 = vmax.f32 %v4934_v3, 0.0  ;;  %v4086_v49 = vadd.f32 %v3958_v55, %v15858_v6  ;;  %v4245_v4 = vld [vmem:[%s14442_s2 + $0x2b0] sm:$0xff]  ;;  %v4565_v59 = vpop.permute.xlu0 %4564  ;;  %v15863_v3 = vld [vmem:[#allocation197_spill] sm:$0xff] }
 0x34e   :  { %4794 = vperm.xlu1 %9056, %v4260_v47   ;;  %v4981_v48 = vadd.f32 %v12727_v62, %v4085_v11  ;;  %7312 = vmatprep.subr.bf16.mxu0 %v5258_v2  ;;  %v983_v15 = vmul.f32 %v9184_v44, %v15733_v26  ;;  %v3283_v47 = vadd.f32 %v15859_v39, %v2511_v43  ;;  %v15860_v1 = vld [vmem:[#allocation111_spill] sm:$0xff]  ;;  %v15861_v24 = vunpack.i.l.bf16 %v15842_v14  ;;  %v15862_v62 = vld [vmem:[#allocation276_spill] sm:$0xff]  ;;  %v15907_v14 = vld [vmem:[#allocation122_spill] sm:$0xff] }
 0x34f   :  { %v2495_v31 = vadd.f32 %v15860_v1, %v1723_v58  ;;  %v1771_v11 = vadd.f32 %v15862_v62, %v999_v56  ;;  %v4069_v2 = vadd.f32 %v3941_v34, %v15863_v3  ;;  %v4982_v55 = vadd.f32 %v4565_v59, %v4086_v49  ;;  %v12942_v0 = vpop.permute.xlu1 %4429  ;;  %v15865_v58 = vld [vmem:[#allocation194_spill] sm:$0xff]  ;;  %v15872_v59 = vld [vmem:[#allocation20_spill] sm:$0xff] }
 0x350   :  { %v4002_v51 = vmul.f32 %v15861_v24, %v11791_v63  ;;  %4824 = vperm.xlu0 %9130, %v4266_v20   ;;  %v5250_v6 = vpack.c.bf16 %v5062_v40, %v5061_v9  ;;  %v984_v44 = vmul.f32 %v9185_v10, %v15733_v26  ;;  %v1772_v43 = vadd.f32 %v15864_v28, %v1000_v41  ;;  %v4252_v1 = vld [vmem:[%s14442_s2 + $0x2e8] sm:$0xff]  ;;  %v4229_v10 = vld [vmem:[%s14442_s2 + $0x230] sm:$0xff] }
 0x351   :  { %v4070_v39 = vadd.f32 %v3942_v8, %v15865_v58  ;;  %v15866_v24 = vld [vmem:[#allocation22_spill] sm:$0xff]  ;;  %v5109_v62 = vmax.f32 %v4981_v48, 0.0  ;;  %v4965_v34 = vadd.f32 %v12750_v30, %v4069_v2  ;;  %v5110_v49 = vmax.f32 %v4982_v55, 0.0  ;;  %v15867_v20 = vld [vmem:[#allocation39_spill] sm:$0xff]  ;;  %v15870_v9 = vld [vmem:[#allocation332_spill] sm:$0xff]  ;;  %v4485_v48 = vpop.permute.xlu0 %4484 }
 0x352   :  { %4719 = vperm.xlu1 %9056, %v4245_v4   ;;  %v2496_v56 = vadd.f32 %v15866_v24, %v1724_v25  ;;  %7313 = vmatpush3.bf16.msra.mxu0 %v5250_v6  ;;  %v3284_v28 = vadd.f32 %v15867_v20, %v2512_v52  ;;  %v15868_v8 = vunpack.i.l.bf16 %v15825_v12  ;;  %v4055_v40 = vadd.f32 %v15870_v9, %v3283_v47  ;;  %v15871_v4 = vld [vmem:[#allocation7_spill] sm:$0xff]  ;;  %v15874_v3 = vld [vmem:[#allocation266_spill] sm:$0xff] }
 0x353   :  { %v3267_v25 = vadd.f32 %v15871_v4, %v2495_v31  ;;  %v12964_v30 = vadd.f32 %v4002_v51, %v15872_v59  ;;  %v1755_v2 = vadd.f32 %v15874_v3, %v983_v15  ;;  %v15875_v55 = vld [vmem:[#allocation135_spill] sm:$0xff]  ;;  %v4966_v58 = vadd.f32 %v4485_v48, %v4070_v39  ;;  %v12968_v24 = vpop.permute.xlu1 %4349  ;;  %v15876_v12 = vld [vmem:[#allocation242_spill] sm:$0xff]  ;;  %v15878_v31 = vld [vmem:[#allocation28_spill] sm:$0xff] }
 0x354   :  { %v12959_v41 = vmul.f32 %v15868_v8, %v11791_v63  ;;  %v2543_v6 = vadd.f32 %v15875_v55, %v1771_v11  ;;  %4754 = vperm.xlu0 %9130, %v4252_v1   ;;  %v5274_v52 = vpack.c.bf16 %v5110_v49, %v5109_v62  ;;  %v8674_v20 = vunpack.i.l.bf16 %v15876_v12  ;;  %v15877_v8 = vld [vmem:[#allocation268_spill] sm:$0xff]  ;;  %v4236_v47 = vld [vmem:[%s14442_s2 + $0x268] sm:$0xff] }
 0x355   :  { %15873 = vst [vmem:[#allocation142_spill] sm:$0xff] %v12964_v30  ;;  %v1756_v57 = vadd.f32 %v15877_v8, %v984_v44  ;;  %v3268_v51 = vadd.f32 %v15878_v31, %v2496_v56  ;;  %v15879_v9 = vld [vmem:[#allocation275_spill] sm:$0xff]  ;;  %v5093_v4 = vmax.f32 %v4965_v34, 0.0  ;;  %v4951_v11 = vadd.f32 %v12767_v45, %v4055_v40  ;;  %v15880_v1 = vld [vmem:[#allocation30_spill] sm:$0xff]  ;;  %v4230_v44 = vld [vmem:[%s14442_s2 + $0x238] sm:$0xff] }
 0x356   :  { %15869 = vst [vmem:[#allocation133_spill] sm:$0xff] %v12959_v41  ;;  %4639 = vperm.xlu1 %9056, %v4229_v10   ;;  %v2544_v15 = vadd.f32 %v15879_v9, %v1772_v43  ;;  %v5094_v39 = vmax.f32 %v4966_v58, 0.0  ;;  %7376 = vmatprep.subr.bf16.mxu1 %v5274_v52  ;;  %v4056_v62 = vadd.f32 %v15880_v1, %v3284_v28  ;;  %v8675_v49 = vunpack.i.h.bf16 %v15876_v12  ;;  %v15881_v10 = vld [vmem:[#allocation226_spill] sm:$0xff]  ;;  %v15882_v56 = vld [vmem:[#allocation21_spill] sm:$0xff]  ;;  %v4415_v43 = vpop.permute.xlu0 %4414  ;;  %v15909_v30 = vld [vmem:[#allocation192_spill] sm:$0xff] }
 0x357   :  { %v8715_v48 = vunpack.i.h.bf16 %v15881_v10  ;;  %v8714_v59 = vunpack.i.l.bf16 %v15881_v10  ;;  %v4039_v3 = vadd.f32 %v15882_v56, %v3267_v25  ;;  %v3315_v34 = vadd.f32 %v12696_v61, %v2543_v6  ;;  %v15883_v45 = vld [vmem:[#allocation265_spill] sm:$0xff]  ;;  %v12988_v58 = vpop.permute.xlu1 %4589 }
 0x358   :  { %v2527_v40 = vadd.f32 %v15883_v45, %v1755_v2  ;;  %v4952_v55 = vadd.f32 %v4415_v43, %v4056_v62  ;;  %4674 = vperm.xlu0 %9130, %v4236_v47   ;;  %v5266_v28 = vpack.c.bf16 %v5094_v39, %v5093_v4  ;;  %v12991_v52 = vmul.f32 %v8674_v20, %v11209_v38  ;;  %v15884_v12 = vld [vmem:[#allocation125_spill] sm:$0xff]  ;;  %v4277_v20 = vld [vmem:[%s14442_s2 + $0x3b0] sm:$0xff]  ;;  %v15891_v45 = vld [vmem:[#allocation318_spill] sm:$0xff] }
 0x359   :  { %v8754_v8 = vunpack.i.l.bf16 %v15884_v12  ;;  %v15885_v31 = vld [vmem:[#allocation329_spill] sm:$0xff]  ;;  %v3316_v61 = vadd.f32 %v12706_v37, %v2544_v15  ;;  %v5079_v2 = vmax.f32 %v4951_v11, 0.0  ;;  %v4935_v6 = vadd.f32 %v12785_v50, %v4039_v3  ;;  %v15886_v47 = vld [vmem:[#allocation127_spill] sm:$0xff]  ;;  %v15887_v37 = vld [vmem:[#allocation174_spill] sm:$0xff] }
 0x35a   :  { %4644 = vperm.xlu1 %9056, %v4230_v44   ;;  %v4040_v9 = vadd.f32 %v15885_v31, %v3268_v51  ;;  %v4283_v25 = vld [vmem:[%s14442_s2 + $0x3e0] sm:$0xff]  ;;  %v5080_v1 = vmax.f32 %v4952_v55, 0.0  ;;  %7377 = vmatpush3.bf16.msra.mxu1 %v5266_v28  ;;  %v2528_v4 = vadd.f32 %v15886_v47, %v1756_v57  ;;  %v13005_v39 = vmul.f32 %v8675_v49, %v11209_v38  ;;  %v4335_v50 = vpop.permute.xlu0 %4334 }
 0x35b   :  { %v13008_v51 = vmul.f32 %v8714_v59, %v11209_v38  ;;  %v13011_v62 = vmul.f32 %v8715_v48, %v11209_v38  ;;  %v8861_v15 = vunpack.i.l.bf16 %v15887_v37  ;;  %v15888_v11 = vld [vmem:[#allocation229_spill] sm:$0xff]  ;;  %v13016_v43 = vpop.permute.xlu1 %4509  ;;  %v8755_v49 = vunpack.i.h.bf16 %v15884_v12 }
 0x35c   :  { %v4087_v44 = vadd.f32 %v15888_v11, %v3315_v34  ;;  %v15889_v10 = vld [vmem:[#allocation137_spill] sm:$0xff]  ;;  %v4936_v3 = vadd.f32 %v4335_v50, %v4040_v9  ;;  %4909 = vperm.xlu0 %9130, %v4283_v25   ;;  %v5259_v57 = vpack.c.bf16 %v5080_v1, %v5079_v2  ;;  %v13020_v59 = vmul.f32 %v8754_v8, %v11209_v38  ;;  %v4253_v34 = vld [vmem:[%s14442_s2 + $0x2f0] sm:$0xff]  ;;  %v15892_v8 = vld [vmem:[#allocation18_spill] sm:$0xff] }
 0x35d   :  { %v3299_v56 = vadd.f32 %v15889_v10, %v2527_v40  ;;  %v8862_v48 = vunpack.i.h.bf16 %v15887_v37  ;;  %v4088_v55 = vadd.f32 %v15891_v45, %v3316_v61  ;;  %v5063_v40 = vmax.f32 %v4935_v6, 0.0  ;;  %v4278_v12 = vld [vmem:[%s14442_s2 + $0x3b8] sm:$0xff]  ;;  %v15893_v25 = vld [vmem:[#allocation150_spill] sm:$0xff]  ;;  %v15895_v61 = vld [vmem:[#allocation175_spill] sm:$0xff] }
 0x35e   :  { %15890 = vst [vmem:[#allocation124_spill] sm:$0xff] %v13020_v59  ;;  %4879 = vperm.xlu1 %9056, %v4277_v20   ;;  %v4983_v28 = vadd.f32 %v12812_v54, %v4087_v44  ;;  %v5064_v31 = vmax.f32 %v4936_v3, 0.0  ;;  %7314 = vmatprep.subr.bf16.mxu0 %v5259_v57  ;;  %v3300_v9 = vadd.f32 %v15892_v8, %v2528_v4  ;;  %v9149_v2 = vunpack.i.l.bf16 %v15893_v25  ;;  %v15894_v1 = vld [vmem:[#allocation302_spill] sm:$0xff]  ;;  %v4575_v50 = vpop.permute.xlu0 %4574 }
 0x35f   :  { %v8821_v20 = vunpack.i.l.bf16 %v15894_v1  ;;  %v9170_v47 = vunpack.i.h.bf16 %v15895_v61  ;;  %v9169_v37 = vunpack.i.l.bf16 %v15895_v61  ;;  %v3929_v6 = vmul.f32 %v8861_v15, %v11791_v63  ;;  %v15896_v54 = vld [vmem:[#allocation338_spill] sm:$0xff]  ;;  %v13038_v10 = vpop.permute.xlu1 %4439  ;;  %v4238_v15 = vld [vmem:[%s14442_s2 + $0x278] sm:$0xff] }
 0x360   :  { %v4071_v11 = vadd.f32 %v15896_v54, %v3299_v56  ;;  %v4984_v44 = vadd.f32 %v4575_v50, %v4088_v55  ;;  %4759 = vperm.xlu0 %9130, %v4253_v34   ;;  %v5251_v3 = vpack.c.bf16 %v5064_v31, %v5063_v40  ;;  %v13041_v4 = vmul.f32 %v8755_v49, %v11209_v38  ;;  %v15897_v34 = vld [vmem:[#allocation303_spill] sm:$0xff]  ;;  %v15930_v59 = vld [vmem:[#allocation278_spill] sm:$0xff] }
 0x361   :  { %v9150_v57 = vunpack.i.h.bf16 %v15893_v25  ;;  %v8822_v45 = vunpack.i.h.bf16 %v15894_v1  ;;  %v3930_v8 = vmul.f32 %v8862_v48, %v11791_v63  ;;  %v5111_v56 = vmax.f32 %v4983_v28, 0.0  ;;  %v4261_v49 = vld [vmem:[%s14442_s2 + $0x330] sm:$0xff] }
 0x362   :  { %4884 = vperm.xlu1 %9056, %v4278_v12   ;;  %v4967_v55 = vadd.f32 %v12837_v5, %v4071_v11  ;;  %v5112_v61 = vmax.f32 %v4984_v44, 0.0  ;;  %7315 = vmatpush3.bf16.msra.mxu0 %v5251_v3  ;;  %v4072_v40 = vadd.f32 %v15897_v34, %v3300_v9  ;;  %v955_v31 = vmul.f32 %v9149_v2, %v15733_v26  ;;  %v4495_v1 = vpop.permute.xlu0 %4494  ;;  %v15898_v28 = vld [vmem:[#allocation196_spill] sm:$0xff]  ;;  %v15899_v5 = vld [vmem:[#allocation186_spill] sm:$0xff] }
 0x363   :  { %v3913_v48 = vmul.f32 %v8821_v20, %v11791_v63  ;;  %v971_v12 = vmul.f32 %v9169_v37, %v15733_v26  ;;  %v972_v25 = vmul.f32 %v9170_v47, %v15733_v26  ;;  %v8941_v50 = vunpack.i.l.bf16 %v15898_v28  ;;  %v13060_v44 = vpop.permute.xlu1 %4359  ;;  %v15900_v37 = vld [vmem:[#allocation189_spill] sm:$0xff] }
 0x364   :  { %v4057_v54 = vadd.f32 %v3929_v6, %v15899_v5  ;;  %v4968_v11 = vadd.f32 %v4495_v1, %v4072_v40  ;;  %4684 = vperm.xlu0 %9130, %v4238_v15   ;;  %v5275_v9 = vpack.c.bf16 %v5112_v61, %v5111_v56  ;;  %v956_v3 = vmul.f32 %v9150_v57, %v15733_v26  ;;  %v4286_v47 = vld [vmem:[%s14442_s2 + $0x3f8] sm:$0xff] }
 0x365   :  { %v3914_v2 = vmul.f32 %v8822_v45, %v11791_v63  ;;  %v8942_v20 = vunpack.i.h.bf16 %v15898_v28  ;;  %v4058_v34 = vadd.f32 %v3930_v8, %v15900_v37  ;;  %v5095_v42 = vmax.f32 %v4967_v55, 0.0  ;;  %v15901_v15 = vld [vmem:[#allocation9_spill] sm:$0xff]  ;;  %v15903_v61 = vld [vmem:[#allocation16_spill] sm:$0xff]  ;;  %v15905_v45 = vld [vmem:[#allocation250_spill] sm:$0xff] }
 0x366   :  { %4799 = vperm.xlu1 %9056, %v4261_v49   ;;  %v4953_v6 = vadd.f32 %v12859_v22, %v4057_v54  ;;  %v5096_v40 = vmax.f32 %v4968_v11, 0.0  ;;  %7378 = vmatprep.subr.bf16.mxu1 %v5275_v9  ;;  %v15902_v56 = vunpack.c.h.bf16 %v15901_v15  ;;  %v15904_v57 = vunpack.c.l.bf16 %v15903_v61  ;;  %v15906_v28 = vld [vmem:[#allocation260_spill] sm:$0xff]  ;;  %v4425_v38 = vpop.permute.xlu0 %4424  ;;  %v15910_v15 = vld [vmem:[#allocation185_spill] sm:$0xff] }
 0x367   :  { %v1727_v5 = vadd.f32 %v15905_v45, %v955_v31  ;;  %v1743_v49 = vadd.f32 %v15906_v28, %v971_v12  ;;  %v1744_v8 = vadd.f32 %v15907_v14, %v972_v25  ;;  %v15908_v37 = vld [vmem:[#allocation176_spill] sm:$0xff]  ;;  %v9209_v55 = vunpack.i.l.bf16 %v15909_v30  ;;  %v13080_v11 = vpop.permute.xlu1 %4599  ;;  %v15914_v45 = vld [vmem:[#allocation258_spill] sm:$0xff] }
 0x368   :  { %v9078_v1 = vpack.i.bf16 %v15904_v57, %v15902_v56  ;;  %v4041_v23 = vadd.f32 %v3913_v48, %v15908_v37  ;;  %v3961_v22 = vmul.f32 %v8941_v50, %v11791_v63  ;;  %v4954_v54 = vadd.f32 %v4425_v38, %v4058_v34  ;;  %4924 = vperm.xlu0 %9130, %v4286_v47   ;;  %v4270_v48 = vld [vmem:[%s14442_s2 + $0x378] sm:$0xff]  ;;  %v15912_v47 = vld [vmem:[#allocation251_spill] sm:$0xff]  ;;  %v15913_v57 = vld [vmem:[#allocation182_spill] sm:$0xff] }
 0x369   :  { %v5267_v9 = vpack.c.bf16 %v5096_v40, %v5095_v42  ;;  %v8902_v56 = vunpack.i.h.bf16 %v15910_v15  ;;  %v8901_v31 = vunpack.i.l.bf16 %v15910_v15  ;;  %v9210_v12 = vunpack.i.h.bf16 %v15909_v30  ;;  %v15911_v42 = vld [vmem:[#allocation178_spill] sm:$0xff] }
 0x36a   :  { %v3962_v14 = vmul.f32 %v8942_v20, %v11791_v63  ;;  %9077 = vset.pattern.permute.xlu1 %v15808_v16  ;;  %v5081_v25 = vmax.f32 %v4953_v6, 0.0  ;;  %v4937_v38 = vadd.f32 %v12880_v46, %v4041_v23  ;;  %v5082_v50 = vmax.f32 %v4954_v54, 0.0  ;;  %v4345_v37 = vpop.permute.xlu0 %4344  ;;  %v15916_v54 = vld [vmem:[#allocation323_spill] sm:$0xff] }
 0x36b   :  { %9079 = vperm.xlu1 %9077, %v9078_v1   ;;  %7379 = vmatpush3.bf16.msra.mxu1 %v5267_v9  ;;  %v4042_v34 = vadd.f32 %v3914_v2, %v15911_v42  ;;  %v1728_v40 = vadd.f32 %v15912_v47, %v956_v3  ;;  %v9190_v30 = vunpack.i.h.bf16 %v15913_v57  ;;  %v9189_v20 = vunpack.i.l.bf16 %v15913_v57  ;;  %v13098_v23 = vpop.permute.xlu1 %4519  ;;  %v4247_v3 = vld [vmem:[%s14442_s2 + $0x2c0] sm:$0xff] }
 0x36c   :  { %v2515_v28 = vadd.f32 %v15914_v45, %v1743_v49  ;;  %v1003_v15 = vmul.f32 %v9209_v55, %v15733_v26  ;;  %v4089_v6 = vadd.f32 %v3961_v22, %v15915_v17  ;;  %4844 = vperm.xlu0 %9130, %v4270_v48   ;;  %v5260_v46 = vpack.c.bf16 %v5082_v50, %v5081_v25  ;;  %v5312_v17 = vld [vmem:[%s14444_s4 + $0x8] sm:$0xff] }
 0x36d   :  { %v4938_v7 = vadd.f32 %v4345_v37, %v4042_v34  ;;  %v3945_v2 = vmul.f32 %v8901_v31, %v11791_v63  ;;  %v3946_v1 = vmul.f32 %v8902_v56, %v11791_v63  ;;  %v1004_v49 = vmul.f32 %v9210_v12, %v15733_v26  ;;  %v15917_v25 = vld [vmem:[#allocation259_spill] sm:$0xff]  ;;  %v15918_v31 = vld [vmem:[#allocation161_spill] sm:$0xff]  ;;  %v15919_v12 = vld [vmem:[#allocation336_spill] sm:$0xff] }
 0x36e   :  { %v4090_v9 = vadd.f32 %v3962_v14, %v15916_v54  ;;  %v5065_v55 = vmax.f32 %v4937_v38, 0.0  ;;  %v4985_v22 = vadd.f32 %v12900_v19, %v4089_v6  ;;  %7316 = vmatprep.subr.bf16.mxu0 %v5260_v46  ;;  %v2516_v50 = vadd.f32 %v15917_v25, %v1744_v8  ;;  %v15920_v14 = vld [vmem:[#allocation112_spill] sm:$0xff]  ;;  %v4585_v57 = vpop.permute.xlu0 %4584  ;;  %v15921_v45 = vld [vmem:[#allocation138_spill] sm:$0xff] }
 0x36f   :  { %v5066_v48 = vmax.f32 %v4938_v7, 0.0  ;;  %9083 = vset.pattern.permute.xlu1 %v15820_v13  ;;  %v8832_v42 = vunpack.i.h.bf16 %v15918_v31  ;;  %v987_v56 = vmul.f32 %v9189_v20, %v15733_v26  ;;  %v3287_v34 = vadd.f32 %v15919_v12, %v2515_v28  ;;  %v4231_v8 = vld [vmem:[%s14442_s2 + $0x240] sm:$0xff]  ;;  %v15922_v20 = vld [vmem:[#allocation280_spill] sm:$0xff] }
 0x370   :  { %v2499_v47 = vadd.f32 %v15920_v14, %v1727_v5  ;;  %4729 = vperm.xlu1 %9083, %v4247_v3   ;;  %v8831_v38 = vunpack.i.l.bf16 %v15918_v31  ;;  %v1775_v19 = vadd.f32 %v15921_v45, %v1003_v15  ;;  %v4986_v7 = vadd.f32 %v4585_v57, %v4090_v9  ;;  %5334 = vperm.xlu0 %9130, %v5312_v17   ;;  %v15923_v28 = vld [vmem:[#allocation320_spill] sm:$0xff]  ;;  %v13125_v5 = vpop.permute.xlu1 %8996  ;;  %v15924_v15 = vld [vmem:[#allocation249_spill] sm:$0xff]  ;;  %v15929_v45 = vld [vmem:[#allocation330_spill] sm:$0xff] }
 0x371   :  { %v5252_v37 = vpack.c.bf16 %v5066_v48, %v5065_v55  ;;  %v988_v6 = vmul.f32 %v9190_v30, %v15733_v26  ;;  %v1776_v46 = vadd.f32 %v15922_v20, %v1004_v49  ;;  %v4073_v54 = vadd.f32 %v3945_v2, %v15923_v28  ;;  %v5314_v3 = vld [vmem:[%s14444_s4 + $0x18] sm:$0xff] }
 0x372   :  { %v2500_v9 = vadd.f32 %v15924_v15, %v1728_v40  ;;  %v5113_v17 = vmax.f32 %v4985_v22, 0.0  ;;  %v5114_v55 = vmax.f32 %v4986_v7, 0.0  ;;  %v15925_v48 = vld [vmem:[#allocation321_spill] sm:$0xff]  ;;  %v15928_v2 = vld [vmem:[#allocation32_spill] sm:$0xff]  ;;  %v3271_v20 = vadd.f32 %v15929_v45, %v2499_v47  ;;  %v4505_v28 = vpop.permute.xlu0 %4504  ;;  %v15934_v47 = vld [vmem:[#allocation331_spill] sm:$0xff] }
 0x373   :  { %7317 = vmatpush3.bf16.msra.mxu0 %v5252_v37  ;;  %v4074_v25 = vadd.f32 %v3946_v1, %v15925_v48  ;;  %v15926_v31 = vld [vmem:[#allocation337_spill] sm:$0xff]  ;;  %v4969_v49 = vadd.f32 %v12920_v32, %v4073_v54  ;;  %v4059_v57 = vadd.f32 %v15928_v2, %v3287_v34  ;;  %v2547_v41 = vadd.f32 %v15930_v59, %v1775_v19  ;;  %v5316_v59 = vld [vmem:[%s14444_s4 + $0x28] sm:$0xff] }
 0x374   :  { %v3288_v12 = vadd.f32 %v15926_v31, %v2516_v50  ;;  %v15927_v30 = vld [vmem:[#allocation129_spill] sm:$0xff]  ;;  %4649 = vperm.xlu1 %9083, %v4231_v8   ;;  %5344 = vperm.xlu0 %9130, %v5314_v3   ;;  %v5276_v22 = vpack.c.bf16 %v5114_v55, %v5113_v17  ;;  %v15931_v7 = vunpack.c.h.bf16 %v15903_v61  ;;  %v13146_v32 = vmul.f32 %v8832_v42, %v11791_v63  ;;  %v13148_v34 = vpop.permute.xlu1 %9006  ;;  %v15935_v8 = vld [vmem:[#allocation279_spill] sm:$0xff]  ;;  %v15936_v61 = vld [vmem:[#allocation130_spill] sm:$0xff] }
 0x375   :  { %v1759_v14 = vadd.f32 %v15927_v30, %v987_v56  ;;  %v4970_v40 = vadd.f32 %v4505_v28, %v4074_v25  ;;  %v15932_v1 = vld [vmem:[#allocation13_spill] sm:$0xff]  ;;  %v13143_v56 = vmul.f32 %v8831_v38, %v11791_v63  ;;  %v3272_v19 = vadd.f32 %v15934_v47, %v2500_v9  ;;  %v15937_v38 = vld [vmem:[#allocation35_spill] sm:$0xff] }
 0x376   :  { %v15933_v37 = vunpack.c.l.bf16 %v15932_v1  ;;  %v2548_v54 = vadd.f32 %v15935_v8, %v1776_v46  ;;  %v1760_v3 = vadd.f32 %v15936_v61, %v988_v6  ;;  %v4955_v15 = vadd.f32 %v12942_v0, %v4059_v57  ;;  %7380 = vmatprep.subr.bf16.mxu1 %v5276_v22  ;;  %v15938_v42 = vld [vmem:[#allocation233_spill] sm:$0xff]  ;;  %v15939_v25 = vld [vmem:[#allocation319_spill] sm:$0xff]  ;;  %v4435_v9 = vpop.permute.xlu0 %4434 }
 0x377   :  { %v5098_v17 = vmax.f32 %v4970_v40, 0.0  ;;  %v4060_v55 = vadd.f32 %v15937_v38, %v3288_v12  ;;  %v8872_v48 = vunpack.i.h.bf16 %v15938_v42  ;;  %v9214_v31 = vunpack.i.l.bf16 %v15939_v25  ;;  %v15940_v2 = vld [vmem:[#allocation269_spill] sm:$0xff]  ;;  %v15941_v28 = vld [vmem:[#allocation19_spill] sm:$0xff] }
 0x378   :  { %v9085_v50 = vpack.i.bf16 %v15933_v37, %v15931_v7  ;;  %v5097_v30 = vmax.f32 %v4969_v49, 0.0  ;;  %v2531_v45 = vadd.f32 %v15940_v2, %v1759_v14  ;;  %9084 = vset.pattern.permute.xlu1 %v15808_v16  ;;  %v8871_v46 = vunpack.i.l.bf16 %v15938_v42  ;;  %5354 = vperm.xlu0 %9130, %v5316_v59   ;;  %v13166_v40 = vpop.permute.xlu1 %9011  ;;  %v15942_v49 = vld [vmem:[#allocation68_spill] sm:$0xff]  ;;  %v15944_v47 = vld [vmem:[#allocation33_spill] sm:$0xff] }
 0x379   :  { %v4043_v6 = vadd.f32 %v15941_v28, %v3271_v20  ;;  %v3319_v0 = vadd.f32 %v12791_v27, %v2547_v41  ;;  %v4956_v57 = vadd.f32 %v4435_v9, %v4060_v55  ;;  %v9215_v12 = vunpack.i.h.bf16 %v15939_v25  ;;  %v5318_v14 = vld [vmem:[%s14444_s4 + $0x38] sm:$0xff]  ;;  %v4280_v41 = vld [vmem:[%s14442_s2 + $0x3c8] sm:$0xff] }
 0x37a   :  { %9086 = vperm.xlu1 %9084, %v9085_v50   ;;  %v5268_v22 = vpack.c.bf16 %v5098_v17, %v5097_v30  ;;  %v4044_v7 = vadd.f32 %v15942_v49, %v3272_v19  ;;  %v3320_v1 = vadd.f32 %v12803_v29, %v2548_v54  ;;  %v5083_v37 = vmax.f32 %v4955_v15, 0.0  ;;  %v15943_v50 = vld [vmem:[#allocation270_spill] sm:$0xff]  ;;  %v15945_v17 = vld [vmem:[#allocation47_spill] sm:$0xff]  ;;  %v4355_v29 = vpop.permute.xlu0 %4354  ;;  %v15966_v15 = vld [vmem:[#allocation148_spill] sm:$0xff] }
 0x37b   :  { %v4939_v20 = vadd.f32 %v12968_v24, %v4043_v6  ;;  %v5084_v27 = vmax.f32 %v4956_v57, 0.0  ;;  %v2532_v59 = vadd.f32 %v15943_v50, %v1760_v3  ;;  %v8912_v8 = vunpack.i.h.bf16 %v15944_v47  ;;  %v15947_v24 = vld [vmem:[#allocation115_spill] sm:$0xff] }
 0x37c   :  { %v8911_v19 = vunpack.i.l.bf16 %v15944_v47  ;;  %v1007_v61 = vmul.f32 %v9214_v31, %v15733_v26  ;;  %v3303_v38 = vadd.f32 %v15945_v17, %v2531_v45  ;;  %7381 = vmatpush3.bf16.msra.mxu1 %v5268_v22  ;;  %v4091_v55 = vadd.f32 %v15947_v24, %v3319_v0  ;;  %5364 = vperm.xlu0 %9130, %v5318_v14   ;;  %v15948_v31 = vld [vmem:[#allocation25_spill] sm:$0xff]  ;;  %v5320_v9 = vld [vmem:[%s14444_s4 + $0x48] sm:$0xff] }
 0x37d   :  { %v4940_v42 = vadd.f32 %v4355_v29, %v4044_v7  ;;  %v5261_v25 = vpack.c.bf16 %v5084_v27, %v5083_v37  ;;  %v3933_v3 = vmul.f32 %v8871_v46, %v11791_v63  ;;  %v3934_v30 = vmul.f32 %v8872_v48, %v11791_v63  ;;  %v13193_v57 = vpop.permute.xlu1 %4694  ;;  %v4263_v48 = vld [vmem:[%s14442_s2 + $0x340] sm:$0xff]  ;;  %v15950_v7 = vld [vmem:[#allocation140_spill] sm:$0xff] }
 0x37e   :  { %9090 = vset.pattern.permute.xlu1 %v15820_v13  ;;  %v1008_v2 = vmul.f32 %v9215_v12, %v15733_v26  ;;  %v4092_v45 = vadd.f32 %v15948_v31, %v3320_v1  ;;  %v5067_v28 = vmax.f32 %v4939_v20, 0.0  ;;  %v4987_v6 = vadd.f32 %v12988_v58, %v4091_v55  ;;  %v15949_v46 = vld [vmem:[#allocation49_spill] sm:$0xff]  ;;  %v15951_v1 = vld [vmem:[#allocation199_spill] sm:$0xff]  ;;  %v4595_v37 = vpop.permute.xlu0 %4594  ;;  %v15952_v20 = vld [vmem:[#allocation50_spill] sm:$0xff] }
 0x37f   :  { %4894 = vperm.xlu1 %9090, %v4280_v41   ;;  %v5068_v0 = vmax.f32 %v4940_v42, 0.0  ;;  %7318 = vmatprep.subr.bf16.mxu0 %v5261_v25  ;;  %v3304_v12 = vadd.f32 %v15949_v46, %v2532_v59  ;;  %v3949_v22 = vmul.f32 %v8911_v19, %v11791_v63  ;;  %v13201_v49 = vmul.f32 %v8912_v8, %v11791_v63  ;;  %v15953_v41 = vld [vmem:[#allocation41_spill] sm:$0xff]  ;;  %v15954_v29 = vld [vmem:[#allocation282_spill] sm:$0xff]  ;;  %v15955_v8 = vld [vmem:[#allocation200_spill] sm:$0xff] }
 0x380   :  { %v13204_v14 = vadd.f32 %v15950_v7, %v1007_v61  ;;  %v8951_v58 = vunpack.i.l.bf16 %v15951_v1  ;;  %v9235_v27 = vunpack.i.h.bf16 %v15952_v20  ;;  %v4075_v50 = vadd.f32 %v15953_v41, %v3303_v38  ;;  %5374 = vperm.xlu0 %9130, %v5320_v9   ;;  %v5322_v55 = vld [vmem:[%s14444_s4 + $0x58] sm:$0xff]  ;;  %v4264_v9 = vld [vmem:[%s14442_s2 + $0x348] sm:$0xff] }
 0x381   :  { %v4988_v47 = vadd.f32 %v4595_v37, %v4092_v45  ;;  %v5253_v17 = vpack.c.bf16 %v5068_v0, %v5067_v28  ;;  %v13210_v59 = vadd.f32 %v15954_v29, %v1008_v2  ;;  %v8952_v19 = vunpack.i.h.bf16 %v15951_v1  ;;  %v13219_v31 = vpop.permute.xlu1 %4609  ;;  %v15956_v2 = vld [vmem:[#allocation42_spill] sm:$0xff]  ;;  %v15958_v1 = vld [vmem:[#allocation188_spill] sm:$0xff] }
 0x382   :  { %v8961_v24 = vunpack.i.l.bf16 %v15955_v8  ;;  %v9234_v61 = vunpack.i.l.bf16 %v15952_v20  ;;  %v5115_v42 = vmax.f32 %v4987_v6, 0.0  ;;  %v4971_v38 = vadd.f32 %v13016_v43, %v4075_v50  ;;  %v15957_v0 = vld [vmem:[#allocation322_spill] sm:$0xff]  ;;  %v4515_v7 = vpop.permute.xlu0 %4514  ;;  %v15967_v46 = vld [vmem:[#allocation224_spill] sm:$0xff] }
 0x383   :  { %4809 = vperm.xlu1 %9090, %v4263_v48   ;;  %v5116_v25 = vmax.f32 %v4988_v47, 0.0  ;;  %7319 = vmatpush3.bf16.msra.mxu0 %v5253_v17  ;;  %v4076_v45 = vadd.f32 %v15956_v2, %v3304_v12  ;;  %v3965_v28 = vmul.f32 %v8951_v58, %v11791_v63  ;;  %v8962_v6 = vunpack.i.h.bf16 %v15955_v8  ;;  %v15959_v47 = vld [vmem:[#allocation26_spill] sm:$0xff]  ;;  %v15962_v2 = vld [vmem:[#allocation181_spill] sm:$0xff] }
 0x384   :  { %v1024_v43 = vmul.f32 %v9235_v27, %v15733_v26  ;;  %v4061_v37 = vadd.f32 %v3933_v3, %v15958_v1  ;;  %5384 = vperm.xlu0 %9130, %v5322_v55   ;;  %v3966_v41 = vmul.f32 %v8952_v19, %v11791_v63  ;;  %v13233_v50 = vmul.f32 %v8961_v24, %v11791_v63  ;;  %v5324_v29 = vld [vmem:[%s14444_s4 + $0x68] sm:$0xff]  ;;  %v4249_v19 = vld [vmem:[%s14442_s2 + $0x2d0] sm:$0xff] }
 0x385   :  { %v4972_v20 = vadd.f32 %v4515_v7, %v4076_v45  ;;  %v5277_v12 = vpack.c.bf16 %v5116_v25, %v5115_v42  ;;  %v1023_v58 = vmul.f32 %v9234_v61, %v15733_v26  ;;  %v9254_v17 = vunpack.i.l.bf16 %v15959_v47  ;;  %v15960_v55 = vld [vmem:[#allocation191_spill] sm:$0xff]  ;;  %v15964_v1 = vld [vmem:[#allocation294_spill] sm:$0xff] }
 0x386   :  { %v5099_v27 = vmax.f32 %v4971_v38, 0.0  ;;  %v4957_v3 = vadd.f32 %v13038_v10, %v4061_v37  ;;  %v4062_v42 = vadd.f32 %v3934_v30, %v15960_v55  ;;  %v13246_v24 = vmul.f32 %v8962_v6, %v11791_v63  ;;  %v15961_v61 = vld [vmem:[#allocation11_spill] sm:$0xff]  ;;  %v13252_v7 = vpop.permute.xlu1 %9018  ;;  %v4445_v10 = vpop.permute.xlu0 %4444  ;;  %v15965_v30 = vld [vmem:[#allocation45_spill] sm:$0xff] }
 0x387   :  { %4814 = vperm.xlu1 %9090, %v4264_v9   ;;  %v5100_v8 = vmax.f32 %v4972_v20, 0.0  ;;  %7382 = vmatprep.subr.bf16.mxu1 %v5277_v12  ;;  %v9275_v25 = vunpack.i.h.bf16 %v15961_v61  ;;  %v4045_v45 = vadd.f32 %v13143_v56, %v15962_v2  ;;  %v15963_v9 = vld [vmem:[#allocation78_spill] sm:$0xff]  ;;  %v1796_v37 = vadd.f32 %v15964_v1, %v1024_v43 }
 0x388   :  { %v4093_v38 = vadd.f32 %v3965_v28, %v15963_v9  ;;  %v4077_v20 = vadd.f32 %v3949_v22, %v15965_v30  ;;  %v4958_v12 = vadd.f32 %v4445_v10, %v4062_v42  ;;  %5394 = vperm.xlu0 %9130, %v5324_v29   ;;  %v1795_v6 = vadd.f32 %v15966_v15, %v1023_v58  ;;  %v5326_v28 = vld [vmem:[%s14444_s4 + $0x78] sm:$0xff]  ;;  %v15968_v29 = vld [vmem:[#allocation183_spill] sm:$0xff] }
 0x389   :  { %v5269_v55 = vpack.c.bf16 %v5100_v8, %v5099_v27  ;;  %v8992_v48 = vunpack.i.h.bf16 %v15967_v46  ;;  %v9255_v54 = vunpack.i.h.bf16 %v15959_v47  ;;  %v1039_v56 = vmul.f32 %v9254_v17, %v15733_v26  ;;  %v4233_v15 = vld [vmem:[%s14442_s2 + $0x250] sm:$0xff] }
 0x38a   :  { %v5085_v2 = vmax.f32 %v4957_v3, 0.0  ;;  %v4941_v43 = vadd.f32 %v13060_v44, %v4045_v45  ;;  %v5086_v22 = vmax.f32 %v4958_v12, 0.0  ;;  %v4046_v27 = vadd.f32 %v13146_v32, %v15968_v29  ;;  %v15969_v58 = vld [vmem:[#allocation328_spill] sm:$0xff]  ;;  %v4365_v3 = vpop.permute.xlu0 %4364  ;;  %v15971_v12 = vld [vmem:[#allocation306_spill] sm:$0xff] }
 0x38b   :  { %4739 = vperm.xlu1 %9090, %v4249_v19   ;;  %7383 = vmatpush3.bf16.msra.mxu1 %v5269_v55  ;;  %v9240_v47 = vunpack.i.h.bf16 %v15969_v58  ;;  %v9274_v8 = vunpack.i.l.bf16 %v15961_v61  ;;  %v1056_v42 = vmul.f32 %v9275_v25, %v15733_v26  ;;  %v8998_v44 = vunpack.i.l.bf16 %v13125_v5  ;;  %v15970_v19 = vld [vmem:[#allocation293_spill] sm:$0xff]  ;;  %v13275_v10 = vpop.permute.xlu1 %4854  ;;  %v6156_v61 = vld [vmem:[%s14446_s6 + $0x8] sm:$0xff] }
 0x38c   :  { %v2568_v45 = vadd.f32 %v15970_v19, %v1796_v37  ;;  %v4942_v9 = vadd.f32 %v4365_v3, %v4046_v27  ;;  %5404 = vperm.xlu0 %9130, %v5326_v28   ;;  %v5262_v32 = vpack.c.bf16 %v5086_v22, %v5085_v2  ;;  %v3983_v1 = vmul.f32 %v8992_v48, %v11791_v63  ;;  %v15972_v25 = vld [vmem:[#allocation147_spill] sm:$0xff]  ;;  %v15973_v28 = vld [vmem:[#allocation324_spill] sm:$0xff] }
 0x38d   :  { %v1040_v30 = vmul.f32 %v9255_v54, %v15733_v26  ;;  %v1811_v55 = vadd.f32 %v15971_v12, %v1039_v56  ;;  %v2567_v29 = vadd.f32 %v15972_v25, %v1795_v6  ;;  %v5069_v17 = vmax.f32 %v4941_v43, 0.0  ;;  %v4234_v54 = vld [vmem:[%s14442_s2 + $0x258] sm:$0xff] }
 0x38e   :  { %v4989_v37 = vadd.f32 %v13080_v11, %v4093_v38  ;;  %v5070_v27 = vmax.f32 %v4942_v9, 0.0  ;;  %7320 = vmatprep.subr.bf16.mxu0 %v5262_v32  ;;  %v4094_v2 = vadd.f32 %v3966_v41, %v15973_v28  ;;  %v1055_v48 = vmul.f32 %v9274_v8, %v15733_v26  ;;  %v15974_v56 = vld [vmem:[#allocation312_spill] sm:$0xff]  ;;  %v4605_v19 = vpop.permute.xlu0 %4604  ;;  %v15976_v6 = vld [vmem:[#allocation281_spill] sm:$0xff]  ;;  %v15979_v28 = vld [vmem:[#allocation198_spill] sm:$0xff] }
 0x38f   :  { %4659 = vperm.xlu1 %9090, %v4233_v15   ;;  %v1828_v22 = vadd.f32 %v15974_v56, %v1056_v42  ;;  %v15975_v15 = vld [vmem:[#allocation139_spill] sm:$0xff]  ;;  %v2552_v43 = vadd.f32 %v15976_v6, %v13210_v59  ;;  %v13298_v11 = vld [vmem:[%s14443_s3 + $0x40] sm:$0xff]  ;;  %v3984_v38 = vmul.f32 %v8998_v44, %v11791_v63  ;;  %v3340_v8 = vadd.f32 %v13005_v39, %v2568_v45  ;;  %v15977_v59 = vld [vmem:[#allocation160_spill] sm:$0xff] }
 0x390   :  { %v2551_v3 = vadd.f32 %v15975_v15, %v13204_v14  ;;  %v13303_v41 = vld [vmem:[%s14443_s3 + $0x60] sm:$0xff]  ;;  %v4990_v42 = vadd.f32 %v4605_v19, %v4094_v2  ;;  %v13307_v14 = vpop.permute.xlu1 %4769  ;;  %6178 = vperm.xlu0 %9130, %v6156_v61   ;;  %v5254_v9 = vpack.c.bf16 %v5070_v27, %v5069_v17  ;;  %v1812_v32 = vadd.f32 %v15977_v59, %v1040_v30  ;;  %v6158_v15 = vld [vmem:[%s14446_s6 + $0x18] sm:$0xff]  ;;  %v4281_v17 = vld [vmem:[%s14442_s2 + $0x3d0] sm:$0xff] }
 0x391   :  { %v15978_v12 = vld [vmem:[#allocation305_spill] sm:$0xff]  ;;  %v4078_v56 = vadd.f32 %v13201_v49, %v15979_v28  ;;  %v3339_v44 = vadd.f32 %v12991_v52, %v2567_v29  ;;  %v5117_v39 = vmax.f32 %v4989_v37, 0.0  ;;  %v4973_v45 = vadd.f32 %v13098_v23, %v4077_v20  ;;  %v15981_v27 = vld [vmem:[#allocation311_spill] sm:$0xff] }
 0x392   :  { %v2583_v25 = vadd.f32 %v15978_v12, %v1811_v55  ;;  %v5118_v2 = vmax.f32 %v4990_v42, 0.0  ;;  %7321 = vmatpush3.bf16.msra.mxu0 %v5254_v9  ;;  %v6877_v30 = vcombine.high %v13298_v11, %v13303_v41  ;;  %v15980_v55 = vld [vmem:[#allocation168_spill] sm:$0xff]  ;;  %v3323_v61 = vadd.f32 %v12807_v60, %v2551_v3  ;;  %v4525_v19 = vpop.permute.xlu0 %4524  ;;  %v15982_v9 = vld [vmem:[#allocation155_spill] sm:$0xff] }
 0x393   :  { %4664 = vperm.xlu1 %9090, %v4234_v54   ;;  %v1827_v49 = vadd.f32 %v15980_v55, %v1055_v48  ;;  %v2600_v54 = vadd.f32 %v15981_v27, %v1828_v22  ;;  %v3324_v52 = vadd.f32 %v12827_v33, %v2552_v43  ;;  %v9008_v23 = vunpack.i.l.bf16 %v13148_v34  ;;  %v6160_v3 = vld [vmem:[%s14446_s6 + $0x28] sm:$0xff] }
 0x394   :  { %v4112_v20 = vadd.f32 %v3984_v38, %v3340_v8  ;;  %v4974_v29 = vadd.f32 %v4525_v19, %v4078_v56  ;;  %v13328_v37 = vpop.permute.xlu1 %4774  ;;  %6188 = vperm.xlu0 %9130, %v6158_v15   ;;  %v5278_v6 = vpack.c.bf16 %v5118_v2, %v5117_v39  ;;  %v13331_v42 = vmul.f32 %v9240_v47, %v15733_v26  ;;  %v6162_v39 = vld [vmem:[%s14446_s6 + $0x38] sm:$0xff] }
 0x395   :  { %v8999_v48 = vunpack.i.h.bf16 %v13125_v5  ;;  %v2584_v60 = vadd.f32 %v15982_v9, %v1812_v32  ;;  %v15983_v22 = vcombine.low %v12612_v53, %v12617_v36  ;;  %v4111_v33 = vadd.f32 %v3983_v1, %v3339_v44  ;;  %v4282_v5 = vld [vmem:[%s14442_s2 + $0x3d8] sm:$0xff]  ;;  %v15984_v32 = vld [vmem:[#allocation310_spill] sm:$0xff] }
 0x396   :  { %v5101_v43 = vmax.f32 %v4973_v45, 0.0  ;;  %v5008_v38 = vadd.f32 %v13193_v57, %v4112_v20  ;;  %v3355_v47 = vadd.f32 %v13008_v51, %v2583_v25  ;;  %v5102_v8 = vmax.f32 %v4974_v29, 0.0  ;;  %7384 = vmatprep.subr.bf16.mxu1 %v5278_v6  ;;  %v4690_v1 = vpop.permute.xlu0 %4689  ;;  %v13353_v51 = vld [vmem:[%s14443_s3 + $0x80] sm:$0xff]  ;;  %v15986_v19 = vld [vmem:[#allocation124_spill] sm:$0xff]  ;;  %v6164_v9 = vld [vmem:[%s14446_s6 + $0x48] sm:$0xff] }
 0x397   :  { %4899 = vperm.xlu1 %9090, %v4281_v17   ;;  %5760 = vmatmul.mubr.bf16.vlgmr.msra.gmra.mrb[0].mxu0 %v15983_v22  ;;  %v4095_v53 = vadd.f32 %v12630_v21, %v3323_v61  ;;  %v3372_v36 = vadd.f32 %v13041_v4, %v2600_v54  ;;  %v4096_v59 = vadd.f32 %v12642_v35, %v3324_v52  ;;  %v9009_v57 = vunpack.i.h.bf16 %v13148_v34  ;;  %v13362_v35 = vld [vmem:[%s14443_s3 + $0xa0] sm:$0xff]  ;;  %v13367_v4 = vld [vmem:[%s14443_s3 + $0x48] sm:$0xff] }
 0x398   :  { %5767 = vmatprep.mubr.bf16.mxu0 %v6877_v30  ;;  %v2599_v12 = vadd.f32 %v15984_v32, %v1827_v49  ;;  %v4000_v25 = vmul.f32 %v9008_v23, %v11791_v63  ;;  %v5007_v28 = vadd.f32 %v4690_v1, %v4111_v33  ;;  %v13357_v56 = vpop.permute.xlu1 %4699  ;;  %6198 = vperm.xlu0 %9130, %v6160_v3   ;;  %v13372_v34 = vld [vmem:[%s14443_s3 + $0x68] sm:$0xff]  ;;  %v9013_v15 = vunpack.i.l.bf16 %v13166_v40  ;;  %v15985_v61 = vld [vmem:[#allocation133_spill] sm:$0xff]  ;;  %v15994_v32 = vld [vmem:[#allocation216_spill] sm:$0xff] }
 0x399   :  { %v5270_v21 = vpack.c.bf16 %v5102_v8, %v5101_v43  ;;  %v3356_v44 = vadd.f32 %v13011_v62, %v2584_v60  ;;  %v6876_v45 = vcombine.low %v13298_v11, %v13303_v41  ;;  %v4015_v2 = vmul.f32 %v8999_v48, %v11791_v63  ;;  %v4265_v62 = vld [vmem:[%s14442_s2 + $0x350] sm:$0xff]  ;;  %v15987_v60 = vld [vmem:[#allocation10_spill] sm:$0xff] }
 0x39a   :  { %v5136_v17 = vmax.f32 %v5008_v38, 0.0  ;;  %v4991_v30 = vadd.f32 %v13219_v31, %v4095_v53  ;;  %v4127_v55 = vadd.f32 %v12843_v18, %v3355_v47  ;;  %v5135_v49 = vmax.f32 %v5007_v28, 0.0  ;;  %v4615_v54 = vpop.permute.xlu0 %4614  ;;  %v15989_v33 = vld [vmem:[#allocation6_spill] sm:$0xff]  ;;  %v15991_v53 = vld [vmem:[#allocation172_spill] sm:$0xff] }
 0x39b   :  { %4904 = vperm.xlu1 %9090, %v4282_v5   ;;  %7385 = vmatpush3.bf16.msra.mxu1 %v5270_v21  ;;  %v4144_v27 = vadd.f32 %v15985_v61, %v3372_v36  ;;  %v3371_v52 = vadd.f32 %v15986_v19, %v2599_v12  ;;  %v6885_v11 = vcombine.high %v13353_v51, %v13362_v35  ;;  %v9014_v6 = vunpack.i.h.bf16 %v13166_v40  ;;  %v15992_v36 = vld [vmem:[#allocation141_spill] sm:$0xff]  ;;  %v15996_v21 = vld [vmem:[#allocation326_spill] sm:$0xff] }
 0x39c   :  { %v6879_v41 = vcombine.high %v13367_v4, %v13372_v34  ;;  %v3985_v31 = vmul.f32 %v9009_v57, %v11791_v63  ;;  %v4128_v18 = vadd.f32 %v4000_v25, %v3356_v44  ;;  %v4992_v23 = vadd.f32 %v4615_v54, %v4096_v59  ;;  %v4620_v20 = vpop.permute.xlu1 %4619  ;;  %6208 = vperm.xlu0 %9130, %v6162_v39   ;;  %v15995_v25 = vld [vmem:[#allocation325_spill] sm:$0xff] }
 0x39d   :  { %v5287_v29 = vpack.c.bf16 %v5136_v17, %v5135_v49  ;;  %v4143_v48 = vadd.f32 %v4015_v2, %v3371_v52  ;;  %v15988_v22 = vunpack.c.h.bf16 %v15987_v60  ;;  %v15990_v3 = vunpack.c.h.bf16 %v15989_v33  ;;  %v15997_v17 = vld [vmem:[#allocation327_spill] sm:$0xff]  ;;  %v13434_v61 = vld [vmem:[%s14443_s3 + $0xe0] sm:$0xff]  ;;  %v16000_v60 = vld [vmem:[#allocation52_spill] sm:$0xff] }
 0x39e   :  { %v3986_v38 = vmul.f32 %v9013_v15, %v11791_v63  ;;  %v5119_v47 = vmax.f32 %v4991_v30, 0.0  ;;  %v5040_v8 = vadd.f32 %v13275_v10, %v4144_v27  ;;  %v5024_v5 = vadd.f32 %v13328_v37, %v4128_v18  ;;  %v4850_v57 = vpop.permute.xlu0 %4849  ;;  %v6166_v30 = vld [vmem:[%s14446_s6 + $0x58] sm:$0xff]  ;;  %v16001_v33 = vld [vmem:[#allocation298_spill] sm:$0xff] }
 0x39f   :  { %4819 = vperm.xlu1 %9090, %v4265_v62   ;;  %5768 = vmatmul.mubr.bf16.gmra.mrb[4].mxu0 %v6876_v45  ;;  %v9112_v43 = vpack.i.bf16 %v15990_v3, %v15988_v22  ;;  %v5120_v40 = vmax.f32 %v4992_v23, 0.0  ;;  %v15993_v1 = vcombine.low %v15991_v53, %v15992_v36  ;;  %v9020_v59 = vunpack.i.l.bf16 %v13252_v7  ;;  %v16002_v53 = vld [vmem:[#allocation84_spill] sm:$0xff] }
 0x3a0   :  { %7434 = vmatprep.subr.bf16.mxu0 %v5287_v29  ;;  %v4097_v12 = vadd.f32 %v13233_v50, %v15994_v32  ;;  %v4098_v28 = vadd.f32 %v13246_v24, %v15995_v25  ;;  %5775 = vmatprep.mubr.bf16.mxu0 %v6885_v11  ;;  %v6884_v10 = vcombine.low %v13353_v51, %v13362_v35  ;;  %v4625_v45 = vpop.permute.xlu1 %4624  ;;  %v13428_v51 = vld [vmem:[%s14443_s3 + $0xc0] sm:$0xff]  ;;  %v5168_v35 = vmax.f32 %v5040_v8, 0.0 }
 0x3a1   :  { %5857 = vmatmul.mubr.bf16.vlgmr.msra.gmra.mrb[0].mxu1 %v15993_v1  ;;  %v5023_v37 = vadd.f32 %v13307_v14, %v4127_v55  ;;  %v4113_v15 = vadd.f32 %v3985_v31, %v15996_v21  ;;  %v5279_v44 = vpack.c.bf16 %v5120_v40, %v5119_v47  ;;  %v5039_v39 = vadd.f32 %v4850_v57, %v4143_v48  ;;  %v4251_v48 = vld [vmem:[%s14442_s2 + $0x2e0] sm:$0xff] }
 0x3a2   :  { %5864 = vmatprep.mubr.bf16.mxu1 %v6879_v41  ;;  %6218 = vperm.xlu0 %9130, %v6164_v9   ;;  %v4017_v2 = vmul.f32 %v9014_v6, %v11791_v63  ;;  %v4994_v50 = vadd.f32 %v4625_v45, %v4098_v28  ;;  %v4114_v24 = vadd.f32 %v3986_v38, %v15997_v17  ;;  %v5152_v55 = vmax.f32 %v5024_v5, 0.0  ;;  %v4705_v11 = vpop.permute.xlu0 %4704  ;;  %v13473_v1 = vld [vmem:[%s14443_s3 + $0x100] sm:$0xff] }
 0x3a3   :  { %9111 = vset.pattern.permute.xlu1 %v15808_v16  ;;  %v6878_v14 = vcombine.low %v13367_v4, %v13372_v34  ;;  %v5009_v49 = vadd.f32 %v13357_v56, %v4113_v15  ;;  %v5167_v62 = vmax.f32 %v5039_v39, 0.0  ;;  %7435 = vmatpush3.bf16.msra.mxu0 %v5279_v44  ;;  %v13439_v4 = vld [vmem:[%s14443_s3 + $0x88] sm:$0xff]  ;;  %v15998_v56 = vunpack.i.h.bf16 %v15957_v0  ;;  %v16005_v25 = vld [vmem:[#allocation297_spill] sm:$0xff] }
 0x3a4   :  { %9113 = vperm.xlu1 %9111, %v9112_v43   ;;  %v13444_v34 = vld [vmem:[%s14443_s3 + $0xa8] sm:$0xff]  ;;  %v9021_v54 = vunpack.i.h.bf16 %v13252_v7  ;;  %v4018_v19 = vmul.f32 %v9020_v59, %v11791_v63  ;;  %v4993_v52 = vadd.f32 %v4620_v20, %v4097_v12  ;;  %v15999_v41 = vunpack.i.l.bf16 %v15969_v58  ;;  %v4860_v6 = vpop.permute.xlu1 %4859  ;;  %v16003_v59 = vld [vmem:[#allocation96_spill] sm:$0xff]  ;;  %v4235_v15 = vld [vmem:[%s14442_s2 + $0x260] sm:$0xff] }
 0x3a5   :  { %v1012_v27 = vmul.f32 %v15998_v56, %v15733_v26  ;;  %v5151_v18 = vmax.f32 %v5023_v37, 0.0  ;;  %v5303_v23 = vpack.c.bf16 %v5168_v35, %v5167_v62  ;;  %v5010_v29 = vadd.f32 %v4705_v11, %v4114_v24  ;;  %v6168_v20 = vld [vmem:[%s14446_s6 + $0x68] sm:$0xff]  ;;  %v16007_v24 = vld [vmem:[#allocation296_spill] sm:$0xff] }
 0x3a6   :  { %v1027_v31 = vmul.f32 %v15999_v41, %v15733_v26  ;;  %6228 = vperm.xlu0 %9130, %v6166_v30   ;;  %v5122_v9 = vmax.f32 %v4994_v50, 0.0  ;;  %v4145_v7 = vadd.f32 %v4017_v2, %v16000_v60  ;;  %v6893_v58 = vcombine.high %v13428_v51, %v13434_v61  ;;  %v4785_v37 = vpop.permute.xlu0 %4784  ;;  %v16006_v50 = vld [vmem:[#allocation286_spill] sm:$0xff]  ;;  %v16012_v11 = vld [vmem:[#allocation48_spill] sm:$0xff] }
 0x3a7   :  { %5776 = vmatmul.mubr.bf16.gmra.mrb[8].mxu0 %v6884_v10  ;;  %v6887_v22 = vcombine.high %v13439_v4, %v13444_v34  ;;  %v1800_v3 = vadd.f32 %v16001_v33, %v13331_v42  ;;  %v5295_v43 = vpack.c.bf16 %v5152_v55, %v5151_v18  ;;  %v5137_v38 = vmax.f32 %v5009_v49, 0.0  ;;  %7498 = vmatprep.subr.bf16.mxu1 %v5303_v23  ;;  %v13478_v42 = vld [vmem:[%s14443_s3 + $0x120] sm:$0xff]  ;;  %v13503_v55 = vld [vmem:[%s14443_s3 + $0xc8] sm:$0xff] }
 0x3a8   :  { %v5138_v47 = vmax.f32 %v5010_v29, 0.0  ;;  %9117 = vset.pattern.permute.xlu1 %v15820_v13  ;;  %v4001_v8 = vmul.f32 %v9021_v54, %v11791_v63  ;;  %v5121_v5 = vmax.f32 %v4993_v52, 0.0  ;;  %v5041_v40 = vadd.f32 %v4860_v6, %v4145_v7  ;;  %v4865_v21 = vpop.permute.xlu1 %4864  ;;  %5783 = vmatprep.mubr.bf16.mxu0 %v6893_v58  ;;  %v16008_v62 = vld [vmem:[#allocation142_spill] sm:$0xff]  ;;  %v16014_v7 = vld [vmem:[#allocation237_spill] sm:$0xff] }
 0x3a9   :  { %5865 = vmatmul.mubr.bf16.gmra.mrb[4].mxu1 %v6878_v14  ;;  %4749 = vperm.xlu1 %9117, %v4251_v48   ;;  %v4146_v36 = vadd.f32 %v4018_v19, %v16002_v53  ;;  %v8685_v32 = vunpack.i.h.bf16 %v16003_v59  ;;  %v16004_v12 = vunpack.i.l.bf16 %v15957_v0  ;;  %v1799_v28 = vadd.f32 %v16005_v25, %v1027_v31  ;;  %v6170_v0 = vld [vmem:[%s14446_s6 + $0x78] sm:$0xff]  ;;  %v6437_v29 = vld [vmem:[%s14448_s8 + $0x8] sm:$0xff]  ;;  %v7205_v60 = vld [vmem:[%s14449_s9] sm:$0xff]  }
 0x3aa   :  { %v5288_v10 = vpack.c.bf16 %v5138_v47, %v5137_v38  ;;  %7499 = vmatpush3.bf16.msra.mxu1 %v5295_v43  ;;  %6238 = vperm.xlu0 %9130, %v6168_v20   ;;  %v8684_v44 = vunpack.i.l.bf16 %v16003_v59  ;;  %v5280_v39 = vpack.c.bf16 %v5122_v9, %v5121_v5  ;;  %v6892_v2 = vcombine.low %v13428_v51, %v13434_v61  ;;  %v13508_v51 = vld [vmem:[%s14443_s3 + $0xe8] sm:$0xff]  ;;  %v16011_v19 = vld [vmem:[#allocation285_spill] sm:$0xff]  ;;  %v16017_v5 = vld [vmem:[#allocation284_spill] sm:$0xff] }
 0x3ab   :  { %v1011_v57 = vmul.f32 %v16004_v12, %v15733_v26  ;;  %v5042_v45 = vadd.f32 %v4865_v21, %v4146_v36  ;;  %5872 = vmatprep.mubr.bf16.mxu1 %v6887_v22  ;;  %v1784_v17 = vadd.f32 %v16006_v50, %v1012_v27  ;;  %v2572_v30 = vadd.f32 %v16007_v24, %v1800_v3  ;;  %v16010_v27 = vld [vmem:[#allocation108_spill] sm:$0xff]  ;;  %v16013_v48 = vld [vmem:[#allocation295_spill] sm:$0xff]  ;;  %v16016_v22 = vld [vmem:[#allocation86_spill] sm:$0xff] }
 0x3ac   :  { %7436 = vmatprep.subr.bf16.mxu0 %v5288_v10  ;;  %v6886_v14 = vcombine.low %v13439_v4, %v13444_v34  ;;  %v6901_v35 = vcombine.high %v13473_v1, %v13478_v42  ;;  %v5169_v49 = vmax.f32 %v5041_v40, 0.0  ;;  %v5026_v61 = vadd.f32 %v4785_v37, %v16008_v62  ;;  %v16009_v4 = vld [vmem:[#allocation227_spill] sm:$0xff]  ;;  %v4780_v31 = vpop.permute.xlu1 %4779  ;;  %v13535_v53 = vld [vmem:[%s14443_s3 + $0x140] sm:$0xff] }
 0x3ad   :  { %v5170_v56 = vmax.f32 %v5042_v45, 0.0  ;;  %4669 = vperm.xlu1 %9117, %v4235_v15   ;;  %7437 = vmatpush3.bf16.msra.mxu0 %v5280_v39  ;;  %v4129_v34 = vadd.f32 %v4001_v8, %v16009_v4  ;;  %v3216_v54 = vmul.f32 %v8685_v32, %v16010_v27  ;;  %v1783_v52 = vadd.f32 %v16011_v19, %v1011_v57  ;;  %v13540_v36 = vld [vmem:[%s14443_s3 + $0x160] sm:$0xff]  ;;  %v4715_v32 = vpop.permute.xlu0 %4714  ;;  %v16019_v25 = vld [vmem:[#allocation283_spill] sm:$0xff] }
 0x3ae   :  { %v9279_v41 = vunpack.i.l.bf16 %v16012_v11  ;;  %6248 = vperm.xlu0 %9130, %v6170_v0   ;;  %v6895_v6 = vcombine.high %v13503_v55, %v13508_v51  ;;  %v2571_v9 = vadd.f32 %v16013_v48, %v1799_v28  ;;  %v16015_v20 = vunpack.i.h.bf16 %v16014_v7  ;;  %v16018_v12 = vld [vmem:[#allocation17_spill] sm:$0xff]  ;;  %v13548_v10 = vld [vmem:[%s14443_s3 + $0x108] sm:$0xff]  ;;  %v16029_v48 = vld [vmem:[#allocation128_spill] sm:$0xff] }
 0x3af   :  { %v5025_v18 = vadd.f32 %v4780_v31, %v4129_v34  ;;  %5784 = vmatmul.mubr.bf16.gmra.mrb[12].mxu0 %v6892_v2  ;;  %v5304_v23 = vpack.c.bf16 %v5170_v56, %v5169_v49  ;;  %v9027_v33 = vunpack.i.h.bf16 %v16016_v22  ;;  %v3215_v3 = vmul.f32 %v8684_v44, %v16010_v27  ;;  %v13553_v37 = vld [vmem:[%s14443_s3 + $0x128] sm:$0xff]  ;;  %v6439_v0 = vld [vmem:[%s14448_s8 + $0x18] sm:$0xff] }
 0x3b0   :  { %v3200_v58 = vmul.f32 %v16015_v20, %v16010_v27  ;;  %v9280_v43 = vunpack.i.h.bf16 %v16012_v11  ;;  %5791 = vmatprep.mubr.bf16.mxu0 %v6901_v35  ;;  %v5154_v38 = vmax.f32 %v5026_v61, 0.0  ;;  %v3344_v47 = vadd.f32 %v3216_v54, %v2572_v30  ;;  %v16020_v21 = vld [vmem:[#allocation90_spill] sm:$0xff]  ;;  %v16022_v49 = vld [vmem:[#allocation31_spill] sm:$0xff]  ;;  %v16024_v34 = vld [vmem:[#allocation317_spill] sm:$0xff] }
 0x3b1   :  { %5873 = vmatmul.mubr.bf16.gmra.mrb[8].mxu1 %v6886_v14  ;;  %v5153_v8 = vmax.f32 %v5025_v18, 0.0  ;;  %9118 = vset.pattern.permute.xlu1 %v15808_v16  ;;  %v2556_v40 = vadd.f32 %v16017_v5, %v1784_v17  ;;  %v1059_v59 = vmul.f32 %v9279_v41, %v15733_v26  ;;  %v7206_v16 = vunpack.c.l.bf16 %v7205_v60  ;;  %v13558_v45 = vpop.permute.xlu1 %9045  ;;  %v4284_v30 = vld [vmem:[%s14442_s2 + $0x3e8] sm:$0xff]  ;;  %v16027_v31 = vld [vmem:[#allocation61_spill] sm:$0xff] }
 0x3b2   :  { %7500 = vmatprep.subr.bf16.mxu1 %v5304_v23  ;;  %9120 = vperm.xlu1 %9118, %v16018_v12   ;;  %v7207_v57 = vunpack.c.h.bf16 %v7205_v60  ;;  %v2555_v28 = vadd.f32 %v16019_v25, %v1783_v52  ;;  %v16021_v15 = vunpack.i.l.bf16 %v16020_v21  ;;  %v6900_v2 = vcombine.low %v13473_v1, %v13478_v42  ;;  %v16023_v42 = vld [vmem:[#allocation55_spill] sm:$0xff]  ;;  %v16031_v5 = vld [vmem:[#allocation313_spill] sm:$0xff] }
 0x3b3   :  { %6459 = vperm.xlu0 %9130, %v6437_v29   ;;  %v5296_v39 = vpack.c.bf16 %v5154_v38, %v5153_v8  ;;  %5880 = vmatprep.mubr.bf16.mxu1 %v6895_v6  ;;  %v3343_v50 = vadd.f32 %v3215_v3, %v2571_v9  ;;  %v3987_v17 = vmul.f32 %v9027_v33, %v11791_v63  ;;  %v9259_v62 = vunpack.i.l.bf16 %v16022_v49  ;;  %v16026_v52 = vld [vmem:[#allocation207_spill] sm:$0xff]  ;;  %v4267_v33 = vld [vmem:[%s14442_s2 + $0x360] sm:$0xff] }
 0x3b4   :  { %v3988_v44 = vmul.f32 %v16021_v15, %v11791_v63  ;;  %v1060_v24 = vmul.f32 %v9280_v43, %v15733_v26  ;;  %v6894_v14 = vcombine.low %v13503_v55, %v13508_v51  ;;  %v6909_v35 = vcombine.high %v13535_v53, %v13540_v36  ;;  %v16025_v55 = vld [vmem:[#allocation53_spill] sm:$0xff]  ;;  %v7300_v6 = vld [vmem:[%s14449_s9 + $0x10] sm:$0xff]   ;;  %v13612_v25 = vld [vmem:[%s14443_s3 + $0x148] sm:$0xff] }
 0x3b5   :  { %v3328_v56 = vadd.f32 %v3200_v58, %v2556_v40  ;;  %7501 = vmatpush3.bf16.msra.mxu1 %v5296_v39  ;;  %v6903_v1 = vcombine.high %v13548_v10, %v13553_v37  ;;  %v8328_v4 = vunpack.i.h.bf16 %v16023_v42  ;;  %v1831_v54 = vadd.f32 %v16024_v34, %v1059_v59  ;;  %v16030_v7 = vld [vmem:[#allocation171_spill] sm:$0xff]  ;;  %v4635_v58 = vpop.permute.xlu0 %4634  ;;  %v13600_v8 = vld [vmem:[%s14443_s3 + $0x180] sm:$0xff] }
 0x3b6   :  { %v4116_v61 = vadd.f32 %v3988_v44, %v3344_v47  ;;  %9124 = vset.pattern.permute.xlu1 %v15820_v13  ;;  %v9291_v19 = vpack.i.bf16 %v7207_v57, %v7206_v16  ;;  %v3327_v51 = vadd.f32 %v16025_v55, %v2555_v28  ;;  %v8690_v11 = vunpack.i.h.bf16 %v16026_v52  ;;  %v16032_v59 = vld [vmem:[#allocation177_spill] sm:$0xff]  ;;  %v13617_v28 = vld [vmem:[%s14443_s3 + $0x168] sm:$0xff] }
 0x3b7   :  { %6469 = vperm.xlu0 %9130, %v6439_v0   ;;  %v16028_v18 = vunpack.i.h.bf16 %v16027_v31  ;;  %4914 = vperm.xlu1 %9124, %v4284_v30   ;;  %v4115_v29 = vadd.f32 %v3987_v17, %v3343_v50  ;;  %v9032_v13 = vunpack.i.h.bf16 %v16020_v21  ;;  %v8764_v9 = vunpack.i.l.bf16 %v16029_v48  ;;  %v4710_v22 = vpop.permute.xlu1 %4709  ;;  %v13607_v57 = vld [vmem:[%s14443_s3 + $0x1a0] sm:$0xff]  ;;  %v6441_v39 = vld [vmem:[%s14448_s8 + $0x28] sm:$0xff] }
 0x3b8   :  { %v5012_v41 = vadd.f32 %v4715_v32, %v4116_v61  ;;  %5792 = vmatmul.mubr.bf16.gmra.mrb[16].mxu0 %v6900_v2  ;;  %v9260_v60 = vunpack.i.h.bf16 %v16022_v49  ;;  %v1832_v20 = vadd.f32 %v16030_v7, %v1060_v24  ;;  %v8765_v3 = vunpack.i.h.bf16 %v16029_v48  ;;  %v4268_v24 = vld [vmem:[%s14442_s2 + $0x368] sm:$0xff] }
 0x3b9   :  { %v3972_v23 = vmul.f32 %v16028_v18, %v11791_v63  ;;  %5881 = vmatmul.mubr.bf16.gmra.mrb[12].mxu1 %v6894_v14  ;;  %5799 = vmatprep.mubr.bf16.mxu0 %v6909_v35  ;;  %v1043_v43 = vmul.f32 %v9259_v62, %v15733_v26  ;;  %v5011_v47 = vadd.f32 %v4710_v22, %v4115_v29  ;;  %v7214_v12 = vunpack.c.l.bf16 %v7300_v6  ;;  %v16033_v14 = vld [vmem:[#allocation316_spill] sm:$0xff]  ;;  %v16036_v55 = vld [vmem:[#allocation163_spill] sm:$0xff] }
 0x3ba   :  { %5888 = vmatprep.mubr.bf16.mxu1 %v6903_v1  ;;  %v2603_v40 = vadd.f32 %v16031_v5, %v1831_v54  ;;  %v4099_v32 = vadd.f32 %v16032_v59, %v3327_v51  ;;  %v7215_v16 = vunpack.c.h.bf16 %v7300_v6  ;;  %v5140_v21 = vmax.f32 %v5012_v41, 0.0  ;;  %v16035_v1 = vld [vmem:[#allocation243_spill] sm:$0xff]  ;;  %v16038_v6 = vld [vmem:[#allocation309_spill] sm:$0xff] }
 0x3bb   :  { %v4100_v38 = vadd.f32 %v3972_v23, %v3328_v56  ;;  %9292 = vperm.xlu0 %9130, %v9291_v19   ;;  %v5139_v44 = vmax.f32 %v5011_v47, 0.0  ;;  %4829 = vperm.xlu1 %9124, %v4267_v33   ;;  %v6908_v0 = vcombine.low %v13535_v53, %v13540_v36  ;;  %v3247_v2 = vmul.f32 %v8764_v9, %v16010_v27  ;;  %v4630_v17 = vpop.permute.xlu1 %4629  ;;  %v16034_v36 = vld [vmem:[#allocation59_spill] sm:$0xff]  ;;  %v16037_v23 = vld [vmem:[#allocation113_spill] sm:$0xff]  ;;  %v4870_v47 = vpop.permute.xlu0 %4869 }
 0x3bc   :  { %v1044_v50 = vmul.f32 %v9260_v60, %v15733_v26  ;;  %v6902_v30 = vcombine.low %v13548_v10, %v13553_v37  ;;  %v2604_v35 = vadd.f32 %v16033_v14, %v1832_v20  ;;  %v4995_v49 = vadd.f32 %v4630_v17, %v4099_v32  ;;  %v4254_v9 = vld [vmem:[%s14442_s2 + $0x2f8] sm:$0xff]  ;;  %v13661_v33 = vld [vmem:[%s14443_s3 + $0x1e0] sm:$0xff]  ;;  %v13670_v5 = vld [vmem:[%s14443_s3 + $0x188] sm:$0xff] }
 0x3bd   :  { %v4996_v15 = vadd.f32 %v4635_v58, %v4100_v38  ;;  %v5289_v62 = vpack.c.bf16 %v5140_v21, %v5139_v44  ;;  %v6917_v61 = vcombine.high %v13600_v8, %v13607_v57  ;;  %v6911_v53 = vcombine.high %v13612_v25, %v13617_v28  ;;  %v16040_v21 = vld [vmem:[#allocation307_spill] sm:$0xff]  ;;  %v7302_v44 = vld [vmem:[%s14449_s9 + $0x20] sm:$0xff]  }
 0x3be   :  { %v8368_v56 = vunpack.i.h.bf16 %v16034_v36  ;;  %v9036_v34 = vunpack.i.l.bf16 %v16035_v1  ;;  %v3248_v54 = vmul.f32 %v8765_v3, %v16010_v27  ;;  %v9301_v19 = vpack.i.bf16 %v7215_v16, %v7214_v12  ;;  %v16039_v3 = vld [vmem:[#allocation230_spill] sm:$0xff] }
 0x3bf   :  { %6479 = vperm.xlu0 %9130, %v6441_v39   ;;  %v1815_v10 = vadd.f32 %v16036_v55, %v1043_v43  ;;  %v5124_v37 = vmax.f32 %v4996_v15, 0.0  ;;  %v3375_v51 = vadd.f32 %v3247_v2, %v2603_v40  ;;  %v5123_v41 = vmax.f32 %v4995_v49, 0.0  ;;  %4834 = vperm.xlu1 %9124, %v4268_v24   ;;  %v13675_v40 = vld [vmem:[%s14443_s3 + $0x1a8] sm:$0xff]  ;;  %v6444_v12 = vld [vmem:[%s14448_s8 + $0x40] sm:$0xff] }
 0x3c0   :  { %5800 = vmatmul.mubr.bf16.gmra.mrb[20].mxu0 %v6908_v0  ;;  %v8327_v31 = vunpack.i.l.bf16 %v16023_v42  ;;  %v13642_v18 = vmul.f32 %v8690_v11, %v16010_v27  ;;  %v8724_v29 = vunpack.i.l.bf16 %v16037_v23  ;;  %v1816_v48 = vadd.f32 %v16038_v6, %v1044_v50  ;;  %7438 = vmatprep.subr.bf16.mxu0 %v5289_v62  ;;  %v13651_v58 = vpop.permute.xlu1 %9052  ;;  %v13656_v11 = vld [vmem:[%s14443_s3 + $0x1c0] sm:$0xff]  ;;  %v4237_v0 = vld [vmem:[%s14442_s2 + $0x270] sm:$0xff] }
 0x3c1   :  { %5889 = vmatmul.mubr.bf16.gmra.mrb[16].mxu1 %v6902_v30  ;;  %v8689_v60 = vunpack.i.l.bf16 %v16026_v52  ;;  %v4019_v7 = vmul.f32 %v9032_v13, %v11791_v63  ;;  %v5281_v20 = vpack.c.bf16 %v5124_v37, %v5123_v41  ;;  %v3376_v22 = vadd.f32 %v3248_v54, %v2604_v35  ;;  %5807 = vmatprep.mubr.bf16.mxu0 %v6917_v61  ;;  %v16041_v50 = vld [vmem:[#allocation308_spill] sm:$0xff]  ;;  %v16042_v49 = vld [vmem:[#allocation82_spill] sm:$0xff]  ;;  %v16044_v42 = vld [vmem:[#allocation81_spill] sm:$0xff] }
 0x3c2   :  { %5896 = vmatprep.mubr.bf16.mxu1 %v6911_v53  ;;  %v8367_v52 = vunpack.i.l.bf16 %v16034_v36  ;;  %v2446_v13 = vmul.f32 %v8368_v56, %v16039_v3  ;;  %v9037_v43 = vunpack.i.h.bf16 %v16035_v1  ;;  %v4020_v38 = vmul.f32 %v9036_v34, %v11791_v63  ;;  %v6445_v54 = vld [vmem:[%s14448_s8 + $0x48] sm:$0xff] }
 0x3c3   :  { %9302 = vperm.xlu0 %9130, %v9301_v19   ;;  %v8725_v59 = vunpack.i.h.bf16 %v16037_v23  ;;  %v4147_v32 = vadd.f32 %v4019_v7, %v3375_v51  ;;  %4764 = vperm.xlu1 %9124, %v4254_v9   ;;  %v6916_v16 = vcombine.low %v13600_v8, %v13607_v57  ;;  %v2587_v15 = vadd.f32 %v16040_v21, %v1815_v10  ;;  %v4285_v51 = vld [vmem:[%s14442_s2 + $0x3f0] sm:$0xff] }
 0x3c4   :  { %7439 = vmatpush3.bf16.msra.mxu0 %v5281_v20  ;;  %v3231_v39 = vmul.f32 %v8724_v29, %v16010_v27  ;;  %v6910_v2 = vcombine.low %v13612_v25, %v13617_v28  ;;  %v2588_v17 = vadd.f32 %v16041_v50, %v1816_v48  ;;  %v6925_v8 = vcombine.high %v13656_v11, %v13661_v33  ;;  %v16043_v28 = vld [vmem:[#allocation63_spill] sm:$0xff] }
 0x3c5   :  { %v9047_v57 = vunpack.i.l.bf16 %v13558_v45  ;;  %v5043_v24 = vadd.f32 %v4870_v47, %v4147_v32  ;;  %v4148_v30 = vadd.f32 %v4020_v38, %v3376_v22  ;;  %v6919_v14 = vcombine.high %v13670_v5, %v13675_v40  ;;  %v4875_v61 = vpop.permute.xlu1 %4874  ;;  %v13722_v20 = vld [vmem:[%s14443_s3 + $0x1c8] sm:$0xff] }
 0x3c6   :  { %v2445_v35 = vmul.f32 %v8367_v52, %v16039_v3  ;;  %v2574_v62 = vadd.f32 %v2446_v13, %v16042_v49  ;;  %v7222_v53 = vunpack.c.l.bf16 %v7302_v44  ;;  %v7223_v25 = vunpack.c.h.bf16 %v7302_v44  ;;  %v13727_v22 = vld [vmem:[%s14443_s3 + $0x1e8] sm:$0xff]  ;;  %v16054_v49 = vld [vmem:[#allocation212_spill] sm:$0xff] }
 0x3c7   :  { %6494 = vperm.xlu0 %9130, %v6444_v12   ;;  %v9041_v36 = vunpack.i.l.bf16 %v16043_v28  ;;  %v3232_v56 = vmul.f32 %v8725_v59, %v16010_v27  ;;  %v5044_v1 = vadd.f32 %v4875_v61, %v4148_v30  ;;  %4679 = vperm.xlu1 %9124, %v4237_v0   ;;  %v3359_v34 = vadd.f32 %v3231_v39, %v2587_v15  ;;  %v16047_v59 = vld [vmem:[#allocation54_spill] sm:$0xff]  ;;  %v16049_v0 = vld [vmem:[#allocation151_spill] sm:$0xff]  ;;  %v4725_v30 = vpop.permute.xlu0 %4724  ;;  %v16055_v61 = vld [vmem:[#allocation76_spill] sm:$0xff] }
 0x3c8   :  { %5808 = vmatmul.mubr.bf16.gmra.mrb[24].mxu0 %v6916_v16  ;;  %v2429_v19 = vmul.f32 %v8327_v31, %v16039_v3  ;;  %v2430_v55 = vmul.f32 %v8328_v4, %v16039_v3  ;;  %v4003_v10 = vmul.f32 %v9037_v43, %v11791_v63  ;;  %v9042_v37 = vunpack.i.h.bf16 %v16043_v28  ;;  %v16045_v43 = vld [vmem:[#allocation202_spill] sm:$0xff]  ;;  %v4269_v16 = vld [vmem:[%s14442_s2 + $0x370] sm:$0xff] }
 0x3c9   :  { %5897 = vmatmul.mubr.bf16.gmra.mrb[20].mxu1 %v6910_v2  ;;  %5815 = vmatprep.mubr.bf16.mxu0 %v6925_v8  ;;  %v5171_v41 = vmax.f32 %v5043_v24, 0.0  ;;  %v3990_v23 = vmul.f32 %v9047_v57, %v11791_v63  ;;  %v5172_v29 = vmax.f32 %v5044_v1, 0.0  ;;  %v3360_v6 = vadd.f32 %v3232_v56, %v2588_v17  ;;  %v4790_v9 = vpop.permute.xlu1 %4789  ;;  %v16052_v57 = vld [vmem:[#allocation57_spill] sm:$0xff]  ;;  %v16057_v1 = vld [vmem:[#allocation220_spill] sm:$0xff] }
 0x3ca   :  { %5904 = vmatprep.mubr.bf16.mxu1 %v6919_v14  ;;  %v3217_v31 = vmul.f32 %v8689_v60, %v16010_v27  ;;  %v2573_v4 = vadd.f32 %v2445_v35, %v16044_v42  ;;  %v3346_v48 = vadd.f32 %v13642_v18, %v2574_v62  ;;  %v9311_v7 = vpack.i.bf16 %v7223_v25, %v7222_v53  ;;  %v16053_v14 = vld [vmem:[#allocation156_spill] sm:$0xff]  ;;  %v6448_v28 = vld [vmem:[%s14448_s8 + $0x60] sm:$0xff] }
 0x3cb   :  { %6499 = vperm.xlu0 %9130, %v6445_v54   ;;  %v4004_v52 = vmul.f32 %v9041_v36, %v11791_v63  ;;  %v4131_v60 = vadd.f32 %v4003_v10, %v3359_v34  ;;  %4919 = vperm.xlu1 %9124, %v4285_v51   ;;  %v5305_v13 = vpack.c.bf16 %v5172_v29, %v5171_v41  ;;  %v16046_v38 = vunpack.i.l.bf16 %v16045_v43  ;;  %v16058_v29 = vld [vmem:[#allocation214_spill] sm:$0xff] }
 0x3cc   :  { %v6924_v18 = vcombine.low %v13656_v11, %v13661_v33  ;;  %v2557_v32 = vadd.f32 %v2429_v19, %v16047_v59  ;;  %v3989_v12 = vmul.f32 %v9042_v37, %v11791_v63  ;;  %v6918_v21 = vcombine.low %v13670_v5, %v13675_v40  ;;  %v16048_v33 = vld [vmem:[#allocation228_spill] sm:$0xff]  ;;  %v5311_v19 = vld [vmem:[%s14444_s4] sm:$0xff] }
 0x3cd   :  { %v3201_v47 = vmul.f32 %v16046_v38, %v16010_v27  ;;  %v4118_v15 = vadd.f32 %v3990_v23, %v3346_v48  ;;  %v5027_v44 = vadd.f32 %v4790_v9, %v4131_v60  ;;  %7502 = vmatprep.subr.bf16.mxu1 %v5305_v13  ;;  %v4132_v39 = vadd.f32 %v4004_v52, %v3360_v6  ;;  %v4795_v5 = vpop.permute.xlu1 %4794  ;;  %v13782_v13 = vld [vmem:[%s14449_s9 + $0x30] sm:$0xff]  }
 0x3ce   :  { %v6927_v11 = vcombine.high %v13722_v20, %v13727_v22  ;;  %v16050_v2 = vunpack.i.h.bf16 %v16049_v0  ;;  %v16051_v17 = vunpack.i.h.bf16 %v16045_v43  ;;  %v2558_v24 = vadd.f32 %v2430_v55, %v16052_v57  ;;  %v13792_v43 = vld [vmem:[%s14443_s3 + $0x30] sm:$0xff] }
 0x3cf   :  { %9312 = vperm.xlu0 %9130, %v9311_v7   ;;  %v3345_v40 = vadd.f32 %v3217_v31, %v2573_v4  ;;  %v8413_v35 = vunpack.i.h.bf16 %v16053_v14  ;;  %v8730_v62 = vunpack.i.h.bf16 %v16054_v49  ;;  %v8971_v53 = vunpack.i.l.bf16 %v16055_v61  ;;  %4839 = vperm.xlu1 %9124, %v4269_v16   ;;  %v6449_v4 = vld [vmem:[%s14448_s8 + $0x68] sm:$0xff] }
 0x3d0   :  { %v13747_v50 = vmul.f32 %v16050_v2, %v16048_v33  ;;  %v3202_v8 = vmul.f32 %v16051_v17, %v16010_v27  ;;  %v5028_v25 = vadd.f32 %v4795_v5, %v4132_v39  ;;  %5816 = vmatmul.mubr.bf16.gmra.mrb[28].mxu0 %v6924_v18  ;;  %v16056_v36 = vunpack.i.l.bf16 %v16053_v14  ;;  %v13787_v18 = vld [vmem:[%s14443_s3 + $0x10] sm:$0xff]  ;;  %v13813_v17 = vld [vmem:[%s14443_s3 + $0x18] sm:$0xff] }
 0x3d1   :  { %v8447_v34 = vunpack.i.l.bf16 %v16057_v1  ;;  %5905 = vmatmul.mubr.bf16.gmra.mrb[24].mxu1 %v6918_v21  ;;  %v4117_v54 = vadd.f32 %v3989_v12, %v3345_v40  ;;  %v3329_v55 = vadd.f32 %v3201_v47, %v2557_v32  ;;  %v8972_v10 = vunpack.i.h.bf16 %v16055_v61  ;;  %v4720_v42 = vpop.permute.xlu1 %4719  ;;  %v5313_v47 = vld [vmem:[%s14444_s4 + $0x10] sm:$0xff]  ;;  %v13820_v5 = vld [vmem:[%s14443_s3 + $0x38] sm:$0xff] }
 0x3d2   :  { %v13762_v56 = vmul.f32 %v16056_v36, %v16039_v3  ;;  %v5014_v37 = vadd.f32 %v4725_v30, %v4118_v15  ;;  %v5155_v51 = vmax.f32 %v5027_v44, 0.0  ;;  %v5156_v41 = vmax.f32 %v5028_v25, 0.0  ;;  %5912 = vmatprep.mubr.bf16.mxu1 %v6927_v11  ;;  %v16059_v11 = vld [vmem:[#allocation218_spill] sm:$0xff]  ;;  %v16060_v40 = vld [vmem:[#allocation101_spill] sm:$0xff]  ;;  %v16061_v61 = vld [vmem:[#allocation23_spill] sm:$0xff] }
 0x3d3   :  { %v8729_v23 = vunpack.i.l.bf16 %v16054_v49  ;;  %v8408_v6 = vunpack.i.h.bf16 %v16058_v29  ;;  %v8448_v31 = vunpack.i.h.bf16 %v16057_v1  ;;  %6514 = vperm.xlu0 %9130, %v6448_v28   ;;  %v3330_v48 = vadd.f32 %v3202_v8, %v2558_v24  ;;  %5329 = vperm.xlu1 %9124, %v5311_v19   ;;  %v5315_v25 = vld [vmem:[%s14444_s4 + $0x20] sm:$0xff] }
 0x3d4   :  { %v13776_v9 = vmul.f32 %v8730_v62, %v16010_v27  ;;  %v3973_v7 = vmul.f32 %v8971_v53, %v11791_v63  ;;  %v5297_v52 = vpack.c.bf16 %v5156_v41, %v5155_v51  ;;  %v5013_v60 = vadd.f32 %v4720_v42, %v4117_v54 }
 0x3d5   :  { %v2477_v38 = vmul.f32 %v8447_v34, %v16039_v3  ;;  %v6926_v59 = vcombine.low %v13722_v20, %v13727_v22  ;;  %v6872_v32 = vcombine.low %v13787_v18, %v13792_v43  ;;  %v6873_v12 = vcombine.high %v13787_v18, %v13792_v43  ;;  %v4640_v20 = vpop.permute.xlu1 %4639  ;;  %v5198_v18 = vld [vmem:[%s14443_s3 + $0x78] sm:$0xff] }
 0x3d6   :  { %v8407_v16 = vunpack.i.l.bf16 %v16058_v29  ;;  %v3974_v21 = vmul.f32 %v8972_v10, %v11791_v63  ;;  %v5142_v15 = vmax.f32 %v5014_v37, 0.0  ;;  %v5141_v44 = vmax.f32 %v5013_v60, 0.0  ;;  %7503 = vmatpush3.bf16.msra.mxu1 %v5297_v52  ;;  %v16063_v37 = vld [vmem:[#allocation240_spill] sm:$0xff]  ;;  %v16065_v60 = vld [vmem:[#allocation201_spill] sm:$0xff] }
 0x3d7   :  { %v2462_v39 = vmul.f32 %v8408_v6, %v16039_v3  ;;  %v8769_v0 = vunpack.i.l.bf16 %v16059_v11  ;;  %v2478_v2 = vmul.f32 %v8448_v31, %v16039_v3  ;;  %6519 = vperm.xlu0 %9130, %v6449_v4   ;;  %v7230_v22 = vunpack.c.l.bf16 %v13782_v13  ;;  %5953 = vmatprep.mubr.bf16.mxu0 %v6873_v12  ;;  %v16064_v6 = vld [vmem:[#allocation99_spill] sm:$0xff] }
 0x3d8   :  { %v8770_v8 = vunpack.i.h.bf16 %v16059_v11  ;;  %v9048_v57 = vunpack.i.h.bf16 %v13558_v45  ;;  %v4101_v24 = vadd.f32 %v3973_v7, %v3329_v55  ;;  %5339 = vperm.xlu1 %9124, %v5313_v47   ;;  %v5290_v30 = vpack.c.bf16 %v5142_v15, %v5141_v44  ;;  %v16062_v55 = vld [vmem:[#allocation102_spill] sm:$0xff]  ;;  %v16066_v44 = vld [vmem:[#allocation239_spill] sm:$0xff] }
 0x3d9   :  { %v2605_v62 = vadd.f32 %v2477_v38, %v16060_v40  ;;  %v9245_v53 = vunpack.i.h.bf16 %v16061_v61  ;;  %5913 = vmatmul.mubr.bf16.gmra.mrb[28].mxu1 %v6926_v59  ;;  %v6874_v45 = vcombine.low %v13813_v17, %v13820_v5  ;;  %v6875_v28 = vcombine.high %v13813_v17, %v13820_v5  ;;  %v4645_v41 = vpop.permute.xlu1 %4644  ;;  %v5317_v59 = vld [vmem:[%s14444_s4 + $0x30] sm:$0xff] }
 0x3da   :  { %v2461_v36 = vmul.f32 %v8407_v16, %v16039_v3  ;;  %v9054_v1 = vunpack.i.l.bf16 %v13651_v58  ;;  %v4997_v34 = vadd.f32 %v4640_v20, %v4101_v24  ;;  %7440 = vmatprep.subr.bf16.mxu0 %v5290_v30  ;;  %v4102_v54 = vadd.f32 %v3974_v21, %v3330_v48  ;;  %v13843_v48 = vld [vmem:[%s14449_s9 + $0x38] sm:$0xff]  }
 0x3db   :  { %v3249_v19 = vmul.f32 %v8769_v0, %v16010_v27  ;;  %v2606_v10 = vadd.f32 %v2478_v2, %v16062_v55  ;;  %v2590_v51 = vadd.f32 %v2462_v39, %v16063_v37  ;;  %6787 = vperm.xlu0 %9130, %v7230_v22   ;;  %v7231_v29 = vunpack.c.h.bf16 %v13782_v13  ;;  %6050 = vmatprep.mubr.bf16.mxu1 %v6875_v28 }
 0x3dc   :  { %v9060_v31 = vunpack.i.l.bf16 %v16064_v6  ;;  %v9244_v42 = vunpack.i.l.bf16 %v16061_v61  ;;  %v4021_v4 = vmul.f32 %v9048_v57, %v11791_v63  ;;  %v4998_v7 = vadd.f32 %v4645_v41, %v4102_v54  ;;  %5349 = vperm.xlu1 %9124, %v5315_v25  }
 0x3dd   :  { %v3250_v52 = vmul.f32 %v8770_v8, %v16010_v27  ;;  %v9225_v38 = vunpack.i.h.bf16 %v16065_v60  ;;  %v1032_v13 = vmul.f32 %v9245_v53, %v15733_v26  ;;  %v3377_v47 = vadd.f32 %v3249_v19, %v2605_v62  ;;  %v4880_v0 = vpop.permute.xlu1 %4879  ;;  %v16067_v62 = vld [vmem:[#allocation300_spill] sm:$0xff]  ;;  %v5319_v53 = vld [vmem:[%s14444_s4 + $0x40] sm:$0xff]  ;;  %v4805_v19 = vpop.permute.xlu0 %4804 }
 0x3de   :  { %v9055_v12 = vunpack.i.h.bf16 %v13651_v58  ;;  %v4022_v16 = vmul.f32 %v9054_v1, %v11791_v63  ;;  %v5125_v21 = vmax.f32 %v4997_v34, 0.0  ;;  %v5126_v15 = vmax.f32 %v4998_v7, 0.0 }
 0x3df   :  { %v2589_v39 = vadd.f32 %v2461_v36, %v16066_v44  ;;  %v9224_v11 = vunpack.i.l.bf16 %v16065_v60  ;;  %6792 = vperm.xlu0 %9130, %v7231_v29   ;;  %v3378_v2 = vadd.f32 %v3250_v52, %v2606_v10  ;;  %v7235_v20 = vunpack.c.h.bf16 %v13843_v48  ;;  %v16070_v10 = vld [vmem:[#allocation153_spill] sm:$0xff]  ;;  %v16073_v52 = vld [vmem:[#allocation299_spill] sm:$0xff] }
 0x3e0   :  { %v1031_v22 = vmul.f32 %v9244_v42, %v15733_v26  ;;  %v4006_v8 = vmul.f32 %v9060_v31, %v11791_v63  ;;  %v5282_v57 = vpack.c.bf16 %v5126_v15, %v5125_v21  ;;  %v4149_v24 = vadd.f32 %v4021_v4, %v3377_v47  ;;  %5359 = vperm.xlu1 %9124, %v5317_v59   ;;  %v16071_v29 = vld [vmem:[#allocation165_spill] sm:$0xff]  ;;  %v16072_v4 = vld [vmem:[#allocation288_spill] sm:$0xff]  ;;  %v16075_v44 = vld [vmem:[#allocation67_spill] sm:$0xff] }
 0x3e1   :  { %v13861_v58 = vmul.f32 %v8413_v35, %v16039_v3  ;;  %v3233_v30 = vmul.f32 %v8729_v23, %v16010_v27  ;;  %v1016_v40 = vmul.f32 %v9225_v38, %v15733_v26  ;;  %v1804_v61 = vadd.f32 %v16067_v62, %v1032_v13  ;;  %v16068_v35 = vld [vmem:[#allocation157_spill] sm:$0xff]  ;;  %v16069_v23 = vld [vmem:[#allocation98_spill] sm:$0xff]  ;;  %v4885_v55 = vpop.permute.xlu1 %4884  ;;  %v5321_v38 = vld [vmem:[%s14444_s4 + $0x50] sm:$0xff] }
 0x3e2   :  { %v3362_v25 = vadd.f32 %v13776_v9, %v2590_v51  ;;  %v4005_v28 = vmul.f32 %v9055_v12, %v11791_v63  ;;  %v5045_v36 = vadd.f32 %v4880_v0, %v4149_v24  ;;  %7441 = vmatpush3.bf16.msra.mxu0 %v5282_v57  ;;  %v4150_v14 = vadd.f32 %v4022_v16, %v3378_v2  ;;  %v16074_v16 = vld [vmem:[#allocation85_spill] sm:$0xff]  ;;  %v16078_v24 = vld [vmem:[#allocation152_spill] sm:$0xff] }
 0x3e3   :  { %v8091_v1 = vunpack.i.h.bf16 %v16068_v35  ;;  %v8090_v49 = vunpack.i.l.bf16 %v16068_v35  ;;  %v8695_v34 = vunpack.i.h.bf16 %v16069_v23  ;;  %v1015_v54 = vmul.f32 %v9224_v11, %v15733_v26  ;;  %6802 = vperm.xlu0 %9130, %v7235_v20   ;;  %v16076_v11 = vld [vmem:[#allocation144_spill] sm:$0xff]  ;;  %v16077_v20 = vld [vmem:[#allocation114_spill] sm:$0xff]  ;;  %v16088_v35 = vld [vmem:[#allocation159_spill] sm:$0xff] }
 0x3e4   :  { %v1803_v37 = vadd.f32 %v16070_v10, %v1031_v22  ;;  %v4134_v41 = vadd.f32 %v4006_v8, %v3362_v25  ;;  %v5046_v9 = vadd.f32 %v4885_v55, %v4150_v14  ;;  %5369 = vperm.xlu1 %9124, %v5319_v53   ;;  %v3361_v51 = vadd.f32 %v3233_v30, %v2589_v39  ;;  %v16079_v53 = vld [vmem:[#allocation287_spill] sm:$0xff] }
 0x3e5   :  { %v8130_v31 = vunpack.i.l.bf16 %v16071_v29  ;;  %v8694_v42 = vunpack.i.l.bf16 %v16069_v23  ;;  %v1788_v7 = vadd.f32 %v16072_v4, %v1016_v40  ;;  %v2576_v60 = vadd.f32 %v16073_v52, %v1804_v61  ;;  %v4800_v2 = vpop.permute.xlu1 %4799  ;;  %v16082_v52 = vld [vmem:[#allocation164_spill] sm:$0xff] }
 0x3e6   :  { %v5030_v13 = vadd.f32 %v4805_v19, %v4134_v41  ;;  %v5173_v47 = vmax.f32 %v5045_v36, 0.0  ;;  %v5174_v59 = vmax.f32 %v5046_v9, 0.0  ;;  %v4133_v12 = vadd.f32 %v4005_v28, %v3361_v51  ;;  %v5323_v28 = vld [vmem:[%s14444_s4 + $0x60] sm:$0xff] }
 0x3e7   :  { %v8655_v21 = vunpack.i.h.bf16 %v16074_v16  ;;  %v3220_v15 = vmul.f32 %v8695_v34, %v16010_v27  ;;  %v9065_v39 = vunpack.i.l.bf16 %v16075_v44  ;;  %v1787_v0 = vadd.f32 %v16076_v11, %v1015_v54  ;;  %v16080_v19 = vld [vmem:[#allocation73_spill] sm:$0xff] }
 0x3e8   :  { %v9284_v22 = vunpack.i.l.bf16 %v16077_v20  ;;  %v5029_v8 = vadd.f32 %v4800_v2, %v4133_v12  ;;  %5379 = vperm.xlu1 %9124, %v5321_v38   ;;  %v5306_v57 = vpack.c.bf16 %v5174_v59, %v5173_v47  ;;  %v2575_v30 = vadd.f32 %v16078_v24, %v1803_v37  ;;  %v4735_v37 = vpop.permute.xlu0 %4734  ;;  %v5325_v47 = vld [vmem:[%s14444_s4 + $0x70] sm:$0xff] }
 0x3e9   :  { %v8654_v40 = vunpack.i.l.bf16 %v16074_v16  ;;  %v3219_v62 = vmul.f32 %v8694_v42, %v16010_v27  ;;  %v9061_v61 = vunpack.i.h.bf16 %v16064_v6  ;;  %v2560_v25 = vadd.f32 %v16079_v53, %v1788_v7  ;;  %v16081_v6 = vld [vmem:[#allocation143_spill] sm:$0xff] }
 0x3ea   :  { %v9285_v36 = vunpack.i.h.bf16 %v16077_v20  ;;  %v5158_v14 = vmax.f32 %v5030_v13, 0.0  ;;  %v3348_v23 = vadd.f32 %v3220_v15, %v2576_v60  ;;  %v5157_v34 = vmax.f32 %v5029_v8, 0.0  ;;  %7504 = vmatprep.subr.bf16.mxu1 %v5306_v57  ;;  %v13905_v4 = vpop.permute.xlu1 %9079  ;;  %v16084_v57 = vld [vmem:[#allocation158_spill] sm:$0xff] }
 0x3eb   :  { %v8131_v54 = vunpack.i.h.bf16 %v16071_v29  ;;  %v8977_v55 = vunpack.i.h.bf16 %v16080_v19  ;;  %v3204_v10 = vmul.f32 %v8655_v21, %v16010_v27  ;;  %v2559_v41 = vadd.f32 %v16081_v6, %v1787_v0 }
 0x3ec   :  { %v1063_v9 = vmul.f32 %v9284_v22, %v15733_v26  ;;  %v3992_v51 = vmul.f32 %v9065_v39, %v11791_v63  ;;  %v5298_v42 = vpack.c.bf16 %v5158_v14, %v5157_v34  ;;  %5389 = vperm.xlu1 %9124, %v5323_v28   ;;  %v3347_v7 = vadd.f32 %v3219_v62, %v2575_v30  ;;  %v16085_v62 = vld [vmem:[#allocation132_spill] sm:$0xff]  ;;  %v4655_v53 = vpop.permute.xlu0 %4654  ;;  %v6155_v28 = vld [vmem:[%s14446_s6] sm:$0xff] }
 0x3ed   :  { %v8452_v60 = vunpack.i.l.bf16 %v16082_v52  ;;  %v1707_v29 = vmul.f32 %v8130_v31, %v16048_v33  ;;  %v8976_v38 = vunpack.i.l.bf16 %v16080_v19  ;;  %v3203_v13 = vmul.f32 %v8654_v40, %v16010_v27  ;;  %v16083_v31 = vld [vmem:[#allocation335_spill] sm:$0xff] }
 0x3ee   :  { %v3991_v59 = vmul.f32 %v9061_v61, %v11791_v63  ;;  %v1064_v12 = vmul.f32 %v9285_v36, %v15733_v26  ;;  %v4120_v16 = vadd.f32 %v3992_v51, %v3348_v23  ;;  %v3332_v21 = vadd.f32 %v3204_v10, %v2560_v25  ;;  %7505 = vmatpush3.bf16.msra.mxu1 %v5298_v42 }
 0x3ef   :  { %v8453_v15 = vunpack.i.h.bf16 %v16082_v52  ;;  %v1708_v39 = vmul.f32 %v8131_v54, %v16048_v33  ;;  %v9264_v11 = vunpack.i.l.bf16 %v16083_v31  ;;  %v3331_v0 = vadd.f32 %v3203_v13, %v2559_v41  ;;  %v4730_v25 = vpop.permute.xlu1 %4729 }
 0x3f0   :  { %v1835_v2 = vadd.f32 %v1707_v29, %v1063_v9  ;;  %v5016_v20 = vadd.f32 %v4735_v37, %v4120_v16  ;;  %v3976_v22 = vmul.f32 %v8977_v55, %v11791_v63  ;;  %5399 = vperm.xlu1 %9124, %v5325_v47   ;;  %v4119_v8 = vadd.f32 %v3991_v59, %v3347_v7  ;;  %v6157_v29 = vld [vmem:[%s14446_s6 + $0x10] sm:$0xff] }
 0x3f1   :  { %v8423_v24 = vunpack.i.h.bf16 %v16084_v57  ;;  %v2479_v30 = vmul.f32 %v8452_v60, %v16039_v3  ;;  %v3975_v40 = vmul.f32 %v8976_v38, %v11791_v63  ;;  %v8774_v61 = vunpack.i.l.bf16 %v16085_v62 }
 0x3f2   :  { %v9265_v36 = vunpack.i.h.bf16 %v16083_v31  ;;  %v1836_v14 = vadd.f32 %v1708_v39, %v1064_v12  ;;  %v4104_v23 = vadd.f32 %v3976_v22, %v3332_v21  ;;  %v5015_v34 = vadd.f32 %v4730_v25, %v4119_v8  ;;  %v16086_v12 = vld [vmem:[#allocation60_spill] sm:$0xff]  ;;  %v16087_v21 = vld [vmem:[#allocation110_spill] sm:$0xff]  ;;  %v16089_v22 = vld [vmem:[#allocation117_spill] sm:$0xff] }
 0x3f3   :  { %v2480_v54 = vmul.f32 %v8453_v15, %v16039_v3  ;;  %v8775_v19 = vunpack.i.h.bf16 %v16085_v62  ;;  %v1047_v55 = vmul.f32 %v9264_v11, %v15733_v26  ;;  %v4103_v10 = vadd.f32 %v3975_v40, %v3331_v0  ;;  %v4650_v60 = vpop.permute.xlu1 %4649 }
 0x3f4   :  { %v5144_v37 = vmax.f32 %v5016_v20, 0.0  ;;  %v5000_v6 = vadd.f32 %v4655_v53, %v4104_v23  ;;  %v2607_v41 = vadd.f32 %v2479_v30, %v1835_v2  ;;  %v5143_v9 = vmax.f32 %v5015_v34, 0.0  ;;  %6173 = vperm.xlu1 %9124, %v6155_v28   ;;  %v16090_v28 = vld [vmem:[#allocation208_spill] sm:$0xff]  ;;  %v4890_v23 = vpop.permute.xlu0 %4889 }
 0x3f5   :  { %v1691_v51 = vmul.f32 %v8090_v49, %v16048_v33  ;;  %v8422_v42 = vunpack.i.l.bf16 %v16084_v57  ;;  %v9066_v7 = vunpack.i.h.bf16 %v16075_v44  ;;  %v3251_v52 = vmul.f32 %v8774_v61, %v16010_v27  ;;  %v6159_v57 = vld [vmem:[%s14446_s6 + $0x20] sm:$0xff] }
 0x3f6   :  { %v1048_v38 = vmul.f32 %v9265_v36, %v15733_v26  ;;  %v4999_v13 = vadd.f32 %v4650_v60, %v4103_v10  ;;  %v5291_v47 = vpack.c.bf16 %v5144_v37, %v5143_v9  ;;  %v2608_v59 = vadd.f32 %v2480_v54, %v1836_v14  ;;  %v16091_v37 = vld [vmem:[#allocation166_spill] sm:$0xff] }
 0x3f7   :  { %v1692_v49 = vmul.f32 %v8091_v1, %v16048_v33  ;;  %v8378_v16 = vunpack.i.h.bf16 %v16086_v12  ;;  %v9070_v44 = vunpack.i.l.bf16 %v16087_v21  ;;  %v3252_v15 = vmul.f32 %v8775_v19, %v16010_v27 }
 0x3f8   :  { %v1819_v39 = vadd.f32 %v1691_v51, %v1047_v55  ;;  %v5128_v31 = vmax.f32 %v5000_v6, 0.0  ;;  %v3379_v11 = vadd.f32 %v3251_v52, %v2607_v41  ;;  %v5127_v0 = vmax.f32 %v4999_v13, 0.0  ;;  %6183 = vperm.xlu1 %9124, %v6157_v29   ;;  %7442 = vmatprep.subr.bf16.mxu0 %v5291_v47  ;;  %v6161_v51 = vld [vmem:[%s14446_s6 + $0x30] sm:$0xff] }
 0x3f9   :  { %v13948_v2 = vmul.f32 %v8422_v42, %v16039_v3  ;;  %v13951_v20 = vmul.f32 %v8423_v24, %v16039_v3  ;;  %v8100_v1 = vunpack.i.l.bf16 %v16088_v35  ;;  %v8734_v8 = vunpack.i.l.bf16 %v16089_v22  ;;  %v13959_v61 = vpop.permute.xlu1 %9086  ;;  %v16092_v13 = vld [vmem:[#allocation92_spill] sm:$0xff] }
 0x3fa   :  { %v1820_v30 = vadd.f32 %v1692_v49, %v1048_v38  ;;  %v4023_v40 = vmul.f32 %v9066_v7, %v11791_v63  ;;  %v5283_v62 = vpack.c.bf16 %v5128_v31, %v5127_v0  ;;  %v3380_v53 = vadd.f32 %v3252_v15, %v2608_v59  ;;  %v16093_v49 = vld [vmem:[#allocation248_spill] sm:$0xff]  ;;  %v6163_v0 = vld [vmem:[%s14446_s6 + $0x40] sm:$0xff] }
 0x3fb   :  { %v8101_v25 = vunpack.i.h.bf16 %v16088_v35  ;;  %v8700_v24 = vunpack.i.h.bf16 %v16090_v28  ;;  %v8377_v36 = vunpack.i.l.bf16 %v16086_v12  ;;  %v2450_v14 = vmul.f32 %v8378_v16, %v16039_v3 }
 0x3fc   :  { %v4024_v34 = vmul.f32 %v9070_v44, %v11791_v63  ;;  %v8735_v54 = vunpack.i.h.bf16 %v16089_v22  ;;  %v4151_v19 = vadd.f32 %v4023_v40, %v3379_v11  ;;  %6193 = vperm.xlu1 %9124, %v6159_v57   ;;  %7443 = vmatpush3.bf16.msra.mxu0 %v5283_v62  ;;  %v2591_v55 = vadd.f32 %v13762_v56, %v1819_v39  ;;  %v16094_v39 = vld [vmem:[#allocation56_spill] sm:$0xff]  ;;  %v16095_v57 = vld [vmem:[#allocation167_spill] sm:$0xff] }
 0x3fd   :  { %v13969_v10 = vmul.f32 %v8100_v1, %v16048_v33  ;;  %v8463_v6 = vunpack.i.h.bf16 %v16091_v37  ;;  %v9071_v41 = vunpack.i.h.bf16 %v16087_v21  ;;  %v3235_v9 = vmul.f32 %v8734_v8, %v16010_v27 }
 0x3fe   :  { %v5047_v42 = vadd.f32 %v4890_v23, %v4151_v19  ;;  %v9081_v7 = vunpack.i.l.bf16 %v13905_v4  ;;  %v4152_v52 = vadd.f32 %v4024_v34, %v3380_v53  ;;  %v2592_v60 = vadd.f32 %v13861_v58, %v1820_v30  ;;  %v4895_v59 = vpop.permute.xlu1 %4894  ;;  %v16097_v19 = vld [vmem:[#allocation204_spill] sm:$0xff] }
 0x3ff   :  { %v8699_v56 = vunpack.i.l.bf16 %v16090_v28  ;;  %v3222_v29 = vmul.f32 %v8700_v24, %v16010_v27  ;;  %v2449_v38 = vmul.f32 %v8377_v36, %v16039_v3  ;;  %v2578_v47 = vadd.f32 %v2450_v14, %v16092_v13  ;;  %v16096_v28 = vld [vmem:[#allocation236_spill] sm:$0xff] }
 0x400   :  { %v9075_v12 = vunpack.i.l.bf16 %v16093_v49  ;;  %v3236_v16 = vmul.f32 %v8735_v54, %v16010_v27  ;;  %v5048_v21 = vadd.f32 %v4895_v59, %v4152_v52  ;;  %6203 = vperm.xlu1 %9124, %v6161_v51   ;;  %v3363_v44 = vadd.f32 %v3235_v9, %v2591_v55  ;;  %v16098_v59 = vld [vmem:[#allocation80_spill] sm:$0xff] }
 0x401   :  { %v8462_v15 = vunpack.i.l.bf16 %v16091_v37  ;;  %v8337_v58 = vunpack.i.l.bf16 %v16094_v39  ;;  %v9076_v31 = vunpack.i.h.bf16 %v16093_v49  ;;  %v4007_v11 = vmul.f32 %v9071_v41, %v11791_v63  ;;  %v6165_v41 = vld [vmem:[%s14446_s6 + $0x50] sm:$0xff] }
 0x402   :  { %v5175_v35 = vmax.f32 %v5047_v42, 0.0  ;;  %v3994_v1 = vmul.f32 %v9081_v7, %v11791_v63  ;;  %v5176_v22 = vmax.f32 %v5048_v21, 0.0  ;;  %v3364_v8 = vadd.f32 %v3236_v16, %v2592_v60  ;;  %v4810_v53 = vpop.permute.xlu1 %4809  ;;  %v16099_v21 = vld [vmem:[#allocation223_spill] sm:$0xff] }
 0x403   :  { %v8140_v30 = vunpack.i.l.bf16 %v16095_v57  ;;  %v8338_v40 = vunpack.i.h.bf16 %v16094_v39  ;;  %v3221_v62 = vmul.f32 %v8699_v56, %v16010_v27  ;;  %v2577_v24 = vadd.f32 %v2449_v38, %v16096_v28  ;;  %v6167_v39 = vld [vmem:[%s14446_s6 + $0x60] sm:$0xff] }
 0x404   :  { %v4135_v36 = vadd.f32 %v4007_v11, %v3363_v44  ;;  %6213 = vperm.xlu1 %9124, %v6163_v0   ;;  %v5307_v14 = vpack.c.bf16 %v5176_v22, %v5175_v35  ;;  %v4008_v23 = vmul.f32 %v9075_v12, %v11791_v63  ;;  %v3350_v34 = vadd.f32 %v3222_v29, %v2578_v47  ;;  %v4745_v44 = vpop.permute.xlu0 %4744 }
 0x405   :  { %v13999_v54 = vmul.f32 %v8101_v25, %v16048_v33  ;;  %v8659_v55 = vunpack.i.l.bf16 %v16097_v19  ;;  %v2433_v37 = vmul.f32 %v8337_v58, %v16039_v3  ;;  %v3993_v9 = vmul.f32 %v9076_v31, %v11791_v63  ;;  %v16100_v58 = vld [vmem:[#allocation62_spill] sm:$0xff] }
 0x406   :  { %v14008_v51 = vmul.f32 %v8462_v15, %v16039_v3  ;;  %v5031_v42 = vadd.f32 %v4810_v53, %v4135_v36  ;;  %7506 = vmatprep.subr.bf16.mxu1 %v5307_v14  ;;  %v4136_v7 = vadd.f32 %v4008_v23, %v3364_v8  ;;  %v4122_v52 = vadd.f32 %v3994_v1, %v3350_v34  ;;  %v4815_v29 = vpop.permute.xlu1 %4814  ;;  %v16101_v8 = vld [vmem:[#allocation64_spill] sm:$0xff]  ;;  %v16103_v34 = vld [vmem:[#allocation205_spill] sm:$0xff] }
 0x407   :  { %v14011_v25 = vmul.f32 %v8463_v6, %v16039_v3  ;;  %v8660_v60 = vunpack.i.h.bf16 %v16097_v19  ;;  %v2434_v56 = vmul.f32 %v8338_v40, %v16039_v3  ;;  %v3349_v38 = vadd.f32 %v3221_v62, %v2577_v24  ;;  %v16102_v62 = vld [vmem:[#allocation65_spill] sm:$0xff] }
 0x408   :  { %v8141_v13 = vunpack.i.h.bf16 %v16095_v57  ;;  %v14017_v47 = vmul.f32 %v8140_v30, %v16048_v33  ;;  %v8981_v49 = vunpack.i.l.bf16 %v16098_v59  ;;  %v5032_v12 = vadd.f32 %v4815_v29, %v4136_v7  ;;  %6223 = vperm.xlu1 %9124, %v6165_v41   ;;  %v6169_v41 = vld [vmem:[%s14446_s6 + $0x70] sm:$0xff] }
 0x409   :  { %v3205_v16 = vmul.f32 %v8659_v55, %v16010_v27  ;;  %v8457_v6 = vunpack.i.l.bf16 %v16099_v21  ;;  %v4121_v15 = vadd.f32 %v3993_v9, %v3349_v38  ;;  %v2561_v31 = vadd.f32 %v2433_v37, %v16100_v58  ;;  %v16104_v9 = vld [vmem:[#allocation213_spill] sm:$0xff] }
 0x40a   :  { %v8982_v11 = vunpack.i.h.bf16 %v16098_v59  ;;  %v5159_v0 = vmax.f32 %v5031_v42, 0.0  ;;  %v5160_v35 = vmax.f32 %v5032_v12, 0.0  ;;  %v5018_v1 = vadd.f32 %v4745_v44, %v4122_v52  ;;  %v4740_v40 = vpop.permute.xlu1 %4739  ;;  %v6436_v58 = vld [vmem:[%s14448_s8] sm:$0xff] }
 0x40b   :  { %v3206_v22 = vmul.f32 %v8660_v60, %v16010_v27  ;;  %v8417_v57 = vunpack.i.l.bf16 %v16101_v8  ;;  %v8458_v30 = vunpack.i.h.bf16 %v16099_v21  ;;  %v2562_v53 = vadd.f32 %v2434_v56, %v16102_v62  ;;  %v16109_v62 = vld [vmem:[#allocation107_spill] sm:$0xff] }
 0x40c   :  { %v8418_v28 = vunpack.i.h.bf16 %v16101_v8  ;;  %v5299_v24 = vpack.c.bf16 %v5160_v35, %v5159_v0  ;;  %v5017_v36 = vadd.f32 %v4740_v40, %v4121_v15  ;;  %6233 = vperm.xlu1 %9124, %v6167_v39   ;;  %v3977_v14 = vmul.f32 %v8981_v49, %v11791_v63  ;;  %v16106_v15 = vld [vmem:[#allocation231_spill] sm:$0xff]  ;;  %v16108_v8 = vld [vmem:[#allocation252_spill] sm:$0xff] }
 0x40d   :  { %v14034_v23 = vmul.f32 %v8141_v13, %v16048_v33  ;;  %v8670_v19 = vunpack.i.h.bf16 %v16103_v34  ;;  %v2481_v55 = vmul.f32 %v8457_v6, %v16039_v3  ;;  %v3333_v37 = vadd.f32 %v3205_v16, %v2561_v31  ;;  %v16105_v33 = vld [vmem:[#allocation219_spill] sm:$0xff] }
 0x40e   :  { %v8740_v42 = vunpack.i.h.bf16 %v16104_v9  ;;  %v5145_v7 = vmax.f32 %v5017_v36, 0.0  ;;  %v5146_v52 = vmax.f32 %v5018_v1, 0.0  ;;  %7507 = vmatpush3.bf16.msra.mxu1 %v5299_v24  ;;  %v3978_v60 = vmul.f32 %v8982_v11, %v11791_v63  ;;  %v4660_v13 = vpop.permute.xlu1 %4659  ;;  %v16107_v31 = vld [vmem:[#allocation103_spill] sm:$0xff] }
 0x40f   :  { %v2465_v56 = vmul.f32 %v8417_v57, %v16039_v3  ;;  %v8779_v29 = vunpack.i.l.bf16 %v16105_v33  ;;  %v2482_v38 = vmul.f32 %v8458_v30, %v16039_v3  ;;  %v3334_v59 = vadd.f32 %v3206_v22, %v2562_v53 }
 0x410   :  { %v2466_v49 = vmul.f32 %v8418_v28, %v16039_v3  ;;  %v9082_v12 = vunpack.i.h.bf16 %v13905_v4  ;;  %v5292_v16 = vpack.c.bf16 %v5146_v52, %v5145_v7  ;;  %v4105_v21 = vadd.f32 %v3977_v14, %v3333_v37  ;;  %6243 = vperm.xlu1 %9124, %v6169_v41   ;;  %v16110_v28 = vld [vmem:[#allocation244_spill] sm:$0xff] }
 0x411   :  { %v8739_v6 = vunpack.i.l.bf16 %v16104_v9  ;;  %v8780_v44 = vunpack.i.h.bf16 %v16105_v33  ;;  %v9250_v39 = vunpack.i.h.bf16 %v16106_v15  ;;  %v2609_v11 = vadd.f32 %v2481_v55, %v16107_v31  ;;  %v16111_v55 = vld [vmem:[#allocation241_spill] sm:$0xff]  ;;  %v16112_v9 = vld [vmem:[#allocation206_spill] sm:$0xff] }
 0x412   :  { %v3238_v0 = vmul.f32 %v8740_v42, %v16010_v27  ;;  %v9088_v35 = vunpack.i.l.bf16 %v13959_v61  ;;  %v5001_v4 = vadd.f32 %v4660_v13, %v4105_v21  ;;  %7444 = vmatprep.subr.bf16.mxu0 %v5292_v16  ;;  %v4106_v1 = vadd.f32 %v3978_v60, %v3334_v59  ;;  %v4665_v40 = vpop.permute.xlu1 %4664  ;;  %v6438_v60 = vld [vmem:[%s14448_s8 + $0x10] sm:$0xff]  ;;  %v7299_v33 = vld [vmem:[%s14449_s9 + $0x8] sm:$0xff]  }
 0x413   :  { %v3253_v22 = vmul.f32 %v8779_v29, %v16010_v27  ;;  %v9094_v57 = vunpack.i.l.bf16 %v16108_v8  ;;  %v9249_v30 = vunpack.i.l.bf16 %v16106_v15  ;;  %v2610_v53 = vadd.f32 %v2482_v38, %v16109_v62 }
 0x414   :  { %v2594_v24 = vadd.f32 %v2466_v49, %v16110_v28  ;;  %v5002_v36 = vadd.f32 %v4665_v40, %v4106_v1  ;;  %6454 = vperm.xlu1 %9124, %v6436_v58   ;;  %v4025_v14 = vmul.f32 %v9082_v12, %v11791_v63  ;;  %v2593_v37 = vadd.f32 %v2465_v56, %v16111_v55  ;;  %v16113_v40 = vld [vmem:[#allocation88_spill] sm:$0xff] }
 0x415   :  { %v3254_v41 = vmul.f32 %v8780_v44, %v16010_v27  ;;  %v9230_v42 = vunpack.i.h.bf16 %v16112_v9  ;;  %v1036_v7 = vmul.f32 %v9250_v39, %v15733_v26  ;;  %v3381_v52 = vadd.f32 %v3253_v22, %v2609_v11 }
 0x416   :  { %v9089_v29 = vunpack.i.h.bf16 %v13959_v61  ;;  %v5129_v38 = vmax.f32 %v5001_v4, 0.0  ;;  %v5130_v13 = vmax.f32 %v5002_v36, 0.0  ;;  %v4026_v56 = vmul.f32 %v9088_v35, %v11791_v63  ;;  %v4900_v16 = vpop.permute.xlu1 %4899  ;;  %v6440_v4 = vld [vmem:[%s14448_s8 + $0x20] sm:$0xff]  ;;  %v4825_v36 = vpop.permute.xlu0 %4824 }
 0x417   :  { %v9229_v59 = vunpack.i.l.bf16 %v16112_v9  ;;  %v1035_v49 = vmul.f32 %v9249_v30, %v15733_v26  ;;  %v4010_v12 = vmul.f32 %v9094_v57, %v11791_v63  ;;  %v3382_v21 = vadd.f32 %v3254_v41, %v2610_v53  ;;  %v16114_v53 = vld [vmem:[#allocation104_spill] sm:$0xff] }
 0x418   :  { %v5284_v44 = vpack.c.bf16 %v5130_v13, %v5129_v38  ;;  %v4153_v15 = vadd.f32 %v4025_v14, %v3381_v52  ;;  %6464 = vperm.xlu1 %9124, %v6438_v60   ;;  %v7210_v39 = vunpack.c.l.bf16 %v7299_v33  ;;  %v7211_v58 = vunpack.c.h.bf16 %v7299_v33  ;;  %v16117_v60 = vld [vmem:[#allocation292_spill] sm:$0xff] }
 0x419   :  { %v8669_v31 = vunpack.i.l.bf16 %v16103_v34  ;;  %v3237_v61 = vmul.f32 %v8739_v6, %v16010_v27  ;;  %v1020_v11 = vmul.f32 %v9230_v42, %v15733_v26  ;;  %v1808_v35 = vadd.f32 %v13747_v50, %v1036_v7  ;;  %v16115_v50 = vld [vmem:[#allocation154_spill] sm:$0xff] }
 0x41a   :  { %v3366_v1 = vadd.f32 %v3238_v0, %v2594_v24  ;;  %v5049_v22 = vadd.f32 %v4900_v16, %v4153_v15  ;;  %7445 = vmatpush3.bf16.msra.mxu0 %v5284_v44  ;;  %v4154_v57 = vadd.f32 %v4026_v56, %v3382_v21  ;;  %v4009_v30 = vmul.f32 %v9089_v29, %v11791_v63  ;;  %v4905_v14 = vpop.permute.xlu1 %4904  ;;  %v16116_v24 = vld [vmem:[#allocation89_spill] sm:$0xff]  ;;  %v16118_v29 = vld [vmem:[#allocation304_spill] sm:$0xff] }
 0x41b   :  { %v8348_v62 = vunpack.i.h.bf16 %v16113_v40  ;;  %v8705_v28 = vunpack.i.h.bf16 %v16114_v53  ;;  %v1019_v6 = vmul.f32 %v9229_v59, %v15733_v26  ;;  %v3365_v55 = vadd.f32 %v3237_v61, %v2593_v37  ;;  %v16119_v21 = vld [vmem:[#allocation257_spill] sm:$0xff]  ;;  %v16121_v15 = vld [vmem:[#allocation272_spill] sm:$0xff] }
 0x41c   :  { %v1807_v41 = vadd.f32 %v16115_v50, %v1035_v49  ;;  %v4138_v9 = vadd.f32 %v4010_v12, %v3366_v1  ;;  %v5050_v42 = vadd.f32 %v4905_v14, %v4154_v57  ;;  %6474 = vperm.xlu1 %9124, %v6440_v4   ;;  %v9296_v0 = vpack.i.bf16 %v7211_v58, %v7210_v39  ;;  %v16120_v12 = vld [vmem:[#allocation146_spill] sm:$0xff]  ;;  %v16122_v61 = vld [vmem:[#allocation77_spill] sm:$0xff]  ;;  %v16124_v50 = vld [vmem:[#allocation291_spill] sm:$0xff] }
 0x41d   :  { %v8665_v7 = vunpack.i.h.bf16 %v16116_v24  ;;  %v8704_v52 = vunpack.i.l.bf16 %v16114_v53  ;;  %v1792_v33 = vadd.f32 %v16117_v60, %v1020_v11  ;;  %v2580_v38 = vadd.f32 %v16118_v29, %v1808_v35  ;;  %v16123_v11 = vld [vmem:[#allocation301_spill] sm:$0xff] }
 0x41e   :  { %v5034_v13 = vadd.f32 %v4825_v36, %v4138_v9  ;;  %v5177_v56 = vmax.f32 %v5049_v22, 0.0  ;;  %v5178_v59 = vmax.f32 %v5050_v42, 0.0  ;;  %v4137_v16 = vadd.f32 %v4009_v30, %v3365_v55  ;;  %v4820_v58 = vpop.permute.xlu1 %4819  ;;  %v7301_v36 = vld [vmem:[%s14449_s9 + $0x18] sm:$0xff]  }
 0x41f   :  { %v3224_v37 = vmul.f32 %v8705_v28, %v16010_v27  ;;  %v9099_v49 = vunpack.i.l.bf16 %v16119_v21  ;;  %v1791_v44 = vadd.f32 %v16120_v12, %v1019_v6  ;;  %v9289_v39 = vunpack.i.l.bf16 %v16121_v15  ;;  %v6442_v6 = vld [vmem:[%s14448_s8 + $0x30] sm:$0xff] }
 0x420   :  { %v8987_v4 = vunpack.i.h.bf16 %v16122_v61  ;;  %v5308_v1 = vpack.c.bf16 %v5178_v59, %v5177_v56  ;;  %v5033_v57 = vadd.f32 %v4820_v58, %v4137_v16  ;;  %9297 = vperm.xlu1 %9124, %v9296_v0   ;;  %v2579_v35 = vadd.f32 %v16123_v11, %v1807_v41  ;;  %v4755_v0 = vpop.permute.xlu0 %4754  ;;  %v16126_v58 = vld [vmem:[#allocation40_spill] sm:$0xff] }
 0x421   :  { %v8664_v22 = vunpack.i.l.bf16 %v16116_v24  ;;  %v3223_v30 = vmul.f32 %v8704_v52, %v16010_v27  ;;  %v9095_v53 = vunpack.i.h.bf16 %v16108_v8  ;;  %v3352_v28 = vadd.f32 %v3224_v37, %v2580_v38  ;;  %v16125_v52 = vld [vmem:[#allocation289_spill] sm:$0xff] }
 0x422   :  { %v9290_v14 = vunpack.i.h.bf16 %v16121_v15  ;;  %v5162_v55 = vmax.f32 %v5034_v13, 0.0  ;;  %v2564_v41 = vadd.f32 %v16124_v50, %v1792_v33  ;;  %v5161_v9 = vmax.f32 %v5033_v57, 0.0  ;;  %7508 = vmatprep.subr.bf16.mxu1 %v5308_v1 }
 0x423   :  { %v3208_v42 = vmul.f32 %v8665_v7, %v16010_v27  ;;  %v1067_v8 = vmul.f32 %v9289_v39, %v15733_v26  ;;  %v3996_v24 = vmul.f32 %v9099_v49, %v11791_v63  ;;  %v2563_v60 = vadd.f32 %v16125_v52, %v1791_v44  ;;  %v14115_v38 = vpop.permute.xlu1 %9113  ;;  %v6443_v49 = vld [vmem:[%s14448_s8 + $0x38] sm:$0xff] }
 0x424   :  { %v5300_v29 = vpack.c.bf16 %v5162_v55, %v5161_v9  ;;  %6484 = vperm.xlu1 %9124, %v6442_v6   ;;  %v3351_v56 = vadd.f32 %v3223_v30, %v2579_v35  ;;  %v7218_v59 = vunpack.c.l.bf16 %v7301_v36  ;;  %v7219_v13 = vunpack.c.h.bf16 %v7301_v36 }
 0x425   :  { %v14118_v33 = vmul.f32 %v8669_v31, %v16010_v27  ;;  %v8347_v16 = vunpack.i.l.bf16 %v16113_v40  ;;  %v8986_v7 = vunpack.i.l.bf16 %v16122_v61  ;;  %v3207_v37 = vmul.f32 %v8664_v22, %v16010_v27 }
 0x426   :  { %v1068_v12 = vmul.f32 %v9290_v14, %v15733_v26  ;;  %v4124_v44 = vadd.f32 %v3996_v24, %v3352_v28  ;;  %v3336_v15 = vadd.f32 %v3208_v42, %v2564_v41  ;;  %7509 = vmatpush3.bf16.msra.mxu1 %v5300_v29  ;;  %v3995_v39 = vmul.f32 %v9095_v53, %v11791_v63  ;;  %v16127_v53 = vld [vmem:[#allocation136_spill] sm:$0xff]  ;;  %v16128_v41 = vld [vmem:[#allocation69_spill] sm:$0xff] }
 0x427   :  { %v2438_v31 = vmul.f32 %v8348_v62, %v16039_v3  ;;  %v9269_v1 = vunpack.i.l.bf16 %v16126_v58  ;;  %v1839_v40 = vadd.f32 %v14017_v47, %v1067_v8  ;;  %v3980_v61 = vmul.f32 %v8987_v4, %v11791_v63  ;;  %v4675_v62 = vpop.permute.xlu0 %4674 }
 0x428   :  { %v5020_v57 = vadd.f32 %v4755_v0, %v4124_v44  ;;  %6489 = vperm.xlu1 %9124, %v6443_v49   ;;  %v4123_v11 = vadd.f32 %v3995_v39, %v3351_v56  ;;  %v9306_v35 = vpack.i.bf16 %v7219_v13, %v7218_v59  ;;  %v3335_v22 = vadd.f32 %v3207_v37, %v2563_v60  ;;  %v4750_v36 = vpop.permute.xlu1 %4749  ;;  %v16129_v60 = vld [vmem:[#allocation211_spill] sm:$0xff]  ;;  %v16130_v44 = vld [vmem:[#allocation261_spill] sm:$0xff] }
 0x429   :  { %v3210_v30 = vmul.f32 %v8670_v19, %v16010_v27  ;;  %v2437_v28 = vmul.f32 %v8347_v16, %v16039_v3  ;;  %v8784_v6 = vunpack.i.l.bf16 %v16127_v53  ;;  %v3979_v14 = vmul.f32 %v8986_v7, %v11791_v63  ;;  %v6446_v16 = vld [vmem:[%s14448_s8 + $0x50] sm:$0xff] }
 0x42a   :  { %v9270_v47 = vunpack.i.h.bf16 %v16126_v58  ;;  %v1840_v4 = vadd.f32 %v14034_v23, %v1068_v12  ;;  %v4108_v55 = vadd.f32 %v3980_v61, %v3336_v15  ;;  %v5019_v50 = vadd.f32 %v4750_v36, %v4123_v11  ;;  %v16131_v11 = vld [vmem:[#allocation121_spill] sm:$0xff] }
 0x42b   :  { %v2566_v9 = vadd.f32 %v2438_v31, %v16128_v41  ;;  %v8785_v42 = vunpack.i.h.bf16 %v16127_v53  ;;  %v1051_v34 = vmul.f32 %v9269_v1, %v15733_v26  ;;  %v2611_v19 = vadd.f32 %v14008_v51, %v1839_v40  ;;  %v7303_v51 = vld [vmem:[%s14449_s9 + $0x28] sm:$0xff]  }
 0x42c   :  { %v5148_v8 = vmax.f32 %v5020_v57, 0.0  ;;  %v5004_v0 = vadd.f32 %v4675_v62, %v4108_v55  ;;  %v5147_v24 = vmax.f32 %v5019_v50, 0.0  ;;  %9307 = vperm.xlu1 %9124, %v9306_v35   ;;  %v4107_v52 = vadd.f32 %v3979_v14, %v3335_v22  ;;  %v4670_v13 = vpop.permute.xlu1 %4669  ;;  %v16132_v22 = vld [vmem:[#allocation66_spill] sm:$0xff]  ;;  %v4910_v50 = vpop.permute.xlu0 %4909 }
 0x42d   :  { %v8388_v29 = vunpack.i.h.bf16 %v16129_v60  ;;  %v8387_v56 = vunpack.i.l.bf16 %v16129_v60  ;;  %v9100_v23 = vunpack.i.h.bf16 %v16119_v21  ;;  %v3255_v59 = vmul.f32 %v8784_v6, %v16010_v27 }
 0x42e   :  { %v1052_v7 = vmul.f32 %v9270_v47, %v15733_v26  ;;  %v5293_v37 = vpack.c.bf16 %v5148_v8, %v5147_v24  ;;  %v5003_v49 = vadd.f32 %v4670_v13, %v4107_v52  ;;  %v2612_v12 = vadd.f32 %v14011_v25, %v1840_v4  ;;  %v6447_v25 = vld [vmem:[%s14448_s8 + $0x58] sm:$0xff]  ;;  %v16135_v52 = vld [vmem:[#allocation95_spill] sm:$0xff] }
 0x42f   :  { %v9104_v15 = vunpack.i.l.bf16 %v16130_v44  ;;  %v3256_v21 = vmul.f32 %v8785_v42, %v16010_v27  ;;  %v1823_v39 = vadd.f32 %v13969_v10, %v1051_v34  ;;  %v3383_v31 = vadd.f32 %v3255_v59, %v2611_v19  ;;  %v16133_v47 = vld [vmem:[#allocation209_spill] sm:$0xff] }
 0x430   :  { %v5132_v58 = vmax.f32 %v5004_v0, 0.0  ;;  %v5131_v1 = vmax.f32 %v5003_v49, 0.0  ;;  %6504 = vperm.xlu1 %9124, %v6446_v16   ;;  %7446 = vmatprep.subr.bf16.mxu0 %v5293_v37  ;;  %v7226_v40 = vunpack.c.l.bf16 %v7303_v51  ;;  %v7227_v61 = vunpack.c.h.bf16 %v7303_v51  ;;  %v16134_v0 = vld [vmem:[#allocation93_spill] sm:$0xff]  ;;  %v16137_v51 = vld [vmem:[#allocation267_spill] sm:$0xff] }
 0x431   :  { %v2453_v57 = vmul.f32 %v8387_v56, %v16039_v3  ;;  %v2454_v26 = vmul.f32 %v8388_v29, %v16039_v3  ;;  %v8744_v35 = vunpack.i.l.bf16 %v16131_v11  ;;  %v2565_v53 = vadd.f32 %v2437_v28, %v16132_v22  ;;  %v14168_v36 = vpop.permute.xlu1 %9120 }
 0x432   :  { %v1824_v10 = vadd.f32 %v13999_v54, %v1052_v7  ;;  %v4027_v6 = vmul.f32 %v9100_v23, %v11791_v63  ;;  %v5285_v62 = vpack.c.bf16 %v5132_v58, %v5131_v1  ;;  %v3384_v14 = vadd.f32 %v3256_v21, %v2612_v12 }
 0x433   :  { %v8710_v4 = vunpack.i.h.bf16 %v16133_v47  ;;  %v8709_v55 = vunpack.i.l.bf16 %v16133_v47  ;;  %v14172_v41 = vadd.f32 %v3210_v30, %v2566_v9  ;;  %v4028_v42 = vmul.f32 %v9104_v15, %v11791_v63  ;;  %v4760_v15 = vpop.permute.xlu0 %4759  ;;  %v16140_v47 = vld [vmem:[#allocation215_spill] sm:$0xff] }
 0x434   :  { %v8745_v34 = vunpack.i.h.bf16 %v16131_v11  ;;  %v4155_v28 = vadd.f32 %v4027_v6, %v3383_v31  ;;  %6509 = vperm.xlu1 %9124, %v6447_v25   ;;  %7447 = vmatpush3.bf16.msra.mxu0 %v5285_v62  ;;  %v9316_v54 = vpack.i.bf16 %v7227_v61, %v7226_v40  ;;  %v2595_v19 = vadd.f32 %v13948_v2, %v1823_v39  ;;  %v16136_v2 = vld [vmem:[#allocation225_spill] sm:$0xff]  ;;  %v6450_v31 = vld [vmem:[%s14448_s8 + $0x70] sm:$0xff] }
 0x435   :  { %v3239_v8 = vmul.f32 %v8744_v35, %v16010_v27  ;;  %v2581_v24 = vadd.f32 %v2453_v57, %v16134_v0  ;;  %v2582_v60 = vadd.f32 %v2454_v26, %v16135_v52  ;;  %v14181_v29 = vadd.f32 %v14118_v33, %v2565_v53  ;;  %v16138_v26 = vld [vmem:[#allocation217_spill] sm:$0xff] }
 0x436   :  { %v9105_v30 = vunpack.i.h.bf16 %v16130_v44  ;;  %v5051_v9 = vadd.f32 %v4910_v50, %v4155_v28  ;;  %v4156_v56 = vadd.f32 %v4028_v42, %v3384_v14  ;;  %v2596_v23 = vadd.f32 %v13951_v20, %v1824_v10  ;;  %v4915_v37 = vpop.permute.xlu1 %4914  ;;  %v16139_v35 = vld [vmem:[#allocation221_spill] sm:$0xff] }
 0x437   :  { %v3225_v59 = vmul.f32 %v8709_v55, %v16010_v27  ;;  %v3226_v13 = vmul.f32 %v8710_v4, %v16010_v27  ;;  %v8468_v16 = vunpack.i.h.bf16 %v16136_v2  ;;  %v9110_v7 = vunpack.i.h.bf16 %v16137_v51 }
 0x438   :  { %v3240_v49 = vmul.f32 %v8745_v34, %v16010_v27  ;;  %v9109_v33 = vunpack.i.l.bf16 %v16137_v51  ;;  %v5052_v12 = vadd.f32 %v4915_v37, %v4156_v56  ;;  %9317 = vperm.xlu1 %9124, %v9316_v54   ;;  %v3367_v44 = vadd.f32 %v3239_v8, %v2595_v19  ;;  %v6451_v34 = vld [vmem:[%s14448_s8 + $0x78] sm:$0xff] }
 0x439   :  { %v3353_v21 = vadd.f32 %v3225_v59, %v2581_v24  ;;  %v9116_v20 = vunpack.i.h.bf16 %v14115_v38  ;;  %v9115_v39 = vunpack.i.l.bf16 %v14115_v38  ;;  %v3354_v58 = vadd.f32 %v3226_v13, %v2582_v60  ;;  %v4685_v60 = vpop.permute.xlu0 %4684  ;;  %v16141_v56 = vld [vmem:[#allocation105_spill] sm:$0xff] }
 0x43a   :  { %v5179_v1 = vmax.f32 %v5051_v9, 0.0  ;;  %v5180_v40 = vmax.f32 %v5052_v12, 0.0  ;;  %v4011_v61 = vmul.f32 %v9105_v30, %v11791_v63  ;;  %v3368_v57 = vadd.f32 %v3240_v49, %v2596_v23  ;;  %v4830_v10 = vpop.permute.xlu1 %4829 }
 0x43b   :  { %v8428_v11 = vunpack.i.h.bf16 %v16138_v26  ;;  %v8790_v25 = vunpack.i.h.bf16 %v16139_v35  ;;  %v8467_v22 = vunpack.i.l.bf16 %v16136_v2  ;;  %v3997_v53 = vmul.f32 %v9110_v7, %v11791_v63 }
 0x43c   :  { %v2486_v38 = vmul.f32 %v8468_v16, %v16039_v3  ;;  %v5309_v6 = vpack.c.bf16 %v5180_v40, %v5179_v1  ;;  %v4139_v62 = vadd.f32 %v4011_v61, %v3367_v44  ;;  %6524 = vperm.xlu1 %9124, %v6450_v31   ;;  %v4012_v14 = vmul.f32 %v9109_v33, %v11791_v63  ;;  %v16144_v1 = vld [vmem:[#allocation271_spill] sm:$0xff] }
 0x43d   :  { %v8750_v4 = vunpack.i.h.bf16 %v16140_v47  ;;  %v8991_v55 = vunpack.i.l.bf16 %v15967_v46  ;;  %v3982_v50 = vmul.f32 %v9116_v20, %v11791_v63  ;;  %v3998_v42 = vmul.f32 %v9115_v39, %v11791_v63  ;;  %v16142_v20 = vld [vmem:[#allocation246_spill] sm:$0xff] }
 0x43e   :  { %v8427_v28 = vunpack.i.l.bf16 %v16138_v26  ;;  %v9123_v54 = vunpack.i.h.bf16 %v14168_v36  ;;  %v5035_v19 = vadd.f32 %v4830_v10, %v4139_v62  ;;  %7510 = vmatprep.subr.bf16.mxu1 %v5309_v6  ;;  %v4140_v8 = vadd.f32 %v4012_v14, %v3368_v57  ;;  %v4835_v30 = vpop.permute.xlu1 %4834  ;;  %v16145_v62 = vld [vmem:[#allocation245_spill] sm:$0xff] }
 0x43f   :  { %v2470_v0 = vmul.f32 %v8428_v11, %v16039_v3  ;;  %v8789_v24 = vunpack.i.l.bf16 %v16139_v35  ;;  %v2485_v46 = vmul.f32 %v8467_v22, %v16039_v3  ;;  %v4125_v52 = vadd.f32 %v3997_v53, %v3353_v21  ;;  %v4925_v11 = vpop.permute.xlu0 %4924 }
 0x440   :  { %v3258_v9 = vmul.f32 %v8790_v25, %v16010_v27  ;;  %v2614_v23 = vadd.f32 %v2486_v38, %v16141_v56  ;;  %v5036_v59 = vadd.f32 %v4835_v30, %v4140_v8  ;;  %6529 = vperm.xlu1 %9124, %v6451_v34   ;;  %v7234_v13 = vunpack.c.l.bf16 %v13843_v48  ;;  %v16143_v48 = vld [vmem:[#allocation71_spill] sm:$0xff] }
 0x441   :  { %v5021_v2 = vadd.f32 %v4760_v15, %v4125_v52  ;;  %v4110_v16 = vadd.f32 %v3982_v50, %v14172_v41  ;;  %v4126_v51 = vadd.f32 %v3998_v42, %v3354_v58  ;;  %v3981_v7 = vmul.f32 %v8991_v55, %v11791_v63  ;;  %v5193_v52 = vld [vmem:[%s14443_s3 + $0x50] sm:$0xff] }
 0x442   :  { %v9122_v37 = vunpack.i.l.bf16 %v14168_v36  ;;  %v4030_v49 = vmul.f32 %v9123_v54, %v11791_v63  ;;  %v5163_v33 = vmax.f32 %v5035_v19, 0.0  ;;  %v5164_v12 = vmax.f32 %v5036_v59, 0.0  ;;  %v4765_v31 = vpop.permute.xlu1 %4764 }
 0x443   :  { %v8749_v44 = vunpack.i.l.bf16 %v16140_v47  ;;  %v2469_v21 = vmul.f32 %v8427_v28, %v16039_v3  ;;  %v2598_v39 = vadd.f32 %v2470_v0, %v16142_v20  ;;  %v2613_v15 = vadd.f32 %v2485_v46, %v16143_v48  ;;  %v6842_v3 = vld [vmem:[#allocation2] sm:$0x1]  ;;  %v5209_v20 = vld [vmem:[%s14443_s3 + $0xd0] sm:$0xff]  ;;  %v5206_v48 = vld [vmem:[%s14443_s3 + $0xb8] sm:$0xff] }
 0x444   :  { %v9129_v41 = vunpack.i.h.bf16 %v16144_v1  ;;  %v3386_v58 = vadd.f32 %v3258_v9, %v2614_v23  ;;  %v5301_v40 = vpack.c.bf16 %v5164_v12, %v5163_v33  ;;  %v5022_v61 = vadd.f32 %v4765_v31, %v4126_v51  ;;  %6797 = vperm.xlu1 %9124, %v7234_v13   ;;  %v5205_v33 = vld [vmem:[%s14443_s3 + $0xb0] sm:$0xff]  ;;  %v5194_v12 = vld [vmem:[%s14443_s3 + $0x58] sm:$0xff] }
 0x445   :  { %v3257_v36 = vmul.f32 %v8789_v24, %v16010_v27  ;;  %v9128_v57 = vunpack.i.l.bf16 %v16144_v1  ;;  %v5149_v26 = vmax.f32 %v5021_v2, 0.0  ;;  %v4109_v35 = vadd.f32 %v3981_v7, %v14181_v29  ;;  %v5202_v31 = vld [vmem:[%s14443_s3 + $0x98] sm:$0xff]  ;;  %v5217_v1 = vld [vmem:[%s14443_s3 + $0x110] sm:$0xff] }
 0x446   :  { %v4029_v25 = vmul.f32 %v9122_v37, %v11791_v63  ;;  %v4158_v22 = vadd.f32 %v4030_v49, %v3386_v58  ;;  %v5150_v53 = vmax.f32 %v5022_v61, 0.0  ;;  %7511 = vmatpush3.bf16.msra.mxu1 %v5301_v40  ;;  %v5006_v10 = vadd.f32 %v4685_v60, %v4110_v16  ;;  %v4680_v6 = vpop.permute.xlu1 %4679  ;;  %v5197_v60 = vld [vmem:[%s14443_s3 + $0x70] sm:$0xff]  ;;  %v5210_v58 = vld [vmem:[%s14443_s3 + $0xd8] sm:$0xff] }
 0x447   :  { %v3242_v38 = vmul.f32 %v8750_v4, %v16010_v27  ;;  %v2597_v14 = vadd.f32 %v2469_v21, %v16145_v62  ;;  %v4014_v47 = vmul.f32 %v9129_v41, %v11791_v63  ;;  %v5005_v50 = vadd.f32 %v4680_v6, %v4109_v35  ;;  %v4845_v4 = vpop.permute.xlu0 %4844  ;;  %v5201_v49 = vld [vmem:[%s14443_s3 + $0x90] sm:$0xff]  ;;  %v5214_v40 = vld [vmem:[%s14443_s3 + $0xf8] sm:$0xff] }
 0x448   :  { %v5294_v55 = vpack.c.bf16 %v5150_v53, %v5149_v26  ;;  %6845 = vperm.xlu1 %9124, %v6842_v3   ;;  %v3385_v42 = vadd.f32 %v3257_v36, %v2613_v15  ;;  %v3241_v29 = vmul.f32 %v8749_v44, %v16010_v27  ;;  %v4013_v28 = vmul.f32 %v9128_v57, %v11791_v63  ;;  %v5221_v41 = vld [vmem:[%s14443_s3 + $0x130] sm:$0xff] }
 0x449   :  { %v3370_v34 = vadd.f32 %v3242_v38, %v2598_v39  ;;  %v5133_v54 = vmax.f32 %v5005_v50, 0.0  ;;  %v5134_v19 = vmax.f32 %v5006_v10, 0.0  ;;  %v5054_v0 = vadd.f32 %v4925_v11, %v4158_v22  ;;  %v5213_v39 = vld [vmem:[%s14443_s3 + $0xf0] sm:$0xff]  ;;  %v5222_v22 = vld [vmem:[%s14443_s3 + $0x138] sm:$0xff] }
 0x44a   :  { %7448 = vmatprep.subr.bf16.mxu0 %v5294_v55  ;;  %v4157_v8 = vadd.f32 %v4029_v25, %v3385_v42  ;;  %v4920_v24 = vpop.permute.xlu1 %4919  ;;  %v3369_v46 = vadd.f32 %v3241_v29, %v2597_v14  ;;  %v6881_v13 = vcombine.high %v5193_v52, %v5197_v60  ;;  %v6889_v44 = vcombine.high %v5201_v49, %v5205_v33  ;;  %v5225_v11 = vld [vmem:[%s14443_s3 + $0x150] sm:$0xff]  ;;  %v5218_v25 = vld [vmem:[%s14443_s3 + $0x118] sm:$0xff] }
 0x44b   :  { %v4142_v27 = vadd.f32 %v4014_v47, %v3370_v34  ;;  %v5286_v30 = vpack.c.bf16 %v5134_v19, %v5133_v54  ;;  %v5182_v59 = vmax.f32 %v5054_v0, 0.0  ;;  %v6883_v21 = vcombine.high %v5194_v12, %v5198_v18  ;;  %v5229_v3 = vld [vmem:[%s14443_s3 + $0x170] sm:$0xff]  ;;  %v5226_v54 = vld [vmem:[%s14443_s3 + $0x158] sm:$0xff] }
 0x44c   :  { %v5053_v9 = vadd.f32 %v4920_v24, %v4157_v8  ;;  %v4141_v63 = vadd.f32 %v4013_v28, %v3369_v46  ;;  %v6888_v17 = vcombine.low %v5201_v49, %v5205_v33  ;;  %v6882_v5 = vcombine.low %v5194_v12, %v5198_v18  ;;  %v5233_v42 = vld [vmem:[%s14443_s3 + $0x190] sm:$0xff]  ;;  %v5230_v19 = vld [vmem:[%s14443_s3 + $0x178] sm:$0xff] }
 0x44d   :  { %v5038_v56 = vadd.f32 %v4845_v4, %v4142_v27  ;;  %7449 = vmatpush3.bf16.msra.mxu0 %v5286_v30  ;;  %v6891_v15 = vcombine.high %v5202_v31, %v5206_v48  ;;  %v6896_v61 = vcombine.low %v5209_v20, %v5213_v39  ;;  %v6890_v36 = vcombine.low %v5202_v31, %v5206_v48  ;;  %v5237_v28 = vld [vmem:[%s14443_s3 + $0x1b0] sm:$0xff] }
 0x44e   :  { %v5181_v23 = vmax.f32 %v5053_v9, 0.0  ;;  %v4840_v2 = vpop.permute.xlu1 %4839  ;;  %v6905_v57 = vcombine.high %v5217_v1, %v5221_v41  ;;  %v6899_v26 = vcombine.high %v5210_v58, %v5214_v40  ;;  %v6904_v6 = vcombine.low %v5217_v1, %v5221_v41  ;;  %v5241_v49 = vld [vmem:[%s14443_s3 + $0x1d0] sm:$0xff] }
 0x44f   :  { %v5037_v51 = vadd.f32 %v4840_v2, %v4141_v63  ;;  %v5166_v7 = vmax.f32 %v5038_v56, 0.0  ;;  %v6898_v62 = vcombine.low %v5210_v58, %v5214_v40  ;;  %v6913_v47 = vcombine.high %v5225_v11, %v5229_v3  ;;  %v5245_v18 = vld [vmem:[%s14443_s3 + $0x1f0] sm:$0xff] }
 0x450   :  { %v5310_v16 = vpack.c.bf16 %v5182_v59, %v5181_v23  ;;  %5954 = vmatmul.mubr.bf16.vlgmr.msra.gmra.mrb[32].mxu0 %v6872_v32  ;;  %v6880_v32 = vcombine.low %v5193_v52, %v5197_v60  ;;  %v6907_v55 = vcombine.high %v5218_v25, %v5222_v22  ;;  %v6912_v52 = vcombine.low %v5225_v11, %v5229_v3  ;;  %v5335_v59 = vpop.permute.xlu0 %5334 }
 0x451   :  { %v5165_v37 = vmax.f32 %v5037_v51, 0.0  ;;  %5961 = vmatprep.mubr.bf16.mxu0 %v6881_v13  ;;  %v6906_v60 = vcombine.low %v5218_v25, %v5222_v22  ;;  %v6921_v56 = vcombine.high %v5233_v42, %v5237_v28  ;;  %v6915_v23 = vcombine.high %v5226_v54, %v5230_v19  ;;  %v5242_v22 = vld [vmem:[%s14443_s3 + $0x1d8] sm:$0xff] }
 0x452   :  { %7512 = vmatprep.subr.bf16.mxu1 %v5310_v16  ;;  %v5330_v29 = vpop.permute.xlu1 %5329  ;;  %v6920_v48 = vcombine.low %v5233_v42, %v5237_v28  ;;  %v6929_v41 = vcombine.high %v5241_v49, %v5245_v18 }
 0x453   :  { %v5302_v43 = vpack.c.bf16 %v5166_v7, %v5165_v37 }
 0x454   :  { %v5345_v40 = vpop.permute.xlu0 %5344 }
 0x455   :  { %7513 = vmatpush3.bf16.msra.mxu1 %v5302_v43  ;;  %v5234_v43 = vld [vmem:[%s14443_s3 + $0x198] sm:$0xff] }
 0x457   :  { %v5340_v33 = vpop.permute.xlu1 %5339 }
 0x458   :  { %5962 = vmatmul.mubr.bf16.gmra.mrb[36].mxu0 %v6880_v32  ;;  %6051 = vmatmul.mubr.bf16.vlgmr.msra.gmra.mrb[32].mxu1 %v6874_v45  ;;  %v6897_v45 = vcombine.high %v5209_v20, %v5213_v39  ;;  %v5238_v32 = vld [vmem:[%s14443_s3 + $0x1b8] sm:$0xff] }
 0x459   :  { %5969 = vmatprep.mubr.bf16.mxu0 %v6889_v44  ;;  %6058 = vmatprep.mubr.bf16.mxu1 %v6883_v21  ;;  %v6923_v58 = vcombine.high %v5234_v43, %v5238_v32 }
 0x45b   :  { %v5350_v3 = vpop.permute.xlu1 %5349 }
 0x460   :  { %5970 = vmatmul.mubr.bf16.gmra.mrb[40].mxu0 %v6888_v17  ;;  %6059 = vmatmul.mubr.bf16.gmra.mrb[36].mxu1 %v6882_v5  ;;  %v6914_v17 = vcombine.low %v5226_v54, %v5230_v19  ;;  %v5355_v54 = vpop.permute.xlu0 %5354 }
 0x461   :  { %5977 = vmatprep.mubr.bf16.mxu0 %v6897_v45  ;;  %6066 = vmatprep.mubr.bf16.mxu1 %v6891_v15 }
 0x468   :  { %5978 = vmatmul.mubr.bf16.gmra.mrb[44].mxu0 %v6896_v61  ;;  %6067 = vmatmul.mubr.bf16.gmra.mrb[40].mxu1 %v6890_v36 }
 0x469   :  { %5985 = vmatprep.mubr.bf16.mxu0 %v6905_v57  ;;  %6074 = vmatprep.mubr.bf16.mxu1 %v6899_v26 }
 0x46a   :  { %v7322_v35 = vpop.f32.mrb[0].mxu0 }
 0x46b   :  { %v7323_v53 = vpop.f32.mrb[1].mxu0 }
 0x46c   :  { %v7324_v10 = vadd.f32 %v7323_v53, %v7322_v35  ;;  %v7325_v38 = vpop.f32.mrb[2].mxu0  ;;  %v5246_v53 = vld [vmem:[%s14443_s3 + $0x1f8] sm:$0xff] }
 0x46d   :  { %v7326_v14 = vpop.f32.mrb[3].mxu0  ;;  %v6931_v28 = vcombine.high %v5242_v22, %v5246_v53 }
 0x46e   :  { %v7327_v50 = vadd.f32 %v7326_v14, %v7325_v38  ;;  %v5762_v27 = vadd.f32 %v7324_v10, %v5330_v29 }
 0x470   :  { %5986 = vmatmul.mubr.bf16.gmra.mrb[48].mxu0 %v6904_v6  ;;  %6075 = vmatmul.mubr.bf16.gmra.mrb[44].mxu1 %v6898_v62  ;;  %v5765_v16 = vadd.f32 %v7327_v50, %v5335_v59 }
 0x471   :  { %5993 = vmatprep.mubr.bf16.mxu0 %v6913_v47  ;;  %6082 = vmatprep.mubr.bf16.mxu1 %v6907_v55  ;;  %v6928_v47 = vcombine.low %v5241_v49, %v5245_v18  ;;  %v6922_v55 = vcombine.low %v5234_v43, %v5238_v32 }
 0x472   :  { %v7328_v34 = vpop.f32.mrb[4].mxu0 }
 0x473   :  { %v7329_v0 = vpop.f32.mrb[5].mxu0 }
 0x474   :  { %v7386_v8 = vpop.f32.mrb[0].mxu1  ;;  %v7330_v4 = vadd.f32 %v7329_v0, %v7328_v34  ;;  %v7331_v46 = vpop.f32.mrb[6].mxu0 }
 0x475   :  { %v7387_v24 = vpop.f32.mrb[1].mxu1  ;;  %v7332_v63 = vpop.f32.mrb[7].mxu0 }
 0x476   :  { %v7388_v30 = vadd.f32 %v7387_v24, %v7386_v8  ;;  %v7389_v9 = vpop.f32.mrb[2].mxu1  ;;  %v7333_v13 = vadd.f32 %v7332_v63, %v7331_v46  ;;  %v5770_v5 = vadd.f32 %v7330_v4, %v5340_v33 }
 0x477   :  { %v7390_v2 = vpop.f32.mrb[3].mxu1 }
 0x478   :  { %v14308_v51 = vadd.f32 %v7388_v30, %v5762_v27  ;;  %v7391_v7 = vadd.f32 %v7390_v2, %v7389_v9  ;;  %5994 = vmatmul.mubr.bf16.gmra.mrb[52].mxu0 %v6912_v52  ;;  %6083 = vmatmul.mubr.bf16.gmra.mrb[48].mxu1 %v6906_v60  ;;  %v5773_v57 = vadd.f32 %v7333_v13, %v5345_v40  ;;  %v5360_v52 = vpop.permute.xlu1 %5359 }
 0x479   :  { %6001 = vmatprep.mubr.bf16.mxu0 %v6921_v56  ;;  %6090 = vmatprep.mubr.bf16.mxu1 %v6915_v23  ;;  %v6930_v23 = vcombine.low %v5242_v22, %v5246_v53 }
 0x47a   :  { %v14310_v37 = vadd.f32 %v7391_v7, %v5765_v16  ;;  %v7334_v12 = vpop.f32.mrb[8].mxu0  ;;  %v5365_v7 = vpop.permute.xlu0 %5364 }
 0x47b   :  { %v7335_v21 = vpop.f32.mrb[9].mxu0 }
 0x47c   :  { %v7392_v44 = vpop.f32.mrb[4].mxu1  ;;  %v7336_v20 = vadd.f32 %v7335_v21, %v7334_v12  ;;  %v7337_v31 = vpop.f32.mrb[10].mxu0 }
 0x47d   :  { %v7393_v39 = vpop.f32.mrb[5].mxu1  ;;  %v7338_v1 = vpop.f32.mrb[11].mxu0 }
 0x47e   :  { %v7394_v45 = vadd.f32 %v7393_v39, %v7392_v44  ;;  %v7395_v15 = vpop.f32.mrb[6].mxu1  ;;  %v7339_v61 = vadd.f32 %v7338_v1, %v7337_v31  ;;  %v5778_v50 = vadd.f32 %v7336_v20, %v5350_v3  ;;  %v5370_v44 = vpop.permute.xlu1 %5369 }
 0x47f   :  { %v7396_v36 = vpop.f32.mrb[7].mxu1 }
 0x480   :  { %v14324_v26 = vadd.f32 %v7394_v45, %v5770_v5  ;;  %v7397_v11 = vadd.f32 %v7396_v36, %v7395_v15  ;;  %6002 = vmatmul.mubr.bf16.gmra.mrb[56].mxu0 %v6920_v48  ;;  %6091 = vmatmul.mubr.bf16.gmra.mrb[52].mxu1 %v6914_v17  ;;  %v5781_v0 = vadd.f32 %v7339_v61, %v5355_v54 }
 0x481   :  { %6009 = vmatprep.mubr.bf16.mxu0 %v6929_v41  ;;  %6098 = vmatprep.mubr.bf16.mxu1 %v6923_v58  ;;  %v5375_v41 = vpop.permute.xlu0 %5374 }
 0x482   :  { %v14326_v35 = vadd.f32 %v7397_v11, %v5773_v57  ;;  %v7340_v25 = vpop.f32.mrb[12].mxu0  ;;  %v5380_v3 = vpop.permute.xlu1 %5379 }
 0x483   :  { %v7341_v38 = vpop.f32.mrb[13].mxu0 }
 0x484   :  { %v7398_v10 = vpop.f32.mrb[8].mxu1  ;;  %v7342_v6 = vadd.f32 %v7341_v38, %v7340_v25  ;;  %v7343_v14 = vpop.f32.mrb[14].mxu0 }
 0x485   :  { %v7399_v62 = vpop.f32.mrb[9].mxu1  ;;  %v7344_v34 = vpop.f32.mrb[15].mxu0 }
 0x486   :  { %v7400_v42 = vadd.f32 %v7399_v62, %v7398_v10  ;;  %v7401_v29 = vpop.f32.mrb[10].mxu1  ;;  %v7345_v19 = vadd.f32 %v7344_v34, %v7343_v14  ;;  %v5786_v59 = vadd.f32 %v7342_v6, %v5360_v52 }
 0x487   :  { %v7402_v8 = vpop.f32.mrb[11].mxu1 }
 0x488   :  { %v14334_v4 = vadd.f32 %v7400_v42, %v5778_v50  ;;  %v7403_v24 = vadd.f32 %v7402_v8, %v7401_v29  ;;  %6010 = vmatmul.mubr.bf16.gmra.mrb[60].mxu0 %v6928_v47  ;;  %6099 = vmatmul.mubr.bf16.gmra.mrb[56].mxu1 %v6922_v55  ;;  %v5789_v12 = vadd.f32 %v7345_v19, %v5365_v7  ;;  %v5385_v50 = vpop.permute.xlu0 %5384  ;;  %v5390_v8 = vpop.permute.xlu1 %5389 }
 0x489   :  { %6106 = vmatprep.mubr.bf16.mxu1 %v6931_v28 }
 0x48a   :  { %v14336_v46 = vadd.f32 %v7403_v24, %v5781_v0 }
 0x48b   :  { %v7346_v60 = vpop.f32.mrb[16].mxu0 }
 0x48c   :  { %v7404_v27 = vpop.f32.mrb[12].mxu1  ;;  %v7347_v30 = vpop.f32.mrb[17].mxu0 }
 0x48d   :  { %v7348_v9 = vadd.f32 %v7347_v30, %v7346_v60  ;;  %v7405_v63 = vpop.f32.mrb[13].mxu1  ;;  %v7349_v56 = vpop.f32.mrb[18].mxu0 }
 0x48e   :  { %v7406_v13 = vadd.f32 %v7405_v63, %v7404_v27  ;;  %v7407_v2 = vpop.f32.mrb[14].mxu1  ;;  %v7350_v16 = vpop.f32.mrb[19].mxu0 }
 0x48f   :  { %v7351_v49 = vadd.f32 %v7350_v16, %v7349_v56  ;;  %v7408_v33 = vpop.f32.mrb[15].mxu1  ;;  %v5794_v5 = vadd.f32 %v7348_v9, %v5370_v44 }
 0x490   :  { %v14338_v18 = vadd.f32 %v7406_v13, %v5786_v59  ;;  %v7409_v43 = vadd.f32 %v7408_v33, %v7407_v2  ;;  %6107 = vmatmul.mubr.bf16.gmra.mrb[60].mxu1 %v6930_v23  ;;  %v5395_v59 = vpop.permute.xlu0 %5394 }
 0x491   :  { %v5797_v61 = vadd.f32 %v7351_v49, %v5375_v41 }
 0x492   :  { %v14340_v32 = vadd.f32 %v7409_v43, %v5789_v12  ;;  %v5400_v43 = vpop.permute.xlu1 %5399 }
 0x493   :  { %v7352_v21 = vpop.f32.mrb[20].mxu0 }
 0x494   :  { %v7410_v20 = vpop.f32.mrb[16].mxu1  ;;  %v7353_v39 = vpop.f32.mrb[21].mxu0 }
 0x495   :  { %v7354_v31 = vadd.f32 %v7353_v39, %v7352_v21  ;;  %v7411_v48 = vpop.f32.mrb[17].mxu1  ;;  %v7355_v17 = vpop.f32.mrb[22].mxu0 }
 0x496   :  { %v7412_v45 = vadd.f32 %v7411_v48, %v7410_v20  ;;  %v7413_v15 = vpop.f32.mrb[18].mxu1  ;;  %v7356_v1 = vpop.f32.mrb[23].mxu0 }
 0x497   :  { %v7357_v58 = vadd.f32 %v7356_v1, %v7355_v17  ;;  %v7414_v40 = vpop.f32.mrb[19].mxu1  ;;  %v5802_v62 = vadd.f32 %v7354_v31, %v5380_v3  ;;  %v5405_v31 = vpop.permute.xlu0 %5404  ;;  %v9321_v1 = vld [vmem:[%s14445_s5] sm:$0xff]  }
 0x498   :  { %v14342_v36 = vadd.f32 %v7412_v45, %v5794_v5  ;;  %v7415_v57 = vadd.f32 %v7414_v40, %v7413_v15  ;;  %7610 = vmatprep.mubr.bf16.mxu0 %v9321_v1 }
 0x499   :  { %v5805_v34 = vadd.f32 %v7357_v58, %v5385_v50 }
 0x49a   :  { %v14344_v11 = vadd.f32 %v7415_v57, %v5797_v61 }
 0x49b   :  { %v7358_v25 = vpop.f32.mrb[24].mxu0 }
 0x49c   :  { %v7416_v22 = vpop.f32.mrb[20].mxu1  ;;  %v7359_v53 = vpop.f32.mrb[25].mxu0 }
 0x49d   :  { %v7360_v10 = vadd.f32 %v7359_v53, %v7358_v25  ;;  %v7417_v38 = vpop.f32.mrb[21].mxu1  ;;  %v7361_v6 = vpop.f32.mrb[26].mxu0 }
 0x49e   :  { %v7418_v14 = vadd.f32 %v7417_v38, %v7416_v22  ;;  %v7419_v47 = vpop.f32.mrb[22].mxu1  ;;  %v7362_v55 = vpop.f32.mrb[27].mxu0 }
 0x49f   :  { %v7363_v42 = vadd.f32 %v7362_v55, %v7361_v6  ;;  %v7420_v29 = vpop.f32.mrb[23].mxu1  ;;  %v5810_v9 = vadd.f32 %v7360_v10, %v5390_v8 }
 0x4a0   :  { %v14346_v28 = vadd.f32 %v7418_v14, %v5802_v62  ;;  %v7421_v54 = vadd.f32 %v7420_v29, %v7419_v47 }
 0x4a1   :  { %v5813_v16 = vadd.f32 %v7363_v42, %v5395_v59 }
 0x4a2   :  { %v14348_v19 = vadd.f32 %v7421_v54, %v5805_v34 }
 0x4a3   :  { %v7364_v0 = vpop.f32.mrb[28].mxu0 }
 0x4a4   :  { %v7422_v24 = vpop.f32.mrb[24].mxu1  ;;  %v7365_v52 = vpop.f32.mrb[29].mxu0 }
 0x4a5   :  { %v7366_v60 = vadd.f32 %v7365_v52, %v7364_v0  ;;  %v7423_v27 = vpop.f32.mrb[25].mxu1  ;;  %v7367_v30 = vpop.f32.mrb[30].mxu0 }
 0x4a6   :  { %v7424_v63 = vadd.f32 %v7423_v27, %v7422_v24  ;;  %v7425_v56 = vpop.f32.mrb[26].mxu1  ;;  %v7368_v23 = vpop.f32.mrb[31].mxu0 }
 0x4a7   :  { %v7369_v13 = vadd.f32 %v7368_v23, %v7367_v30  ;;  %v7426_v2 = vpop.f32.mrb[27].mxu1  ;;  %v5818_v21 = vadd.f32 %v7366_v60, %v5400_v43 }
 0x4a8   :  { %v14350_v7 = vadd.f32 %v7424_v63, %v5810_v9  ;;  %v7427_v49 = vadd.f32 %v7426_v2, %v7425_v56 }
 0x4a9   :  { %v5821_v17 = vadd.f32 %v7369_v13, %v5405_v31 }
 0x4aa   :  { %v14352_v33 = vadd.f32 %v7427_v49, %v5813_v16 }
 0x4ac   :  { %v7428_v12 = vpop.f32.mrb[28].mxu1 }
 0x4ad   :  { %v7429_v44 = vpop.f32.mrb[29].mxu1 }
 0x4ae   :  { %v7430_v20 = vadd.f32 %v7429_v44, %v7428_v12  ;;  %v7431_v39 = vpop.f32.mrb[30].mxu1 }
 0x4af   :  { %v7432_v48 = vpop.f32.mrb[31].mxu1 }
 0x4b0   :  { %v14354_v5 = vadd.f32 %v7430_v20, %v5818_v21  ;;  %v7433_v45 = vadd.f32 %v7432_v48, %v7431_v39 }
 0x4b2   :  { %v14356_v15 = vadd.f32 %v7433_v45, %v5821_v17 }
 0x523   :  { %v7450_v41 = vpop.f32.mrb[32].mxu0 }
 0x524   :  { %v7451_v58 = vpop.f32.mrb[33].mxu0 }
 0x525   :  { %v7452_v40 = vadd.f32 %v7451_v58, %v7450_v41  ;;  %v7453_v61 = vpop.f32.mrb[34].mxu0 }
 0x526   :  { %v7454_v57 = vpop.f32.mrb[35].mxu0 }
 0x527   :  { %v5956_v3 = vadd.f32 %v7452_v40, %v14308_v51  ;;  %v7455_v25 = vadd.f32 %v7454_v57, %v7453_v61 }
 0x529   :  { %v5959_v22 = vadd.f32 %v7455_v25, %v14310_v37 }
 0x52b   :  { %v7456_v53 = vpop.f32.mrb[36].mxu0  ;;  %v7514_v10 = vpop.f32.mrb[32].mxu1 }
 0x52c   :  { %v7457_v38 = vpop.f32.mrb[37].mxu0  ;;  %v7515_v6 = vpop.f32.mrb[33].mxu1 }
 0x52d   :  { %v7458_v62 = vadd.f32 %v7457_v38, %v7456_v53  ;;  %v7516_v14 = vadd.f32 %v7515_v6, %v7514_v10  ;;  %v7459_v47 = vpop.f32.mrb[38].mxu0  ;;  %v7517_v55 = vpop.f32.mrb[34].mxu1 }
 0x52e   :  { %v7460_v50 = vpop.f32.mrb[39].mxu0  ;;  %v7518_v42 = vpop.f32.mrb[35].mxu1 }
 0x52f   :  { %v5964_v29 = vadd.f32 %v7458_v62, %v14324_v26  ;;  %v6053_v34 = vadd.f32 %v7516_v14, %v5956_v3  ;;  %v7461_v54 = vadd.f32 %v7460_v50, %v7459_v47  ;;  %v7519_v8 = vadd.f32 %v7518_v42, %v7517_v55 }
 0x531   :  { %v5967_v51 = vadd.f32 %v7461_v54, %v14326_v35  ;;  %v6056_v0 = vadd.f32 %v7519_v8, %v5959_v22  ;;  %v6115_v24 = vmax.f32 %v6053_v34, 0.0 }
 0x533   :  { %v6116_v37 = vmax.f32 %v6056_v0, 0.0  ;;  %v7462_v52 = vpop.f32.mrb[40].mxu0  ;;  %v7520_v60 = vpop.f32.mrb[36].mxu1 }
 0x534   :  { %v7463_v27 = vpop.f32.mrb[41].mxu0  ;;  %v7521_v30 = vpop.f32.mrb[37].mxu1 }
 0x535   :  { %v7464_v9 = vadd.f32 %v7463_v27, %v7462_v52  ;;  %v7522_v63 = vadd.f32 %v7521_v30, %v7520_v60  ;;  %v7465_v56 = vpop.f32.mrb[42].mxu0  ;;  %v7523_v23 = vpop.f32.mrb[38].mxu1  ;;  %v6147_v59 = vpack.c.bf16 %v6116_v37, %v6115_v24 }
 0x536   :  { %v7466_v13 = vpop.f32.mrb[43].mxu0  ;;  %v7524_v2 = vpop.f32.mrb[39].mxu1 }
 0x537   :  { %v5972_v26 = vadd.f32 %v7464_v9, %v14334_v4  ;;  %v6061_v16 = vadd.f32 %v7522_v63, %v5964_v29  ;;  %v7467_v49 = vadd.f32 %v7466_v13, %v7465_v56  ;;  %v7525_v12 = vadd.f32 %v7524_v2, %v7523_v23  ;;  %7594 = vmatprep.subr.bf16.mxu0 %v6147_v59 }
 0x538   :  { %7595 = vmatpush3.bf16.msra.mxu0 %v6147_v59 }
 0x539   :  { %v5975_v35 = vadd.f32 %v7467_v49, %v14336_v46  ;;  %v6064_v43 = vadd.f32 %v7525_v12, %v5967_v51  ;;  %v6117_v44 = vmax.f32 %v6061_v16, 0.0 }
 0x53b   :  { %v6118_v21 = vmax.f32 %v6064_v43, 0.0  ;;  %v7468_v20 = vpop.f32.mrb[44].mxu0  ;;  %v7526_v39 = vpop.f32.mrb[40].mxu1 }
 0x53c   :  { %v7469_v31 = vpop.f32.mrb[45].mxu0  ;;  %v7527_v48 = vpop.f32.mrb[41].mxu1 }
 0x53d   :  { %v7470_v17 = vadd.f32 %v7469_v31, %v7468_v20  ;;  %v7528_v45 = vadd.f32 %v7527_v48, %v7526_v39  ;;  %v7471_v1 = vpop.f32.mrb[46].mxu0  ;;  %v7529_v41 = vpop.f32.mrb[42].mxu1  ;;  %v6148_v58 = vpack.c.bf16 %v6118_v21, %v6117_v44 }
 0x53e   :  { %v7472_v4 = vpop.f32.mrb[47].mxu0  ;;  %v7530_v40 = vpop.f32.mrb[43].mxu1 }
 0x53f   :  { %v5980_v61 = vadd.f32 %v7470_v17, %v14338_v18  ;;  %v6069_v57 = vadd.f32 %v7528_v45, %v5972_v26  ;;  %v7473_v3 = vadd.f32 %v7472_v4, %v7471_v1  ;;  %v7531_v25 = vadd.f32 %v7530_v40, %v7529_v41  ;;  %7596 = vmatprep.subr.bf16.mxu0 %v6148_v58 }
 0x540   :  { %7597 = vmatpush3.bf16.msra.mxu0 %v6148_v58 }
 0x541   :  { %v5983_v46 = vadd.f32 %v7473_v3, %v14340_v32  ;;  %v6072_v22 = vadd.f32 %v7531_v25, %v5975_v35  ;;  %v6119_v53 = vmax.f32 %v6069_v57, 0.0 }
 0x543   :  { %v6120_v10 = vmax.f32 %v6072_v22, 0.0  ;;  %v7474_v38 = vpop.f32.mrb[48].mxu0  ;;  %v7532_v6 = vpop.f32.mrb[44].mxu1 }
 0x544   :  { %v7475_v62 = vpop.f32.mrb[49].mxu0  ;;  %v7533_v14 = vpop.f32.mrb[45].mxu1 }
 0x545   :  { %v7476_v47 = vadd.f32 %v7475_v62, %v7474_v38  ;;  %v7534_v55 = vadd.f32 %v7533_v14, %v7532_v6  ;;  %v7477_v50 = vpop.f32.mrb[50].mxu0  ;;  %v7535_v42 = vpop.f32.mrb[46].mxu1  ;;  %v6149_v29 = vpack.c.bf16 %v6120_v10, %v6119_v53 }
 0x546   :  { %v7478_v18 = vpop.f32.mrb[51].mxu0  ;;  %v7536_v34 = vpop.f32.mrb[47].mxu1 }
 0x547   :  { %v5988_v54 = vadd.f32 %v7476_v47, %v14342_v36  ;;  %v6077_v8 = vadd.f32 %v7534_v55, %v5980_v61  ;;  %v7479_v51 = vadd.f32 %v7478_v18, %v7477_v50  ;;  %v7537_v0 = vadd.f32 %v7536_v34, %v7535_v42  ;;  %7598 = vmatprep.subr.bf16.mxu0 %v6149_v29 }
 0x548   :  { %7599 = vmatpush3.bf16.msra.mxu0 %v6149_v29 }
 0x549   :  { %v5991_v32 = vadd.f32 %v7479_v51, %v14344_v11  ;;  %v6080_v24 = vadd.f32 %v7537_v0, %v5983_v46  ;;  %v6121_v37 = vmax.f32 %v6077_v8, 0.0 }
 0x54b   :  { %v6122_v52 = vmax.f32 %v6080_v24, 0.0  ;;  %v7480_v60 = vpop.f32.mrb[52].mxu0  ;;  %v7538_v27 = vpop.f32.mrb[48].mxu1 }
 0x54c   :  { %v7481_v30 = vpop.f32.mrb[53].mxu0  ;;  %v7539_v9 = vpop.f32.mrb[49].mxu1 }
 0x54d   :  { %v7482_v63 = vadd.f32 %v7481_v30, %v7480_v60  ;;  %v7540_v56 = vadd.f32 %v7539_v9, %v7538_v27  ;;  %v7483_v23 = vpop.f32.mrb[54].mxu0  ;;  %v7541_v59 = vpop.f32.mrb[50].mxu1  ;;  %v6150_v13 = vpack.c.bf16 %v6122_v52, %v6121_v37 }
 0x54e   :  { %v7484_v36 = vpop.f32.mrb[55].mxu0  ;;  %v7542_v2 = vpop.f32.mrb[51].mxu1 }
 0x54f   :  { %v5996_v26 = vadd.f32 %v7482_v63, %v14346_v28  ;;  %v6085_v16 = vadd.f32 %v7540_v56, %v5988_v54  ;;  %v7485_v49 = vadd.f32 %v7484_v36, %v7483_v23  ;;  %v7543_v12 = vadd.f32 %v7542_v2, %v7541_v59  ;;  %7600 = vmatprep.subr.bf16.mxu0 %v6150_v13  ;;  %v9323_v23 = vld [vmem:[%s14445_s5 + $0x10] sm:$0xff]   ;;  %v9324_v59 = vld [vmem:[%s14445_s5 + $0x18] sm:$0xff]   ;;  %v9326_v36 = vld [vmem:[%s14445_s5 + $0x28] sm:$0xff]  }
 0x550   :  { %7601 = vmatpush3.bf16.msra.mxu0 %v6150_v13  ;;  %v9325_v13 = vld [vmem:[%s14445_s5 + $0x20] sm:$0xff]   ;;  %v9327_v2 = vld [vmem:[%s14445_s5 + $0x30] sm:$0xff]  }
 0x551   :  { %v5999_v11 = vadd.f32 %v7485_v49, %v14348_v19  ;;  %v6088_v35 = vadd.f32 %v7543_v12, %v5991_v32  ;;  %v6123_v43 = vmax.f32 %v6085_v16, 0.0  ;;  %v9329_v16 = vld [vmem:[%s14447_s7] sm:$0xff]   ;;  %v6174_v49 = vpop.permute.xlu1 %6173  ;;  %v6179_v12 = vpop.permute.xlu0 %6178 }
 0x552   :  { %7642 = vmatprep.mubr.bf16.mxu1 %v9329_v16 }
 0x553   :  { %v6124_v44 = vmax.f32 %v6088_v35, 0.0  ;;  %v7486_v21 = vpop.f32.mrb[56].mxu0  ;;  %v7544_v20 = vpop.f32.mrb[52].mxu1 }
 0x554   :  { %v7487_v39 = vpop.f32.mrb[57].mxu0  ;;  %v7545_v31 = vpop.f32.mrb[53].mxu1 }
 0x555   :  { %v7488_v48 = vadd.f32 %v7487_v39, %v7486_v21  ;;  %v7546_v17 = vadd.f32 %v7545_v31, %v7544_v20  ;;  %v7489_v45 = vpop.f32.mrb[58].mxu0  ;;  %v7547_v1 = vpop.f32.mrb[54].mxu1  ;;  %v6151_v41 = vpack.c.bf16 %v6124_v44, %v6123_v43 }
 0x556   :  { %v7490_v28 = vpop.f32.mrb[59].mxu0  ;;  %v7548_v58 = vpop.f32.mrb[55].mxu1 }
 0x557   :  { %v6004_v4 = vadd.f32 %v7488_v48, %v14350_v7  ;;  %v6093_v40 = vadd.f32 %v7546_v17, %v5996_v26  ;;  %v7491_v61 = vadd.f32 %v7490_v28, %v7489_v45  ;;  %v7549_v57 = vadd.f32 %v7548_v58, %v7547_v1  ;;  %7602 = vmatprep.subr.bf16.mxu0 %v6151_v41  ;;  %v9328_v26 = vld [vmem:[%s14445_s5 + $0x38] sm:$0xff]   ;;  %v6189_v35 = vpop.permute.xlu0 %6188 }
 0x558   :  { %7603 = vmatpush3.bf16.msra.mxu0 %v6151_v41 }
 0x559   :  { %v6007_v19 = vadd.f32 %v7491_v61, %v14352_v33  ;;  %v6096_v3 = vadd.f32 %v7549_v57, %v5999_v11  ;;  %v6125_v25 = vmax.f32 %v6093_v40, 0.0  ;;  %v6184_v11 = vpop.permute.xlu1 %6183 }
 0x55b   :  { %v6126_v46 = vmax.f32 %v6096_v3, 0.0  ;;  %v7492_v22 = vpop.f32.mrb[60].mxu0  ;;  %v7550_v53 = vpop.f32.mrb[56].mxu1 }
 0x55c   :  { %v7493_v10 = vpop.f32.mrb[61].mxu0  ;;  %v7551_v38 = vpop.f32.mrb[57].mxu1 }
 0x55d   :  { %v7494_v6 = vadd.f32 %v7493_v10, %v7492_v22  ;;  %v7552_v62 = vadd.f32 %v7551_v38, %v7550_v53  ;;  %v7495_v14 = vpop.f32.mrb[62].mxu0  ;;  %v7553_v47 = vpop.f32.mrb[58].mxu1  ;;  %v6152_v55 = vpack.c.bf16 %v6126_v46, %v6125_v25 }
 0x55e   :  { %v7496_v7 = vpop.f32.mrb[63].mxu0  ;;  %v7554_v50 = vpop.f32.mrb[59].mxu1 }
 0x55f   :  { %v6012_v42 = vadd.f32 %v7494_v6, %v14354_v5  ;;  %v6101_v29 = vadd.f32 %v7552_v62, %v6004_v4  ;;  %v7497_v18 = vadd.f32 %v7496_v7, %v7495_v14  ;;  %v7555_v34 = vadd.f32 %v7554_v50, %v7553_v47  ;;  %7604 = vmatprep.subr.bf16.mxu0 %v6152_v55  ;;  %v6194_v43 = vpop.permute.xlu1 %6193  ;;  %v6199_v44 = vpop.permute.xlu0 %6198 }
 0x560   :  { %7605 = vmatpush3.bf16.msra.mxu0 %v6152_v55 }
 0x561   :  { %v6015_v33 = vadd.f32 %v7497_v18, %v14356_v15  ;;  %v6104_v54 = vadd.f32 %v7555_v34, %v6007_v19  ;;  %v6127_v8 = vmax.f32 %v6101_v29, 0.0  ;;  %v9322_v15 = vld [vmem:[%s14445_s5 + $0x8] sm:$0xff]  }
 0x563   :  { %v6128_v51 = vmax.f32 %v6104_v54, 0.0  ;;  %v7556_v0 = vpop.f32.mrb[60].mxu1  ;;  %v6204_v21 = vpop.permute.xlu1 %6203 }
 0x564   :  { %v7557_v32 = vpop.f32.mrb[61].mxu1  ;;  %v6209_v48 = vpop.permute.xlu0 %6208 }
 0x565   :  { %v7558_v24 = vadd.f32 %v7557_v32, %v7556_v0  ;;  %v7559_v37 = vpop.f32.mrb[62].mxu1  ;;  %v6153_v52 = vpack.c.bf16 %v6128_v51, %v6127_v8 }
 0x566   :  { %v7560_v60 = vpop.f32.mrb[63].mxu1 }
 0x567   :  { %v6109_v27 = vadd.f32 %v7558_v24, %v6012_v42  ;;  %v7561_v30 = vadd.f32 %v7560_v60, %v7559_v37  ;;  %7606 = vmatprep.subr.bf16.mxu0 %v6153_v52  ;;  %v6214_v40 = vpop.permute.xlu1 %6213 }
 0x568   :  { %7607 = vmatpush3.bf16.msra.mxu0 %v6153_v52  ;;  %v6219_v3 = vpop.permute.xlu0 %6218 }
 0x569   :  { %v6112_v5 = vadd.f32 %v7561_v30, %v6015_v33  ;;  %v6129_v9 = vmax.f32 %v6109_v27, 0.0 }
 0x56b   :  { %v6130_v63 = vmax.f32 %v6112_v5, 0.0  ;;  %v6224_v14 = vpop.permute.xlu1 %6223 }
 0x56c   :  { %v6229_v50 = vpop.permute.xlu0 %6228 }
 0x56d   :  { %v6154_v56 = vpack.c.bf16 %v6130_v63, %v6129_v9 }
 0x56f   :  { %7608 = vmatprep.subr.bf16.mxu0 %v6154_v56  ;;  %v6234_v51 = vpop.permute.xlu1 %6233 }
 0x570   :  { %7609 = vmatpush3.bf16.msra.mxu0 %v6154_v56  ;;  %v6239_v52 = vpop.permute.xlu0 %6238 }
 0x573   :  { %7611 = vmatmul.mubr.bf16.vlgmr.msra.gmra.mrb[64].mxu0 %v9322_v15  ;;  %v6244_v56 = vpop.permute.xlu1 %6243 }
 0x574   :  { %7614 = vmatprep.mubr.bf16.mxu0 %v9323_v23 }
 0x57b   :  { %7615 = vmatmul.mubr.bf16.gmra.mrb[68].mxu0 %v9324_v59 }
 0x57c   :  { %7618 = vmatprep.mubr.bf16.mxu0 %v9325_v13 }
 0x583   :  { %7619 = vmatmul.mubr.bf16.gmra.mrb[72].mxu0 %v9326_v36  ;;  %v6249_v36 = vpop.permute.xlu0 %6248 }
 0x584   :  { %7622 = vmatprep.mubr.bf16.mxu0 %v9327_v2 }
 0x58b   :  { %7623 = vmatmul.mubr.bf16.gmra.mrb[76].mxu0 %v9328_v26 }
 0x646   :  { %v7612_v20 = vpop.f32.mrb[64].mxu0 }
 0x647   :  { %v6342_v39 = vadd.f32 %v7612_v20, %v6184_v11  ;;  %v6333_v31 = vpop.f32.mrb[65].mxu0 }
 0x648   :  { %v6334_v17 = vadd.f32 %v6333_v31, %v6174_v49  ;;  %v7613_v45 = vpop.f32.mrb[66].mxu0  ;;  %v9331_v31 = vld [vmem:[%s14447_s7 + $0x10] sm:$0xff]  }
 0x649   :  { %v6345_v1 = vadd.f32 %v7613_v45, %v6189_v35  ;;  %v6336_v41 = vpop.f32.mrb[67].mxu0  ;;  %v6398_v58 = vmax.f32 %v6342_v39, 0.0  ;;  %v9330_v39 = vld [vmem:[%s14447_s7 + $0x8] sm:$0xff]  }
 0x64a   :  { %v6337_v28 = vadd.f32 %v6336_v41, %v6179_v12  ;;  %v6396_v61 = vmax.f32 %v6334_v17, 0.0  ;;  %v9333_v17 = vld [vmem:[%s14447_s7 + $0x20] sm:$0xff]   ;;  %v9334_v45 = vld [vmem:[%s14447_s7 + $0x28] sm:$0xff]   ;;  %v9336_v41 = vld [vmem:[%s14447_s7 + $0x38] sm:$0xff]  }
 0x64b   :  { %v6399_v4 = vmax.f32 %v6345_v1, 0.0  ;;  %v9335_v1 = vld [vmem:[%s14447_s7 + $0x30] sm:$0xff]  }
 0x64c   :  { %v6397_v57 = vmax.f32 %v6337_v28, 0.0  ;;  %v6455_v28 = vpop.permute.xlu1 %6454 }
 0x64d   :  { %v6429_v19 = vpack.c.bf16 %v6399_v4, %v6398_v58  ;;  %v6460_v58 = vpop.permute.xlu0 %6459 }
 0x64e   :  { %v6428_v25 = vpack.c.bf16 %v6397_v57, %v6396_v61  ;;  %v7616_v46 = vpop.f32.mrb[68].mxu0 }
 0x64f   :  { %v6358_v22 = vadd.f32 %v7616_v46, %v6204_v21  ;;  %v6349_v53 = vpop.f32.mrb[69].mxu0 }
 0x650   :  { %v6350_v10 = vadd.f32 %v6349_v53, %v6194_v43  ;;  %v7617_v38 = vpop.f32.mrb[70].mxu0  ;;  %7626 = vmatprep.subr.bf16.mxu1 %v6428_v25  ;;  %v6465_v4 = vpop.permute.xlu1 %6464 }
 0x651   :  { %v6361_v6 = vadd.f32 %v7617_v38, %v6209_v48  ;;  %v6352_v62 = vpop.f32.mrb[71].mxu0  ;;  %7627 = vmatpush3.bf16.msra.mxu1 %v6428_v25  ;;  %v6402_v55 = vmax.f32 %v6358_v22, 0.0  ;;  %v9332_v48 = vld [vmem:[%s14447_s7 + $0x18] sm:$0xff]   ;;  %s9367_s7 = smov [#allocation3]  }
 0x652   :  { %v6353_v47 = vadd.f32 %v6352_v62, %v6199_v44  ;;  %7628 = vmatprep.subr.bf16.mxu1 %v6429_v19  ;;  %v6400_v42 = vmax.f32 %v6350_v10, 0.0  ;;  %s6860_s1 = sshll.u32 %s9367_s7, 4  ;;  %s6861_s1 = int_to_ptr.vmem [resolvable:$true] %s6860_s1 }
 0x653   :  { %v6403_v7 = vmax.f32 %v6361_v6, 0.0  ;;  %s9338_s26 = scalar_lea.vmem %s6861_s1, 16  ;;  %s9342_s27 = scalar_lea.vmem %s6861_s1, 32 }
 0x654   :  { %v6401_v29 = vmax.f32 %v6353_v47, 0.0  ;;  %v6475_v61 = vpop.permute.xlu1 %6474  ;;  %p9339_p0 = scmp.ne.s32.totalorder %s6861_s1, %s9338_s26  ;;  %p9343_p1 = scmp.lt.s32.totalorder %s6861_s1, %s6861_s1 }
 0x655   :  { %v6431_v18 = vpack.c.bf16 %v6403_v7, %v6402_v55  ;;  %7629 = vmatpush3.bf16.msra.mxu1 %v6429_v19  ;;  %p9344_p2 = scmp.lt.s32.totalorder %s9342_s27, %s9338_s26 }
 0x656   :  { %v6430_v34 = vpack.c.bf16 %v6401_v29, %v6400_v42  ;;  %v7620_v33 = vpop.f32.mrb[72].mxu0 }
 0x657   :  { %v6374_v54 = vadd.f32 %v7620_v33, %v6224_v14  ;;  %v6365_v8 = vpop.f32.mrb[73].mxu0  ;;  %p9345_p3 = por %p9344_p2, %p9343_p1 }
 0x658   :  { %v6366_v0 = vadd.f32 %v6365_v8, %v6214_v40  ;;  %v7621_v32 = vpop.f32.mrb[74].mxu0  ;;  %7630 = vmatprep.subr.bf16.mxu1 %v6430_v34  ;;  %v6470_v40 = vpop.permute.xlu0 %6469 }
 0x659   :  { %v6377_v24 = vadd.f32 %v7621_v32, %v6229_v50  ;;  %v6368_v37 = vpop.f32.mrb[75].mxu0  ;;  %7631 = vmatpush3.bf16.msra.mxu1 %v6430_v34  ;;  %v6406_v27 = vmax.f32 %v6374_v54, 0.0  ;;  %v9298_v19 = vpop.permute.xlu1 %9297  ;;  %p9346_p4 = pnand %p9345_p3, %p9339_p0 }
 0x65a   :  { %v6369_v60 = vadd.f32 %v6368_v37, %v6219_v3  ;;  %7632 = vmatprep.subr.bf16.mxu1 %v6431_v18  ;;  %v6404_v5 = vmax.f32 %v6366_v0, 0.0  ;;  %v9299_v32 = vunpack.i.l.bf16 %v9298_v19 }
 0x65b   :  { %v6407_v30 = vmax.f32 %v6377_v24, 0.0 }
 0x65c   :  { %v6405_v9 = vmax.f32 %v6369_v60, 0.0  ;;  %v9293_v57 = vpop.permute.xlu0 %9292  ;;  %v9300_v60 = vunpack.i.h.bf16 %v9298_v19 }
 0x65d   :  { %v6433_v63 = vpack.c.bf16 %v6407_v30, %v6406_v27  ;;  %7633 = vmatpush3.bf16.msra.mxu1 %v6431_v18  ;;  %v6485_v25 = vpop.permute.xlu1 %6484  ;;  %v9295_v33 = vunpack.i.h.bf16 %v9293_v57  ;;  %v9294_v54 = vunpack.i.l.bf16 %v9293_v57 }
 0x65e   :  { %v6432_v15 = vpack.c.bf16 %v6405_v9, %v6404_v5  ;;  %v7624_v23 = vpop.f32.mrb[76].mxu0 }
 0x65f   :  { %v6390_v59 = vadd.f32 %v7624_v23, %v6244_v56  ;;  %v6381_v13 = vpop.f32.mrb[77].mxu0 }
 0x660   :  { %v6382_v2 = vadd.f32 %v6381_v13, %v6234_v51  ;;  %v7625_v26 = vpop.f32.mrb[78].mxu0  ;;  %7634 = vmatprep.subr.bf16.mxu1 %v6432_v15  ;;  %v6480_v3 = vpop.permute.xlu0 %6479 }
 0x661   :  { %v6393_v16 = vadd.f32 %v7625_v26, %v6249_v36  ;;  %v6384_v49 = vpop.f32.mrb[79].mxu0  ;;  %7635 = vmatpush3.bf16.msra.mxu1 %v6432_v15  ;;  %v6410_v11 = vmax.f32 %v6390_v59, 0.0  ;;  %v6490_v22 = vpop.permute.xlu1 %6489 }
 0x662   :  { %v6385_v12 = vadd.f32 %v6384_v49, %v6239_v52  ;;  %7636 = vmatprep.subr.bf16.mxu1 %v6433_v63  ;;  %v6408_v43 = vmax.f32 %v6382_v2, 0.0 }
 0x663   :  { %v6411_v35 = vmax.f32 %v6393_v16, 0.0 }
 0x664   :  { %v6409_v44 = vmax.f32 %v6385_v12, 0.0  ;;  %v9303_v46 = vpop.permute.xlu0 %9302 }
 0x665   :  { %v6435_v21 = vpack.c.bf16 %v6411_v35, %v6410_v11  ;;  %7637 = vmatpush3.bf16.msra.mxu1 %v6433_v63  ;;  %v9308_v10 = vpop.permute.xlu1 %9307  ;;  %v9304_v23 = vunpack.i.l.bf16 %v9303_v46  ;;  %v9305_v12 = vunpack.i.h.bf16 %v9303_v46 }
 0x666   :  { %v6434_v20 = vpack.c.bf16 %v6409_v44, %v6408_v43 }
 0x668   :  { %7638 = vmatprep.subr.bf16.mxu1 %v6434_v20  ;;  %v6495_v53 = vpop.permute.xlu0 %6494 }
 0x669   :  { %7639 = vmatpush3.bf16.msra.mxu1 %v6434_v20  ;;  %v6505_v7 = vpop.permute.xlu1 %6504  ;;  %v9309_v20 = vunpack.i.l.bf16 %v9308_v10 }
 0x66a   :  { %7640 = vmatprep.subr.bf16.mxu1 %v6435_v21 }
 0x66c   :  { %v6500_v38 = vpop.permute.xlu0 %6499 }
 0x66d   :  { %7641 = vmatpush3.bf16.msra.mxu1 %v6435_v21  ;;  %v6510_v27 = vpop.permute.xlu1 %6509 }
 0x670   :  { %7643 = vmatmul.mubr.bf16.vlgmr.msra.gmra.mrb[64].mxu1 %v9330_v39  ;;  %v14422_v34 = vpop.permute.xlu0 %9312 }
 0x671   :  { %7646 = vmatprep.mubr.bf16.mxu1 %v9331_v31  ;;  %v9318_v21 = vpop.permute.xlu1 %9317  ;;  %v9314_v57 = vunpack.i.l.bf16 %v14422_v34 }
 0x674   :  { %v6515_v59 = vpop.permute.xlu0 %6514 }
 0x678   :  { %7647 = vmatmul.mubr.bf16.gmra.mrb[68].mxu1 %v9332_v48 }
 0x679   :  { %7650 = vmatprep.mubr.bf16.mxu1 %v9333_v17 }
 0x680   :  { %7651 = vmatmul.mubr.bf16.gmra.mrb[72].mxu1 %v9334_v45  ;;  %v6520_v45 = vpop.permute.xlu0 %6519 }
 0x681   :  { %7654 = vmatprep.mubr.bf16.mxu1 %v9335_v1  ;;  %v9310_v1 = vunpack.i.h.bf16 %v9308_v10 }
 0x688   :  { %7655 = vmatmul.mubr.bf16.gmra.mrb[76].mxu1 %v9336_v41 }
 0x743   :  { %v7644_v6 = vpop.f32.mrb[64].mxu1 }
 0x744   :  { %v6614_v62 = vpop.f32.mrb[65].mxu1  ;;  %v6623_v14 = vadd.f32 %v7644_v6, %v6465_v4 }
 0x745   :  { %v6615_v47 = vadd.f32 %v6614_v62, %v6455_v28  ;;  %v7645_v55 = vpop.f32.mrb[66].mxu1  ;;  %v9315_v62 = vunpack.i.h.bf16 %v14422_v34 }
 0x746   :  { %v6626_v50 = vadd.f32 %v7645_v55, %v6470_v40  ;;  %v6617_v42 = vpop.f32.mrb[67].mxu1  ;;  %v6679_v8 = vmax.f32 %v6623_v14, 0.0  ;;  %v6525_v14 = vpop.permute.xlu1 %6524 }
 0x747   :  { %v6677_v29 = vmax.f32 %v6615_v47, 0.0  ;;  %v6618_v18 = vadd.f32 %v6617_v42, %v6460_v58  ;;  %v6788_v42 = vpop.permute.xlu0 %6787 }
 0x748   :  { %v6680_v0 = vmax.f32 %v6626_v50, 0.0  ;;  %v6807_v5 = vmul.f32 %v9299_v32, %v6679_v8 }
 0x749   :  { %v6678_v51 = vmax.f32 %v6618_v18, 0.0  ;;  %v6805_v24 = vmul.f32 %v9294_v54, %v6677_v29  ;;  %v9320_v54 = vunpack.i.h.bf16 %v9318_v21 }
 0x74a   :  { %v6808_v13 = vmul.f32 %v9300_v60, %v6680_v0 }
 0x74b   :  { %v6806_v37 = vmul.f32 %v9295_v33, %v6678_v51  ;;  %v7648_v52 = vpop.f32.mrb[68].mxu1 }
 0x74c   :  { %v6630_v30 = vpop.f32.mrb[69].mxu1  ;;  %v6639_v63 = vadd.f32 %v7648_v52, %v6485_v25 }
 0x74d   :  { %v6821_v9 = vadd.f32 %v6806_v37, %v6805_v24  ;;  %v6631_v56 = vadd.f32 %v6630_v30, %v6475_v61  ;;  %v7649_v15 = vpop.f32.mrb[70].mxu1  ;;  %v6530_v37 = vpop.permute.xlu1 %6529 }
 0x74e   :  { %v6633_v36 = vpop.f32.mrb[71].mxu1  ;;  %v6642_v16 = vadd.f32 %v7649_v15, %v6490_v22  ;;  %v6683_v11 = vmax.f32 %v6639_v63, 0.0 }
 0x74f   :  { %v6822_v2 = vadd.f32 %v6821_v9, %v6807_v5  ;;  %v6681_v26 = vmax.f32 %v6631_v56, 0.0  ;;  %v6634_v49 = vadd.f32 %v6633_v36, %v6480_v3  ;;  %v6793_v9 = vpop.permute.xlu0 %6792 }
 0x750   :  { %v6684_v31 = vmax.f32 %v6642_v16, 0.0  ;;  %v6811_v28 = vmul.f32 %v9309_v20, %v6683_v11 }
 0x751   :  { %v6809_v35 = vmul.f32 %v9304_v23, %v6681_v26  ;;  %v6823_v43 = vadd.f32 %v6822_v2, %v6808_v13  ;;  %v6682_v44 = vmax.f32 %v6634_v49, 0.0  ;;  %v6798_v26 = vpop.permute.xlu1 %6797 }
 0x752   :  { %v6812_v25 = vmul.f32 %v9310_v1, %v6684_v31 }
 0x753   :  { %v6824_v39 = vadd.f32 %v6823_v43, %v6809_v35  ;;  %v6810_v48 = vmul.f32 %v9305_v12, %v6682_v44  ;;  %v7652_v17 = vpop.f32.mrb[72].mxu1 }
 0x754   :  { %v6646_v41 = vpop.f32.mrb[73].mxu1  ;;  %v6655_v4 = vadd.f32 %v7652_v17, %v6505_v7  ;;  %v9319_v7 = vunpack.i.l.bf16 %v9318_v21 }
 0x755   :  { %v6825_v58 = vadd.f32 %v6824_v39, %v6810_v48  ;;  %v6647_v40 = vadd.f32 %v6646_v41, %v6495_v53  ;;  %v7653_v61 = vpop.f32.mrb[74].mxu1  ;;  %v6846_v39 = vpop.permute.xlu1 %6845  ;;  %v16146_v48 = vld [vmem:[#allocation222_spill] sm:$0xff] }
 0x756   :  { %v6658_v19 = vadd.f32 %v7653_v61, %v6510_v27  ;;  %v6649_v3 = vpop.f32.mrb[75].mxu1  ;;  %v6687_v47 = vmax.f32 %v6655_v4, 0.0  ;;  %v16147_v17 = vsub.s32 0, %v16146_v48 }
 0x757   :  { %v6826_v46 = vadd.f32 %v6825_v58, %v6811_v28  ;;  %v6685_v22 = vmax.f32 %v6647_v40, 0.0  ;;  %v6650_v6 = vadd.f32 %v6649_v3, %v6500_v38 }
 0x758   :  { %v6688_v29 = vmax.f32 %v6658_v19, 0.0  ;;  %v6815_v51 = vmul.f32 %v9319_v7, %v6687_v47 }
 0x759   :  { %v6813_v55 = vmul.f32 %v9314_v57, %v6685_v22  ;;  %v6827_v10 = vadd.f32 %v6826_v46, %v6812_v25  ;;  %v6686_v50 = vmax.f32 %v6650_v6, 0.0 }
 0x75a   :  { %v6816_v34 = vmul.f32 %v9320_v54, %v6688_v29 }
 0x75b   :  { %v6828_v53 = vadd.f32 %v6827_v10, %v6813_v55  ;;  %v6814_v18 = vmul.f32 %v9315_v62, %v6686_v50  ;;  %v7656_v33 = vpop.f32.mrb[76].mxu1 }
 0x75c   :  { %v6662_v8 = vpop.f32.mrb[77].mxu1  ;;  %v6671_v32 = vadd.f32 %v7656_v33, %v6525_v14 }
 0x75d   :  { %v6829_v0 = vadd.f32 %v6828_v53, %v6814_v18  ;;  %v6663_v24 = vadd.f32 %v6662_v8, %v6515_v59  ;;  %v7657_v38 = vpop.f32.mrb[78].mxu1  ;;  %v6803_v59 = vpop.permute.xlu0 %6802 }
 0x75e   :  { %v6665_v52 = vpop.f32.mrb[79].mxu1  ;;  %v6674_v30 = vadd.f32 %v7657_v38, %v6530_v37  ;;  %v6691_v63 = vmax.f32 %v6671_v32, 0.0 }
 0x75f   :  { %v6830_v60 = vadd.f32 %v6829_v0, %v6815_v51  ;;  %v6689_v27 = vmax.f32 %v6663_v24, 0.0  ;;  %v6666_v5 = vadd.f32 %v6665_v52, %v6520_v45  ;;  %v6851_v45 = vrot.slane %v6846_v39, %v16147_v17 }
 0x760   :  { %v6692_v36 = vmax.f32 %v6674_v30, 0.0  ;;  %v6819_v16 = vmul.f32 %v6798_v26, %v6691_v63 }
 0x761   :  { %v6817_v56 = vmul.f32 %v6788_v42, %v6689_v27  ;;  %v6831_v15 = vadd.f32 %v6830_v60, %v6816_v34  ;;  %v6690_v23 = vmax.f32 %v6666_v5, 0.0 }
 0x762   :  { %v6820_v12 = vmul.f32 %v6803_v59, %v6692_v36 }
 0x763   :  { %v6832_v13 = vadd.f32 %v6831_v15, %v6817_v56  ;;  %v6818_v2 = vmul.f32 %v6793_v9, %v6690_v23 }
 0x765   :  { %v6833_v49 = vadd.f32 %v6832_v13, %v6818_v2 }
 0x767   :  { %v6834_v11 = vadd.f32 %v6833_v49, %v6819_v16 }
 0x769   :  { %v6835_v35 = vadd.f32 %v6834_v11, %v6820_v12 }
 0x76b   :  { %v6836_v43 = vrot.slane %v6835_v35, 4 }
 0x76d   :  { %v6837_v44 = vadd.f32 %v6836_v43, %v6835_v35 }
 0x76f   :  { %v6838_v21 = vrot.slane %v6837_v44, 2 }
 0x771   :  { %v6839_v20 = vadd.f32 %v6838_v21, %v6837_v44 }
 0x773   :  { %v6840_v31 = vrot.slane %v6839_v20, 1 }
 0x775   :  { %v6841_v1 = vadd.f32 %v6840_v31, %v6839_v20 }
 0x777   :  { %v6852_v41 = vadd.f32 %v6851_v45, %v6841_v1 }
 0x779   :  { %6853 = vst [vmem:[#allocation3] sm:$0x1] %v6852_v41 }
 0x77a   :  { %9349 = shalt.err (!%p9346_p4)
}
 0x77b   :  { %s9350_s30 = scalar_lea.hbm %s14451_s11, 16 }
 0x77c   :  { %p9351_p5 = scmp.ne.s32.totalorder %s14451_s11, %s9350_s30  ;;  %p9354_p6 = scmp.lt.u32.totalorder %s9350_s30, %s14451_s11 }
 0x77e   :  { %p9356_p7 = pnand %p9354_p6, %p9351_p5 }
 0x780   :  { %9359 = shalt.err (!%p9356_p7)
}
 0x781   :  { %6863 = dma.vmem_to_hbm [thread:$0]  %s6861_s1, 16, %s14451_s11, [#allocation4]  }
 0x782   :  { %9360 = dma.done.wait [#allocation4], 16  }
 0x783   :  { %9361 = vsyncadd [#allocation4], 4294967280 }
 0x784   :  { %6867 = vsyncpa [#allocation4], 1 }

</bundles_post_ra>
